<compile_context>
chip_gen: v7x
topology: tpu7x:2x2x1
jax: 0.10.0
libtpu: 0.0.40
codegen_flags: <defaults>
</compile_context>

<pallas_src>
import jax
import jax.numpy as jnp
from jax.experimental import pallas as pl
from jax.experimental.pallas import tpu as pltpu


def transform_net_kernel(x_ref,
                         w1_ref, b1_ref, w2_ref, b2_ref, w3_ref, b3_ref,
                         w4_ref, b4_ref, w5_ref, b5_ref, wt_ref, bt_ref,
                         out_ref, acc_ref):
    p = pl.program_id(1)
    n_k = x_ref.shape[1]
    bf16 = jnp.bfloat16

    # ---- init per-batch global-max accumulator at the first point tile ----
    @pl.when(p == 0)
    def _init():
        acc_ref[...] = jnp.full(acc_ref.shape, -jnp.inf, acc_ref.dtype)

    def shift_lrelu(h, b_ref, slope=0.2):
        """Folded-BN shift (scale already in the weights) + LeakyReLU, f32."""
        h = h + b_ref[...]
        return jnp.where(h >= 0, h, slope * h)

    # ---- conv1 + conv2 per neighbor, running max over K ----
    # x_ref block: (1, K, 6, TILE_P) bf16 -> channels on sublanes, points on lanes.
    m12 = None
    for k in range(n_k):                                           # static unroll
        xk = x_ref[0, k]                                           # (6, TILE_P) bf16
        h = jnp.dot(w1_ref[...], xk, preferred_element_type=jnp.float32)
        h = shift_lrelu(h, b1_ref)                                 # (64, TILE_P) f32
        h = jnp.dot(w2_ref[...], h.astype(bf16),
                    preferred_element_type=jnp.float32)
        h = shift_lrelu(h, b2_ref)                                 # (128, TILE_P) f32
        m12 = h if m12 is None else jnp.maximum(m12, h)

    # ---- conv3 (128 -> 1024) on the K-maxed features of this point tile ----
    h = jnp.dot(w3_ref[...], m12.astype(bf16),
                preferred_element_type=jnp.float32)
    h = shift_lrelu(h, b3_ref)                                     # (1024, TILE_P) f32

    # ---- fold tile-local max over points into the per-batch global max ----
    acc_ref[...] = jnp.maximum(acc_ref[...], jnp.max(h, axis=1, keepdims=True))

    # ---- FC head: run exactly once per batch, after the global max ----
    @pl.when(p == pl.num_programs(1) - 1)
    def _finalize():
        g = acc_ref[...].astype(bf16)                              # (1024, 1)
        f = jnp.dot(w4_ref[...], g, preferred_element_type=jnp.float32)
        f = shift_lrelu(f, b4_ref)                                 # (512, 1)
        f = jnp.dot(w5_ref[...], f.astype(bf16),
                    preferred_element_type=jnp.float32)
        f = shift_lrelu(f, b5_ref)                                 # (256, 1)
        out = (jnp.dot(wt_ref[...], f.astype(bf16),
                       preferred_element_type=jnp.float32) + bt_ref[...])  # (9, 1)
        out_ref[...] = out.reshape(1, 9, 1)


def _pick_point_tile(n, max_tile=1024):
    """Largest point tile that divides N and is a multiple of 128 (lane dim), or N."""
    if n <= max_tile:
        return n
    t = (max_tile // 128) * 128
    while t >= 128:
        if n % t == 0:
            return t
        t -= 128
    return n   # fallback: single full-width tile (block dim == full array dim)


def _prepare_operands(params):
    """Transpose weights to (Cout, Cin), fold BN scale, shifts as (Cout, 1) f32."""
    bf16 = jnp.bfloat16
    ops = []
    for wname, sname, bname in (("w1", "s1", "b1"), ("w2", "s2", "b2"),
                                ("w3", "s3", "b3"), ("w4", "s4", "b4"),
                                ("w5", "s5", "b5")):
        wt = (params[sname].T * params[wname].T).astype(bf16)   # (Cout, Cin) bf16
        sh = params[bname].T.astype(jnp.float32)                # (Cout, 1)  f32
        ops += [wt, sh]
    ops += [params["wt"].T.astype(bf16), params["bt"].T.astype(jnp.float32)]
    return ops


def transform_net_forward(x, params, *, tile_p=None):
    """x: (B, 6, N, K) float32, NCHW like the PyTorch module. Returns (B, 3, 3)."""
    B, C, N, K = x.shape
    assert C == 6
    if tile_p is None:
        tile_p = _pick_point_tile(N)
    assert N % tile_p == 0 and (tile_p == N or tile_p % 128 == 0)
    n_tiles = N // tile_p

    # (B, 6, N, K) -> (B, K, 6, N): points on the lane axis -> dense DMA rows.
    xr = jnp.transpose(x.astype(jnp.bfloat16), (0, 3, 1, 2))
    operands = _prepare_operands(params)

    def resident(arr):
        nd = arr.ndim
        return pl.BlockSpec(arr.shape, lambda b, p, _nd=nd: (0,) * _nd)

    x_spec = pl.BlockSpec((1, K, C, tile_p), lambda b, p: (b, 0, 0, p))
    out_spec = pl.BlockSpec((1, 9, 1), lambda b, p: (b, 0, 0))

    out = pl.pallas_call(
        transform_net_kernel,
        out_shape=jax.ShapeDtypeStruct((B, 9, 1), jnp.float32),
        grid_spec=pltpu.PrefetchScalarGridSpec(
            num_scalar_prefetch=0,
            grid=(B, n_tiles),
            in_specs=[x_spec] + [resident(a) for a in operands],
            out_specs=out_spec,
            scratch_shapes=[pltpu.VMEM((1024, 1), jnp.float32)],
        ),
        compiler_params=pltpu.CompilerParams(
            dimension_semantics=("parallel", "arbitrary"),
            vmem_limit_bytes=32 * 1024 * 1024,
        ),
    )(xr, *operands)
    return out.reshape(B, 3, 3)


def init_params(key):
    ks = jax.random.split(key, 11)

    def conv_w(k, cin, cout):
        bound = 1.0 / (cin ** 0.5)
        return jax.random.uniform(k, (cin, cout), jnp.float32, -bound, bound)

    def bn_fold(k, c, eps=1e-5):
        kg, kb, km, kv = jax.random.split(k, 4)
        gamma = 1.0 + 0.1 * jax.random.normal(kg, (c,), jnp.float32)
        beta = 0.1 * jax.random.normal(kb, (c,), jnp.float32)
        mean = 0.1 * jax.random.normal(km, (c,), jnp.float32)
        var = 0.5 + jnp.abs(jax.random.normal(kv, (c,), jnp.float32))
        scale = gamma / jnp.sqrt(var + eps)
        shift = beta - mean * scale
        return scale.reshape(1, c), shift.reshape(1, c)

    p = {}
    p["w1"] = conv_w(ks[0], 6, 64)
    p["s1"], p["b1"] = bn_fold(ks[1], 64)
    p["w2"] = conv_w(ks[2], 64, 128)
    p["s2"], p["b2"] = bn_fold(ks[3], 128)
    p["w3"] = conv_w(ks[4], 128, 1024)
    p["s3"], p["b3"] = bn_fold(ks[5], 1024)
    p["w4"] = conv_w(ks[6], 1024, 512)
    p["s4"], p["b4"] = bn_fold(ks[7], 512)
    p["w5"] = conv_w(ks[8], 512, 256)
    p["s5"], p["b5"] = bn_fold(ks[9], 256)
    # The module's __init__ sets transform.weight = 0 and bias = eye(3); we use a
    # small random weight so the correctness check exercises the full network.
    p["wt"] = conv_w(ks[10], 256, 9)
    p["bt"] = jnp.eye(3, dtype=jnp.float32).reshape(1, 9)
    return p


def reference_forward(x, p):
    """Pure-JAX reference with the same folded params / mixed precision."""
    B, C, N, K = x.shape
    bf16 = jnp.bfloat16

    def fold(w, s):
        return (w * s).astype(bf16)

    def leaky(h):
        return jnp.where(h >= 0, h, 0.2 * h)

    h = jnp.transpose(x, (0, 2, 3, 1)).reshape(B * N * K, C).astype(bf16)
    h = leaky(jnp.dot(h, fold(p["w1"], p["s1"]),
                      preferred_element_type=jnp.float32) + p["b1"])
    h = leaky(jnp.dot(h.astype(bf16), fold(p["w2"], p["s2"]),
                      preferred_element_type=jnp.float32) + p["b2"])
    h = h.reshape(B * N, K, -1).max(axis=1)
    h = leaky(jnp.dot(h.astype(bf16), fold(p["w3"], p["s3"]),
                      preferred_element_type=jnp.float32) + p["b3"])
    h = h.reshape(B, N, -1).max(axis=1)
    h = leaky(jnp.dot(h.astype(bf16), fold(p["w4"], p["s4"]),
                      preferred_element_type=jnp.float32) + p["b4"])
    h = leaky(jnp.dot(h.astype(bf16), fold(p["w5"], p["s5"]),
                      preferred_element_type=jnp.float32) + p["b5"])
    out = jnp.dot(h.astype(bf16), p["wt"].astype(bf16),
                  preferred_element_type=jnp.float32) + p["bt"]
    return out.reshape(B, 3, 3)


if __name__ == "__main__":
    key = jax.random.PRNGKey(0)
    k_x, k_p = jax.random.split(key)

    B, N, K = 2, 256, 8                   # small: batch=2, 256 points, k=8 neighbors
    x = jax.random.normal(k_x, (B, 6, N, K), jnp.float32)
    params = init_params(k_p)

    # tile_p=128 -> 2 point tiles per batch, exercising the accumulator
    # init / fold / finalize path.
    out = transform_net_forward(x, params, tile_p=128)
    out = jax.block_until_ready(out)

    ref = reference_forward(x, params)
    assert out.shape == (B, 3, 3)
    max_diff = jnp.max(jnp.abs(out - ref))
    assert jnp.allclose(out, ref, atol=2e-2, rtol=2e-2), (
        "mismatch vs reference, max abs diff = %s" % max_diff)
    print("KERNEL_OK")
</pallas_src>

<mosaic_0001>
module attributes {stable_mosaic.version = 11 : i64} {
  func.func @transform_net_kernel(%arg0: i32, %arg1: i32, %arg2: memref<1x8x6x128xbf16, #tpu.memory_space<vmem>>, %arg3: memref<64x6xbf16, #tpu.memory_space<vmem>>, %arg4: memref<64x1xf32, #tpu.memory_space<vmem>>, %arg5: memref<128x64xbf16, #tpu.memory_space<vmem>>, %arg6: memref<128x1xf32, #tpu.memory_space<vmem>>, %arg7: memref<1024x128xbf16, #tpu.memory_space<vmem>>, %arg8: memref<1024x1xf32, #tpu.memory_space<vmem>>, %arg9: memref<512x1024xbf16, #tpu.memory_space<vmem>>, %arg10: memref<512x1xf32, #tpu.memory_space<vmem>>, %arg11: memref<256x512xbf16, #tpu.memory_space<vmem>>, %arg12: memref<256x1xf32, #tpu.memory_space<vmem>>, %arg13: memref<9x256xbf16, #tpu.memory_space<vmem>>, %arg14: memref<9x1xf32, #tpu.memory_space<vmem>>, %arg15: memref<1x9x1xf32, #tpu.memory_space<vmem>>, %arg16: memref<1024x1xf32, #tpu.memory_space<vmem>>) attributes {dimension_semantics = [#tpu.dimension_semantics<parallel>, #tpu.dimension_semantics<arbitrary>], iteration_bounds = array<i64: 2, 2>, scalar_prefetch = 0 : i64, scratch_operands = 1 : i64, tpu.core_type = #tpu.core_type<tc>, window_params = [{transform_indices = @transform_0, window_bounds = array<i64: 1, 8, 6, 128>}, {pipeline_mode = #tpu.pipeline_mode<synchronous>, transform_indices = @transform_1, window_bounds = array<i64: 64, 6>}, {pipeline_mode = #tpu.pipeline_mode<synchronous>, transform_indices = @transform_2, window_bounds = array<i64: 64, 1>}, {pipeline_mode = #tpu.pipeline_mode<synchronous>, transform_indices = @transform_3, window_bounds = array<i64: 128, 64>}, {pipeline_mode = #tpu.pipeline_mode<synchronous>, transform_indices = @transform_4, window_bounds = array<i64: 128, 1>}, {pipeline_mode = #tpu.pipeline_mode<synchronous>, transform_indices = @transform_5, window_bounds = array<i64: 1024, 128>}, {pipeline_mode = #tpu.pipeline_mode<synchronous>, transform_indices = @transform_6, window_bounds = array<i64: 1024, 1>}, {pipeline_mode = #tpu.pipeline_mode<synchronous>, transform_indices = @transform_7, window_bounds = array<i64: 512, 1024>}, {pipeline_mode = #tpu.pipeline_mode<synchronous>, transform_indices = @transform_8, window_bounds = array<i64: 512, 1>}, {pipeline_mode = #tpu.pipeline_mode<synchronous>, transform_indices = @transform_9, window_bounds = array<i64: 256, 512>}, {pipeline_mode = #tpu.pipeline_mode<synchronous>, transform_indices = @transform_10, window_bounds = array<i64: 256, 1>}, {pipeline_mode = #tpu.pipeline_mode<synchronous>, transform_indices = @transform_11, window_bounds = array<i64: 9, 256>}, {pipeline_mode = #tpu.pipeline_mode<synchronous>, transform_indices = @transform_12, window_bounds = array<i64: 9, 1>}, {transform_indices = @transform_13, window_bounds = array<i64: 1, 9, 1>}]} {
    %c0_i32 = arith.constant 0 : i32
    %0 = arith.cmpi eq, %arg1, %c0_i32 : i32
    %1 = arith.extui %0 : i1 to i32
    %c0_i32_0 = arith.constant 0 : i32
    %2 = arith.cmpi ne, %1, %c0_i32_0 : i32
    scf.if %2 {
      %cst_149 = arith.constant 0xFF800000 : f32
      %213 = vector.broadcast %cst_149 : f32 to vector<1024x1xf32>
      %c0_150 = arith.constant 0 : index
      %c0_151 = arith.constant 0 : index
      %214 = vector.load %arg16[%c0_150, %c0_151] : memref<1024x1xf32, #tpu.memory_space<vmem>>, vector<1024x1xf32>
      tpu.vector_store %arg16[%c0_150, %c0_151], %213 {strides = array<i32>} : memref<1024x1xf32, #tpu.memory_space<vmem>>, vector<1024x1xf32>,
    } else {
    }
    %c0 = arith.constant 0 : index
    %c0_1 = arith.constant 0 : index
    %c0_2 = arith.constant 0 : index
    %c0_3 = arith.constant 0 : index
    %3 = vector.load %arg2[%c0, %c0_1, %c0_2, %c0_3] : memref<1x8x6x128xbf16, #tpu.memory_space<vmem>>, vector<1x1x6x128xbf16>
    %4 = vector.shape_cast %3 : vector<1x1x6x128xbf16> to vector<6x128xbf16>
    %c0_4 = arith.constant 0 : index
    %c0_5 = arith.constant 0 : index
    %5 = vector.load %arg3[%c0_4, %c0_5] : memref<64x6xbf16, #tpu.memory_space<vmem>>, vector<64x6xbf16>
    %cst = arith.constant dense<0.000000e+00> : vector<64x128xf32>
    %6 = tpu.matmul %5, %4, %cst {dimension_numbers = #tpu.dot_dimension_numbers<[1], [0], [0], [1], [0, 0, 1, 1], [], []>} : vector<64x6xbf16>, vector<6x128xbf16>, vector<64x128xf32> -> vector<64x128xf32>
    %c0_6 = arith.constant 0 : index
    %c0_7 = arith.constant 0 : index
    %7 = vector.load %arg4[%c0_6, %c0_7] : memref<64x1xf32, #tpu.memory_space<vmem>>, vector<64x1xf32>
    %8 = vector.broadcast %7 : vector<64x1xf32> to vector<64x128xf32>
    %9 = arith.addf %6, %8 : vector<64x128xf32>
    %cst_8 = arith.constant 0.000000e+00 : f32
    %10 = vector.broadcast %cst_8 : f32 to vector<64x128xf32>
    %11 = arith.cmpf oge, %9, %10 : vector<64x128xf32>
    %cst_9 = arith.constant 2.000000e-01 : f32
    %12 = vector.broadcast %cst_9 : f32 to vector<64x128xf32>
    %13 = arith.mulf %12, %9 : vector<64x128xf32>
    %14 = arith.select %11, %9, %13 : vector<64x128xi1>, vector<64x128xf32>
    %c0_10 = arith.constant 0 : index
    %c0_11 = arith.constant 0 : index
    %15 = vector.load %arg5[%c0_10, %c0_11] : memref<128x64xbf16, #tpu.memory_space<vmem>>, vector<128x64xbf16>
    %16 = arith.truncf %14 : vector<64x128xf32> to vector<64x128xbf16>
    %cst_12 = arith.constant dense<0.000000e+00> : vector<128x128xf32>
    %17 = tpu.matmul %15, %16, %cst_12 {dimension_numbers = #tpu.dot_dimension_numbers<[1], [0], [0], [1], [0, 0, 1, 1], [], []>} : vector<128x64xbf16>, vector<64x128xbf16>, vector<128x128xf32> -> vector<128x128xf32>
    %c0_13 = arith.constant 0 : index
    %c0_14 = arith.constant 0 : index
    %18 = vector.load %arg6[%c0_13, %c0_14] : memref<128x1xf32, #tpu.memory_space<vmem>>, vector<128x1xf32>
    %19 = vector.broadcast %18 : vector<128x1xf32> to vector<128x128xf32>
    %20 = arith.addf %17, %19 : vector<128x128xf32>
    %cst_15 = arith.constant 0.000000e+00 : f32
    %21 = vector.broadcast %cst_15 : f32 to vector<128x128xf32>
    %22 = arith.cmpf oge, %20, %21 : vector<128x128xf32>
    %cst_16 = arith.constant 2.000000e-01 : f32
    %23 = vector.broadcast %cst_16 : f32 to vector<128x128xf32>
    %24 = arith.mulf %23, %20 : vector<128x128xf32>
    %25 = arith.select %22, %20, %24 : vector<128x128xi1>, vector<128x128xf32>
    %c0_17 = arith.constant 0 : index
    %c1 = arith.constant 1 : index
    %c0_18 = arith.constant 0 : index
    %c0_19 = arith.constant 0 : index
    %26 = vector.load %arg2[%c0_17, %c1, %c0_18, %c0_19] : memref<1x8x6x128xbf16, #tpu.memory_space<vmem>>, vector<1x1x6x128xbf16>
    %27 = vector.shape_cast %26 : vector<1x1x6x128xbf16> to vector<6x128xbf16>
    %c0_20 = arith.constant 0 : index
    %c0_21 = arith.constant 0 : index
    %28 = vector.load %arg3[%c0_20, %c0_21] : memref<64x6xbf16, #tpu.memory_space<vmem>>, vector<64x6xbf16>
    %cst_22 = arith.constant dense<0.000000e+00> : vector<64x128xf32>
    %29 = tpu.matmul %28, %27, %cst_22 {dimension_numbers = #tpu.dot_dimension_numbers<[1], [0], [0], [1], [0, 0, 1, 1], [], []>} : vector<64x6xbf16>, vector<6x128xbf16>, vector<64x128xf32> -> vector<64x128xf32>
    %c0_23 = arith.constant 0 : index
    %c0_24 = arith.constant 0 : index
    %30 = vector.load %arg4[%c0_23, %c0_24] : memref<64x1xf32, #tpu.memory_space<vmem>>, vector<64x1xf32>
    %31 = vector.broadcast %30 : vector<64x1xf32> to vector<64x128xf32>
    %32 = arith.addf %29, %31 : vector<64x128xf32>
    %cst_25 = arith.constant 0.000000e+00 : f32
    %33 = vector.broadcast %cst_25 : f32 to vector<64x128xf32>
    %34 = arith.cmpf oge, %32, %33 : vector<64x128xf32>
    %cst_26 = arith.constant 2.000000e-01 : f32
    %35 = vector.broadcast %cst_26 : f32 to vector<64x128xf32>
    %36 = arith.mulf %35, %32 : vector<64x128xf32>
    %37 = arith.select %34, %32, %36 : vector<64x128xi1>, vector<64x128xf32>
    %c0_27 = arith.constant 0 : index
    %c0_28 = arith.constant 0 : index
    %38 = vector.load %arg5[%c0_27, %c0_28] : memref<128x64xbf16, #tpu.memory_space<vmem>>, vector<128x64xbf16>
    %39 = arith.truncf %37 : vector<64x128xf32> to vector<64x128xbf16>
    %cst_29 = arith.constant dense<0.000000e+00> : vector<128x128xf32>
    %40 = tpu.matmul %38, %39, %cst_29 {dimension_numbers = #tpu.dot_dimension_numbers<[1], [0], [0], [1], [0, 0, 1, 1], [], []>} : vector<128x64xbf16>, vector<64x128xbf16>, vector<128x128xf32> -> vector<128x128xf32>
    %c0_30 = arith.constant 0 : index
    %c0_31 = arith.constant 0 : index
    %41 = vector.load %arg6[%c0_30, %c0_31] : memref<128x1xf32, #tpu.memory_space<vmem>>, vector<128x1xf32>
    %42 = vector.broadcast %41 : vector<128x1xf32> to vector<128x128xf32>
    %43 = arith.addf %40, %42 : vector<128x128xf32>
    %cst_32 = arith.constant 0.000000e+00 : f32
    %44 = vector.broadcast %cst_32 : f32 to vector<128x128xf32>
    %45 = arith.cmpf oge, %43, %44 : vector<128x128xf32>
    %cst_33 = arith.constant 2.000000e-01 : f32
    %46 = vector.broadcast %cst_33 : f32 to vector<128x128xf32>
    %47 = arith.mulf %46, %43 : vector<128x128xf32>
    %48 = arith.select %45, %43, %47 : vector<128x128xi1>, vector<128x128xf32>
    %49 = arith.maximumf %25, %48 : vector<128x128xf32>
    %c0_34 = arith.constant 0 : index
    %c2 = arith.constant 2 : index
    %c0_35 = arith.constant 0 : index
    %c0_36 = arith.constant 0 : index
    %50 = vector.load %arg2[%c0_34, %c2, %c0_35, %c0_36] : memref<1x8x6x128xbf16, #tpu.memory_space<vmem>>, vector<1x1x6x128xbf16>
    %51 = vector.shape_cast %50 : vector<1x1x6x128xbf16> to vector<6x128xbf16>
    %c0_37 = arith.constant 0 : index
    %c0_38 = arith.constant 0 : index
    %52 = vector.load %arg3[%c0_37, %c0_38] : memref<64x6xbf16, #tpu.memory_space<vmem>>, vector<64x6xbf16>
    %cst_39 = arith.constant dense<0.000000e+00> : vector<64x128xf32>
    %53 = tpu.matmul %52, %51, %cst_39 {dimension_numbers = #tpu.dot_dimension_numbers<[1], [0], [0], [1], [0, 0, 1, 1], [], []>} : vector<64x6xbf16>, vector<6x128xbf16>, vector<64x128xf32> -> vector<64x128xf32>
    %c0_40 = arith.constant 0 : index
    %c0_41 = arith.constant 0 : index
    %54 = vector.load %arg4[%c0_40, %c0_41] : memref<64x1xf32, #tpu.memory_space<vmem>>, vector<64x1xf32>
    %55 = vector.broadcast %54 : vector<64x1xf32> to vector<64x128xf32>
    %56 = arith.addf %53, %55 : vector<64x128xf32>
    %cst_42 = arith.constant 0.000000e+00 : f32
    %57 = vector.broadcast %cst_42 : f32 to vector<64x128xf32>
    %58 = arith.cmpf oge, %56, %57 : vector<64x128xf32>
    %cst_43 = arith.constant 2.000000e-01 : f32
    %59 = vector.broadcast %cst_43 : f32 to vector<64x128xf32>
    %60 = arith.mulf %59, %56 : vector<64x128xf32>
    %61 = arith.select %58, %56, %60 : vector<64x128xi1>, vector<64x128xf32>
    %c0_44 = arith.constant 0 : index
    %c0_45 = arith.constant 0 : index
    %62 = vector.load %arg5[%c0_44, %c0_45] : memref<128x64xbf16, #tpu.memory_space<vmem>>, vector<128x64xbf16>
    %63 = arith.truncf %61 : vector<64x128xf32> to vector<64x128xbf16>
    %cst_46 = arith.constant dense<0.000000e+00> : vector<128x128xf32>
    %64 = tpu.matmul %62, %63, %cst_46 {dimension_numbers = #tpu.dot_dimension_numbers<[1], [0], [0], [1], [0, 0, 1, 1], [], []>} : vector<128x64xbf16>, vector<64x128xbf16>, vector<128x128xf32> -> vector<128x128xf32>
    %c0_47 = arith.constant 0 : index
    %c0_48 = arith.constant 0 : index
    %65 = vector.load %arg6[%c0_47, %c0_48] : memref<128x1xf32, #tpu.memory_space<vmem>>, vector<128x1xf32>
    %66 = vector.broadcast %65 : vector<128x1xf32> to vector<128x128xf32>
    %67 = arith.addf %64, %66 : vector<128x128xf32>
    %cst_49 = arith.constant 0.000000e+00 : f32
    %68 = vector.broadcast %cst_49 : f32 to vector<128x128xf32>
    %69 = arith.cmpf oge, %67, %68 : vector<128x128xf32>
    %cst_50 = arith.constant 2.000000e-01 : f32
    %70 = vector.broadcast %cst_50 : f32 to vector<128x128xf32>
    %71 = arith.mulf %70, %67 : vector<128x128xf32>
    %72 = arith.select %69, %67, %71 : vector<128x128xi1>, vector<128x128xf32>
    %73 = arith.maximumf %49, %72 : vector<128x128xf32>
    %c0_51 = arith.constant 0 : index
    %c3 = arith.constant 3 : index
    %c0_52 = arith.constant 0 : index
    %c0_53 = arith.constant 0 : index
    %74 = vector.load %arg2[%c0_51, %c3, %c0_52, %c0_53] : memref<1x8x6x128xbf16, #tpu.memory_space<vmem>>, vector<1x1x6x128xbf16>
    %75 = vector.shape_cast %74 : vector<1x1x6x128xbf16> to vector<6x128xbf16>
    %c0_54 = arith.constant 0 : index
    %c0_55 = arith.constant 0 : index
    %76 = vector.load %arg3[%c0_54, %c0_55] : memref<64x6xbf16, #tpu.memory_space<vmem>>, vector<64x6xbf16>
    %cst_56 = arith.constant dense<0.000000e+00> : vector<64x128xf32>
    %77 = tpu.matmul %76, %75, %cst_56 {dimension_numbers = #tpu.dot_dimension_numbers<[1], [0], [0], [1], [0, 0, 1, 1], [], []>} : vector<64x6xbf16>, vector<6x128xbf16>, vector<64x128xf32> -> vector<64x128xf32>
    %c0_57 = arith.constant 0 : index
    %c0_58 = arith.constant 0 : index
    %78 = vector.load %arg4[%c0_57, %c0_58] : memref<64x1xf32, #tpu.memory_space<vmem>>, vector<64x1xf32>
    %79 = vector.broadcast %78 : vector<64x1xf32> to vector<64x128xf32>
    %80 = arith.addf %77, %79 : vector<64x128xf32>
    %cst_59 = arith.constant 0.000000e+00 : f32
    %81 = vector.broadcast %cst_59 : f32 to vector<64x128xf32>
    %82 = arith.cmpf oge, %80, %81 : vector<64x128xf32>
    %cst_60 = arith.constant 2.000000e-01 : f32
    %83 = vector.broadcast %cst_60 : f32 to vector<64x128xf32>
    %84 = arith.mulf %83, %80 : vector<64x128xf32>
    %85 = arith.select %82, %80, %84 : vector<64x128xi1>, vector<64x128xf32>
    %c0_61 = arith.constant 0 : index
    %c0_62 = arith.constant 0 : index
    %86 = vector.load %arg5[%c0_61, %c0_62] : memref<128x64xbf16, #tpu.memory_space<vmem>>, vector<128x64xbf16>
    %87 = arith.truncf %85 : vector<64x128xf32> to vector<64x128xbf16>
    %cst_63 = arith.constant dense<0.000000e+00> : vector<128x128xf32>
    %88 = tpu.matmul %86, %87, %cst_63 {dimension_numbers = #tpu.dot_dimension_numbers<[1], [0], [0], [1], [0, 0, 1, 1], [], []>} : vector<128x64xbf16>, vector<64x128xbf16>, vector<128x128xf32> -> vector<128x128xf32>
    %c0_64 = arith.constant 0 : index
    %c0_65 = arith.constant 0 : index
    %89 = vector.load %arg6[%c0_64, %c0_65] : memref<128x1xf32, #tpu.memory_space<vmem>>, vector<128x1xf32>
    %90 = vector.broadcast %89 : vector<128x1xf32> to vector<128x128xf32>
    %91 = arith.addf %88, %90 : vector<128x128xf32>
    %cst_66 = arith.constant 0.000000e+00 : f32
    %92 = vector.broadcast %cst_66 : f32 to vector<128x128xf32>
    %93 = arith.cmpf oge, %91, %92 : vector<128x128xf32>
    %cst_67 = arith.constant 2.000000e-01 : f32
    %94 = vector.broadcast %cst_67 : f32 to vector<128x128xf32>
    %95 = arith.mulf %94, %91 : vector<128x128xf32>
    %96 = arith.select %93, %91, %95 : vector<128x128xi1>, vector<128x128xf32>
    %97 = arith.maximumf %73, %96 : vector<128x128xf32>
    %c0_68 = arith.constant 0 : index
    %c4 = arith.constant 4 : index
    %c0_69 = arith.constant 0 : index
    %c0_70 = arith.constant 0 : index
    %98 = vector.load %arg2[%c0_68, %c4, %c0_69, %c0_70] : memref<1x8x6x128xbf16, #tpu.memory_space<vmem>>, vector<1x1x6x128xbf16>
    %99 = vector.shape_cast %98 : vector<1x1x6x128xbf16> to vector<6x128xbf16>
    %c0_71 = arith.constant 0 : index
    %c0_72 = arith.constant 0 : index
    %100 = vector.load %arg3[%c0_71, %c0_72] : memref<64x6xbf16, #tpu.memory_space<vmem>>, vector<64x6xbf16>
    %cst_73 = arith.constant dense<0.000000e+00> : vector<64x128xf32>
    %101 = tpu.matmul %100, %99, %cst_73 {dimension_numbers = #tpu.dot_dimension_numbers<[1], [0], [0], [1], [0, 0, 1, 1], [], []>} : vector<64x6xbf16>, vector<6x128xbf16>, vector<64x128xf32> -> vector<64x128xf32>
    %c0_74 = arith.constant 0 : index
    %c0_75 = arith.constant 0 : index
    %102 = vector.load %arg4[%c0_74, %c0_75] : memref<64x1xf32, #tpu.memory_space<vmem>>, vector<64x1xf32>
    %103 = vector.broadcast %102 : vector<64x1xf32> to vector<64x128xf32>
    %104 = arith.addf %101, %103 : vector<64x128xf32>
    %cst_76 = arith.constant 0.000000e+00 : f32
    %105 = vector.broadcast %cst_76 : f32 to vector<64x128xf32>
    %106 = arith.cmpf oge, %104, %105 : vector<64x128xf32>
    %cst_77 = arith.constant 2.000000e-01 : f32
    %107 = vector.broadcast %cst_77 : f32 to vector<64x128xf32>
    %108 = arith.mulf %107, %104 : vector<64x128xf32>
    %109 = arith.select %106, %104, %108 : vector<64x128xi1>, vector<64x128xf32>
    %c0_78 = arith.constant 0 : index
    %c0_79 = arith.constant 0 : index
    %110 = vector.load %arg5[%c0_78, %c0_79] : memref<128x64xbf16, #tpu.memory_space<vmem>>, vector<128x64xbf16>
    %111 = arith.truncf %109 : vector<64x128xf32> to vector<64x128xbf16>
    %cst_80 = arith.constant dense<0.000000e+00> : vector<128x128xf32>
    %112 = tpu.matmul %110, %111, %cst_80 {dimension_numbers = #tpu.dot_dimension_numbers<[1], [0], [0], [1], [0, 0, 1, 1], [], []>} : vector<128x64xbf16>, vector<64x128xbf16>, vector<128x128xf32> -> vector<128x128xf32>
    %c0_81 = arith.constant 0 : index
    %c0_82 = arith.constant 0 : index
    %113 = vector.load %arg6[%c0_81, %c0_82] : memref<128x1xf32, #tpu.memory_space<vmem>>, vector<128x1xf32>
    %114 = vector.broadcast %113 : vector<128x1xf32> to vector<128x128xf32>
    %115 = arith.addf %112, %114 : vector<128x128xf32>
    %cst_83 = arith.constant 0.000000e+00 : f32
    %116 = vector.broadcast %cst_83 : f32 to vector<128x128xf32>
    %117 = arith.cmpf oge, %115, %116 : vector<128x128xf32>
    %cst_84 = arith.constant 2.000000e-01 : f32
    %118 = vector.broadcast %cst_84 : f32 to vector<128x128xf32>
    %119 = arith.mulf %118, %115 : vector<128x128xf32>
    %120 = arith.select %117, %115, %119 : vector<128x128xi1>, vector<128x128xf32>
    %121 = arith.maximumf %97, %120 : vector<128x128xf32>
    %c0_85 = arith.constant 0 : index
    %c5 = arith.constant 5 : index
    %c0_86 = arith.constant 0 : index
    %c0_87 = arith.constant 0 : index
    %122 = vector.load %arg2[%c0_85, %c5, %c0_86, %c0_87] : memref<1x8x6x128xbf16, #tpu.memory_space<vmem>>, vector<1x1x6x128xbf16>
    %123 = vector.shape_cast %122 : vector<1x1x6x128xbf16> to vector<6x128xbf16>
    %c0_88 = arith.constant 0 : index
    %c0_89 = arith.constant 0 : index
    %124 = vector.load %arg3[%c0_88, %c0_89] : memref<64x6xbf16, #tpu.memory_space<vmem>>, vector<64x6xbf16>
    %cst_90 = arith.constant dense<0.000000e+00> : vector<64x128xf32>
    %125 = tpu.matmul %124, %123, %cst_90 {dimension_numbers = #tpu.dot_dimension_numbers<[1], [0], [0], [1], [0, 0, 1, 1], [], []>} : vector<64x6xbf16>, vector<6x128xbf16>, vector<64x128xf32> -> vector<64x128xf32>
    %c0_91 = arith.constant 0 : index
    %c0_92 = arith.constant 0 : index
    %126 = vector.load %arg4[%c0_91, %c0_92] : memref<64x1xf32, #tpu.memory_space<vmem>>, vector<64x1xf32>
    %127 = vector.broadcast %126 : vector<64x1xf32> to vector<64x128xf32>
    %128 = arith.addf %125, %127 : vector<64x128xf32>
    %cst_93 = arith.constant 0.000000e+00 : f32
    %129 = vector.broadcast %cst_93 : f32 to vector<64x128xf32>
    %130 = arith.cmpf oge, %128, %129 : vector<64x128xf32>
    %cst_94 = arith.constant 2.000000e-01 : f32
    %131 = vector.broadcast %cst_94 : f32 to vector<64x128xf32>
    %132 = arith.mulf %131, %128 : vector<64x128xf32>
    %133 = arith.select %130, %128, %132 : vector<64x128xi1>, vector<64x128xf32>
    %c0_95 = arith.constant 0 : index
    %c0_96 = arith.constant 0 : index
    %134 = vector.load %arg5[%c0_95, %c0_96] : memref<128x64xbf16, #tpu.memory_space<vmem>>, vector<128x64xbf16>
    %135 = arith.truncf %133 : vector<64x128xf32> to vector<64x128xbf16>
    %cst_97 = arith.constant dense<0.000000e+00> : vector<128x128xf32>
    %136 = tpu.matmul %134, %135, %cst_97 {dimension_numbers = #tpu.dot_dimension_numbers<[1], [0], [0], [1], [0, 0, 1, 1], [], []>} : vector<128x64xbf16>, vector<64x128xbf16>, vector<128x128xf32> -> vector<128x128xf32>
    %c0_98 = arith.constant 0 : index
    %c0_99 = arith.constant 0 : index
    %137 = vector.load %arg6[%c0_98, %c0_99] : memref<128x1xf32, #tpu.memory_space<vmem>>, vector<128x1xf32>
    %138 = vector.broadcast %137 : vector<128x1xf32> to vector<128x128xf32>
    %139 = arith.addf %136, %138 : vector<128x128xf32>
    %cst_100 = arith.constant 0.000000e+00 : f32
    %140 = vector.broadcast %cst_100 : f32 to vector<128x128xf32>
    %141 = arith.cmpf oge, %139, %140 : vector<128x128xf32>
    %cst_101 = arith.constant 2.000000e-01 : f32
    %142 = vector.broadcast %cst_101 : f32 to vector<128x128xf32>
    %143 = arith.mulf %142, %139 : vector<128x128xf32>
    %144 = arith.select %141, %139, %143 : vector<128x128xi1>, vector<128x128xf32>
    %145 = arith.maximumf %121, %144 : vector<128x128xf32>
    %c0_102 = arith.constant 0 : index
    %c6 = arith.constant 6 : index
    %c0_103 = arith.constant 0 : index
    %c0_104 = arith.constant 0 : index
    %146 = vector.load %arg2[%c0_102, %c6, %c0_103, %c0_104] : memref<1x8x6x128xbf16, #tpu.memory_space<vmem>>, vector<1x1x6x128xbf16>
    %147 = vector.shape_cast %146 : vector<1x1x6x128xbf16> to vector<6x128xbf16>
    %c0_105 = arith.constant 0 : index
    %c0_106 = arith.constant 0 : index
    %148 = vector.load %arg3[%c0_105, %c0_106] : memref<64x6xbf16, #tpu.memory_space<vmem>>, vector<64x6xbf16>
    %cst_107 = arith.constant dense<0.000000e+00> : vector<64x128xf32>
    %149 = tpu.matmul %148, %147, %cst_107 {dimension_numbers = #tpu.dot_dimension_numbers<[1], [0], [0], [1], [0, 0, 1, 1], [], []>} : vector<64x6xbf16>, vector<6x128xbf16>, vector<64x128xf32> -> vector<64x128xf32>
    %c0_108 = arith.constant 0 : index
    %c0_109 = arith.constant 0 : index
    %150 = vector.load %arg4[%c0_108, %c0_109] : memref<64x1xf32, #tpu.memory_space<vmem>>, vector<64x1xf32>
    %151 = vector.broadcast %150 : vector<64x1xf32> to vector<64x128xf32>
    %152 = arith.addf %149, %151 : vector<64x128xf32>
    %cst_110 = arith.constant 0.000000e+00 : f32
    %153 = vector.broadcast %cst_110 : f32 to vector<64x128xf32>
    %154 = arith.cmpf oge, %152, %153 : vector<64x128xf32>
    %cst_111 = arith.constant 2.000000e-01 : f32
    %155 = vector.broadcast %cst_111 : f32 to vector<64x128xf32>
    %156 = arith.mulf %155, %152 : vector<64x128xf32>
    %157 = arith.select %154, %152, %156 : vector<64x128xi1>, vector<64x128xf32>
    %c0_112 = arith.constant 0 : index
    %c0_113 = arith.constant 0 : index
    %158 = vector.load %arg5[%c0_112, %c0_113] : memref<128x64xbf16, #tpu.memory_space<vmem>>, vector<128x64xbf16>
    %159 = arith.truncf %157 : vector<64x128xf32> to vector<64x128xbf16>
    %cst_114 = arith.constant dense<0.000000e+00> : vector<128x128xf32>
    %160 = tpu.matmul %158, %159, %cst_114 {dimension_numbers = #tpu.dot_dimension_numbers<[1], [0], [0], [1], [0, 0, 1, 1], [], []>} : vector<128x64xbf16>, vector<64x128xbf16>, vector<128x128xf32> -> vector<128x128xf32>
    %c0_115 = arith.constant 0 : index
    %c0_116 = arith.constant 0 : index
    %161 = vector.load %arg6[%c0_115, %c0_116] : memref<128x1xf32, #tpu.memory_space<vmem>>, vector<128x1xf32>
    %162 = vector.broadcast %161 : vector<128x1xf32> to vector<128x128xf32>
    %163 = arith.addf %160, %162 : vector<128x128xf32>
    %cst_117 = arith.constant 0.000000e+00 : f32
    %164 = vector.broadcast %cst_117 : f32 to vector<128x128xf32>
    %165 = arith.cmpf oge, %163, %164 : vector<128x128xf32>
    %cst_118 = arith.constant 2.000000e-01 : f32
    %166 = vector.broadcast %cst_118 : f32 to vector<128x128xf32>
    %167 = arith.mulf %166, %163 : vector<128x128xf32>
    %168 = arith.select %165, %163, %167 : vector<128x128xi1>, vector<128x128xf32>
    %169 = arith.maximumf %145, %168 : vector<128x128xf32>
    %c0_119 = arith.constant 0 : index
    %c7 = arith.constant 7 : index
    %c0_120 = arith.constant 0 : index
    %c0_121 = arith.constant 0 : index
    %170 = vector.load %arg2[%c0_119, %c7, %c0_120, %c0_121] : memref<1x8x6x128xbf16, #tpu.memory_space<vmem>>, vector<1x1x6x128xbf16>
    %171 = vector.shape_cast %170 : vector<1x1x6x128xbf16> to vector<6x128xbf16>
    %c0_122 = arith.constant 0 : index
    %c0_123 = arith.constant 0 : index
    %172 = vector.load %arg3[%c0_122, %c0_123] : memref<64x6xbf16, #tpu.memory_space<vmem>>, vector<64x6xbf16>
    %cst_124 = arith.constant dense<0.000000e+00> : vector<64x128xf32>
    %173 = tpu.matmul %172, %171, %cst_124 {dimension_numbers = #tpu.dot_dimension_numbers<[1], [0], [0], [1], [0, 0, 1, 1], [], []>} : vector<64x6xbf16>, vector<6x128xbf16>, vector<64x128xf32> -> vector<64x128xf32>
    %c0_125 = arith.constant 0 : index
    %c0_126 = arith.constant 0 : index
    %174 = vector.load %arg4[%c0_125, %c0_126] : memref<64x1xf32, #tpu.memory_space<vmem>>, vector<64x1xf32>
    %175 = vector.broadcast %174 : vector<64x1xf32> to vector<64x128xf32>
    %176 = arith.addf %173, %175 : vector<64x128xf32>
    %cst_127 = arith.constant 0.000000e+00 : f32
    %177 = vector.broadcast %cst_127 : f32 to vector<64x128xf32>
    %178 = arith.cmpf oge, %176, %177 : vector<64x128xf32>
    %cst_128 = arith.constant 2.000000e-01 : f32
    %179 = vector.broadcast %cst_128 : f32 to vector<64x128xf32>
    %180 = arith.mulf %179, %176 : vector<64x128xf32>
    %181 = arith.select %178, %176, %180 : vector<64x128xi1>, vector<64x128xf32>
    %c0_129 = arith.constant 0 : index
    %c0_130 = arith.constant 0 : index
    %182 = vector.load %arg5[%c0_129, %c0_130] : memref<128x64xbf16, #tpu.memory_space<vmem>>, vector<128x64xbf16>
    %183 = arith.truncf %181 : vector<64x128xf32> to vector<64x128xbf16>
    %cst_131 = arith.constant dense<0.000000e+00> : vector<128x128xf32>
    %184 = tpu.matmul %182, %183, %cst_131 {dimension_numbers = #tpu.dot_dimension_numbers<[1], [0], [0], [1], [0, 0, 1, 1], [], []>} : vector<128x64xbf16>, vector<64x128xbf16>, vector<128x128xf32> -> vector<128x128xf32>
    %c0_132 = arith.constant 0 : index
    %c0_133 = arith.constant 0 : index
    %185 = vector.load %arg6[%c0_132, %c0_133] : memref<128x1xf32, #tpu.memory_space<vmem>>, vector<128x1xf32>
    %186 = vector.broadcast %185 : vector<128x1xf32> to vector<128x128xf32>
    %187 = arith.addf %184, %186 : vector<128x128xf32>
    %cst_134 = arith.constant 0.000000e+00 : f32
    %188 = vector.broadcast %cst_134 : f32 to vector<128x128xf32>
    %189 = arith.cmpf oge, %187, %188 : vector<128x128xf32>
    %cst_135 = arith.constant 2.000000e-01 : f32
    %190 = vector.broadcast %cst_135 : f32 to vector<128x128xf32>
    %191 = arith.mulf %190, %187 : vector<128x128xf32>
    %192 = arith.select %189, %187, %191 : vector<128x128xi1>, vector<128x128xf32>
    %193 = arith.maximumf %169, %192 : vector<128x128xf32>
    %c0_136 = arith.constant 0 : index
    %c0_137 = arith.constant 0 : index
    %194 = vector.load %arg7[%c0_136, %c0_137] : memref<1024x128xbf16, #tpu.memory_space<vmem>>, vector<1024x128xbf16>
    %195 = arith.truncf %193 : vector<128x128xf32> to vector<128x128xbf16>
    %cst_138 = arith.constant dense<0.000000e+00> : vector<1024x128xf32>
    %196 = tpu.matmul %194, %195, %cst_138 {dimension_numbers = #tpu.dot_dimension_numbers<[1], [0], [0], [1], [0, 0, 1, 1], [], []>} : vector<1024x128xbf16>, vector<128x128xbf16>, vector<1024x128xf32> -> vector<1024x128xf32>
    %c0_139 = arith.constant 0 : index
    %c0_140 = arith.constant 0 : index
    %197 = vector.load %arg8[%c0_139, %c0_140] : memref<1024x1xf32, #tpu.memory_space<vmem>>, vector<1024x1xf32>
    %198 = vector.broadcast %197 : vector<1024x1xf32> to vector<1024x128xf32>
    %199 = arith.addf %196, %198 : vector<1024x128xf32>
    %cst_141 = arith.constant 0.000000e+00 : f32
    %200 = vector.broadcast %cst_141 : f32 to vector<1024x128xf32>
    %201 = arith.cmpf oge, %199, %200 : vector<1024x128xf32>
    %cst_142 = arith.constant 2.000000e-01 : f32
    %202 = vector.broadcast %cst_142 : f32 to vector<1024x128xf32>
    %203 = arith.mulf %202, %199 : vector<1024x128xf32>
    %204 = arith.select %201, %199, %203 : vector<1024x128xi1>, vector<1024x128xf32>
    %c0_143 = arith.constant 0 : index
    %c0_144 = arith.constant 0 : index
    %205 = vector.load %arg16[%c0_143, %c0_144] : memref<1024x1xf32, #tpu.memory_space<vmem>>, vector<1024x1xf32>
    %cst_145 = arith.constant dense<0xFF800000> : vector<1024xf32>
    %206 = vector.multi_reduction <maximumf>, %204, %cst_145 [1] : vector<1024x128xf32> to vector<1024xf32>
    %207 = vector.shape_cast %206 : vector<1024xf32> to vector<1024x1xf32>
    %208 = arith.maximumf %205, %207 : vector<1024x1xf32>
    %c0_146 = arith.constant 0 : index
    %c0_147 = arith.constant 0 : index
    %209 = vector.load %arg16[%c0_146, %c0_147] : memref<1024x1xf32, #tpu.memory_space<vmem>>, vector<1024x1xf32>
    tpu.vector_store %arg16[%c0_146, %c0_147], %208 {strides = array<i32>} : memref<1024x1xf32, #tpu.memory_space<vmem>>, vector<1024x1xf32>,
    %c1_i32 = arith.constant 1 : i32
    %210 = arith.cmpi eq, %arg1, %c1_i32 : i32
    %211 = arith.extui %210 : i1 to i32
    %c0_i32_148 = arith.constant 0 : i32
    %212 = arith.cmpi ne, %211, %c0_i32_148 : i32
    scf.if %212 {
      %c0_149 = arith.constant 0 : index
      %c0_150 = arith.constant 0 : index
      %213 = vector.load %arg16[%c0_149, %c0_150] : memref<1024x1xf32, #tpu.memory_space<vmem>>, vector<1024x1xf32>
      %214 = arith.truncf %213 : vector<1024x1xf32> to vector<1024x1xbf16>
      %c0_151 = arith.constant 0 : index
      %c0_152 = arith.constant 0 : index
      %215 = vector.load %arg9[%c0_151, %c0_152] : memref<512x1024xbf16, #tpu.memory_space<vmem>>, vector<512x1024xbf16>
      %cst_153 = arith.constant dense<0.000000e+00> : vector<512x1xf32>
      %216 = tpu.matmul %215, %214, %cst_153 {dimension_numbers = #tpu.dot_dimension_numbers<[1], [0], [0], [1], [0, 0, 1, 1], [], []>} : vector<512x1024xbf16>, vector<1024x1xbf16>, vector<512x1xf32> -> vector<512x1xf32>
      %c0_154 = arith.constant 0 : index
      %c0_155 = arith.constant 0 : index
      %217 = vector.load %arg10[%c0_154, %c0_155] : memref<512x1xf32, #tpu.memory_space<vmem>>, vector<512x1xf32>
      %218 = arith.addf %216, %217 : vector<512x1xf32>
      %cst_156 = arith.constant 0.000000e+00 : f32
      %219 = vector.broadcast %cst_156 : f32 to vector<512x1xf32>
      %220 = arith.cmpf oge, %218, %219 : vector<512x1xf32>
      %cst_157 = arith.constant 2.000000e-01 : f32
      %221 = vector.broadcast %cst_157 : f32 to vector<512x1xf32>
      %222 = arith.mulf %221, %218 : vector<512x1xf32>
      %223 = arith.select %220, %218, %222 : vector<512x1xi1>, vector<512x1xf32>
      %c0_158 = arith.constant 0 : index
      %c0_159 = arith.constant 0 : index
      %224 = vector.load %arg11[%c0_158, %c0_159] : memref<256x512xbf16, #tpu.memory_space<vmem>>, vector<256x512xbf16>
      %225 = arith.truncf %223 : vector<512x1xf32> to vector<512x1xbf16>
      %cst_160 = arith.constant dense<0.000000e+00> : vector<256x1xf32>
      %226 = tpu.matmul %224, %225, %cst_160 {dimension_numbers = #tpu.dot_dimension_numbers<[1], [0], [0], [1], [0, 0, 1, 1], [], []>} : vector<256x512xbf16>, vector<512x1xbf16>, vector<256x1xf32> -> vector<256x1xf32>
      %c0_161 = arith.constant 0 : index
      %c0_162 = arith.constant 0 : index
      %227 = vector.load %arg12[%c0_161, %c0_162] : memref<256x1xf32, #tpu.memory_space<vmem>>, vector<256x1xf32>
      %228 = arith.addf %226, %227 : vector<256x1xf32>
      %cst_163 = arith.constant 0.000000e+00 : f32
      %229 = vector.broadcast %cst_163 : f32 to vector<256x1xf32>
      %230 = arith.cmpf oge, %228, %229 : vector<256x1xf32>
      %cst_164 = arith.constant 2.000000e-01 : f32
      %231 = vector.broadcast %cst_164 : f32 to vector<256x1xf32>
      %232 = arith.mulf %231, %228 : vector<256x1xf32>
      %233 = arith.select %230, %228, %232 : vector<256x1xi1>, vector<256x1xf32>
      %c0_165 = arith.constant 0 : index
      %c0_166 = arith.constant 0 : index
      %234 = vector.load %arg13[%c0_165, %c0_166] : memref<9x256xbf16, #tpu.memory_space<vmem>>, vector<9x256xbf16>
      %235 = arith.truncf %233 : vector<256x1xf32> to vector<256x1xbf16>
      %cst_167 = arith.constant dense<0.000000e+00> : vector<9x1xf32>
      %236 = tpu.matmul %234, %235, %cst_167 {dimension_numbers = #tpu.dot_dimension_numbers<[1], [0], [0], [1], [0, 0, 1, 1], [], []>} : vector<9x256xbf16>, vector<256x1xbf16>, vector<9x1xf32> -> vector<9x1xf32>
      %c0_168 = arith.constant 0 : index
      %c0_169 = arith.constant 0 : index
      %237 = vector.load %arg14[%c0_168, %c0_169] : memref<9x1xf32, #tpu.memory_space<vmem>>, vector<9x1xf32>
      %238 = arith.addf %236, %237 : vector<9x1xf32>
      %239 = vector.shape_cast %238 : vector<9x1xf32> to vector<1x9x1xf32>
      %c0_170 = arith.constant 0 : index
      %c0_171 = arith.constant 0 : index
      %c0_172 = arith.constant 0 : index
      %240 = vector.load %arg15[%c0_170, %c0_171, %c0_172] : memref<1x9x1xf32, #tpu.memory_space<vmem>>, vector<1x9x1xf32>
      tpu.vector_store %arg15[%c0_170, %c0_171, %c0_172], %239 {strides = array<i32>} : memref<1x9x1xf32, #tpu.memory_space<vmem>>, vector<1x9x1xf32>,
    } else {
    }
    return
  }
  func.func @transform_0(%arg0: i32, %arg1: i32) -> (i32, i32, i32, i32) {
    %c0_i32 = arith.constant 0 : i32
    %c0_i32_0 = arith.constant 0 : i32
    %c0_i32_1 = arith.constant 0 : i32
    return %arg0, %c0_i32, %c0_i32_0, %arg1 : i32, i32, i32, i32
  }
  func.func @transform_1(%arg0: i32, %arg1: i32) -> (i32, i32) {
    %c0_i32 = arith.constant 0 : i32
    %c0_i32_0 = arith.constant 0 : i32
    %c0_i32_1 = arith.constant 0 : i32
    return %c0_i32, %c0_i32_0 : i32, i32
  }
  func.func @transform_2(%arg0: i32, %arg1: i32) -> (i32, i32) {
    %c0_i32 = arith.constant 0 : i32
    %c0_i32_0 = arith.constant 0 : i32
    %c0_i32_1 = arith.constant 0 : i32
    return %c0_i32, %c0_i32_0 : i32, i32
  }
  func.func @transform_3(%arg0: i32, %arg1: i32) -> (i32, i32) {
    %c0_i32 = arith.constant 0 : i32
    %c0_i32_0 = arith.constant 0 : i32
    %c0_i32_1 = arith.constant 0 : i32
    return %c0_i32, %c0_i32_0 : i32, i32
  }
  func.func @transform_4(%arg0: i32, %arg1: i32) -> (i32, i32) {
    %c0_i32 = arith.constant 0 : i32
    %c0_i32_0 = arith.constant 0 : i32
    %c0_i32_1 = arith.constant 0 : i32
    return %c0_i32, %c0_i32_0 : i32, i32
  }
  func.func @transform_5(%arg0: i32, %arg1: i32) -> (i32, i32) {
    %c0_i32 = arith.constant 0 : i32
    %c0_i32_0 = arith.constant 0 : i32
    %c0_i32_1 = arith.constant 0 : i32
    return %c0_i32, %c0_i32_0 : i32, i32
  }
  func.func @transform_6(%arg0: i32, %arg1: i32) -> (i32, i32) {
    %c0_i32 = arith.constant 0 : i32
    %c0_i32_0 = arith.constant 0 : i32
    %c0_i32_1 = arith.constant 0 : i32
    return %c0_i32, %c0_i32_0 : i32, i32
  }
  func.func @transform_7(%arg0: i32, %arg1: i32) -> (i32, i32) {
    %c0_i32 = arith.constant 0 : i32
    %c0_i32_0 = arith.constant 0 : i32
    %c0_i32_1 = arith.constant 0 : i32
    return %c0_i32, %c0_i32_0 : i32, i32
  }
  func.func @transform_8(%arg0: i32, %arg1: i32) -> (i32, i32) {
    %c0_i32 = arith.constant 0 : i32
    %c0_i32_0 = arith.constant 0 : i32
    %c0_i32_1 = arith.constant 0 : i32
    return %c0_i32, %c0_i32_0 : i32, i32
  }
  func.func @transform_9(%arg0: i32, %arg1: i32) -> (i32, i32) {
    %c0_i32 = arith.constant 0 : i32
    %c0_i32_0 = arith.constant 0 : i32
    %c0_i32_1 = arith.constant 0 : i32
    return %c0_i32, %c0_i32_0 : i32, i32
  }
  func.func @transform_10(%arg0: i32, %arg1: i32) -> (i32, i32) {
    %c0_i32 = arith.constant 0 : i32
    %c0_i32_0 = arith.constant 0 : i32
    %c0_i32_1 = arith.constant 0 : i32
    return %c0_i32, %c0_i32_0 : i32, i32
  }
  func.func @transform_11(%arg0: i32, %arg1: i32) -> (i32, i32) {
    %c0_i32 = arith.constant 0 : i32
    %c0_i32_0 = arith.constant 0 : i32
    %c0_i32_1 = arith.constant 0 : i32
    return %c0_i32, %c0_i32_0 : i32, i32
  }
  func.func @transform_12(%arg0: i32, %arg1: i32) -> (i32, i32) {
    %c0_i32 = arith.constant 0 : i32
    %c0_i32_0 = arith.constant 0 : i32
    %c0_i32_1 = arith.constant 0 : i32
    return %c0_i32, %c0_i32_0 : i32, i32
  }
  func.func @transform_13(%arg0: i32, %arg1: i32) -> (i32, i32, i32) {
    %c0_i32 = arith.constant 0 : i32
    %c0_i32_0 = arith.constant 0 : i32
    %c0_i32_1 = arith.constant 0 : i32
    return %arg0, %c0_i32, %c0_i32_0 : i32, i32, i32
  }
}

</mosaic_0001>

<bundles_post_ra>
// kernel: tpu_custom_call.1
= control target key start
LH: loop header
LB: loop body
LE: loop exit
PB: predicated region body
PF: predicated region fallthrough
CT: control target
= control target key end

     0   :  { %s16977_s0 = inlined_call_operand.vmem [shape: bf16[2,8,6,256], index: 0, kind: input, shape index: {}]   ;;  %s16978_s1 = inlined_call_operand.vmem [shape: bf16[64,6], index: 1, kind: input, shape index: {}]   ;;  %s16979_s2 = inlined_call_operand.vmem [shape: f32[64,1], index: 2, kind: input, shape index: {}]   ;;  %s16980_s3 = inlined_call_operand.vmem [shape: bf16[128,64], index: 3, kind: input, shape index: {}]   ;;  %s16981_s4 = inlined_call_operand.vmem [shape: f32[128,1], index: 4, kind: input, shape index: {}]   ;;  %s16982_s5 = inlined_call_operand.hbm [shape: bf16[1024,128], index: 5, kind: input, shape index: {}]   ;;  %s16983_s6 = inlined_call_operand.vmem [shape: f32[1024,1], index: 6, kind: input, shape index: {}]   ;;  %s16984_s7 = inlined_call_operand.vmem [shape: bf16[512,1024], index: 7, kind: input, shape index: {}]   ;;  %s16985_s8 = inlined_call_operand.vmem [shape: f32[512,1], index: 8, kind: input, shape index: {}]   ;;  %s16986_s9 = inlined_call_operand.hbm [shape: bf16[256,512], index: 9, kind: input, shape index: {}]   ;;  %s16987_s10 = inlined_call_operand.vmem [shape: f32[256,1], index: 10, kind: input, shape index: {}]   ;;  %s16988_s11 = inlined_call_operand.vmem [shape: bf16[9,256], index: 11, kind: input, shape index: {}]   ;;  %s16989_s12 = inlined_call_operand.vmem [shape: f32[9,1], index: 12, kind: input, shape index: {}]   ;;  %s16990_s13 = inlined_call_operand.vmem [shape: f32[2,9,1], index: 13, kind: output, shape index: {}]  }
   0x1   :  { %17108 = sst [smem:[#allocation106_spill]] %s16980_s3 }
   0x2   :  { %17109 = sst [smem:[#allocation107_spill]] %s16981_s4 }
   0x3   :  { %17110 = sst [smem:[#allocation108_spill]] %s16983_s6 }
   0x4   :  { %17111 = sst [smem:[#allocation109_spill]] %s16984_s7 }
   0x5   :  { %17112 = sst [smem:[#allocation110_spill]] %s16985_s8 }
   0x6   :  { %17113 = sst [smem:[#allocation111_spill]] %s16987_s10 }
   0x7   :  { %17114 = sst [smem:[#allocation112_spill]] %s16988_s11 }
   0x8   :  { %17115 = sst [smem:[#allocation113_spill]] %s16989_s12 }
   0x9   :  { %18 = vsyncpa [#allocation5], 0 }
   0xa   :  { %19 = vsyncpa [#allocation7], 0  ;;  %s12358_s25 = smov 0   ;;  %s12360_s26 = smov 0  }
   0xb   :  { %s12362_s27 = smov 0   ;;  %s12364_s28 = smov 0  }
   0xc   :  { %s12366_s29 = smov 0   ;;  %s12368_s30 = smov 0  }
   0xd   :  { %s12370_s14 = smov 0  }
   0xe LB: > { %s10051_s15 = sadd.s32 4294967295, %s12277_s14   ;;  %s34_s16 = sadd.s32 1, %s12269_s29  ;;  %s12277_s14 = sphi %s12370_s14, %s25_s14   ;;  %s12273_s30 = sphi %s12368_s30, %s17611_s30   ;;  %s12269_s29 = sphi %s12366_s29, %s17610_s29   ;;  %s12265_s28 = sphi %s12364_s28, %s17609_s28   ;;  %s12261_s27 = sphi %s12362_s27, %s17608_s27   ;;  %s12257_s26 = sphi %s12360_s26, %s17607_s26   ;;  %s12253_s25 = sphi %s12358_s25, %s17606_s25  }
   0xf   : > { %p35_p0 = scmp.ge.s32.totalorder %s34_s16, 2  ;;  %s37_s17 = sadd.s32 1, %s12273_s30 }
  0x10   : > { %s46_s18 = sadd.s32 1, %s12257_s26  ;;  %p53_p1 = scmp.ne.s32.totalorder %s12257_s26, %s12253_s25 }
  0x11   : > { %s17613_s16 = smov (%p35_p0, %s34_s16), 0  ;;  %s17615_s17 = smov (!%p35_p0, %s37_s17), %s12273_s30 }
  0x12   : > { %17116 = sst [smem:[#allocation10_spill]] %s17613_s16  ;;  %s42_s19 = ssub.s32 %s12269_s29, %s17613_s16 }
  0x13   : > { %p54_p2 = scmp.eq.s32.totalorder %s12277_s14, 0  ;;  %p39_p3 = scmp.ge.s32.totalorder %s17615_s17, 2 }
  0x14   : > { %p10053_p4 = scmp.ge.s32.totalorder %s12277_s14, 1  ;;  %p348_p6 = scmp.lt.s32.totalorder %s12277_s14, 5 }
  0x15   : > { %p12406_p5 = por %p54_p2, %p53_p1  ;;  %s17617_s17 = smov (%p39_p3, %s17615_s17), 0 }
  0x16   : > { %17118 = sst [smem:[#allocation11_spill]] %s17617_s17  ;;  %p12413_p7 = pnand %p10053_p4, %p348_p6 }
  0x17   : > { %s17117_s20 = scalar_select %p12406_p5, 1, 0 }
  0x18   : > { %s17119_s21 = scalar_select %p12413_p7, 1, 0 }
  0x19   : > { %s41_s22 = ssub.s32 %s12273_s30, %s17617_s17  ;;  %p12419_p8 = scmp.eq.s32.totalorder %s10051_s15, 0 }
  0x1a   : > { %s43_s24 = sor.u32 %s42_s19, %s41_s22  ;;  %p11890_p9 = pneg %p12413_p7 }
  0x1b   : > { %s17120_s23 = scalar_select %p12419_p8, 1, 0 }
  0x1c   : > { %p44_p10 = scmp.eq.s32.totalorder %s43_s24, 0  ;;  %s12279_s16 = smov [#allocation4]  }
  0x1d   : > { %s372_s12 = sshll.u32 %s12279_s16, 4  ;;  %p12427_p11 = pnand %p12419_p8, %p11890_p9  ;;  %s373_s12 = int_to_ptr.vmem [resolvable:$true] %s372_s12 }
  0x1e   : > { %s12432_s10 = scalar_select %p44_p10, %s12257_s26, %s46_s18  }
  0x1f   : > { %s12159_s8 = scalar_lea.hbm %s16982_s5, 8192  ;;  %p12161_p13 = pneg %p12427_p11 }
  0x20   : > { %17122 = sst [smem:[#allocation12_spill]] %s12432_s10  ;;  %p12160_p12 = scmp.ne.s32.totalorder %s16982_s5, %s12159_s8 }
  0x21   : > { %p12166_p2 = scmp.lt.u32.totalorder %s12159_s8, %s16982_s5 }
  0x22   : > { %p12162_p0 = pnand %p12161_p13, %p12160_p12 }
  0x24   : > { %p12163_p1 = pneg %p12162_p0 }
  0x26   : > { %p12168_p3 = pnand %p12166_p2, %p12163_p1 }
  0x28   : > { %12171 = shalt.err (!%p12168_p3)
}
  0x29   : > { %s12172_s18 = scalar_lea.vmem %s373_s12, 8192  ;;  %p12180_p10 = scmp.lt.s32.totalorder %s373_s12, %s373_s12 }
  0x2a   : > { %p12173_p4 = scmp.ne.s32.totalorder %s373_s12, %s12172_s18  ;;  %p12181_p8 = scmp.lt.s32.totalorder %s12172_s18, %s12172_s18 }
  0x2c   : > { %p12175_p6 = pnand %p12173_p4, %p12161_p13  ;;  %p12182_p7 = por %p12181_p8, %p12180_p10 }
  0x2e   : > { %p12176_p9 = pneg %p12175_p6 }
  0x30   : > { %p12183_p5 = pnand %p12182_p7, %p12176_p9 }
  0x32   : > { %12186 = shalt.err (!%p12183_p5)
}
  0x33   : > { %s12280_s17 = smov 64   ;;  %s12281_s15 = smov 4  }
  0x34   : > { %11893 = dma.hbm_to_vmem [thread:$0]  (!%p12427_p11), %s16982_s5, 8192, %s373_s12, [#allocation5], %s12280_s17, %s12280_s17, %s12281_s15  }
  0x35   : > { %s12282_s22 = smov [#allocation6]   ;;  %s12187_s7 = scalar_lea.hbm %s16986_s9, 8192 }
  0x36   : > { %s394_s16 = sshll.u32 %s12282_s22, 4  ;;  %p12188_p5 = scmp.ne.s32.totalorder %s16986_s9, %s12187_s7  ;;  %s395_s16 = int_to_ptr.vmem [resolvable:$true] %s394_s16 }
  0x37   : > { %p12194_p12 = scmp.lt.u32.totalorder %s12187_s7, %s16986_s9 }
  0x38   : > { %p12190_p7 = pnand %p12188_p5, %p12161_p13 }
  0x3a   : > { %p12191_p8 = pneg %p12190_p7 }
  0x3c   : > { %p12196_p0 = pnand %p12194_p12, %p12191_p8 }
  0x3e   : > { %12199 = shalt.err (!%p12196_p0)
}
  0x3f   : > { %s12200_s12 = scalar_lea.vmem %s395_s16, 8192  ;;  %p12208_p4 = scmp.lt.s32.totalorder %s395_s16, %s395_s16 }
  0x40   : > { %p12201_p1 = scmp.ne.s32.totalorder %s395_s16, %s12200_s12  ;;  %p12209_p6 = scmp.lt.s32.totalorder %s12200_s12, %s12200_s12 }
  0x42   : > { %p12203_p2 = pnand %p12201_p1, %p12161_p13  ;;  %p12210_p9 = por %p12209_p6, %p12208_p4 }
  0x44   : > { %p12204_p3 = pneg %p12203_p2 }
  0x46   : > { %p12211_p10 = pnand %p12210_p9, %p12204_p3 }
  0x48   : > { %12214 = shalt.err (!%p12211_p10)
}
  0x49   : > { %s12283_s3 = smov 256   ;;  %s12284_s10 = smov 16  }
  0x4a   : > { %11896 = dma.hbm_to_vmem [thread:$0]  (!%p12427_p11), %s16986_s9, 8192, %s395_s16, [#allocation7], %s12283_s3, %s12283_s3, %s12284_s10  }
  0x4b   : > { %p10056_p5 = scmp.ge.s32.totalorder %s12277_s14, 4 }
  0x4c   : > { %p17123_p7 = scmp.ne.s32.totalorder (!%p10056_p5), %s17117_s20, 0 }
  0x4d   : > { %413 = sbr.rel (%p10056_p5) target bundleno = 95 (0x5f), region = 64 }
  0x54   : > { %416 = sbr.rel (!%p17123_p7) target bundleno = 95 (0x5f), region = 68  ;;  %s418_s7 = sand.u32 (%p17123_p7), 1, %s12257_s26  }
  0x55   : > { %s10058_s17 = sshll.u32 (%p17123_p7), %s12273_s30, 4  ;;  %s10057_s15 = sshll.u32 (%p17123_p7), %s418_s7, 5 }
  0x56   : > { %s422_s8 = sadd.s32 (%p17123_p7), %s12269_s29, %s10058_s17  ;;  %s420_s16 = scalar_lea.vmem (%p17123_p7), [#allocation3], %s10057_s15 }
  0x57   : > { %s10059_s19 = sshll.u32 (%p17123_p7), %s422_s8, 2 }
  0x58   : > { %s424_s24 = scalar_lea.vmem (%p17123_p7), %s16977_s0, %s10059_s19 }
  0x59   : > { %v440_v0 = vld [vmem:[%s424_s24] sm:$0xf] (%p17123_p7)  ;;  %v442_v1 = vld [vmem:[%s424_s24 + $0x8] sm:$0xf] (%p17123_p7)  ;;  %v444_v2 = vld [vmem:[%s424_s24 + $0x10] sm:$0xf] (%p17123_p7) }
  0x5a   : > { %441 = vst [vmem:[%s420_s16] sm:$0xf] (%p17123_p7), %v440_v0  ;;  %443 = vst [vmem:[%s420_s16 + $0x4] sm:$0xf] (%p17123_p7), %v442_v1  ;;  %v446_v3 = vld [vmem:[%s424_s24 + $0x18] sm:$0xf] (%p17123_p7) }
  0x5b   : > { %445 = vst [vmem:[%s420_s16 + $0x8] sm:$0xf] %v444_v2  ;;  %v448_v4 = vld [vmem:[%s424_s24 + $0x20] sm:$0xf]  ;;  %v450_v5 = vld [vmem:[%s424_s24 + $0x28] sm:$0xf] }
  0x5c   : > { %447 = vst [vmem:[%s420_s16 + $0xc] sm:$0xf] %v446_v3  ;;  %449 = vst [vmem:[%s420_s16 + $0x10] sm:$0xf] %v448_v4  ;;  %v452_v6 = vld [vmem:[%s424_s24 + $0x30] sm:$0xf] }
  0x5d   : > { %451 = vst [vmem:[%s420_s16 + $0x14] sm:$0xf] %v450_v5  ;;  %v454_v7 = vld [vmem:[%s424_s24 + $0x38] sm:$0xf]  ;;  %453 = vst [vmem:[%s420_s16 + $0x18] sm:$0xf] %v452_v6 }
  0x5e   : > { %455 = vst [vmem:[%s420_s16 + $0x1c] sm:$0xf] %v454_v7 }
  0x5f PF: > { %p17124_p11 = scmp.ne.s32.totalorder %s17119_s21, 0 }
  0x61   : > { %497 = sbr.rel (%p17124_p11) target bundleno = 3654 (0xe46), region = 109 }
  0x68   : > { %s500_s20 = sand.u32 1, %s12253_s25   ;;  %p17125_p13 = scmp.ne.s32.totalorder %s17120_s23, 0 }
  0x69   : > { %s10061_s18 = sshll.u32 %s500_s20, 5 }
  0x6a   : > { %s12488_s12 = scalar_lea.vmem [#allocation3], %s10061_s18 }
  0x6b   : > { %12244 = dma.done.wait (%p17125_p13), [#allocation5], 8192  }
  0x6c   : > { %12246 = vsyncadd (%p17125_p13), [#allocation5], 4294959104 }
  0x6d   : > { %12248 = dma.done.wait (%p17125_p13), [#allocation7], 8192  }
  0x6e   : > { %12250 = vsyncadd (%p17125_p13), [#allocation7], 4294959104  ;;  %p551_p8 = scmp.lt.s32.totalorder %s12265_s28, 1  ;;  %p10066_p12 = scmp.ne.s32.totalorder %s12261_s27, 0 }
  0x6f   : > { %vm561_vm0 = vcmask (!%p10066_p12), 7168   ;;  %v12285_v8 = vmov (!%p10066_p12), -inf  }
  0x70   : > { %s17619_s28 = smov (!%p551_p8, %s12265_s28), 1  ;;  %560 = sbr.rel (%p10066_p12) target bundleno = 177 (0xb1), region = 125 }
  0x71   : > { %s10571_s21 = sshll.u32 %s17619_s28, 4  ;;  %562 = vst.msk [vmem:[#allocation2] sm:$0xff] (!%p10066_p12), %vm561_vm0, %v12285_v8  ;;  %563 = vst.msk [vmem:[#allocation2 + $0x8] sm:$0xff] (!%p10066_p12), %vm561_vm0, %v12285_v8 }
  0x72   : > { %s12503_s10 = scalar_lea.vmem %s16990_s13, %s10571_s21  ;;  %564 = vst.msk [vmem:[#allocation2 + $0x10] sm:$0xff] (!%p10066_p12), %vm561_vm0, %v12285_v8  ;;  %565 = vst.msk [vmem:[#allocation2 + $0x18] sm:$0xff] (!%p10066_p12), %vm561_vm0, %v12285_v8 }
  0x73   : > { %566 = vst.msk [vmem:[#allocation2 + $0x20] sm:$0xff] (!%p10066_p12), %vm561_vm0, %v12285_v8  ;;  %567 = vst.msk [vmem:[#allocation2 + $0x28] sm:$0xff] (!%p10066_p12), %vm561_vm0, %v12285_v8 }
  0x74   : > { %568 = vst.msk [vmem:[#allocation2 + $0x30] sm:$0xff] (!%p10066_p12), %vm561_vm0, %v12285_v8  ;;  %569 = vst.msk [vmem:[#allocation2 + $0x38] sm:$0xff] (!%p10066_p12), %vm561_vm0, %v12285_v8 }
  0x75   : > { %570 = vst.msk [vmem:[#allocation2 + $0x40] sm:$0xff] (!%p10066_p12), %vm561_vm0, %v12285_v8  ;;  %571 = vst.msk [vmem:[#allocation2 + $0x48] sm:$0xff] (!%p10066_p12), %vm561_vm0, %v12285_v8 }
  0x76   : > { %572 = vst.msk [vmem:[#allocation2 + $0x50] sm:$0xff] (!%p10066_p12), %vm561_vm0, %v12285_v8  ;;  %573 = vst.msk [vmem:[#allocation2 + $0x58] sm:$0xff] (!%p10066_p12), %vm561_vm0, %v12285_v8 }
  0x77   : > { %574 = vst.msk [vmem:[#allocation2 + $0x60] sm:$0xff] %vm561_vm0, %v12285_v8  ;;  %575 = vst.msk [vmem:[#allocation2 + $0x68] sm:$0xff] %vm561_vm0, %v12285_v8 }
  0x78   : > { %576 = vst.msk [vmem:[#allocation2 + $0x70] sm:$0xff] %vm561_vm0, %v12285_v8  ;;  %577 = vst.msk [vmem:[#allocation2 + $0x78] sm:$0xff] %vm561_vm0, %v12285_v8 }
  0x79   : > { %578 = vst.msk [vmem:[#allocation2 + $0x80] sm:$0xff] %vm561_vm0, %v12285_v8  ;;  %579 = vst.msk [vmem:[#allocation2 + $0x88] sm:$0xff] %vm561_vm0, %v12285_v8 }
  0x7a   : > { %580 = vst.msk [vmem:[#allocation2 + $0x90] sm:$0xff] %vm561_vm0, %v12285_v8  ;;  %581 = vst.msk [vmem:[#allocation2 + $0x98] sm:$0xff] %vm561_vm0, %v12285_v8 }
  0x7b   : > { %582 = vst.msk [vmem:[#allocation2 + $0xa0] sm:$0xff] %vm561_vm0, %v12285_v8  ;;  %583 = vst.msk [vmem:[#allocation2 + $0xa8] sm:$0xff] %vm561_vm0, %v12285_v8 }
  0x7c   : > { %584 = vst.msk [vmem:[#allocation2 + $0xb0] sm:$0xff] %vm561_vm0, %v12285_v8  ;;  %585 = vst.msk [vmem:[#allocation2 + $0xb8] sm:$0xff] %vm561_vm0, %v12285_v8 }
  0x7d   : > { %586 = vst.msk [vmem:[#allocation2 + $0xc0] sm:$0xff] %vm561_vm0, %v12285_v8  ;;  %587 = vst.msk [vmem:[#allocation2 + $0xc8] sm:$0xff] %vm561_vm0, %v12285_v8 }
  0x7e   : > { %588 = vst.msk [vmem:[#allocation2 + $0xd0] sm:$0xff] %vm561_vm0, %v12285_v8  ;;  %589 = vst.msk [vmem:[#allocation2 + $0xd8] sm:$0xff] %vm561_vm0, %v12285_v8 }
  0x7f   : > { %590 = vst.msk [vmem:[#allocation2 + $0xe0] sm:$0xff] %vm561_vm0, %v12285_v8  ;;  %591 = vst.msk [vmem:[#allocation2 + $0xe8] sm:$0xff] %vm561_vm0, %v12285_v8 }
  0x80   : > { %592 = vst.msk [vmem:[#allocation2 + $0xf0] sm:$0xff] %vm561_vm0, %v12285_v8  ;;  %593 = vst.msk [vmem:[#allocation2 + $0xf8] sm:$0xff] %vm561_vm0, %v12285_v8 }
  0x81   : > { %594 = vst.msk [vmem:[#allocation2 + $0x100] sm:$0xff] %vm561_vm0, %v12285_v8  ;;  %595 = vst.msk [vmem:[#allocation2 + $0x108] sm:$0xff] %vm561_vm0, %v12285_v8 }
  0x82   : > { %596 = vst.msk [vmem:[#allocation2 + $0x110] sm:$0xff] %vm561_vm0, %v12285_v8  ;;  %597 = vst.msk [vmem:[#allocation2 + $0x118] sm:$0xff] %vm561_vm0, %v12285_v8 }
  0x83   : > { %598 = vst.msk [vmem:[#allocation2 + $0x120] sm:$0xff] %vm561_vm0, %v12285_v8  ;;  %599 = vst.msk [vmem:[#allocation2 + $0x128] sm:$0xff] %vm561_vm0, %v12285_v8 }
  0x84   : > { %600 = vst.msk [vmem:[#allocation2 + $0x130] sm:$0xff] %vm561_vm0, %v12285_v8  ;;  %601 = vst.msk [vmem:[#allocation2 + $0x138] sm:$0xff] %vm561_vm0, %v12285_v8 }
  0x85   : > { %602 = vst.msk [vmem:[#allocation2 + $0x140] sm:$0xff] %vm561_vm0, %v12285_v8  ;;  %603 = vst.msk [vmem:[#allocation2 + $0x148] sm:$0xff] %vm561_vm0, %v12285_v8 }
  0x86   : > { %604 = vst.msk [vmem:[#allocation2 + $0x150] sm:$0xff] %vm561_vm0, %v12285_v8  ;;  %605 = vst.msk [vmem:[#allocation2 + $0x158] sm:$0xff] %vm561_vm0, %v12285_v8 }
  0x87   : > { %606 = vst.msk [vmem:[#allocation2 + $0x160] sm:$0xff] %vm561_vm0, %v12285_v8  ;;  %607 = vst.msk [vmem:[#allocation2 + $0x168] sm:$0xff] %vm561_vm0, %v12285_v8 }
  0x88   : > { %608 = vst.msk [vmem:[#allocation2 + $0x170] sm:$0xff] %vm561_vm0, %v12285_v8  ;;  %609 = vst.msk [vmem:[#allocation2 + $0x178] sm:$0xff] %vm561_vm0, %v12285_v8 }
  0x89   : > { %610 = vst.msk [vmem:[#allocation2 + $0x180] sm:$0xff] %vm561_vm0, %v12285_v8  ;;  %611 = vst.msk [vmem:[#allocation2 + $0x188] sm:$0xff] %vm561_vm0, %v12285_v8 }
  0x8a   : > { %612 = vst.msk [vmem:[#allocation2 + $0x190] sm:$0xff] %vm561_vm0, %v12285_v8  ;;  %613 = vst.msk [vmem:[#allocation2 + $0x198] sm:$0xff] %vm561_vm0, %v12285_v8 }
  0x8b   : > { %614 = vst.msk [vmem:[#allocation2 + $0x1a0] sm:$0xff] %vm561_vm0, %v12285_v8  ;;  %615 = vst.msk [vmem:[#allocation2 + $0x1a8] sm:$0xff] %vm561_vm0, %v12285_v8 }
  0x8c   : > { %616 = vst.msk [vmem:[#allocation2 + $0x1b0] sm:$0xff] %vm561_vm0, %v12285_v8  ;;  %617 = vst.msk [vmem:[#allocation2 + $0x1b8] sm:$0xff] %vm561_vm0, %v12285_v8 }
  0x8d   : > { %618 = vst.msk [vmem:[#allocation2 + $0x1c0] sm:$0xff] %vm561_vm0, %v12285_v8  ;;  %619 = vst.msk [vmem:[#allocation2 + $0x1c8] sm:$0xff] %vm561_vm0, %v12285_v8 }
  0x8e   : > { %620 = vst.msk [vmem:[#allocation2 + $0x1d0] sm:$0xff] %vm561_vm0, %v12285_v8  ;;  %621 = vst.msk [vmem:[#allocation2 + $0x1d8] sm:$0xff] %vm561_vm0, %v12285_v8 }
  0x8f   : > { %622 = vst.msk [vmem:[#allocation2 + $0x1e0] sm:$0xff] %vm561_vm0, %v12285_v8  ;;  %623 = vst.msk [vmem:[#allocation2 + $0x1e8] sm:$0xff] %vm561_vm0, %v12285_v8 }
  0x90   : > { %624 = vst.msk [vmem:[#allocation2 + $0x1f0] sm:$0xff] %vm561_vm0, %v12285_v8  ;;  %625 = vst.msk [vmem:[#allocation2 + $0x1f8] sm:$0xff] %vm561_vm0, %v12285_v8 }
  0x91   : > { %626 = vst.msk [vmem:[#allocation2 + $0x200] sm:$0xff] %vm561_vm0, %v12285_v8  ;;  %627 = vst.msk [vmem:[#allocation2 + $0x208] sm:$0xff] %vm561_vm0, %v12285_v8 }
  0x92   : > { %628 = vst.msk [vmem:[#allocation2 + $0x210] sm:$0xff] %vm561_vm0, %v12285_v8  ;;  %629 = vst.msk [vmem:[#allocation2 + $0x218] sm:$0xff] %vm561_vm0, %v12285_v8 }
  0x93   : > { %630 = vst.msk [vmem:[#allocation2 + $0x220] sm:$0xff] %vm561_vm0, %v12285_v8  ;;  %631 = vst.msk [vmem:[#allocation2 + $0x228] sm:$0xff] %vm561_vm0, %v12285_v8 }
  0x94   : > { %632 = vst.msk [vmem:[#allocation2 + $0x230] sm:$0xff] %vm561_vm0, %v12285_v8  ;;  %633 = vst.msk [vmem:[#allocation2 + $0x238] sm:$0xff] %vm561_vm0, %v12285_v8 }
  0x95   : > { %634 = vst.msk [vmem:[#allocation2 + $0x240] sm:$0xff] %vm561_vm0, %v12285_v8  ;;  %635 = vst.msk [vmem:[#allocation2 + $0x248] sm:$0xff] %vm561_vm0, %v12285_v8 }
  0x96   : > { %636 = vst.msk [vmem:[#allocation2 + $0x250] sm:$0xff] %vm561_vm0, %v12285_v8  ;;  %637 = vst.msk [vmem:[#allocation2 + $0x258] sm:$0xff] %vm561_vm0, %v12285_v8 }
  0x97   : > { %638 = vst.msk [vmem:[#allocation2 + $0x260] sm:$0xff] %vm561_vm0, %v12285_v8  ;;  %639 = vst.msk [vmem:[#allocation2 + $0x268] sm:$0xff] %vm561_vm0, %v12285_v8 }
  0x98   : > { %640 = vst.msk [vmem:[#allocation2 + $0x270] sm:$0xff] %vm561_vm0, %v12285_v8  ;;  %641 = vst.msk [vmem:[#allocation2 + $0x278] sm:$0xff] %vm561_vm0, %v12285_v8 }
  0x99   : > { %642 = vst.msk [vmem:[#allocation2 + $0x280] sm:$0xff] %vm561_vm0, %v12285_v8  ;;  %643 = vst.msk [vmem:[#allocation2 + $0x288] sm:$0xff] %vm561_vm0, %v12285_v8 }
  0x9a   : > { %644 = vst.msk [vmem:[#allocation2 + $0x290] sm:$0xff] %vm561_vm0, %v12285_v8  ;;  %645 = vst.msk [vmem:[#allocation2 + $0x298] sm:$0xff] %vm561_vm0, %v12285_v8 }
  0x9b   : > { %646 = vst.msk [vmem:[#allocation2 + $0x2a0] sm:$0xff] %vm561_vm0, %v12285_v8  ;;  %647 = vst.msk [vmem:[#allocation2 + $0x2a8] sm:$0xff] %vm561_vm0, %v12285_v8 }
  0x9c   : > { %648 = vst.msk [vmem:[#allocation2 + $0x2b0] sm:$0xff] %vm561_vm0, %v12285_v8  ;;  %649 = vst.msk [vmem:[#allocation2 + $0x2b8] sm:$0xff] %vm561_vm0, %v12285_v8 }
  0x9d   : > { %650 = vst.msk [vmem:[#allocation2 + $0x2c0] sm:$0xff] %vm561_vm0, %v12285_v8  ;;  %651 = vst.msk [vmem:[#allocation2 + $0x2c8] sm:$0xff] %vm561_vm0, %v12285_v8 }
  0x9e   : > { %652 = vst.msk [vmem:[#allocation2 + $0x2d0] sm:$0xff] %vm561_vm0, %v12285_v8  ;;  %653 = vst.msk [vmem:[#allocation2 + $0x2d8] sm:$0xff] %vm561_vm0, %v12285_v8 }
  0x9f   : > { %654 = vst.msk [vmem:[#allocation2 + $0x2e0] sm:$0xff] %vm561_vm0, %v12285_v8  ;;  %655 = vst.msk [vmem:[#allocation2 + $0x2e8] sm:$0xff] %vm561_vm0, %v12285_v8 }
  0xa0   : > { %656 = vst.msk [vmem:[#allocation2 + $0x2f0] sm:$0xff] %vm561_vm0, %v12285_v8  ;;  %657 = vst.msk [vmem:[#allocation2 + $0x2f8] sm:$0xff] %vm561_vm0, %v12285_v8 }
  0xa1   : > { %658 = vst.msk [vmem:[#allocation2 + $0x300] sm:$0xff] %vm561_vm0, %v12285_v8  ;;  %659 = vst.msk [vmem:[#allocation2 + $0x308] sm:$0xff] %vm561_vm0, %v12285_v8 }
  0xa2   : > { %660 = vst.msk [vmem:[#allocation2 + $0x310] sm:$0xff] %vm561_vm0, %v12285_v8  ;;  %661 = vst.msk [vmem:[#allocation2 + $0x318] sm:$0xff] %vm561_vm0, %v12285_v8 }
  0xa3   : > { %662 = vst.msk [vmem:[#allocation2 + $0x320] sm:$0xff] %vm561_vm0, %v12285_v8  ;;  %663 = vst.msk [vmem:[#allocation2 + $0x328] sm:$0xff] %vm561_vm0, %v12285_v8 }
  0xa4   : > { %664 = vst.msk [vmem:[#allocation2 + $0x330] sm:$0xff] %vm561_vm0, %v12285_v8  ;;  %665 = vst.msk [vmem:[#allocation2 + $0x338] sm:$0xff] %vm561_vm0, %v12285_v8 }
  0xa5   : > { %666 = vst.msk [vmem:[#allocation2 + $0x340] sm:$0xff] %vm561_vm0, %v12285_v8  ;;  %667 = vst.msk [vmem:[#allocation2 + $0x348] sm:$0xff] %vm561_vm0, %v12285_v8 }
  0xa6   : > { %668 = vst.msk [vmem:[#allocation2 + $0x350] sm:$0xff] %vm561_vm0, %v12285_v8  ;;  %669 = vst.msk [vmem:[#allocation2 + $0x358] sm:$0xff] %vm561_vm0, %v12285_v8 }
  0xa7   : > { %670 = vst.msk [vmem:[#allocation2 + $0x360] sm:$0xff] %vm561_vm0, %v12285_v8  ;;  %671 = vst.msk [vmem:[#allocation2 + $0x368] sm:$0xff] %vm561_vm0, %v12285_v8 }
  0xa8   : > { %672 = vst.msk [vmem:[#allocation2 + $0x370] sm:$0xff] %vm561_vm0, %v12285_v8  ;;  %673 = vst.msk [vmem:[#allocation2 + $0x378] sm:$0xff] %vm561_vm0, %v12285_v8 }
  0xa9   : > { %674 = vst.msk [vmem:[#allocation2 + $0x380] sm:$0xff] %vm561_vm0, %v12285_v8  ;;  %675 = vst.msk [vmem:[#allocation2 + $0x388] sm:$0xff] %vm561_vm0, %v12285_v8 }
  0xaa   : > { %676 = vst.msk [vmem:[#allocation2 + $0x390] sm:$0xff] %vm561_vm0, %v12285_v8  ;;  %677 = vst.msk [vmem:[#allocation2 + $0x398] sm:$0xff] %vm561_vm0, %v12285_v8 }
  0xab   : > { %678 = vst.msk [vmem:[#allocation2 + $0x3a0] sm:$0xff] %vm561_vm0, %v12285_v8  ;;  %679 = vst.msk [vmem:[#allocation2 + $0x3a8] sm:$0xff] %vm561_vm0, %v12285_v8 }
  0xac   : > { %680 = vst.msk [vmem:[#allocation2 + $0x3b0] sm:$0xff] %vm561_vm0, %v12285_v8  ;;  %681 = vst.msk [vmem:[#allocation2 + $0x3b8] sm:$0xff] %vm561_vm0, %v12285_v8 }
  0xad   : > { %682 = vst.msk [vmem:[#allocation2 + $0x3c0] sm:$0xff] %vm561_vm0, %v12285_v8  ;;  %683 = vst.msk [vmem:[#allocation2 + $0x3c8] sm:$0xff] %vm561_vm0, %v12285_v8 }
  0xae   : > { %684 = vst.msk [vmem:[#allocation2 + $0x3d0] sm:$0xff] %vm561_vm0, %v12285_v8  ;;  %685 = vst.msk [vmem:[#allocation2 + $0x3d8] sm:$0xff] %vm561_vm0, %v12285_v8 }
  0xaf   : > { %686 = vst.msk [vmem:[#allocation2 + $0x3e0] sm:$0xff] %vm561_vm0, %v12285_v8  ;;  %687 = vst.msk [vmem:[#allocation2 + $0x3e8] sm:$0xff] %vm561_vm0, %v12285_v8 }
  0xb0   : > { %688 = vst.msk [vmem:[#allocation2 + $0x3f0] sm:$0xff] %vm561_vm0, %v12285_v8  ;;  %689 = vst.msk [vmem:[#allocation2 + $0x3f8] sm:$0xff] %vm561_vm0, %v12285_v8 }
  0xb1 PF: > { %v690_v9 = vld [vmem:[%s12488_s12] sm:$0x7]  ;;  %vm780_vm1 = vcmask 1042432   ;;  %v701_v10 = vld [vmem:[%s16979_s2 + $0x10] sm:$0xff]  ;;  %v12286_v12 = vmov 0   ;;  %vm767_vm2 = vcmask 48128  }
  0xb2   : > { %v699_v11 = vld [vmem:[%s16979_s2] sm:$0xff]  ;;  %11967 = vset.pattern.permute.xlu1 %v12286_v12  ;;  %11966 = vset.pattern.permute.xlu0 %v12286_v12  ;;  %v782_v13 = vsel %vm780_vm1, %v690_v9, 0  ;;  %v11969_v15 = vld [vmem:[%s16978_s1 + $0x8] sm:$0xff]   ;;  %v702_v17 = vld [vmem:[%s16979_s2 + $0x18] sm:$0xff]  ;;  %s17126_s19 = sld [smem:[#allocation107_spill]]  ;;  %s17127_s15 = sld [smem:[#allocation108_spill]] }
  0xb3   : > { %v11968_v14 = vld [vmem:[%s16978_s1] sm:$0xff]   ;;  %11874 = vmatprep.subr.msk.bf16.mxu0 %vm780_vm1, %v690_v9  ;;  %719 = vperm.xlu1 %11967, %v701_v10   ;;  %v700_v18 = vld [vmem:[%s16979_s2 + $0x8] sm:$0xff]  ;;  %v11970_v20 = vld [vmem:[%s16978_s1 + $0x10] sm:$0xff]   ;;  %s17128_s16 = sld [smem:[#allocation106_spill]]  ;;  %vm1029_vm3 = vcmask 523264   ;;  %p10246_p0 = scmp.ne.s32.totalorder %s12261_s27, 1 }
  0xb4   : > { %709 = vperm.xlu0 %11966, %v699_v11   ;;  %11027 = vmatpush3.bf16.msra.mxu0 %v782_v13  ;;  %v10091_v16 = vld [vmem:[%s12488_s12 + $0x4] sm:$0x7]  ;;  %v704_v21 = vld [vmem:[%s16979_s2 + $0x28] sm:$0xff]  ;;  %v11971_v23 = vld [vmem:[%s16978_s1 + $0x18] sm:$0xff]  }
  0xb5   : > { %11028 = vmatprep.mubr.msk.bf16.mxu0 %vm767_vm2, %v11968_v14  ;;  %11875 = vmatprep.subr.msk.bf16.mxu0 %vm780_vm1, %v10091_v16  ;;  %v1202_v19 = vsel %vm780_vm1, %v10091_v16, 0  ;;  %v703_v22 = vld [vmem:[%s16979_s2 + $0x20] sm:$0xff]  ;;  %v706_v24 = vld [vmem:[%s16979_s2 + $0x38] sm:$0xff]  ;;  %v705_v25 = vld [vmem:[%s16979_s2 + $0x30] sm:$0xff] }
  0xb7   : > { %11029 = vmatmul.mubr.msk.bf16.vlgmr.msra.gmra.mrb[0].mxu0 %vm767_vm2, %v11969_v15  ;;  %724 = vperm.xlu1 %11967, %v702_v17  }
  0xb8   : > { %714 = vperm.xlu0 %11966, %v700_v18   ;;  %11061 = vmatpush3.bf16.msra.mxu0 %v1202_v19  ;;  %v894_v26 = vld [vmem:[%s17126_s19 + $0x8] sm:$0xff]  ;;  %v893_v27 = vld [vmem:[%s17126_s19] sm:$0xff]  ;;  %v896_v28 = vld [vmem:[%s17126_s19 + $0x18] sm:$0xff] }
  0xb9   : > { %11032 = vmatprep.mubr.msk.bf16.mxu0 %vm767_vm2, %v11970_v20  ;;  %v895_v29 = vld [vmem:[%s17126_s19 + $0x10] sm:$0xff]  ;;  %v898_v30 = vld [vmem:[%s17126_s19 + $0x28] sm:$0xff]  ;;  %v897_v31 = vld [vmem:[%s17126_s19 + $0x20] sm:$0xff] }
  0xba   : > { %v900_v32 = vld [vmem:[%s17126_s19 + $0x38] sm:$0xff]  ;;  %v899_v33 = vld [vmem:[%s17126_s19 + $0x30] sm:$0xff]  ;;  %v902_v34 = vld [vmem:[%s17126_s19 + $0x48] sm:$0xff] }
  0xbb   : > { %734 = vperm.xlu1 %11967, %v704_v21   ;;  %v901_v35 = vld [vmem:[%s17126_s19 + $0x40] sm:$0xff]  ;;  %v904_v36 = vld [vmem:[%s17126_s19 + $0x58] sm:$0xff]  ;;  %v903_v37 = vld [vmem:[%s17126_s19 + $0x50] sm:$0xff] }
  0xbc   : > { %729 = vperm.xlu0 %11966, %v703_v22   ;;  %v906_v38 = vld [vmem:[%s17126_s19 + $0x68] sm:$0xff]  ;;  %v905_v39 = vld [vmem:[%s17126_s19 + $0x60] sm:$0xff]  ;;  %v908_v40 = vld [vmem:[%s17126_s19 + $0x78] sm:$0xff] }
  0xbd   : > { %v907_v41 = vld [vmem:[%s17126_s19 + $0x70] sm:$0xff]  ;;  %v3149_v42 = vld [vmem:[%s17127_s15 + $0x8] sm:$0xff]  ;;  %v3148_v43 = vld [vmem:[%s17127_s15] sm:$0xff] }
  0xbe   : > { %v3151_v44 = vld [vmem:[%s17127_s15 + $0x18] sm:$0xff]  ;;  %v3150_v45 = vld [vmem:[%s17127_s15 + $0x10] sm:$0xff]  ;;  %v3153_v46 = vld [vmem:[%s17127_s15 + $0x28] sm:$0xff] }
  0xbf   : > { %11033 = vmatmul.mubr.msk.bf16.gmra.mrb[4].mxu0 %vm767_vm2, %v11971_v23  ;;  %744 = vperm.xlu1 %11967, %v706_v24   ;;  %v3152_v47 = vld [vmem:[%s17127_s15 + $0x20] sm:$0xff]  ;;  %v3155_v48 = vld [vmem:[%s17127_s15 + $0x38] sm:$0xff]  ;;  %v3154_v49 = vld [vmem:[%s17127_s15 + $0x30] sm:$0xff] }
  0xc0   : > { %739 = vperm.xlu0 %11966, %v705_v25   ;;  %11062 = vmatprep.mubr.msk.bf16.mxu0 %vm767_vm2, %v11968_v14  ;;  %v3157_v50 = vld [vmem:[%s17127_s15 + $0x48] sm:$0xff]  ;;  %v3156_v51 = vld [vmem:[%s17127_s15 + $0x40] sm:$0xff]  ;;  %v3159_v52 = vld [vmem:[%s17127_s15 + $0x58] sm:$0xff] }
  0xc1   : > { %v3158_v53 = vld [vmem:[%s17127_s15 + $0x50] sm:$0xff]  ;;  %v3161_v54 = vld [vmem:[%s17127_s15 + $0x68] sm:$0xff]  ;;  %v3160_v55 = vld [vmem:[%s17127_s15 + $0x60] sm:$0xff] }
  0xc2   : > { %v3163_v56 = vld [vmem:[%s17127_s15 + $0x78] sm:$0xff]  ;;  %v3162_v57 = vld [vmem:[%s17127_s15 + $0x70] sm:$0xff]  ;;  %v3165_v58 = vld [vmem:[%s17127_s15 + $0x88] sm:$0xff] }
  0xc3   : > { %916 = vperm.xlu1 %11967, %v894_v26   ;;  %v3164_v59 = vld [vmem:[%s17127_s15 + $0x80] sm:$0xff]  ;;  %v3167_v60 = vld [vmem:[%s17127_s15 + $0x98] sm:$0xff]  ;;  %v3166_v61 = vld [vmem:[%s17127_s15 + $0x90] sm:$0xff] }
  0xc4   : > { %911 = vperm.xlu0 %11966, %v893_v27   ;;  %v3169_v62 = vld [vmem:[%s17127_s15 + $0xa8] sm:$0xff]  ;;  %v3168_v63 = vld [vmem:[%s17127_s15 + $0xa0] sm:$0xff]  ;;  %v3171_v0 = vld [vmem:[%s17127_s15 + $0xb8] sm:$0xff] }
  0xc5   : > { %v3170_v1 = vld [vmem:[%s17127_s15 + $0xb0] sm:$0xff]  ;;  %v3173_v2 = vld [vmem:[%s17127_s15 + $0xc8] sm:$0xff]  ;;  %v3172_v3 = vld [vmem:[%s17127_s15 + $0xc0] sm:$0xff] }
  0xc6   : > { %v3175_v4 = vld [vmem:[%s17127_s15 + $0xd8] sm:$0xff]  ;;  %v3174_v5 = vld [vmem:[%s17127_s15 + $0xd0] sm:$0xff]  ;;  %v3177_v6 = vld [vmem:[%s17127_s15 + $0xe8] sm:$0xff] }
  0xc7   : > { %11063 = vmatmul.mubr.msk.bf16.vlgmr.msra.gmra.mrb[8].mxu0 %vm767_vm2, %v11969_v15  ;;  %926 = vperm.xlu1 %11967, %v896_v28   ;;  %v3176_v7 = vld [vmem:[%s17127_s15 + $0xe0] sm:$0xff]  ;;  %v3179_v8 = vld [vmem:[%s17127_s15 + $0xf8] sm:$0xff]  ;;  %v3178_v9 = vld [vmem:[%s17127_s15 + $0xf0] sm:$0xff] }
  0xc8   : > { %921 = vperm.xlu0 %11966, %v895_v29   ;;  %11066 = vmatprep.mubr.msk.bf16.mxu0 %vm767_vm2, %v11970_v20  ;;  %v3181_v10 = vld [vmem:[%s17127_s15 + $0x108] sm:$0xff]  ;;  %v3180_v11 = vld [vmem:[%s17127_s15 + $0x100] sm:$0xff]  ;;  %v3183_v13 = vld [vmem:[%s17127_s15 + $0x118] sm:$0xff] }
  0xc9   : > { %v12965_v12 = vld [vmem:[%s17128_s16] sm:$0xff]   ;;  %v3182_v14 = vld [vmem:[%s17127_s15 + $0x110] sm:$0xff]  ;;  %v3185_v15 = vld [vmem:[%s17127_s15 + $0x128] sm:$0xff] }
  0xca   : > { %11044 = vmatprep.mubr.msk.bf16.mxu1 %vm1029_vm3, %v12965_v12  ;;  %v3184_v16 = vld [vmem:[%s17127_s15 + $0x120] sm:$0xff]  ;;  %v3187_v17 = vld [vmem:[%s17127_s15 + $0x138] sm:$0xff]  ;;  %v3186_v18 = vld [vmem:[%s17127_s15 + $0x130] sm:$0xff] }
  0xcb   : > { %936 = vperm.xlu1 %11967, %v898_v30   ;;  %v3189_v19 = vld [vmem:[%s17127_s15 + $0x148] sm:$0xff]  ;;  %v3188_v20 = vld [vmem:[%s17127_s15 + $0x140] sm:$0xff]  ;;  %v3191_v21 = vld [vmem:[%s17127_s15 + $0x158] sm:$0xff] }
  0xcc   : > { %931 = vperm.xlu0 %11966, %v897_v31   ;;  %v3190_v22 = vld [vmem:[%s17127_s15 + $0x150] sm:$0xff]  ;;  %v3192_v24 = vld [vmem:[%s17127_s15 + $0x160] sm:$0xff]  ;;  %v3195_v25 = vld [vmem:[%s17127_s15 + $0x178] sm:$0xff] }
  0xcd   : > { %v3194_v26 = vld [vmem:[%s17127_s15 + $0x170] sm:$0xff]  ;;  %v3197_v27 = vld [vmem:[%s17127_s15 + $0x188] sm:$0xff]  ;;  %v3196_v28 = vld [vmem:[%s17127_s15 + $0x180] sm:$0xff] }
  0xce   : > { %v3199_v31 = vld [vmem:[%s17127_s15 + $0x198] sm:$0xff] }
  0xcf   : > { %11067 = vmatmul.mubr.msk.bf16.gmra.mrb[12].mxu0 %vm767_vm2, %v11971_v23  ;;  %946 = vperm.xlu1 %11967, %v900_v32   ;;  %v3193_v23 = vld [vmem:[%s17127_s15 + $0x168] sm:$0xff]  ;;  %v3198_v32 = vld [vmem:[%s17127_s15 + $0x190] sm:$0xff] }
  0xd0   : > { %941 = vperm.xlu0 %11966, %v899_v33   ;;  %11078 = vmatprep.mubr.msk.bf16.mxu0 %vm1029_vm3, %v12965_v12  ;;  %v3201_v33 = vld [vmem:[%s17127_s15 + $0x1a8] sm:$0xff] }
  0xd3   : > { %956 = vperm.xlu1 %11967, %v902_v34  }
  0xd4   : > { %951 = vperm.xlu0 %11966, %v901_v35   ;;  %v3200_v35 = vld [vmem:[%s17127_s15 + $0x1a0] sm:$0xff] }
  0xd7   : > { %966 = vperm.xlu1 %11967, %v904_v36  }
  0xd8   : > { %961 = vperm.xlu0 %11966, %v903_v37   ;;  %v3203_v37 = vld [vmem:[%s17127_s15 + $0x1b8] sm:$0xff] }
  0xdb   : > { %976 = vperm.xlu1 %11967, %v906_v38   ;;  %v3202_v38 = vld [vmem:[%s17127_s15 + $0x1b0] sm:$0xff] }
  0xdc   : > { %971 = vperm.xlu0 %11966, %v905_v39  }
  0xdf   : > { %986 = vperm.xlu1 %11967, %v908_v40  }
  0xe0   : > { %981 = vperm.xlu0 %11966, %v907_v41   ;;  %v3205_v41 = vld [vmem:[%s17127_s15 + $0x1c8] sm:$0xff] }
  0xe3   : > { %3283 = vperm.xlu1 %11967, %v3149_v42   ;;  %v3204_v42 = vld [vmem:[%s17127_s15 + $0x1c0] sm:$0xff] }
  0xe4   : > { %3278 = vperm.xlu0 %11966, %v3148_v43   ;;  %v3207_v43 = vld [vmem:[%s17127_s15 + $0x1d8] sm:$0xff] }
  0xe7   : > { %3293 = vperm.xlu1 %11967, %v3151_v44  }
  0xe8   : > { %3288 = vperm.xlu0 %11966, %v3150_v45   ;;  %v3206_v45 = vld [vmem:[%s17127_s15 + $0x1d0] sm:$0xff] }
  0xeb   : > { %3303 = vperm.xlu1 %11967, %v3153_v46  }
  0xec   : > { %3298 = vperm.xlu0 %11966, %v3152_v47   ;;  %v3209_v47 = vld [vmem:[%s17127_s15 + $0x1e8] sm:$0xff] }
  0xef   : > { %3313 = vperm.xlu1 %11967, %v3155_v48   ;;  %v3208_v48 = vld [vmem:[%s17127_s15 + $0x1e0] sm:$0xff] }
  0xf0   : > { %3308 = vperm.xlu0 %11966, %v3154_v49  }
  0xf3   : > { %3323 = vperm.xlu1 %11967, %v3157_v50  }
  0xf4   : > { %3318 = vperm.xlu0 %11966, %v3156_v51   ;;  %v3211_v51 = vld [vmem:[%s17127_s15 + $0x1f8] sm:$0xff] }
  0xf7   : > { %3333 = vperm.xlu1 %11967, %v3159_v52   ;;  %v3210_v52 = vld [vmem:[%s17127_s15 + $0x1f0] sm:$0xff] }
  0xf8   : > { %3328 = vperm.xlu0 %11966, %v3158_v53   ;;  %v3213_v53 = vld [vmem:[%s17127_s15 + $0x208] sm:$0xff] }
  0xfb   : > { %3343 = vperm.xlu1 %11967, %v3161_v54  }
  0xfc   : > { %3338 = vperm.xlu0 %11966, %v3160_v55   ;;  %v3212_v55 = vld [vmem:[%s17127_s15 + $0x200] sm:$0xff] }
  0xff   : > { %3353 = vperm.xlu1 %11967, %v3163_v56  }
 0x100   : > { %3348 = vperm.xlu0 %11966, %v3162_v57   ;;  %v3215_v57 = vld [vmem:[%s17127_s15 + $0x218] sm:$0xff] }
 0x103   : > { %3363 = vperm.xlu1 %11967, %v3165_v58   ;;  %v3214_v58 = vld [vmem:[%s17127_s15 + $0x210] sm:$0xff] }
 0x104   : > { %3358 = vperm.xlu0 %11966, %v3164_v59  }
 0x107   : > { %3373 = vperm.xlu1 %11967, %v3167_v60  }
 0x108   : > { %3368 = vperm.xlu0 %11966, %v3166_v61   ;;  %v3217_v61 = vld [vmem:[%s17127_s15 + $0x228] sm:$0xff] }
 0x10b   : > { %3383 = vperm.xlu1 %11967, %v3169_v62   ;;  %v3216_v62 = vld [vmem:[%s17127_s15 + $0x220] sm:$0xff] }
 0x10c   : > { %3378 = vperm.xlu0 %11966, %v3168_v63   ;;  %v3219_v63 = vld [vmem:[%s17127_s15 + $0x238] sm:$0xff] }
 0x10f   : > { %3393 = vperm.xlu1 %11967, %v3171_v0  }
 0x110   : > { %3388 = vperm.xlu0 %11966, %v3170_v1   ;;  %v3218_v1 = vld [vmem:[%s17127_s15 + $0x230] sm:$0xff] }
 0x113   : > { %3403 = vperm.xlu1 %11967, %v3173_v2  }
 0x114   : > { %3398 = vperm.xlu0 %11966, %v3172_v3   ;;  %v3221_v3 = vld [vmem:[%s17127_s15 + $0x248] sm:$0xff] }
 0x117   : > { %3413 = vperm.xlu1 %11967, %v3175_v4   ;;  %v3220_v4 = vld [vmem:[%s17127_s15 + $0x240] sm:$0xff] }
 0x118   : > { %3408 = vperm.xlu0 %11966, %v3174_v5  }
 0x11b   : > { %3423 = vperm.xlu1 %11967, %v3177_v6  }
 0x11c   : > { %3418 = vperm.xlu0 %11966, %v3176_v7   ;;  %v3223_v7 = vld [vmem:[%s17127_s15 + $0x258] sm:$0xff] }
 0x11f   : > { %3433 = vperm.xlu1 %11967, %v3179_v8   ;;  %v3222_v8 = vld [vmem:[%s17127_s15 + $0x250] sm:$0xff] }
 0x120   : > { %3428 = vperm.xlu0 %11966, %v3178_v9   ;;  %v3225_v9 = vld [vmem:[%s17127_s15 + $0x268] sm:$0xff] }
 0x123   : > { %3443 = vperm.xlu1 %11967, %v3181_v10  }
 0x124   : > { %3438 = vperm.xlu0 %11966, %v3180_v11   ;;  %v3224_v11 = vld [vmem:[%s17127_s15 + $0x260] sm:$0xff] }
 0x127   : > { %3453 = vperm.xlu1 %11967, %v3183_v13  }
 0x128   : > { %3448 = vperm.xlu0 %11966, %v3182_v14   ;;  %v3227_v14 = vld [vmem:[%s17127_s15 + $0x278] sm:$0xff] }
 0x12b   : > { %3463 = vperm.xlu1 %11967, %v3185_v15   ;;  %v3226_v15 = vld [vmem:[%s17127_s15 + $0x270] sm:$0xff] }
 0x12c   : > { %3458 = vperm.xlu0 %11966, %v3184_v16  }
 0x12f   : > { %3473 = vperm.xlu1 %11967, %v3187_v17  }
 0x130   : > { %3468 = vperm.xlu0 %11966, %v3186_v18   ;;  %v3229_v18 = vld [vmem:[%s17127_s15 + $0x288] sm:$0xff] }
 0x132   : > { %v13019_v29 = vpop.permute.xlu1 %719 }
 0x133   : > { %3483 = vperm.xlu1 %11967, %v3189_v19   ;;  %v13021_v30 = vpop.permute.xlu0 %709  ;;  %v3228_v19 = vld [vmem:[%s17127_s15 + $0x280] sm:$0xff] }
 0x134   : > { %3478 = vperm.xlu0 %11966, %v3188_v20   ;;  %v3231_v20 = vld [vmem:[%s17127_s15 + $0x298] sm:$0xff] }
 0x136   : > { %v13032_v34 = vpop.permute.xlu1 %724 }
 0x137   : > { %3493 = vperm.xlu1 %11967, %v3191_v21   ;;  %17129 = vst [vmem:[#allocation13_spill] sm:$0xff] %v13032_v34  ;;  %v13037_v36 = vpop.permute.xlu0 %714 }
 0x138   : > { %3488 = vperm.xlu0 %11966, %v3190_v22   ;;  %17130 = vst [vmem:[#allocation14_spill] sm:$0xff] %v13037_v36  ;;  %v3230_v22 = vld [vmem:[%s17127_s15 + $0x290] sm:$0xff] }
 0x13a   : > { %v13045_v39 = vpop.permute.xlu1 %734 }
 0x13b   : > { %3503 = vperm.xlu1 %11967, %v3193_v23   ;;  %v13047_v40 = vpop.permute.xlu0 %729 }
 0x13c   : > { %3498 = vperm.xlu0 %11966, %v3192_v24   ;;  %v3233_v24 = vld [vmem:[%s17127_s15 + $0x2a8] sm:$0xff] }
 0x13e   : > { %v13058_v44 = vpop.permute.xlu1 %744 }
 0x13f   : > { %3513 = vperm.xlu1 %11967, %v3195_v25   ;;  %v13063_v46 = vpop.permute.xlu0 %739  ;;  %v3232_v25 = vld [vmem:[%s17127_s15 + $0x2a0] sm:$0xff] }
 0x140   : > { %3508 = vperm.xlu0 %11966, %v3194_v26  }
 0x142   : > { %v13071_v49 = vpop.permute.xlu1 %916 }
 0x143   : > { %3523 = vperm.xlu1 %11967, %v3197_v27   ;;  %17131 = vst [vmem:[#allocation15_spill] sm:$0xff] %v13071_v49  ;;  %v13073_v50 = vpop.permute.xlu0 %911 }
 0x144   : > { %3518 = vperm.xlu0 %11966, %v3196_v28   ;;  %17132 = vst [vmem:[#allocation16_spill] sm:$0xff] %v13073_v50 }
 0x146   : > { %v13084_v54 = vpop.permute.xlu1 %926 }
 0x147   : > { %3533 = vperm.xlu1 %11967, %v3199_v31   ;;  %17133 = vst [vmem:[#allocation17_spill] sm:$0xff] %v13084_v54  ;;  %v13089_v56 = vpop.permute.xlu0 %921 }
 0x148   : > { %3528 = vperm.xlu0 %11966, %v3198_v32   ;;  %17134 = vst [vmem:[#allocation18_spill] sm:$0xff] %v13089_v56 }
 0x14a   : > { %v13097_v59 = vpop.permute.xlu1 %936 }
 0x14b   : > { %3543 = vperm.xlu1 %11967, %v3201_v33   ;;  %17135 = vst [vmem:[#allocation19_spill] sm:$0xff] %v13097_v59  ;;  %v13099_v60 = vpop.permute.xlu0 %931 }
 0x14c   : > { %3538 = vperm.xlu0 %11966, %v3200_v35   ;;  %17136 = vst [vmem:[#allocation20_spill] sm:$0xff] %v13099_v60 }
 0x14e   : > { %v13110_v0 = vpop.permute.xlu1 %946 }
 0x14f   : > { %3553 = vperm.xlu1 %11967, %v3203_v37   ;;  %17137 = vst [vmem:[#allocation21_spill] sm:$0xff] %v13110_v0  ;;  %v13115_v2 = vpop.permute.xlu0 %941  ;;  %v3235_v37 = vld [vmem:[%s17127_s15 + $0x2b8] sm:$0xff] }
 0x150   : > { %3548 = vperm.xlu0 %11966, %v3202_v38   ;;  %17138 = vst [vmem:[#allocation22_spill] sm:$0xff] %v13115_v2 }
 0x152   : > { %v13123_v5 = vpop.permute.xlu1 %956 }
 0x153   : > { %3563 = vperm.xlu1 %11967, %v3205_v41   ;;  %17139 = vst [vmem:[#allocation23_spill] sm:$0xff] %v13123_v5  ;;  %v13125_v6 = vpop.permute.xlu0 %951 }
 0x154   : > { %3558 = vperm.xlu0 %11966, %v3204_v42   ;;  %17140 = vst [vmem:[#allocation24_spill] sm:$0xff] %v13125_v6 }
 0x156   : > { %v13136_v10 = vpop.permute.xlu1 %966 }
 0x157   : > { %3573 = vperm.xlu1 %11967, %v3207_v43   ;;  %17141 = vst [vmem:[#allocation25_spill] sm:$0xff] %v13136_v10  ;;  %v13141_v13 = vpop.permute.xlu0 %961  ;;  %v3234_v43 = vld [vmem:[%s17127_s15 + $0x2b0] sm:$0xff] }
 0x158   : > { %3568 = vperm.xlu0 %11966, %v3206_v45   ;;  %17142 = vst [vmem:[#allocation26_spill] sm:$0xff] %v13141_v13 }
 0x15a   : > { %v13149_v16 = vpop.permute.xlu1 %976 }
 0x15b   : > { %3583 = vperm.xlu1 %11967, %v3209_v47   ;;  %17143 = vst [vmem:[#allocation27_spill] sm:$0xff] %v13149_v16  ;;  %v13151_v17 = vpop.permute.xlu0 %971 }
 0x15c   : > { %3578 = vperm.xlu0 %11966, %v3208_v48   ;;  %17144 = vst [vmem:[#allocation28_spill] sm:$0xff] %v13151_v17 }
 0x15e   : > { %v13162_v21 = vpop.permute.xlu1 %986 }
 0x15f   : > { %3593 = vperm.xlu1 %11967, %v3211_v51   ;;  %17145 = vst [vmem:[#allocation29_spill] sm:$0xff] %v13162_v21  ;;  %v13167_v23 = vpop.permute.xlu0 %981 }
 0x160   : > { %3588 = vperm.xlu0 %11966, %v3210_v52   ;;  %17146 = vst [vmem:[#allocation30_spill] sm:$0xff] %v13167_v23  ;;  %v3237_v52 = vld [vmem:[%s17127_s15 + $0x2c8] sm:$0xff] }
 0x162   : > { %v13175_v27 = vpop.permute.xlu1 %3283 }
 0x163   : > { %3603 = vperm.xlu1 %11967, %v3213_v53   ;;  %17147 = vst [vmem:[#allocation31_spill] sm:$0xff] %v13175_v27  ;;  %v13178_v32 = vpop.permute.xlu0 %3278 }
 0x164   : > { %3598 = vperm.xlu0 %11966, %v3212_v55   ;;  %17148 = vst [vmem:[#allocation32_spill] sm:$0xff] %v13178_v32  ;;  %v3236_v55 = vld [vmem:[%s17127_s15 + $0x2c0] sm:$0xff] }
 0x166   : > { %v13192_v53 = vpop.permute.xlu1 %3293 }
 0x167   : > { %3613 = vperm.xlu1 %11967, %v3215_v57   ;;  %17149 = vst [vmem:[#allocation33_spill] sm:$0xff] %v13192_v53 }
 0x168   : > { %3608 = vperm.xlu0 %11966, %v3214_v58  }
 0x16b   : > { %3623 = vperm.xlu1 %11967, %v3217_v61   ;;  %v13197_v61 = vpop.permute.xlu0 %3288 }
 0x16c   : > { %3618 = vperm.xlu0 %11966, %v3216_v62   ;;  %17150 = vst [vmem:[#allocation34_spill] sm:$0xff] %v13197_v61 }
 0x16f   : > { %3633 = vperm.xlu1 %11967, %v3219_v63  }
 0x170   : > { %3628 = vperm.xlu0 %11966, %v3218_v1  }
 0x173   : > { %3643 = vperm.xlu1 %11967, %v3221_v3  }
 0x174   : > { %3638 = vperm.xlu0 %11966, %v3220_v4  }
 0x177   : > { %3653 = vperm.xlu1 %11967, %v3223_v7  }
 0x178   : > { %3648 = vperm.xlu0 %11966, %v3222_v8  }
 0x17b   : > { %3663 = vperm.xlu1 %11967, %v3225_v9  }
 0x17c   : > { %3658 = vperm.xlu0 %11966, %v3224_v11  }
 0x17f   : > { %3673 = vperm.xlu1 %11967, %v3227_v14   ;;  %v3239_v14 = vld [vmem:[%s17127_s15 + $0x2d8] sm:$0xff] }
 0x180   : > { %3668 = vperm.xlu0 %11966, %v3226_v15  }
 0x183   : > { %3683 = vperm.xlu1 %11967, %v3229_v18  }
 0x184   : > { %3678 = vperm.xlu0 %11966, %v3228_v19  }
 0x187   : > { %3693 = vperm.xlu1 %11967, %v3231_v20   ;;  %v3238_v20 = vld [vmem:[%s17127_s15 + $0x2d0] sm:$0xff] }
 0x188   : > { %3688 = vperm.xlu0 %11966, %v3230_v22  }
 0x18a   : > { %v11030_v26 = vpop.f32.mrb[0].mxu0 }
 0x18b   : > { %v827_v28 = vadd.f32 %v11030_v26, %v13019_v29  ;;  %v818_v31 = vpop.f32.mrb[1].mxu0  ;;  %3703 = vperm.xlu1 %11967, %v3233_v24  }
 0x18c   : > { %v819_v33 = vadd.f32 %v818_v31, %v13021_v30  ;;  %3698 = vperm.xlu0 %11966, %v3232_v25   ;;  %v11031_v35 = vpop.f32.mrb[2].mxu0  ;;  %v13209_v25 = vpop.permute.xlu1 %3303 }
 0x18d   : > { %v859_v38 = vmul.f32 0.2, %v827_v28  ;;  %v830_v41 = vadd.f32 %v11031_v35, %v13032_v34  ;;  %v821_v42 = vpop.f32.mrb[3].mxu0  ;;  %vm851_vm4 = vcmp.ge.f32.partialorder %v827_v28, 0.0  ;;  %17151 = vst [vmem:[#allocation35_spill] sm:$0xff] %v13209_v25  ;;  %v3240_v35 = vld [vmem:[%s17127_s15 + $0x2e0] sm:$0xff] }
 0x18e   : > { %v857_v45 = vmul.f32 0.2, %v819_v33  ;;  %v822_v47 = vadd.f32 %v821_v42, %v13037_v36  ;;  %vm849_vm6 = vcmp.ge.f32.partialorder %v819_v33, 0.0 }
 0x18f   : > { %vm852_vm5 = vcmp.ge.f32.partialorder %v830_v41, 0.0  ;;  %v860_v48 = vmul.f32 0.2, %v830_v41  ;;  %3713 = vperm.xlu1 %11967, %v3235_v37   ;;  %v867_v57 = vsel %vm851_vm4, %v827_v28, %v859_v38  ;;  %v13211_v28 = vpop.permute.xlu0 %3298 }
 0x190   : > { %v858_v51 = vmul.f32 0.2, %v822_v47  ;;  %3708 = vperm.xlu0 %11966, %v3234_v43   ;;  %vm850_vm7 = vcmp.ge.f32.partialorder %v822_v47, 0.0  ;;  %v865_v63 = vsel %vm849_vm6, %v819_v33, %v857_v45  ;;  %17152 = vst [vmem:[#allocation36_spill] sm:$0xff] %v13211_v28  ;;  %v3241_v33 = vld [vmem:[%s17127_s15 + $0x2e8] sm:$0xff] }
 0x191   : > { %v868_v58 = vsel %vm852_vm5, %v830_v41, %v860_v48 }
 0x192   : > { %v11034_v62 = vpop.f32.mrb[4].mxu0  ;;  %v866_v1 = vsel %vm850_vm7, %v822_v47, %v858_v51  ;;  %v890_v3 = vpack.c.bf16 %v868_v58, %v867_v57  ;;  %v3243_v57 = vld [vmem:[%s17127_s15 + $0x2f8] sm:$0xff]  ;;  %v13225_v58 = vpop.permute.xlu1 %3313 }
 0x193   : > { %v843_v4 = vadd.f32 %v11034_v62, %v13063_v46  ;;  %v834_v7 = vpop.f32.mrb[5].mxu0  ;;  %3723 = vperm.xlu1 %11967, %v3237_v52   ;;  %v889_v8 = vpack.c.bf16 %v866_v1, %v865_v63  ;;  %17153 = vst [vmem:[#allocation37_spill] sm:$0xff] %v13225_v58 }
 0x194   : > { %v835_v9 = vadd.f32 %v834_v7, %v13047_v40  ;;  %3718 = vperm.xlu0 %11966, %v3236_v55   ;;  %v11035_v11 = vpop.f32.mrb[6].mxu0 }
 0x195   : > { %v863_v15 = vmul.f32 0.2, %v843_v4  ;;  %v846_v18 = vadd.f32 %v11035_v11, %v13058_v44  ;;  %v837_v19 = vpop.f32.mrb[7].mxu0  ;;  %11036 = vmatprep.subr.bf16.mxu1 %v889_v8  ;;  %vm855_vm8 = vcmp.ge.f32.partialorder %v843_v4, 0.0 }
 0x196   : > { %v861_v22 = vmul.f32 0.2, %v835_v9  ;;  %v838_v24 = vadd.f32 %v837_v19, %v13045_v39  ;;  %11037 = vmatpush3.bf16.msra.mxu1 %v889_v8  ;;  %vm853_vm9 = vcmp.ge.f32.partialorder %v835_v9, 0.0  ;;  %v13244_v19 = vld [vmem:[%s17128_s16 + $0x8] sm:$0xff]  }
 0x197   : > { %vm856_vm10 = vcmp.ge.f32.partialorder %v846_v18, 0.0  ;;  %v864_v26 = vmul.f32 0.2, %v846_v18  ;;  %11038 = vmatprep.subr.bf16.mxu1 %v890_v3  ;;  %3733 = vperm.xlu1 %11967, %v3239_v14   ;;  %v871_v37 = vsel %vm855_vm8, %v843_v4, %v863_v15  ;;  %v13231_v4 = vpop.permute.xlu0 %3308  ;;  %v3245_v14 = vld [vmem:[%s17127_s15 + $0x308] sm:$0xff] }
 0x198   : > { %vm854_vm11 = vcmp.ge.f32.partialorder %v838_v24, 0.0  ;;  %v862_v31 = vmul.f32 0.2, %v838_v24  ;;  %3728 = vperm.xlu0 %11966, %v3238_v20   ;;  %v869_v42 = vsel %vm853_vm9, %v835_v9, %v861_v22  ;;  %17154 = vst [vmem:[#allocation38_spill] sm:$0xff] %v13231_v4  ;;  %v10104_v15 = vld [vmem:[%s12488_s12 + $0x8] sm:$0x7] }
 0x199   : > { %v872_v38 = vsel %vm856_vm10, %v846_v18, %v864_v26  ;;  %v3244_v18 = vld [vmem:[%s17127_s15 + $0x300] sm:$0xff] }
 0x19a   : > { %11039 = vmatpush3.bf16.msra.mxu1 %v890_v3  ;;  %v11064_v41 = vpop.f32.mrb[8].mxu0  ;;  %v870_v43 = vsel %vm854_vm11, %v838_v24, %v862_v31  ;;  %v892_v45 = vpack.c.bf16 %v872_v38, %v871_v37  ;;  %v3242_v3 = vld [vmem:[%s17127_s15 + $0x2f0] sm:$0xff]  ;;  %v13253_v37 = vpop.permute.xlu1 %3323 }
 0x19b   : > { %v1247_v47 = vadd.f32 %v11064_v41, %v13019_v29  ;;  %v1238_v48 = vpop.f32.mrb[9].mxu0  ;;  %3743 = vperm.xlu1 %11967, %v3241_v33   ;;  %v891_v51 = vpack.c.bf16 %v870_v43, %v869_v42  ;;  %17155 = vst [vmem:[#allocation39_spill] sm:$0xff] %v13253_v37  ;;  %v13257_v43 = vpop.permute.xlu0 %3318 }
 0x19c   : > { %v1239_v52 = vadd.f32 %v1238_v48, %v13021_v30  ;;  %3738 = vperm.xlu0 %11966, %v3240_v35   ;;  %v11065_v55 = vpop.f32.mrb[10].mxu0  ;;  %v13251_v35 = vld [vmem:[%s17128_s16 + $0x10] sm:$0xff]   ;;  %17156 = vst [vmem:[#allocation40_spill] sm:$0xff] %v13257_v43  ;;  %v3247_v48 = vld [vmem:[%s17127_s15 + $0x318] sm:$0xff] }
 0x19d   : > { %v1279_v62 = vmul.f32 0.2, %v1247_v47  ;;  %v1250_v63 = vadd.f32 %v11065_v55, %v13032_v34  ;;  %11040 = vmatprep.subr.bf16.mxu1 %v891_v51  ;;  %v1241_v1 = vpop.f32.mrb[11].mxu0  ;;  %vm1271_vm12 = vcmp.ge.f32.partialorder %v1247_v47, 0.0 }
 0x19e   : > { %v1277_v7 = vmul.f32 0.2, %v1239_v52  ;;  %v1242_v8 = vadd.f32 %v1241_v1, %v13037_v36  ;;  %11041 = vmatpush3.bf16.msra.mxu1 %v891_v51  ;;  %vm1269_vm13 = vcmp.ge.f32.partialorder %v1239_v52, 0.0 }
 0x19f   : > { %vm1272_vm14 = vcmp.ge.f32.partialorder %v1250_v63, 0.0  ;;  %v1280_v9 = vmul.f32 0.2, %v1250_v63  ;;  %11042 = vmatprep.subr.bf16.mxu1 %v892_v45  ;;  %3753 = vperm.xlu1 %11967, %v3243_v57   ;;  %v1287_v20 = vsel %vm1271_vm12, %v1247_v47, %v1279_v62  ;;  %v3246_v57 = vld [vmem:[%s17127_s15 + $0x310] sm:$0xff]  ;;  %v1461_v62 = vsel %vm780_vm1, %v10104_v15, 0 }
 0x1a0   : > { %vm1270_vm15 = vcmp.ge.f32.partialorder %v1242_v8, 0.0  ;;  %v1278_v11 = vmul.f32 0.2, %v1242_v8  ;;  %3748 = vperm.xlu0 %11966, %v3242_v3   ;;  %v1285_v26 = vsel %vm1269_vm13, %v1239_v52, %v1277_v7 }
 0x1a1   : > { %v1288_v22 = vsel %vm1272_vm14, %v1250_v63, %v1280_v9  ;;  %v13276_v9 = vpop.permute.xlu1 %3333 }
 0x1a2   : > { %11043 = vmatpush3.bf16.msra.mxu1 %v892_v45  ;;  %v11068_v24 = vpop.f32.mrb[12].mxu0  ;;  %v1286_v31 = vsel %vm1270_vm15, %v1242_v8, %v1278_v11  ;;  %v1294_v33 = vpack.c.bf16 %v1288_v22, %v1287_v20  ;;  %v3249_v8 = vld [vmem:[%s17127_s15 + $0x328] sm:$0xff]  ;;  %17157 = vst [vmem:[#allocation41_spill] sm:$0xff] %v13276_v9  ;;  %v3248_v11 = vld [vmem:[%s17127_s15 + $0x320] sm:$0xff]  ;;  %v13287_v20 = vpop.permute.xlu0 %3328 }
 0x1a3   : > { %v1263_v38 = vadd.f32 %v11068_v24, %v13063_v46  ;;  %v1254_v41 = vpop.f32.mrb[13].mxu0  ;;  %3763 = vperm.xlu1 %11967, %v3245_v14   ;;  %v1293_v42 = vpack.c.bf16 %v1286_v31, %v1285_v26  ;;  %11876 = vmatprep.subr.msk.bf16.mxu1 %vm780_vm1, %v10104_v15  ;;  %v13284_v14 = vld [vmem:[%s17128_s16 + $0x18] sm:$0xff]   ;;  %17158 = vst [vmem:[#allocation42_spill] sm:$0xff] %v13287_v20  ;;  %v13293_v31 = vld [vmem:[%s17128_s16 + $0x20] sm:$0xff]  }
 0x1a4   : > { %v1255_v45 = vadd.f32 %v1254_v41, %v13047_v40  ;;  %3758 = vperm.xlu0 %11966, %v3244_v18   ;;  %v11069_v47 = vpop.f32.mrb[14].mxu0 }
 0x1a5   : > { %v1283_v51 = vmul.f32 0.2, %v1263_v38  ;;  %v1266_v52 = vadd.f32 %v11069_v47, %v13058_v44  ;;  %11045 = vmatmul.mubr.msk.bf16.vlgmr.msra.gmra.mrb[0].mxu1 %vm1029_vm3, %v13244_v19  ;;  %v1257_v55 = vpop.f32.mrb[15].mxu0  ;;  %11070 = vmatprep.subr.bf16.mxu0 %v1293_v42  ;;  %vm1275_vm0 = vcmp.ge.f32.partialorder %v1263_v38, 0.0  ;;  %v3253_v47 = vld [vmem:[%s17127_s15 + $0x348] sm:$0xff] }
 0x1a6   : > { %v1281_v63 = vmul.f32 0.2, %v1255_v45  ;;  %v1258_v1 = vadd.f32 %v1257_v55, %v13045_v39  ;;  %11071 = vmatpush3.bf16.msra.mxu0 %v1293_v42  ;;  %11048 = vmatprep.mubr.msk.bf16.mxu1 %vm1029_vm3, %v13251_v35  ;;  %vm1273_vm4 = vcmp.ge.f32.partialorder %v1255_v45, 0.0  ;;  %v13305_v42 = vpop.permute.xlu1 %3343  ;;  %v13324_v55 = vld [vmem:[%s17128_s16 + $0x30] sm:$0xff]  }
 0x1a7   : > { %vm1276_vm5 = vcmp.ge.f32.partialorder %v1266_v52, 0.0  ;;  %v1284_v3 = vmul.f32 0.2, %v1266_v52  ;;  %11072 = vmatprep.subr.bf16.mxu0 %v1294_v33  ;;  %3773 = vperm.xlu1 %11967, %v3247_v48   ;;  %v1291_v15 = vsel %vm1275_vm0, %v1263_v38, %v1283_v51  ;;  %v3251_v38 = vld [vmem:[%s17127_s15 + $0x338] sm:$0xff]  ;;  %17159 = vst [vmem:[#allocation43_spill] sm:$0xff] %v13305_v42  ;;  %v3252_v51 = vld [vmem:[%s17127_s15 + $0x340] sm:$0xff] }
 0x1a8   : > { %vm1274_vm6 = vcmp.ge.f32.partialorder %v1258_v1, 0.0  ;;  %v1282_v7 = vmul.f32 0.2, %v1258_v1  ;;  %3768 = vperm.xlu0 %11966, %v3246_v57   ;;  %11095 = vmatpush3.bf16.msra.mxu1 %v1461_v62  ;;  %v1289_v22 = vsel %vm1273_vm4, %v1255_v45, %v1281_v63  ;;  %v13307_v45 = vpop.permute.xlu0 %3338  ;;  %v10117_v48 = vld [vmem:[%s12488_s12 + $0xc] sm:$0x7]  ;;  %v3255_v62 = vld [vmem:[%s17127_s15 + $0x358] sm:$0xff] }
 0x1a9   : > { %v1292_v18 = vsel %vm1276_vm5, %v1266_v52, %v1284_v3  ;;  %17160 = vst [vmem:[#allocation44_spill] sm:$0xff] %v13307_v45  ;;  %v13319_v52 = vld [vmem:[%s17128_s16 + $0x28] sm:$0xff]   ;;  %v1720_v57 = vsel %vm780_vm1, %v10117_v48, 0 }
 0x1aa   : > { %11073 = vmatpush3.bf16.msra.mxu0 %v1294_v33  ;;  %v1290_v24 = vsel %vm1274_vm6, %v1258_v1, %v1282_v7  ;;  %v1296_v26 = vpack.c.bf16 %v1292_v18, %v1291_v15  ;;  %v3250_v33 = vld [vmem:[%s17127_s15 + $0x330] sm:$0xff]  ;;  %v13331_v63 = vpop.permute.xlu1 %3353  ;;  %v3257_v7 = vld [vmem:[%s17127_s15 + $0x368] sm:$0xff] }
 0x1ab   : > { %3783 = vperm.xlu1 %11967, %v3249_v8   ;;  %v1295_v41 = vpack.c.bf16 %v1290_v24, %v1289_v22  ;;  %17161 = vst [vmem:[#allocation45_spill] sm:$0xff] %v13331_v63  ;;  %v3254_v1 = vld [vmem:[%s17127_s15 + $0x350] sm:$0xff]  ;;  %v3256_v8 = vld [vmem:[%s17127_s15 + $0x360] sm:$0xff]  ;;  %v3259_v22 = vld [vmem:[%s17127_s15 + $0x378] sm:$0xff] }
 0x1ac   : > { %3778 = vperm.xlu0 %11966, %v3248_v11   ;;  %v13340_v3 = vpop.permute.xlu0 %3348  ;;  %v13355_v11 = vld [vmem:[%s17128_s16 + $0x38] sm:$0xff]   ;;  %v3258_v24 = vld [vmem:[%s17127_s15 + $0x370] sm:$0xff] }
 0x1ad   : > { %11049 = vmatmul.mubr.msk.bf16.gmra.mrb[4].mxu1 %vm1029_vm3, %v13284_v14  ;;  %11074 = vmatprep.subr.bf16.mxu0 %v1295_v41  ;;  %17162 = vst [vmem:[#allocation46_spill] sm:$0xff] %v13340_v3 }
 0x1ae   : > { %11075 = vmatpush3.bf16.msra.mxu0 %v1295_v41  ;;  %11052 = vmatprep.mubr.msk.bf16.mxu1 %vm1029_vm3, %v13293_v31  ;;  %v13357_v15 = vpop.permute.xlu1 %3363  ;;  %v3261_v41 = vld [vmem:[%s17127_s15 + $0x388] sm:$0xff] }
 0x1af   : > { %11076 = vmatprep.subr.bf16.mxu0 %v1296_v26  ;;  %3793 = vperm.xlu1 %11967, %v3251_v38   ;;  %17163 = vst [vmem:[#allocation47_spill] sm:$0xff] %v13357_v15 }
 0x1b0   : > { %3788 = vperm.xlu0 %11966, %v3250_v33   ;;  %v13359_v18 = vpop.permute.xlu0 %3358  ;;  %v3260_v33 = vld [vmem:[%s17127_s15 + $0x380] sm:$0xff] }
 0x1b1   : > { %17164 = vst [vmem:[#allocation48_spill] sm:$0xff] %v13359_v18 }
 0x1b2   : > { %11077 = vmatpush3.bf16.msra.mxu0 %v1296_v26  ;;  %v13376_v26 = vld [vmem:[%s16978_s1] sm:$0xff]   ;;  %v13383_v38 = vpop.permute.xlu1 %3373 }
 0x1b3   : > { %3803 = vperm.xlu1 %11967, %v3253_v47   ;;  %11877 = vmatprep.subr.msk.bf16.mxu0 %vm780_vm1, %v10117_v48  ;;  %17165 = vst [vmem:[#allocation49_spill] sm:$0xff] %v13383_v38  ;;  %v3263_v48 = vld [vmem:[%s17127_s15 + $0x398] sm:$0xff] }
 0x1b4   : > { %3798 = vperm.xlu0 %11966, %v3252_v51   ;;  %v13388_v47 = vpop.permute.xlu0 %3368  ;;  %v13398_v51 = vld [vmem:[%s16978_s1 + $0x8] sm:$0xff]  }
 0x1b5   : > { %11053 = vmatmul.mubr.msk.bf16.gmra.mrb[8].mxu1 %vm1029_vm3, %v13319_v52  ;;  %11079 = vmatmul.mubr.msk.bf16.vlgmr.msra.gmra.mrb[16].mxu0 %vm1029_vm3, %v13244_v19  ;;  %17166 = vst [vmem:[#allocation50_spill] sm:$0xff] %v13388_v47 }
 0x1b6   : > { %11129 = vmatpush3.bf16.msra.mxu0 %v1720_v57  ;;  %11056 = vmatprep.mubr.msk.bf16.mxu1 %vm1029_vm3, %v13324_v55  ;;  %v3262_v57 = vld [vmem:[%s17127_s15 + $0x390] sm:$0xff] }
 0x1b7   : > { %3813 = vperm.xlu1 %11967, %v3255_v62   ;;  %11082 = vmatprep.mubr.msk.bf16.mxu0 %vm1029_vm3, %v13251_v35  ;;  %v13410_v62 = vld [vmem:[%s16978_s1 + $0x10] sm:$0xff]  }
 0x1b8   : > { %3808 = vperm.xlu0 %11966, %v3254_v1   ;;  %v13414_v1 = vpop.permute.xlu1 %3383 }
 0x1b9   : > { %17167 = vst [vmem:[#allocation51_spill] sm:$0xff] %v13414_v1 }
 0x1bb   : > { %3823 = vperm.xlu1 %11967, %v3257_v7   ;;  %v13416_v7 = vpop.permute.xlu0 %3378 }
 0x1bc   : > { %3818 = vperm.xlu0 %11966, %v3256_v8   ;;  %17168 = vst [vmem:[#allocation52_spill] sm:$0xff] %v13416_v7  ;;  %v3265_v8 = vld [vmem:[%s17127_s15 + $0x3a8] sm:$0xff]  ;;  %v3271_v7 = vld [vmem:[%s17127_s15 + $0x3d8] sm:$0xff] }
 0x1bd   : > { %11057 = vmatmul.mubr.msk.bf16.gmra.mrb[12].mxu1 %vm1029_vm3, %v13355_v11  ;;  %11083 = vmatmul.mubr.msk.bf16.gmra.mrb[20].mxu0 %vm1029_vm3, %v13284_v14 }
 0x1be   : > { %11086 = vmatprep.mubr.msk.bf16.mxu0 %vm1029_vm3, %v13293_v31  ;;  %11096 = vmatprep.mubr.msk.bf16.mxu1 %vm767_vm2, %v13376_v26 }
 0x1bf   : > { %3833 = vperm.xlu1 %11967, %v3259_v22   ;;  %v3264_v22 = vld [vmem:[%s17127_s15 + $0x3a0] sm:$0xff] }
 0x1c0   : > { %3828 = vperm.xlu0 %11966, %v3258_v24   ;;  %v3267_v24 = vld [vmem:[%s17127_s15 + $0x3b8] sm:$0xff] }
 0x1c3   : > { %3843 = vperm.xlu1 %11967, %v3261_v41   ;;  %v13427_v41 = vpop.permute.xlu1 %3393 }
 0x1c4   : > { %3838 = vperm.xlu0 %11966, %v3260_v33   ;;  %17169 = vst [vmem:[#allocation53_spill] sm:$0xff] %v13427_v41  ;;  %v13434_v33 = vld [vmem:[%s16978_s1 + $0x18] sm:$0xff]  }
 0x1c5   : > { %11087 = vmatmul.mubr.msk.bf16.gmra.mrb[24].mxu0 %vm1029_vm3, %v13319_v52  ;;  %11097 = vmatmul.mubr.msk.bf16.vlgmr.msra.gmra.mrb[16].mxu1 %vm767_vm2, %v13398_v51 }
 0x1c6   : > { %11090 = vmatprep.mubr.msk.bf16.mxu0 %vm1029_vm3, %v13324_v55  ;;  %11100 = vmatprep.mubr.msk.bf16.mxu1 %vm767_vm2, %v13410_v62 }
 0x1c7   : > { %3853 = vperm.xlu1 %11967, %v3263_v48   ;;  %v3266_v48 = vld [vmem:[%s17127_s15 + $0x3b0] sm:$0xff]  ;;  %v13453_v1 = vpop.permute.xlu1 %3403 }
 0x1c8   : > { %3848 = vperm.xlu0 %11966, %v3262_v57   ;;  %v13441_v57 = vpop.permute.xlu0 %3388  ;;  %17171 = vst [vmem:[#allocation55_spill] sm:$0xff] %v13453_v1 }
 0x1c9   : > { %17170 = vst [vmem:[#allocation54_spill] sm:$0xff] %v13441_v57 }
 0x1cb   : > { %3863 = vperm.xlu1 %11967, %v3265_v8   ;;  %v3269_v8 = vld [vmem:[%s17127_s15 + $0x3c8] sm:$0xff] }
 0x1cc   : > { %3858 = vperm.xlu0 %11966, %v3264_v22   ;;  %v3268_v22 = vld [vmem:[%s17127_s15 + $0x3c0] sm:$0xff]  ;;  %v13455_v41 = vpop.permute.xlu0 %3398 }
 0x1cd   : > { %11091 = vmatmul.mubr.msk.bf16.gmra.mrb[28].mxu0 %vm1029_vm3, %v13355_v11  ;;  %11101 = vmatmul.mubr.msk.bf16.gmra.mrb[20].mxu1 %vm767_vm2, %v13434_v33  ;;  %17172 = vst [vmem:[#allocation56_spill] sm:$0xff] %v13455_v41  ;;  %v3275_v41 = vld [vmem:[%s17127_s15 + $0x3f8] sm:$0xff] }
 0x1ce   : > { %11130 = vmatprep.mubr.msk.bf16.mxu0 %vm767_vm2, %v13376_v26  ;;  %11112 = vmatprep.mubr.msk.bf16.mxu1 %vm1029_vm3, %v12965_v12 }
 0x1cf   : > { %3873 = vperm.xlu1 %11967, %v3267_v24   ;;  %v3270_v24 = vld [vmem:[%s17127_s15 + $0x3d0] sm:$0xff] }
 0x1d0   : > { %3868 = vperm.xlu0 %11966, %v3266_v48   ;;  %v3273_v48 = vld [vmem:[%s17127_s15 + $0x3e8] sm:$0xff]  ;;  %v13475_v1 = vpop.permute.xlu0 %3408 }
 0x1d1   : > { %17174 = vst [vmem:[#allocation58_spill] sm:$0xff] %v13475_v1 }
 0x1d3   : > { %3883 = vperm.xlu1 %11967, %v3269_v8   ;;  %v13470_v8 = vpop.permute.xlu1 %3413 }
 0x1d4   : > { %3878 = vperm.xlu0 %11966, %v3268_v22   ;;  %17173 = vst [vmem:[#allocation57_spill] sm:$0xff] %v13470_v8  ;;  %v3272_v22 = vld [vmem:[%s17127_s15 + $0x3e0] sm:$0xff]  ;;  %v13489_v8 = vpop.permute.xlu0 %3418 }
 0x1d5   : > { %11131 = vmatmul.mubr.msk.bf16.vlgmr.msra.gmra.mrb[32].mxu0 %vm767_vm2, %v13398_v51  ;;  %17176 = vst [vmem:[#allocation60_spill] sm:$0xff] %v13489_v8 }
 0x1d6   : > { %11134 = vmatprep.mubr.msk.bf16.mxu0 %vm767_vm2, %v13410_v62 }
 0x1d7   : > { %3893 = vperm.xlu1 %11967, %v3271_v7   ;;  %v3274_v7 = vld [vmem:[%s17127_s15 + $0x3f0] sm:$0xff] }
 0x1d8   : > { %3888 = vperm.xlu0 %11966, %v3270_v24   ;;  %v13487_v24 = vpop.permute.xlu1 %3423 }
 0x1d9   : > { %17175 = vst [vmem:[#allocation59_spill] sm:$0xff] %v13487_v24 }
 0x1db   : > { %3903 = vperm.xlu1 %11967, %v3273_v48  }
 0x1dc   : > { %3898 = vperm.xlu0 %11966, %v3272_v22  }
 0x1dd   : > { %11135 = vmatmul.mubr.msk.bf16.gmra.mrb[36].mxu0 %vm767_vm2, %v13434_v33 }
 0x1de   : > { %11146 = vmatprep.mubr.msk.bf16.mxu0 %vm1029_vm3, %v12965_v12 }
 0x1df   : > { %3913 = vperm.xlu1 %11967, %v3275_v41  }
 0x1e0   : > { %3908 = vperm.xlu0 %11966, %v3274_v7  }
 0x278   : > { %v11046_v48 = vpop.f32.mrb[0].mxu1 }
 0x279   : > { %v1088_v22 = vpop.f32.mrb[1].mxu1  ;;  %v1097_v15 = vadd.f32 %v11046_v48, %v13089_v56 }
 0x27a   : > { %v11047_v1 = vpop.f32.mrb[2].mxu1  ;;  %v1089_v38 = vadd.f32 %v1088_v22, %v13073_v50 }
 0x27b   : > { %v1091_v57 = vpop.f32.mrb[3].mxu1  ;;  %v1100_v47 = vadd.f32 %v11047_v1, %v13084_v54  ;;  %v1169_v63 = vmul.f32 0.2, %v1097_v15  ;;  %vm1153_vm7 = vcmp.ge.f32.partialorder %v1097_v15, 0.0 }
 0x27c   : > { %v1092_v12 = vadd.f32 %v1091_v57, %v13071_v49  ;;  %v1167_v45 = vmul.f32 0.2, %v1089_v38  ;;  %vm1151_vm8 = vcmp.ge.f32.partialorder %v1089_v38, 0.0 }
 0x27d   : > { %vm1154_vm9 = vcmp.ge.f32.partialorder %v1100_v47, 0.0  ;;  %v1170_v48 = vmul.f32 0.2, %v1100_v47  ;;  %v13499_v57 = vsel %vm1153_vm7, %v1097_v15, %v1169_v63 }
 0x27e   : > { %v1168_v22 = vmul.f32 0.2, %v1092_v12  ;;  %vm1152_vm10 = vcmp.ge.f32.partialorder %v1092_v12, 0.0  ;;  %17177 = vst [vmem:[#allocation61_spill] sm:$0xff] %v13499_v57 }
 0x280   : > { %v11050_v18 = vpop.f32.mrb[4].mxu1  ;;  %v13507_v27 = vsel %vm1152_vm10, %v1092_v12, %v1168_v22 }
 0x281   : > { %v1104_v42 = vpop.f32.mrb[5].mxu1  ;;  %v1113_v24 = vadd.f32 %v11050_v18, %v13115_v2 }
 0x282   : > { %v1105_v41 = vadd.f32 %v1104_v42, %v13099_v60  ;;  %v11051_v8 = vpop.f32.mrb[6].mxu1  ;;  %v13501_v42 = vsel %vm1151_vm8, %v1089_v38, %v1167_v45 }
 0x283   : > { %v1107_v7 = vpop.f32.mrb[7].mxu1  ;;  %v1116_v3 = vadd.f32 %v11051_v8, %v13110_v0  ;;  %v1173_v37 = vmul.f32 0.2, %v1113_v24  ;;  %vm1157_vm11 = vcmp.ge.f32.partialorder %v1113_v24, 0.0  ;;  %17178 = vst [vmem:[#allocation62_spill] sm:$0xff] %v13501_v42  ;;  %v13503_v8 = vsel %vm1154_vm9, %v1100_v47, %v1170_v48 }
 0x284   : > { %v1171_v1 = vmul.f32 0.2, %v1105_v41  ;;  %vm1155_vm12 = vcmp.ge.f32.partialorder %v1105_v41, 0.0  ;;  %v1108_v18 = vadd.f32 %v1107_v7, %v13097_v59 }
 0x285   : > { %v1174_v9 = vmul.f32 0.2, %v1116_v3  ;;  %vm1158_vm13 = vcmp.ge.f32.partialorder %v1116_v3, 0.0  ;;  %v13509_v53 = vsel %vm1157_vm11, %v1113_v24, %v1173_v37 }
 0x286   : > { %17179 = vst [vmem:[#allocation63_spill] sm:$0xff] %v13509_v53  ;;  %v13511_v63 = vsel %vm1155_vm12, %v1105_v41, %v1171_v1  ;;  %v1172_v7 = vmul.f32 0.2, %v1108_v18  ;;  %vm1156_vm15 = vcmp.ge.f32.partialorder %v1108_v18, 0.0 }
 0x287   : > { %17180 = vst [vmem:[#allocation64_spill] sm:$0xff] %v13511_v63 }
 0x288   : > { %v11054_v43 = vpop.f32.mrb[8].mxu1  ;;  %v11080_v20 = vpop.f32.mrb[16].mxu0 }
 0x289   : > { %v1129_v25 = vadd.f32 %v11054_v43, %v13141_v13  ;;  %v1340_v58 = vadd.f32 %v11080_v20, %v13089_v56  ;;  %v1120_v28 = vpop.f32.mrb[9].mxu1  ;;  %v1331_v4 = vpop.f32.mrb[17].mxu0  ;;  %v13515_v43 = vsel %vm1158_vm13, %v1116_v3, %v1174_v9  ;;  %v13526_v9 = vsel %vm1156_vm15, %v1108_v18, %v1172_v7 }
 0x28a   : > { %v1332_v45 = vadd.f32 %v1331_v4, %v13073_v50  ;;  %v11055_v15 = vpop.f32.mrb[10].mxu1  ;;  %v11081_v38 = vpop.f32.mrb[18].mxu0  ;;  %v1121_v48 = vadd.f32 %v1120_v28, %v13125_v6 }
 0x28b   : > { %vm1396_vm14 = vcmp.ge.f32.partialorder %v1340_v58, 0.0  ;;  %v1412_v47 = vmul.f32 0.2, %v1340_v58  ;;  %v1177_v12 = vmul.f32 0.2, %v1129_v25  ;;  %v1132_v37 = vadd.f32 %v11055_v15, %v13136_v10  ;;  %v1123_v4 = vpop.f32.mrb[11].mxu1 }
 0x28c   : > { %vm1394_vm0 = vcmp.ge.f32.partialorder %v1332_v45, 0.0  ;;  %v1410_v20 = vmul.f32 0.2, %v1332_v45  ;;  %v1343_v24 = vadd.f32 %v11081_v38, %v13084_v54  ;;  %v1334_v41 = vpop.f32.mrb[19].mxu0  ;;  %vm1161_vm4 = vcmp.ge.f32.partialorder %v1129_v25, 0.0 }
 0x28d   : > { %v13517_v22 = vsel %vm1396_vm14, %v1340_v58, %v1412_v47  ;;  %v1124_v28 = vadd.f32 %v1123_v4, %v13123_v5  ;;  %vm1159_vm5 = vcmp.ge.f32.partialorder %v1121_v48, 0.0  ;;  %v1175_v3 = vmul.f32 0.2, %v1121_v48 }
 0x28e   : > { %17181 = vst [vmem:[#allocation65_spill] sm:$0xff] %v13517_v22  ;;  %v13523_v32 = vsel %vm1394_vm0, %v1332_v45, %v1410_v20  ;;  %vm1397_vm6 = vcmp.ge.f32.partialorder %v1343_v24, 0.0  ;;  %vm1162_vm7 = vcmp.ge.f32.partialorder %v1132_v37, 0.0  ;;  %v1413_v15 = vmul.f32 0.2, %v1343_v24 }
 0x28f   : > { %17182 = vst [vmem:[#allocation66_spill] sm:$0xff] %v13523_v32  ;;  %v1335_v38 = vadd.f32 %v1334_v41, %v13071_v49  ;;  %v13531_v61 = vsel %vm1161_vm4, %v1129_v25, %v1177_v12  ;;  %v1178_v1 = vmul.f32 0.2, %v1132_v37  ;;  %v1176_v45 = vmul.f32 0.2, %v1124_v28 }
 0x290   : > { %v11058_v47 = vpop.f32.mrb[12].mxu1  ;;  %17183 = vst [vmem:[#allocation67_spill] sm:$0xff] %v13531_v61  ;;  %v11084_v4 = vpop.f32.mrb[20].mxu0  ;;  %v13534_v7 = vsel %vm1397_vm6, %v1343_v24, %v1413_v15  ;;  %vm1160_vm8 = vcmp.ge.f32.partialorder %v1124_v28, 0.0  ;;  %v13545_v50 = vsel %vm1159_vm5, %v1121_v48, %v1175_v3 }
 0x291   : > { %v1145_v20 = vadd.f32 %v11058_v47, %v13167_v23  ;;  %v1136_v18 = vpop.f32.mrb[13].mxu1  ;;  %17184 = vst [vmem:[#allocation68_spill] sm:$0xff] %v13534_v7  ;;  %vm1395_vm9 = vcmp.ge.f32.partialorder %v1335_v38, 0.0  ;;  %v1411_v58 = vmul.f32 0.2, %v1335_v38  ;;  %v1347_v32 = vpop.f32.mrb[21].mxu0  ;;  %v1356_v25 = vadd.f32 %v11084_v4, %v13115_v2 }
 0x292   : > { %v11059_v42 = vpop.f32.mrb[14].mxu1  ;;  %v11085_v12 = vpop.f32.mrb[22].mxu0  ;;  %v1137_v47 = vadd.f32 %v1136_v18, %v13151_v17  ;;  %v1348_v24 = vadd.f32 %v1347_v32, %v13099_v60  ;;  %17185 = vst [vmem:[#allocation69_spill] sm:$0xff] %v13545_v50  ;;  %v13550_v4 = vsel %vm1162_vm7, %v1132_v37, %v1178_v1 }
 0x293   : > { %vm1165_vm10 = vcmp.ge.f32.partialorder %v1145_v20, 0.0  ;;  %v1181_v41 = vmul.f32 0.2, %v1145_v20  ;;  %v1139_v57 = vpop.f32.mrb[15].mxu1  ;;  %v13539_v49 = vsel %vm1395_vm9, %v1335_v38, %v1411_v58  ;;  %v1148_v15 = vadd.f32 %v11059_v42, %v13162_v21  ;;  %v1350_v54 = vpop.f32.mrb[23].mxu0  ;;  %17186 = vst [vmem:[#allocation70_spill] sm:$0xff] %v13550_v4 }
 0x294   : > { %vm1400_vm11 = vcmp.ge.f32.partialorder %v1356_v25, 0.0  ;;  %v1416_v7 = vmul.f32 0.2, %v1356_v25  ;;  %v13553_v58 = vsel %vm1160_vm8, %v1124_v28, %v1176_v45  ;;  %vm1398_vm12 = vcmp.ge.f32.partialorder %v1348_v24, 0.0 }
 0x295   : > { %17187 = vst [vmem:[#allocation71_spill] sm:$0xff] %v13553_v58  ;;  %v1414_v38 = vmul.f32 0.2, %v1348_v24  ;;  %v13556_v32 = vsel %vm1165_vm10, %v1145_v20, %v1181_v41  ;;  %v1179_v48 = vmul.f32 0.2, %v1137_v47  ;;  %v1359_v3 = vadd.f32 %v11085_v12, %v13110_v0 }
 0x296   : > { %v13558_v42 = vsel %vm1400_vm11, %v1356_v25, %v1416_v7  ;;  %v1182_v37 = vmul.f32 0.2, %v1148_v15  ;;  %v1140_v1 = vadd.f32 %v1139_v57, %v13149_v16  ;;  %vm1163_vm13 = vcmp.ge.f32.partialorder %v1137_v47, 0.0 }
 0x297   : > { %17188 = vst [vmem:[#allocation72_spill] sm:$0xff] %v13558_v42  ;;  %v13563_v22 = vsel %vm1398_vm12, %v1348_v24, %v1414_v38  ;;  %vm1401_vm14 = vcmp.ge.f32.partialorder %v1359_v3, 0.0  ;;  %v1417_v7 = vmul.f32 0.2, %v1359_v3  ;;  %vm1166_vm15 = vcmp.ge.f32.partialorder %v1148_v15, 0.0 }
 0x298   : > { %17189 = vst [vmem:[#allocation73_spill] sm:$0xff] %v13563_v22  ;;  %v11088_v28 = vpop.f32.mrb[24].mxu0  ;;  %v11098_v45 = vpop.f32.mrb[16].mxu1  ;;  %v1180_v12 = vmul.f32 0.2, %v1140_v1  ;;  %v1351_v0 = vadd.f32 %v1350_v54, %v13097_v59  ;;  %vm1164_vm0 = vcmp.ge.f32.partialorder %v1140_v1, 0.0  ;;  %v13577_v53 = vsel %vm1163_vm13, %v1137_v47, %v1179_v48 }
 0x299   : > { %v1363_v41 = vpop.f32.mrb[25].mxu0  ;;  %v1497_v25 = vpop.f32.mrb[17].mxu1  ;;  %v1372_v24 = vadd.f32 %v11088_v28, %v13141_v13  ;;  %v13570_v42 = vsel %vm1401_vm14, %v1359_v3, %v1417_v7  ;;  %v13573_v57 = vadd.f32 %v11098_v45, %v13019_v29  ;;  %17190 = vst [vmem:[#allocation74_spill] sm:$0xff] %v13577_v53  ;;  %v13582_v13 = vsel %vm1166_vm15, %v1148_v15, %v1182_v37 }
 0x29a   : > { %v11089_v38 = vpop.f32.mrb[26].mxu0  ;;  %v11099_v18 = vpop.f32.mrb[18].mxu1  ;;  %v1364_v20 = vadd.f32 %v1363_v41, %v13125_v6  ;;  %vm1399_vm4 = vcmp.ge.f32.partialorder %v1351_v0, 0.0  ;;  %v1415_v28 = vmul.f32 0.2, %v1351_v0  ;;  %v13585_v45 = vadd.f32 %v1497_v25, %v13021_v30 }
 0x29b   : > { %v1366_v22 = vpop.f32.mrb[27].mxu0  ;;  %v1500_v63 = vpop.f32.mrb[19].mxu1  ;;  %vm1404_vm5 = vcmp.ge.f32.partialorder %v1372_v24, 0.0  ;;  %v1420_v3 = vmul.f32 0.2, %v1372_v24  ;;  %v13587_v7 = vsel %vm1164_vm0, %v1140_v1, %v1180_v12  ;;  %v1375_v15 = vadd.f32 %v11089_v38, %v13136_v10 }
 0x29c   : > { %v13589_v41 = vsel %vm1399_vm4, %v1351_v0, %v1415_v28  ;;  %vm1402_vm6 = vcmp.ge.f32.partialorder %v1364_v20, 0.0  ;;  %v1418_v47 = vmul.f32 0.2, %v1364_v20  ;;  %v13596_v6 = vmul.f32 0.2, %v13573_v57 }
 0x29d   : > { %17191 = vst [vmem:[#allocation75_spill] sm:$0xff] %v13589_v41  ;;  %v13593_v54 = vsel %vm1404_vm5, %v1372_v24, %v1420_v3  ;;  %v13604_v0 = vadd.f32 %v11099_v18, %v13032_v34  ;;  %v1367_v1 = vadd.f32 %v1366_v22, %v13123_v5  ;;  %vm1530_vm7 = vcmp.ge.f32.partialorder %v13573_v57, 0.0 }
 0x29e   : > { %17192 = vst [vmem:[#allocation76_spill] sm:$0xff] %v13593_v54  ;;  %v13601_v25 = vsel %vm1402_vm6, %v1364_v20, %v1418_v47  ;;  %vm1528_vm8 = vcmp.ge.f32.partialorder %v13585_v45, 0.0  ;;  %vm1405_vm9 = vcmp.ge.f32.partialorder %v1375_v15, 0.0  ;;  %v1421_v38 = vmul.f32 0.2, %v1375_v15 }
 0x29f   : > { %17193 = vst [vmem:[#allocation77_spill] sm:$0xff] %v13601_v25  ;;  %v1536_v20 = vmul.f32 0.2, %v13585_v45  ;;  %vm1403_vm10 = vcmp.ge.f32.partialorder %v1367_v1, 0.0  ;;  %v1419_v18 = vmul.f32 0.2, %v1367_v1  ;;  %v1501_v47 = vadd.f32 %v1500_v63, %v13037_v36 }
 0x2a0   : > { %v11092_v12 = vpop.f32.mrb[28].mxu0  ;;  %v11102_v28 = vpop.f32.mrb[20].mxu1  ;;  %v13613_v22 = vsel %vm1405_vm9, %v1375_v15, %v1421_v38  ;;  %vm1531_vm11 = vcmp.ge.f32.partialorder %v13604_v0, 0.0  ;;  %v1539_v48 = vmul.f32 0.2, %v13604_v0 }
 0x2a1   : > { %v1379_v3 = vpop.f32.mrb[29].mxu0  ;;  %v1513_v37 = vpop.f32.mrb[21].mxu1  ;;  %17194 = vst [vmem:[#allocation78_spill] sm:$0xff] %v13613_v22  ;;  %v1388_v24 = vadd.f32 %v11092_v12, %v13167_v23  ;;  %v13620_v61 = vsel %vm1403_vm10, %v1367_v1, %v1419_v18  ;;  %v13623_v5 = vadd.f32 %v11102_v28, %v13063_v46  ;;  %vm1529_vm13 = vcmp.ge.f32.partialorder %v1501_v47, 0.0 }
 0x2a2   : > { %v11093_v25 = vpop.f32.mrb[30].mxu0  ;;  %v11103_v50 = vpop.f32.mrb[22].mxu1  ;;  %17195 = vst [vmem:[#allocation79_spill] sm:$0xff] %v13620_v61  ;;  %v1380_v63 = vadd.f32 %v1379_v3, %v13151_v17  ;;  %v1514_v12 = vadd.f32 %v1513_v37, %v13047_v40  ;;  %v1537_v23 = vmul.f32 0.2, %v1501_v47 }
 0x2a3   : > { %v1382_v15 = vpop.f32.mrb[31].mxu0  ;;  %v1516_v38 = vpop.f32.mrb[23].mxu1  ;;  %vm1408_vm12 = vcmp.ge.f32.partialorder %v1388_v24, 0.0  ;;  %v1424_v41 = vmul.f32 0.2, %v1388_v24  ;;  %vm1534_vm15 = vcmp.ge.f32.partialorder %v13623_v5, 0.0  ;;  %v1391_v3 = vadd.f32 %v11093_v25, %v13162_v21 }
 0x2a4   : > { %vm1406_vm14 = vcmp.ge.f32.partialorder %v1380_v63, 0.0  ;;  %v1422_v54 = vmul.f32 0.2, %v1380_v63  ;;  %v1542_v28 = vmul.f32 0.2, %v13623_v5  ;;  %vm1532_vm0 = vcmp.ge.f32.partialorder %v1514_v12, 0.0 }
 0x2a5   : > { %v13629_v1 = vsel %vm1408_vm12, %v1388_v24, %v1424_v41  ;;  %v1525_v37 = vadd.f32 %v11103_v50, %v13058_v44  ;;  %v1383_v17 = vadd.f32 %v1382_v15, %v13149_v16  ;;  %vm1409_vm4 = vcmp.ge.f32.partialorder %v1391_v3, 0.0 }
 0x2a6   : > { %v13636_v10 = vsel %vm1406_vm14, %v1380_v63, %v1422_v54  ;;  %v1425_v24 = vmul.f32 0.2, %v1391_v3  ;;  %v1517_v58 = vadd.f32 %v1516_v38, %v13045_v39  ;;  %v1540_v4 = vmul.f32 0.2, %v1514_v12 }
 0x2a7   : > { %17196 = vst [vmem:[#allocation80_spill] sm:$0xff] %v13636_v10  ;;  %vm1535_vm5 = vcmp.ge.f32.partialorder %v1525_v37, 0.0  ;;  %vm1407_vm6 = vcmp.ge.f32.partialorder %v1383_v17, 0.0  ;;  %v1423_v25 = vmul.f32 0.2, %v1383_v17  ;;  %v1544_v50 = vsel %vm1528_vm8, %v13585_v45, %v1536_v20 }
 0x2a8   : > { %v11132_v61 = vpop.f32.mrb[32].mxu0  ;;  %v13643_v18 = vsel %vm1409_vm4, %v1391_v3, %v1425_v24  ;;  %vm1533_vm9 = vcmp.ge.f32.partialorder %v1517_v58, 0.0  ;;  %v1541_v54 = vmul.f32 0.2, %v1517_v58  ;;  %v1545_v38 = vsel %vm1529_vm13, %v1501_v47, %v1537_v23 }
 0x2a9   : > { %v1756_v22 = vpop.f32.mrb[33].mxu0  ;;  %v13650_v41 = vsel %vm1407_vm6, %v1383_v17, %v1423_v25  ;;  %v1546_v3 = vsel %vm1530_vm7, %v13573_v57, %v13596_v6  ;;  %v1552_v53 = vpack.c.bf16 %v1545_v38, %v1544_v50  ;;  %v1547_v45 = vsel %vm1531_vm11, %v13604_v0, %v1539_v48 }
 0x2aa   : > { %v11133_v63 = vpop.f32.mrb[34].mxu0  ;;  %v1765_v20 = vadd.f32 %v11132_v61, %v13019_v29  ;;  %v1543_v17 = vmul.f32 0.2, %v1525_v37  ;;  %v1553_v25 = vpack.c.bf16 %v1547_v45, %v1546_v3  ;;  %v1757_v23 = vadd.f32 %v1756_v22, %v13021_v30 }
 0x2ab   : > { %v1759_v24 = vpop.f32.mrb[35].mxu0  ;;  %v1768_v47 = vadd.f32 %v11133_v63, %v13032_v34  ;;  %11104 = vmatprep.subr.bf16.mxu1 %v1552_v53  ;;  %v1548_v6 = vsel %vm1532_vm0, %v1514_v12, %v1540_v4  ;;  %v1549_v57 = vsel %vm1533_vm9, %v1517_v58, %v1541_v54  ;;  %v1550_v63 = vsel %vm1534_vm15, %v13623_v5, %v1542_v28 }
 0x2ac   : > { %v1797_v15 = vmul.f32 0.2, %v1765_v20  ;;  %v1760_v50 = vadd.f32 %v1759_v24, %v13037_v36  ;;  %11105 = vmatpush3.bf16.msra.mxu1 %v1552_v53  ;;  %vm1787_vm7 = vcmp.ge.f32.partialorder %v1757_v23, 0.0  ;;  %v1795_v38 = vmul.f32 0.2, %v1757_v23 }
 0x2ad   : > { %vm1790_vm8 = vcmp.ge.f32.partialorder %v1768_v47, 0.0  ;;  %v1798_v48 = vmul.f32 0.2, %v1768_v47  ;;  %11106 = vmatprep.subr.bf16.mxu1 %v1553_v25  ;;  %vm1789_vm10 = vcmp.ge.f32.partialorder %v1765_v20, 0.0  ;;  %v1554_v61 = vpack.c.bf16 %v1549_v57, %v1548_v6 }
 0x2ae   : > { %vm1788_vm11 = vcmp.ge.f32.partialorder %v1760_v50, 0.0  ;;  %v1796_v0 = vmul.f32 0.2, %v1760_v50  ;;  %v1551_v4 = vsel %vm1535_vm5, %v1525_v37, %v1543_v17  ;;  %v1803_v53 = vsel %vm1787_vm7, %v1757_v23, %v1795_v38 }
 0x2af   : > { %v1555_v54 = vpack.c.bf16 %v1551_v4, %v1550_v63  ;;  %v1806_v6 = vsel %vm1790_vm8, %v1768_v47, %v1798_v48  ;;  %v1805_v5 = vsel %vm1789_vm10, %v1765_v20, %v1797_v15  ;;  %v17199_v63 = vld [vmem:[#allocation15_spill] sm:$0xff] }
 0x2b0   : > { %v11136_v22 = vpop.f32.mrb[36].mxu0  ;;  %v1804_v45 = vsel %vm1788_vm11, %v1760_v50, %v1796_v0  ;;  %11107 = vmatpush3.bf16.msra.mxu1 %v1553_v25  ;;  %v1812_v17 = vpack.c.bf16 %v1806_v6, %v1805_v5  ;;  %v17203_v6 = vld [vmem:[#allocation62_spill] sm:$0xff] }
 0x2b1   : > { %v1781_v58 = vadd.f32 %v11136_v22, %v13063_v46  ;;  %v1772_v12 = vpop.f32.mrb[37].mxu0  ;;  %v1811_v34 = vpack.c.bf16 %v1804_v45, %v1803_v53  ;;  %11108 = vmatprep.subr.bf16.mxu1 %v1554_v61  ;;  %v17201_v53 = vld [vmem:[#allocation65_spill] sm:$0xff] }
 0x2b2   : > { %v1773_v3 = vadd.f32 %v1772_v12, %v13047_v40  ;;  %v11137_v24 = vpop.f32.mrb[38].mxu0  ;;  %v17200_v12 = vld [vmem:[#allocation61_spill] sm:$0xff] }
 0x2b3   : > { %v1801_v57 = vmul.f32 0.2, %v1781_v58  ;;  %v1784_v10 = vadd.f32 %v11137_v24, %v13058_v44  ;;  %v1775_v36 = vpop.f32.mrb[39].mxu0  ;;  %vm1793_vm12 = vcmp.ge.f32.partialorder %v1781_v58, 0.0  ;;  %11138 = vmatprep.subr.bf16.mxu0 %v1811_v34 }
 0x2b4   : > { %v1799_v28 = vmul.f32 0.2, %v1773_v3  ;;  %v1776_v37 = vadd.f32 %v1775_v36, %v13045_v39  ;;  %vm1791_vm13 = vcmp.ge.f32.partialorder %v1773_v3, 0.0  ;;  %11139 = vmatpush3.bf16.msra.mxu0 %v1811_v34  ;;  %11109 = vmatpush3.bf16.msra.mxu1 %v1554_v61  ;;  %v10130_v36 = vld [vmem:[%s12488_s12 + $0x10] sm:$0x7] }
 0x2b5   : > { %vm1794_vm14 = vcmp.ge.f32.partialorder %v1784_v10, 0.0  ;;  %v1802_v23 = vmul.f32 0.2, %v1784_v10  ;;  %11140 = vmatprep.subr.bf16.mxu0 %v1812_v17  ;;  %v1809_v47 = vsel %vm1793_vm12, %v1781_v58, %v1801_v57  ;;  %11110 = vmatprep.subr.bf16.mxu1 %v1555_v54  ;;  %v1979_v0 = vsel %vm780_vm1, %v10130_v36, 0  ;;  %v10143_v34 = vld [vmem:[%s12488_s12 + $0x14] sm:$0x7] }
 0x2b6   : > { %vm1792_vm15 = vcmp.ge.f32.partialorder %v1776_v37, 0.0  ;;  %v1800_v25 = vmul.f32 0.2, %v1776_v37  ;;  %v1807_v15 = vsel %vm1791_vm13, %v1773_v3, %v1799_v28  ;;  %v17204_v57 = vld [vmem:[#allocation66_spill] sm:$0xff] }
 0x2b7   : > { %v1810_v50 = vsel %vm1794_vm14, %v1784_v10, %v1802_v23  ;;  %v2238_v10 = vsel %vm780_vm1, %v10143_v34, 0  ;;  %v17205_v5 = vmax.f32 %v17203_v6, %v17204_v57  ;;  %v17206_v23 = vld [vmem:[#allocation68_spill] sm:$0xff] }
 0x2b8   : > { %v1808_v20 = vsel %vm1792_vm15, %v1776_v37, %v1800_v25  ;;  %v1814_v38 = vpack.c.bf16 %v1810_v50, %v1809_v47  ;;  %11141 = vmatpush3.bf16.msra.mxu0 %v1812_v17  ;;  %11111 = vmatpush3.bf16.msra.mxu1 %v1555_v54  ;;  %v17202_v54 = vmax.f32 %v17200_v12, %v17201_v53  ;;  %v17211_v53 = vld [vmem:[#allocation63_spill] sm:$0xff] }
 0x2b9   : > { %v1813_v48 = vpack.c.bf16 %v1808_v20, %v1807_v15  ;;  %11878 = vmatprep.subr.msk.bf16.mxu1 %vm780_vm1, %v10130_v36  ;;  %v17207_v25 = vmax.f32 %v13503_v8, %v17206_v23 }
 0x2bb   : > { %11142 = vmatprep.subr.bf16.mxu0 %v1813_v48  ;;  %11113 = vmatmul.mubr.msk.bf16.vlgmr.msra.gmra.mrb[24].mxu1 %vm1029_vm3, %v13244_v19 }
 0x2bc   : > { %11143 = vmatpush3.bf16.msra.mxu0 %v1813_v48  ;;  %11116 = vmatprep.mubr.msk.bf16.mxu1 %vm1029_vm3, %v13251_v35  ;;  %v17209_v48 = vmax.f32 %v13507_v27, %v13539_v49 }
 0x2bd   : > { %11144 = vmatprep.subr.bf16.mxu0 %v1814_v38  ;;  %11163 = vmatpush3.bf16.msra.mxu1 %v1979_v0 }
 0x2c0   : > { %11145 = vmatpush3.bf16.msra.mxu0 %v1814_v38 }
 0x2c1   : > { %11879 = vmatprep.subr.msk.bf16.mxu0 %vm780_vm1, %v10143_v34 }
 0x2c3   : > { %11147 = vmatmul.mubr.msk.bf16.vlgmr.msra.gmra.mrb[40].mxu0 %vm1029_vm3, %v13244_v19  ;;  %11117 = vmatmul.mubr.msk.bf16.gmra.mrb[28].mxu1 %vm1029_vm3, %v13284_v14  ;;  %v13729_v19 = vld [vmem:[%s17128_s16] sm:$0xff]  }
 0x2c4   : > { %11197 = vmatpush3.bf16.msra.mxu0 %v2238_v10  ;;  %11120 = vmatprep.mubr.msk.bf16.mxu1 %vm1029_vm3, %v13293_v31 }
 0x2c5   : > { %11150 = vmatprep.mubr.msk.bf16.mxu0 %vm1029_vm3, %v13251_v35 }
 0x2cb   : > { %11151 = vmatmul.mubr.msk.bf16.gmra.mrb[44].mxu0 %vm1029_vm3, %v13284_v14  ;;  %11121 = vmatmul.mubr.msk.bf16.gmra.mrb[32].mxu1 %vm1029_vm3, %v13319_v52 }
 0x2cc   : > { %11154 = vmatprep.mubr.msk.bf16.mxu0 %vm1029_vm3, %v13293_v31  ;;  %11124 = vmatprep.mubr.msk.bf16.mxu1 %vm1029_vm3, %v13324_v55 }
 0x2d3   : > { %11155 = vmatmul.mubr.msk.bf16.gmra.mrb[48].mxu0 %vm1029_vm3, %v13319_v52  ;;  %11125 = vmatmul.mubr.msk.bf16.gmra.mrb[36].mxu1 %vm1029_vm3, %v13355_v11  ;;  %v17197_v52 = vld [vmem:[#allocation16_spill] sm:$0xff] }
 0x2d4   : > { %11158 = vmatprep.mubr.msk.bf16.mxu0 %vm1029_vm3, %v13324_v55  ;;  %11164 = vmatprep.mubr.msk.bf16.mxu1 %vm767_vm2, %v13376_v26 }
 0x2db   : > { %11159 = vmatmul.mubr.msk.bf16.gmra.mrb[52].mxu0 %vm1029_vm3, %v13355_v11  ;;  %11165 = vmatmul.mubr.msk.bf16.vlgmr.msra.gmra.mrb[40].mxu1 %vm767_vm2, %v13398_v51 }
 0x2dc   : > { %11198 = vmatprep.mubr.msk.bf16.mxu0 %vm767_vm2, %v13376_v26  ;;  %11168 = vmatprep.mubr.msk.bf16.mxu1 %vm767_vm2, %v13410_v62 }
 0x2e3   : > { %11199 = vmatmul.mubr.msk.bf16.vlgmr.msra.gmra.mrb[56].mxu0 %vm767_vm2, %v13398_v51  ;;  %11169 = vmatmul.mubr.msk.bf16.gmra.mrb[44].mxu1 %vm767_vm2, %v13434_v33  ;;  %v17198_v51 = vld [vmem:[#allocation17_spill] sm:$0xff] }
 0x2e4   : > { %11202 = vmatprep.mubr.msk.bf16.mxu0 %vm767_vm2, %v13410_v62  ;;  %11180 = vmatprep.mubr.msk.bf16.mxu1 %vm1029_vm3, %v13729_v19 }
 0x2eb   : > { %11203 = vmatmul.mubr.msk.bf16.gmra.mrb[60].mxu0 %vm767_vm2, %v13434_v33 }
 0x2ec   : > { %11214 = vmatprep.mubr.msk.bf16.mxu0 %vm1029_vm3, %v13729_v19 }
 0x38e   : > { %v11114_v35 = vpop.f32.mrb[24].mxu1 }
 0x38f   : > { %v1599_v14 = vadd.f32 %v11114_v35, %v13089_v56  ;;  %v1590_v31 = vpop.f32.mrb[25].mxu1 }
 0x390   : > { %v1591_v55 = vadd.f32 %v1590_v31, %v17197_v52  ;;  %v11115_v11 = vpop.f32.mrb[26].mxu1 }
 0x391   : > { %vm1655_vm0 = vcmp.ge.f32.partialorder %v1599_v14, 0.0  ;;  %v1671_v26 = vmul.f32 0.2, %v1599_v14  ;;  %v1602_v62 = vadd.f32 %v11115_v11, %v17198_v51  ;;  %v1593_v61 = vpop.f32.mrb[27].mxu1 }
 0x392   : > { %vm1653_vm4 = vcmp.ge.f32.partialorder %v1591_v55, 0.0  ;;  %v1669_v22 = vmul.f32 0.2, %v1591_v55  ;;  %v1594_v4 = vadd.f32 %v1593_v61, %v17199_v63 }
 0x393   : > { %v1687_v33 = vsel %vm1655_vm0, %v1599_v14, %v1671_v26  ;;  %vm1656_vm5 = vcmp.ge.f32.partialorder %v1602_v62, 0.0  ;;  %v1672_v58 = vmul.f32 0.2, %v1602_v62 }
 0x394   : > { %v13744_v3 = vmax.f32 %v17202_v54, %v1687_v33  ;;  %v1685_v24 = vsel %vm1653_vm4, %v1591_v55, %v1669_v22  ;;  %vm1654_vm6 = vcmp.ge.f32.partialorder %v1594_v4, 0.0  ;;  %v1670_v45 = vmul.f32 0.2, %v1594_v4  ;;  %v17212_v54 = vld [vmem:[#allocation72_spill] sm:$0xff] }
 0x395   : > { %v13749_v28 = vmax.f32 %v17205_v5, %v1685_v24  ;;  %v1688_v37 = vsel %vm1656_vm5, %v1602_v62, %v1672_v58  ;;  %v17210_v62 = vld [vmem:[#allocation21_spill] sm:$0xff]  ;;  %v17213_v24 = vmax.f32 %v17211_v53, %v17212_v54  ;;  %v17215_v5 = vld [vmem:[#allocation64_spill] sm:$0xff] }
 0x396   : > { %v11148_v17 = vpop.f32.mrb[40].mxu0  ;;  %v13754_v47 = vmax.f32 %v17207_v25, %v1688_v37  ;;  %v1686_v50 = vsel %vm1654_vm6, %v1594_v4, %v1670_v45  ;;  %v11118_v15 = vpop.f32.mrb[28].mxu1  ;;  %v17216_v37 = vld [vmem:[#allocation73_spill] sm:$0xff] }
 0x397   : > { %v1858_v20 = vadd.f32 %v11148_v17, %v13089_v56  ;;  %v1849_v38 = vpop.f32.mrb[41].mxu0  ;;  %v13760_v36 = vmax.f32 %v17209_v48, %v1686_v50  ;;  %v1615_v0 = vadd.f32 %v11118_v15, %v13115_v2  ;;  %v1606_v34 = vpop.f32.mrb[29].mxu1  ;;  %v17217_v17 = vmax.f32 %v17215_v5, %v17216_v37 }
 0x398   : > { %17208 = vst [vmem:[#allocation61_spill] sm:$0xff] %v13754_v47  ;;  %v1850_v10 = vadd.f32 %v1849_v38, %v17197_v52  ;;  %v11149_v35 = vpop.f32.mrb[42].mxu0  ;;  %v1607_v8 = vadd.f32 %v1606_v34, %v13099_v60  ;;  %v11119_v14 = vpop.f32.mrb[30].mxu1 }
 0x399   : > { %vm1914_vm9 = vcmp.ge.f32.partialorder %v1858_v20, 0.0  ;;  %v1930_v31 = vmul.f32 0.2, %v1858_v20  ;;  %v1861_v55 = vadd.f32 %v11149_v35, %v17198_v51  ;;  %v1852_v11 = vpop.f32.mrb[43].mxu0  ;;  %vm1659_vm7 = vcmp.ge.f32.partialorder %v1615_v0, 0.0  ;;  %v1609_v27 = vpop.f32.mrb[31].mxu1 }
 0x39a   : > { %v1675_v26 = vmul.f32 0.2, %v1615_v0  ;;  %v1618_v49 = vadd.f32 %v11119_v14, %v17210_v62  ;;  %vm1912_vm8 = vcmp.ge.f32.partialorder %v1850_v10, 0.0  ;;  %vm1657_vm10 = vcmp.ge.f32.partialorder %v1607_v8, 0.0  ;;  %v17219_v14 = vld [vmem:[#allocation75_spill] sm:$0xff] }
 0x39b   : > { %v1673_v61 = vmul.f32 0.2, %v1607_v8  ;;  %v1610_v22 = vadd.f32 %v1609_v27, %v13097_v59  ;;  %v13768_v4 = vsel %vm1914_vm9, %v1858_v20, %v1930_v31  ;;  %v1928_v50 = vmul.f32 0.2, %v1850_v10 }
 0x39c   : > { %v1691_v33 = vsel %vm1659_vm7, %v1615_v0, %v1675_v26  ;;  %vm1660_vm11 = vcmp.ge.f32.partialorder %v1618_v49, 0.0  ;;  %v1676_v58 = vmul.f32 0.2, %v1618_v49  ;;  %vm1915_vm13 = vcmp.ge.f32.partialorder %v1861_v55, 0.0 }
 0x39d   : > { %v13775_v45 = vmax.f32 %v17213_v24, %v1691_v33  ;;  %v1689_v6 = vsel %vm1657_vm10, %v1607_v8, %v1673_v61  ;;  %vm1658_vm12 = vcmp.ge.f32.partialorder %v1610_v22, 0.0  ;;  %v1674_v57 = vmul.f32 0.2, %v1610_v22 }
 0x39e   : > { %v13780_v23 = vmax.f32 %v17217_v17, %v1689_v6  ;;  %v1692_v25 = vsel %vm1660_vm11, %v1618_v49, %v1676_v58  ;;  %v11152_v15 = vpop.f32.mrb[44].mxu0  ;;  %v17218_v20 = vmax.f32 %v13515_v43, %v13570_v42  ;;  %v11122_v0 = vpop.f32.mrb[32].mxu1  ;;  %v1931_v34 = vmul.f32 0.2, %v1861_v55  ;;  %v17221_v49 = vld [vmem:[#allocation26_spill] sm:$0xff]  ;;  %v17224_v6 = vld [vmem:[#allocation25_spill] sm:$0xff] }
 0x39f   : > { %17214 = vst [vmem:[#allocation65_spill] sm:$0xff] %v13775_v45  ;;  %v1690_v48 = vsel %vm1658_vm12, %v1610_v22, %v1674_v57  ;;  %v1853_v35 = vadd.f32 %v1852_v11, %v17199_v63  ;;  %v1865_v8 = vpop.f32.mrb[45].mxu0  ;;  %v17220_v31 = vmax.f32 %v13526_v9, %v17219_v14  ;;  %v1631_v27 = vadd.f32 %v11122_v0, %v17221_v49  ;;  %v1622_v61 = vpop.f32.mrb[33].mxu1  ;;  %v17222_v22 = vld [vmem:[#allocation24_spill] sm:$0xff]  ;;  %v17225_v17 = vld [vmem:[#allocation23_spill] sm:$0xff] }
 0x3a0   : > { %v13785_v38 = vmax.f32 %v17218_v20, %v1692_v25  ;;  %v13795_v33 = vsel %vm1912_vm8, %v1850_v10, %v1928_v50  ;;  %v1874_v43 = vadd.f32 %v11152_v15, %v13115_v2  ;;  %v11153_v42 = vpop.f32.mrb[46].mxu0  ;;  %v1623_v58 = vadd.f32 %v1622_v61, %v17222_v22  ;;  %v11123_v53 = vpop.f32.mrb[34].mxu1  ;;  %v17230_v61 = vld [vmem:[#allocation69_spill] sm:$0xff]  ;;  %v17235_v2 = vld [vmem:[#allocation70_spill] sm:$0xff] }
 0x3a1   : > { %v13791_v26 = vmax.f32 %v17220_v31, %v1690_v48  ;;  %v13802_v54 = vsel %vm1915_vm13, %v1861_v55, %v1931_v34  ;;  %vm1913_vm14 = vcmp.ge.f32.partialorder %v1853_v35, 0.0  ;;  %v1868_v9 = vpop.f32.mrb[47].mxu0  ;;  %vm1663_vm15 = vcmp.ge.f32.partialorder %v1631_v27, 0.0  ;;  %v1625_v5 = vpop.f32.mrb[35].mxu1  ;;  %v17226_v55 = vld [vmem:[#allocation67_spill] sm:$0xff]  ;;  %v17227_v48 = vld [vmem:[#allocation76_spill] sm:$0xff] }
 0x3a2   : > { %17223 = vst [vmem:[#allocation62_spill] sm:$0xff] %v13802_v54  ;;  %v1679_v24 = vmul.f32 0.2, %v1631_v27  ;;  %v1634_v57 = vadd.f32 %v11123_v53, %v17224_v6  ;;  %vm1661_vm0 = vcmp.ge.f32.partialorder %v1623_v58, 0.0  ;;  %v1677_v37 = vmul.f32 0.2, %v1623_v58 }
 0x3a3   : > { %v1626_v25 = vadd.f32 %v1625_v5, %v17225_v17  ;;  %v1929_v50 = vmul.f32 0.2, %v1853_v35  ;;  %vm1918_vm5 = vcmp.ge.f32.partialorder %v1874_v43, 0.0  ;;  %v17228_v0 = vmax.f32 %v17226_v55, %v17227_v48  ;;  %v17231_v53 = vld [vmem:[#allocation77_spill] sm:$0xff]  ;;  %v17236_v54 = vld [vmem:[#allocation78_spill] sm:$0xff] }
 0x3a4   : > { %v1695_v15 = vsel %vm1663_vm15, %v1631_v27, %v1679_v24  ;;  %vm1664_vm4 = vcmp.ge.f32.partialorder %v1634_v57, 0.0  ;;  %v1680_v20 = vmul.f32 0.2, %v1634_v57  ;;  %v1693_v14 = vsel %vm1661_vm0, %v1623_v58, %v1677_v37 }
 0x3a5   : > { %v13811_v34 = vmax.f32 %v17228_v0, %v1695_v15  ;;  %vm1662_vm6 = vcmp.ge.f32.partialorder %v1626_v25, 0.0  ;;  %v1678_v31 = vmul.f32 0.2, %v1626_v25  ;;  %v17232_v10 = vmax.f32 %v17230_v61, %v17231_v53  ;;  %v17238_v0 = vld [vmem:[#allocation71_spill] sm:$0xff] }
 0x3a6   : > { %v1696_v12 = vsel %vm1664_vm4, %v1634_v57, %v1680_v20  ;;  %v13819_v5 = vsel %vm1913_vm14, %v1853_v35, %v1929_v50  ;;  %v1934_v27 = vmul.f32 0.2, %v1874_v43  ;;  %v11156_v24 = vpop.f32.mrb[48].mxu0  ;;  %v17237_v47 = vmax.f32 %v17235_v2, %v17236_v54  ;;  %v11126_v37 = vpop.f32.mrb[36].mxu1  ;;  %v17239_v57 = vld [vmem:[#allocation79_spill] sm:$0xff]  ;;  %v17241_v50 = vld [vmem:[#allocation30_spill] sm:$0xff] }
 0x3a7   : > { %17229 = vst [vmem:[#allocation66_spill] sm:$0xff] %v13811_v34  ;;  %v13816_v11 = vmax.f32 %v17232_v10, %v1693_v14  ;;  %17234 = vst [vmem:[#allocation63_spill] sm:$0xff] %v13819_v5  ;;  %v1694_v15 = vsel %vm1662_vm6, %v1626_v25, %v1678_v31  ;;  %v1866_v48 = vadd.f32 %v1865_v8, %v13099_v60  ;;  %v1881_v10 = vpop.f32.mrb[49].mxu0  ;;  %v1638_v2 = vpop.f32.mrb[37].mxu1  ;;  %v17243_v25 = vld [vmem:[#allocation28_spill] sm:$0xff]  ;;  %v17247_v60 = vld [vmem:[#allocation74_spill] sm:$0xff] }
 0x3a8   : > { %v13824_v55 = vmax.f32 %v17237_v47, %v1696_v12  ;;  %v17240_v20 = vmax.f32 %v17238_v0, %v17239_v57  ;;  %v1647_v14 = vadd.f32 %v11126_v37, %v17241_v50  ;;  %v13836_v61 = vsel %vm1918_vm5, %v1874_v43, %v1934_v27  ;;  %v11157_v12 = vpop.f32.mrb[50].mxu0  ;;  %v11127_v53 = vpop.f32.mrb[38].mxu1 }
 0x3a9   : > { %17233 = vst [vmem:[#allocation68_spill] sm:$0xff] %v13816_v11  ;;  %17242 = vst [vmem:[#allocation72_spill] sm:$0xff] %v13836_v61  ;;  %v1877_v47 = vadd.f32 %v11153_v42, %v17210_v62  ;;  %v1639_v8 = vadd.f32 %v1638_v2, %v17243_v25  ;;  %vm1916_vm9 = vcmp.ge.f32.partialorder %v1866_v48, 0.0  ;;  %v1932_v31 = vmul.f32 0.2, %v1866_v48  ;;  %v1884_v0 = vpop.f32.mrb[51].mxu0 }
 0x3aa   : > { %v13832_v35 = vmax.f32 %v17240_v20, %v1694_v15  ;;  %vm1667_vm7 = vcmp.ge.f32.partialorder %v1647_v14, 0.0  ;;  %v1683_v15 = vmul.f32 0.2, %v1647_v14  ;;  %v1650_v37 = vadd.f32 %v11127_v53, %v13162_v21  ;;  %v1641_v43 = vpop.f32.mrb[39].mxu1 }
 0x3ab   : > { %vm1919_vm8 = vcmp.ge.f32.partialorder %v1877_v47, 0.0  ;;  %vm1665_vm10 = vcmp.ge.f32.partialorder %v1639_v8, 0.0  ;;  %v1681_v27 = vmul.f32 0.2, %v1639_v8  ;;  %v13843_v57 = vsel %vm1916_vm9, %v1866_v48, %v1932_v31  ;;  %v17248_v48 = vld [vmem:[#allocation80_spill] sm:$0xff] }
 0x3ac   : > { %17244 = vst [vmem:[#allocation64_spill] sm:$0xff] %v13843_v57  ;;  %v1935_v42 = vmul.f32 0.2, %v1877_v47  ;;  %v1699_v20 = vsel %vm1667_vm7, %v1647_v14, %v1683_v15  ;;  %vm1668_vm11 = vcmp.ge.f32.partialorder %v1650_v37, 0.0  ;;  %v1684_v2 = vmul.f32 0.2, %v1650_v37 }
 0x3ad   : > { %v17245_v58 = vmax.f32 %v13556_v32, %v13629_v1  ;;  %v1697_v45 = vsel %vm1665_vm10, %v1639_v8, %v1681_v27  ;;  %v1642_v62 = vadd.f32 %v1641_v43, %v13149_v16  ;;  %v17249_v31 = vmax.f32 %v17247_v60, %v17248_v48 }
 0x3ae   : > { %v13852_v53 = vsel %vm1919_vm8, %v1877_v47, %v1935_v42  ;;  %v1700_v14 = vsel %vm1668_vm11, %v1650_v37, %v1684_v2  ;;  %v1869_v54 = vadd.f32 %v1868_v9, %v13097_v59  ;;  %v11160_v57 = vpop.f32.mrb[52].mxu0  ;;  %v17250_v32 = vmax.f32 %v13582_v13, %v13643_v18  ;;  %v11166_v8 = vpop.f32.mrb[40].mxu1 }
 0x3af   : > { %v13850_v61 = vmax.f32 %v17245_v58, %v1699_v20  ;;  %v13858_v5 = vmax.f32 %v17249_v31, %v1697_v45  ;;  %vm1666_vm12 = vcmp.ge.f32.partialorder %v1642_v62, 0.0  ;;  %v1682_v58 = vmul.f32 0.2, %v1642_v62  ;;  %v1897_v60 = vpop.f32.mrb[53].mxu0  ;;  %v2015_v9 = vpop.f32.mrb[41].mxu1 }
 0x3b0   : > { %v13866_v1 = vmax.f32 %v17250_v32, %v1700_v14  ;;  %v1890_v47 = vadd.f32 %v11156_v24, %v17221_v49  ;;  %vm1917_vm13 = vcmp.ge.f32.partialorder %v1869_v54, 0.0  ;;  %v1933_v45 = vmul.f32 0.2, %v1869_v54  ;;  %v11161_v27 = vpop.f32.mrb[54].mxu0  ;;  %v11167_v20 = vpop.f32.mrb[42].mxu1 }
 0x3b1   : > { %17246 = vst [vmem:[#allocation73_spill] sm:$0xff] %v13850_v61  ;;  %v13870_v37 = vadd.f32 %v11166_v8, %v13019_v29  ;;  %v1882_v43 = vadd.f32 %v1881_v10, %v17222_v22  ;;  %v1698_v42 = vsel %vm1666_vm12, %v1642_v62, %v1682_v58  ;;  %v13874_v18 = vadd.f32 %v2015_v9, %v13021_v30  ;;  %v1900_v2 = vpop.f32.mrb[55].mxu0  ;;  %v2018_v10 = vpop.f32.mrb[43].mxu1 }
 0x3b2   : > { %vm1922_vm14 = vcmp.ge.f32.partialorder %v1890_v47, 0.0  ;;  %v1938_v13 = vmul.f32 0.2, %v1890_v47  ;;  %v17251_v24 = vmax.f32 %v13587_v7, %v13650_v41  ;;  %v13881_v31 = vsel %vm1917_vm13, %v1869_v54, %v1933_v45  ;;  %v17254_v45 = vld [vmem:[#allocation13_spill] sm:$0xff] }
 0x3b3   : > { %v13884_v14 = vmul.f32 0.2, %v13870_v37  ;;  %vm1920_vm15 = vcmp.ge.f32.partialorder %v1882_v43, 0.0  ;;  %v1936_v58 = vmul.f32 0.2, %v1882_v43  ;;  %vm2046_vm0 = vcmp.ge.f32.partialorder %v13874_v18, 0.0 }
 0x3b4   : > { %v13879_v48 = vmax.f32 %v17251_v24, %v1698_v42  ;;  %v13888_v32 = vsel %vm1922_vm14, %v1890_v47, %v1938_v13  ;;  %v2054_v7 = vmul.f32 0.2, %v13874_v18  ;;  %v1893_v41 = vadd.f32 %v11157_v12, %v17224_v6  ;;  %v17255_v47 = vld [vmem:[#allocation14_spill] sm:$0xff] }
 0x3b5   : > { %17252 = vst [vmem:[#allocation75_spill] sm:$0xff] %v13888_v32  ;;  %v13895_v54 = vsel %vm1920_vm15, %v1882_v43, %v1936_v58  ;;  %v13898_v9 = vadd.f32 %v11167_v20, %v17254_v45  ;;  %v1885_v42 = vadd.f32 %v1884_v0, %v17225_v17  ;;  %v2019_v13 = vadd.f32 %v2018_v10, %v17255_v47 }
 0x3b6   : > { %17253 = vst [vmem:[#allocation67_spill] sm:$0xff] %v13895_v54  ;;  %vm2048_vm4 = vcmp.ge.f32.partialorder %v13870_v37, 0.0  ;;  %vm1923_vm5 = vcmp.ge.f32.partialorder %v1893_v41, 0.0  ;;  %v1939_v8 = vmul.f32 0.2, %v1893_v41  ;;  %v1906_v62 = vadd.f32 %v11160_v57, %v17241_v50  ;;  %v11200_v15 = vpop.f32.mrb[56].mxu0 }
 0x3b7   : > { %vm2049_vm6 = vcmp.ge.f32.partialorder %v13898_v9, 0.0  ;;  %v2057_v12 = vmul.f32 0.2, %v13898_v9  ;;  %vm1921_vm9 = vcmp.ge.f32.partialorder %v1885_v42, 0.0  ;;  %v1937_v43 = vmul.f32 0.2, %v1885_v42 }
 0x3b8   : > { %v13908_v20 = vsel %vm1923_vm5, %v1893_v41, %v1939_v8  ;;  %vm2047_vm7 = vcmp.ge.f32.partialorder %v2019_v13, 0.0  ;;  %v2055_v0 = vmul.f32 0.2, %v2019_v13  ;;  %vm1926_vm8 = vcmp.ge.f32.partialorder %v1906_v62, 0.0  ;;  %v11170_v10 = vpop.f32.mrb[44].mxu1  ;;  %v2274_v58 = vpop.f32.mrb[57].mxu0 }
 0x3b9   : > { %v13912_v54 = vsel %vm1921_vm9, %v1885_v42, %v1937_v43  ;;  %v1942_v57 = vmul.f32 0.2, %v1906_v62  ;;  %v2040_v50 = vadd.f32 %v11170_v10, %v13063_v46  ;;  %v2031_v11 = vpop.f32.mrb[45].mxu1  ;;  %v11201_v32 = vpop.f32.mrb[58].mxu0  ;;  %v1898_v8 = vadd.f32 %v1897_v60, %v17243_v25 }
 0x3ba   : > { %17256 = vst [vmem:[#allocation76_spill] sm:$0xff] %v13912_v54  ;;  %v2032_v41 = vadd.f32 %v2031_v11, %v13047_v40  ;;  %v1909_v17 = vadd.f32 %v11161_v27, %v13162_v21  ;;  %v11171_v6 = vpop.f32.mrb[46].mxu1  ;;  %v2277_v22 = vpop.f32.mrb[59].mxu0  ;;  %v2062_v24 = vsel %vm2046_vm0, %v13874_v18, %v2054_v7  ;;  %v2065_v18 = vsel %vm2049_vm6, %v13898_v9, %v2057_v12 }
 0x3bb   : > { %v13920_v49 = vsel %vm1926_vm8, %v1906_v62, %v1942_v57  ;;  %vm2052_vm10 = vcmp.ge.f32.partialorder %v2040_v50, 0.0  ;;  %v2060_v42 = vmul.f32 0.2, %v2040_v50  ;;  %v2043_v43 = vadd.f32 %v11171_v6, %v13058_v44  ;;  %v2034_v10 = vpop.f32.mrb[47].mxu1 }
 0x3bc   : > { %17257 = vst [vmem:[#allocation69_spill] sm:$0xff] %v13920_v49  ;;  %vm1924_vm11 = vcmp.ge.f32.partialorder %v1898_v8, 0.0  ;;  %v1940_v34 = vmul.f32 0.2, %v1898_v8  ;;  %vm2050_vm12 = vcmp.ge.f32.partialorder %v2032_v41, 0.0  ;;  %vm1927_vm13 = vcmp.ge.f32.partialorder %v1909_v17, 0.0 }
 0x3bd   : > { %v2058_v60 = vmul.f32 0.2, %v2032_v41  ;;  %v1943_v11 = vmul.f32 0.2, %v1909_v17  ;;  %vm2053_vm14 = vcmp.ge.f32.partialorder %v2043_v43, 0.0  ;;  %v1901_v62 = vadd.f32 %v1900_v2, %v13149_v16 }
 0x3be   : > { %v13925_v27 = vsel %vm1924_vm11, %v1898_v8, %v1940_v34  ;;  %v2061_v21 = vmul.f32 0.2, %v2043_v43  ;;  %v2035_v57 = vadd.f32 %v2034_v10, %v13045_v39  ;;  %v11204_v25 = vpop.f32.mrb[60].mxu0  ;;  %v2063_v49 = vsel %vm2047_vm7, %v2019_v13, %v2055_v0 }
 0x3bf   : > { %v13931_v54 = vsel %vm1927_vm13, %v1909_v17, %v1943_v11  ;;  %v2290_v61 = vpop.f32.mrb[61].mxu0  ;;  %vm1925_vm15 = vcmp.ge.f32.partialorder %v1901_v62, 0.0  ;;  %v1941_v2 = vmul.f32 0.2, %v1901_v62  ;;  %v2070_v16 = vpack.c.bf16 %v2063_v49, %v2062_v24 }
 0x3c0   : > { %vm2051_vm5 = vcmp.ge.f32.partialorder %v2035_v57, 0.0  ;;  %v11205_v8 = vpop.f32.mrb[62].mxu0  ;;  %v2059_v10 = vmul.f32 0.2, %v2035_v57  ;;  %v2064_v17 = vsel %vm2048_vm4, %v13870_v37, %v13884_v14  ;;  %v2283_v11 = vadd.f32 %v11200_v15, %v13019_v29 }
 0x3c1   : > { %v2293_v7 = vpop.f32.mrb[63].mxu0  ;;  %v13946_v13 = vsel %vm1925_vm15, %v1901_v62, %v1941_v2  ;;  %v2071_v0 = vpack.c.bf16 %v2065_v18, %v2064_v17  ;;  %v2275_v34 = vadd.f32 %v2274_v58, %v13021_v30  ;;  %11172 = vmatprep.subr.bf16.mxu1 %v2070_v16  ;;  %v2286_v24 = vadd.f32 %v11201_v32, %v17254_v45 }
 0x3c2   : > { %v2066_v37 = vsel %vm2050_vm12, %v2032_v41, %v2058_v60  ;;  %v2067_v14 = vsel %vm2051_vm5, %v2035_v57, %v2059_v10  ;;  %11173 = vmatpush3.bf16.msra.mxu1 %v2070_v16  ;;  %vm2307_vm0 = vcmp.ge.f32.partialorder %v2283_v11, 0.0  ;;  %v2315_v9 = vmul.f32 0.2, %v2283_v11 }
 0x3c3   : > { %vm2305_vm4 = vcmp.ge.f32.partialorder %v2275_v34, 0.0  ;;  %v2313_v12 = vmul.f32 0.2, %v2275_v34  ;;  %11174 = vmatprep.subr.bf16.mxu1 %v2071_v0  ;;  %vm2308_vm6 = vcmp.ge.f32.partialorder %v2286_v24, 0.0  ;;  %v2316_v62 = vmul.f32 0.2, %v2286_v24 }
 0x3c4   : > { %v2072_v15 = vpack.c.bf16 %v2067_v14, %v2066_v37  ;;  %v2278_v58 = vadd.f32 %v2277_v22, %v17255_v47  ;;  %v2068_v2 = vsel %vm2052_vm10, %v2040_v50, %v2060_v42  ;;  %v2069_v17 = vsel %vm2053_vm14, %v2043_v43, %v2061_v21 }
 0x3c5   : > { %v2299_v32 = vadd.f32 %v11204_v25, %v13063_v46  ;;  %v2291_v41 = vadd.f32 %v2290_v61, %v13047_v40  ;;  %v2073_v60 = vpack.c.bf16 %v2069_v17, %v2068_v2  ;;  %v2302_v57 = vadd.f32 %v11205_v8, %v13058_v44 }
 0x3c6   : > { %vm2306_vm9 = vcmp.ge.f32.partialorder %v2278_v58, 0.0  ;;  %v2314_v16 = vmul.f32 0.2, %v2278_v58  ;;  %11175 = vmatpush3.bf16.msra.mxu1 %v2071_v0  ;;  %v2294_v50 = vadd.f32 %v2293_v7, %v13045_v39  ;;  %v2321_v21 = vsel %vm2305_vm4, %v2275_v34, %v2313_v12  ;;  %v13972_v12 = vld [vmem:[%s17128_s16 + $0x8] sm:$0xff]  }
 0x3c7   : > { %vm2311_vm7 = vcmp.ge.f32.partialorder %v2299_v32, 0.0  ;;  %v2319_v10 = vmul.f32 0.2, %v2299_v32  ;;  %vm2309_vm8 = vcmp.ge.f32.partialorder %v2291_v41, 0.0  ;;  %11176 = vmatprep.subr.bf16.mxu1 %v2072_v15  ;;  %v2317_v18 = vmul.f32 0.2, %v2291_v41 }
 0x3c8   : > { %vm2312_vm11 = vcmp.ge.f32.partialorder %v2302_v57, 0.0  ;;  %v2320_v22 = vmul.f32 0.2, %v2302_v57  ;;  %v2322_v25 = vsel %vm2306_vm9, %v2278_v58, %v2314_v16  ;;  %v2323_v61 = vsel %vm2307_vm0, %v2283_v11, %v2315_v9  ;;  %v10156_v9 = vld [vmem:[%s12488_s12 + $0x18] sm:$0x7]  ;;  %v14014_v16 = vld [vmem:[%s17128_s16 + $0x30] sm:$0xff]  }
 0x3c9   : > { %v2324_v42 = vsel %vm2308_vm6, %v2286_v24, %v2316_v62  ;;  %vm2310_vm10 = vcmp.ge.f32.partialorder %v2294_v50, 0.0  ;;  %v2318_v43 = vmul.f32 0.2, %v2294_v50  ;;  %v2329_v8 = vpack.c.bf16 %v2322_v25, %v2321_v21  ;;  %v13979_v62 = vld [vmem:[%s17128_s16 + $0x10] sm:$0xff]   ;;  %v13987_v58 = vld [vmem:[%s17128_s16 + $0x18] sm:$0xff]  }
 0x3ca   : > { %v2330_v0 = vpack.c.bf16 %v2324_v42, %v2323_v61  ;;  %11177 = vmatpush3.bf16.msra.mxu1 %v2072_v15  ;;  %v2327_v37 = vsel %vm2311_vm7, %v2299_v32, %v2319_v10  ;;  %v2328_v14 = vsel %vm2312_vm11, %v2302_v57, %v2320_v22  ;;  %v2325_v7 = vsel %vm2309_vm8, %v2291_v41, %v2317_v18  ;;  %v10169_v15 = vld [vmem:[%s12488_s12 + $0x1c] sm:$0x7]  ;;  %v13996_v32 = vld [vmem:[%s17128_s16 + $0x20] sm:$0xff]   ;;  %v14007_v41 = vld [vmem:[%s17128_s16 + $0x28] sm:$0xff]  }
 0x3cb   : > { %11178 = vmatprep.subr.bf16.mxu1 %v2073_v60  ;;  %11206 = vmatprep.subr.bf16.mxu0 %v2329_v8  ;;  %v2326_v2 = vsel %vm2310_vm10, %v2294_v50, %v2318_v43  ;;  %v2332_v34 = vpack.c.bf16 %v2328_v14, %v2327_v37  ;;  %v2497_v24 = vsel %vm780_vm1, %v10156_v9, 0  ;;  %v2756_v17 = vsel %vm780_vm1, %v10169_v15, 0  ;;  %v12056_v57 = vld [vmem:[%s16978_s1] sm:$0xff]   ;;  %v12057_v10 = vld [vmem:[%s16978_s1 + $0x8] sm:$0xff]   ;;  %v12058_v18 = vld [vmem:[%s16978_s1 + $0x10] sm:$0xff]  }
 0x3cc   : > { %11207 = vmatpush3.bf16.msra.mxu0 %v2329_v8  ;;  %v2331_v11 = vpack.c.bf16 %v2326_v2, %v2325_v7  ;;  %v12059_v22 = vld [vmem:[%s16978_s1 + $0x18] sm:$0xff]  }
 0x3cd   : > { %11208 = vmatprep.subr.bf16.mxu0 %v2330_v0 }
 0x3ce   : > { %11179 = vmatpush3.bf16.msra.mxu1 %v2073_v60  ;;  %v14025_v60 = vld [vmem:[%s17128_s16 + $0x38] sm:$0xff]  }
 0x3cf   : > { %11880 = vmatprep.subr.msk.bf16.mxu1 %vm780_vm1, %v10156_v9 }
 0x3d0   : > { %11209 = vmatpush3.bf16.msra.mxu0 %v2330_v0 }
 0x3d1   : > { %11181 = vmatmul.mubr.msk.bf16.vlgmr.msra.gmra.mrb[48].mxu1 %vm1029_vm3, %v13972_v12  ;;  %11210 = vmatprep.subr.bf16.mxu0 %v2331_v11 }
 0x3d2   : > { %11184 = vmatprep.mubr.msk.bf16.mxu1 %vm1029_vm3, %v13979_v62  ;;  %11231 = vmatpush3.bf16.msra.mxu1 %v2497_v24  ;;  %v17260_v24 = vmax.f32 %v13749_v28, %v13795_v33 }
 0x3d4   : > { %11211 = vmatpush3.bf16.msra.mxu0 %v2331_v11 }
 0x3d5   : > { %11212 = vmatprep.subr.bf16.mxu0 %v2332_v34 }
 0x3d8   : > { %11213 = vmatpush3.bf16.msra.mxu0 %v2332_v34 }
 0x3d9   : > { %11185 = vmatmul.mubr.msk.bf16.gmra.mrb[52].mxu1 %vm1029_vm3, %v13987_v58  ;;  %11881 = vmatprep.subr.msk.bf16.mxu0 %vm780_vm1, %v10169_v15 }
 0x3da   : > { %11188 = vmatprep.mubr.msk.bf16.mxu1 %vm1029_vm3, %v13996_v32 }
 0x3db   : > { %11215 = vmatmul.mubr.msk.bf16.vlgmr.msra.gmra.mrb[64].mxu0 %vm1029_vm3, %v13972_v12 }
 0x3dc   : > { %11265 = vmatpush3.bf16.msra.mxu0 %v2756_v17  ;;  %11218 = vmatprep.mubr.msk.bf16.mxu0 %vm1029_vm3, %v13979_v62 }
 0x3e1   : > { %11189 = vmatmul.mubr.msk.bf16.gmra.mrb[56].mxu1 %vm1029_vm3, %v14007_v41 }
 0x3e2   : > { %11192 = vmatprep.mubr.msk.bf16.mxu1 %vm1029_vm3, %v14014_v16 }
 0x3e3   : > { %11219 = vmatmul.mubr.msk.bf16.gmra.mrb[68].mxu0 %vm1029_vm3, %v13987_v58 }
 0x3e4   : > { %11222 = vmatprep.mubr.msk.bf16.mxu0 %vm1029_vm3, %v13996_v32 }
 0x3e9   : > { %11193 = vmatmul.mubr.msk.bf16.gmra.mrb[60].mxu1 %vm1029_vm3, %v14025_v60 }
 0x3ea   : > { %11232 = vmatprep.mubr.msk.bf16.mxu1 %vm767_vm2, %v12056_v57 }
 0x3eb   : > { %11223 = vmatmul.mubr.msk.bf16.gmra.mrb[72].mxu0 %vm1029_vm3, %v14007_v41 }
 0x3ec   : > { %11226 = vmatprep.mubr.msk.bf16.mxu0 %vm1029_vm3, %v14014_v16 }
 0x3f1   : > { %11233 = vmatmul.mubr.msk.bf16.vlgmr.msra.gmra.mrb[64].mxu1 %vm767_vm2, %v12057_v10 }
 0x3f2   : > { %11236 = vmatprep.mubr.msk.bf16.mxu1 %vm767_vm2, %v12058_v18 }
 0x3f3   : > { %11227 = vmatmul.mubr.msk.bf16.gmra.mrb[76].mxu0 %vm1029_vm3, %v14025_v60 }
 0x3f4   : > { %11266 = vmatprep.mubr.msk.bf16.mxu0 %vm767_vm2, %v12056_v57  ;;  %v17262_v57 = vld [vmem:[#allocation61_spill] sm:$0xff] }
 0x3f9   : > { %11237 = vmatmul.mubr.msk.bf16.gmra.mrb[68].mxu1 %vm767_vm2, %v12059_v22 }
 0x3fa   : > { %11248 = vmatprep.mubr.msk.bf16.mxu1 %vm1029_vm3, %v13729_v19 }
 0x3fb   : > { %11267 = vmatmul.mubr.msk.bf16.vlgmr.msra.gmra.mrb[80].mxu0 %vm767_vm2, %v12057_v10  ;;  %v17263_v10 = vld [vmem:[#allocation62_spill] sm:$0xff] }
 0x3fc   : > { %11270 = vmatprep.mubr.msk.bf16.mxu0 %vm767_vm2, %v12058_v18  ;;  %v17264_v18 = vmax.f32 %v17262_v57, %v17263_v10 }
 0x403   : > { %11271 = vmatmul.mubr.msk.bf16.gmra.mrb[84].mxu0 %vm767_vm2, %v12059_v22 }
 0x404   : > { %11282 = vmatprep.mubr.msk.bf16.mxu0 %vm1029_vm3, %v13729_v19  ;;  %v17258_v19 = vmax.f32 %v13744_v3, %v13768_v4  ;;  %v17265_v3 = vld [vmem:[#allocation63_spill] sm:$0xff] }
 0x405   : > { %v17266_v4 = vmax.f32 %v13760_v36, %v17265_v3 }
 0x4a4   : > { %v11182_v50 = vpop.f32.mrb[48].mxu1 }
 0x4a5   : > { %v2117_v21 = vadd.f32 %v11182_v50, %v13089_v56  ;;  %v2108_v25 = vpop.f32.mrb[49].mxu1 }
 0x4a6   : > { %v2109_v61 = vadd.f32 %v2108_v25, %v17197_v52  ;;  %v11183_v42 = vpop.f32.mrb[50].mxu1 }
 0x4a7   : > { %vm2173_vm1 = vcmp.ge.f32.partialorder %v2117_v21, 0.0  ;;  %v2189_v43 = vmul.f32 0.2, %v2117_v21  ;;  %v2120_v8 = vadd.f32 %v11183_v42, %v17198_v51  ;;  %v2111_v0 = vpop.f32.mrb[51].mxu1 }
 0x4a8   : > { %vm2171_vm12 = vcmp.ge.f32.partialorder %v2109_v61, 0.0  ;;  %v2187_v37 = vmul.f32 0.2, %v2109_v61  ;;  %v2112_v14 = vadd.f32 %v2111_v0, %v17199_v63  ;;  %v17268_v0 = vld [vmem:[#allocation20_spill] sm:$0xff] }
 0x4a9   : > { %v2205_v7 = vsel %vm2173_vm1, %v2117_v21, %v2189_v43  ;;  %vm2174_vm2 = vcmp.ge.f32.partialorder %v2120_v8, 0.0  ;;  %v2190_v2 = vmul.f32 0.2, %v2120_v8 }
 0x4aa   : > { %v14066_v34 = vmax.f32 %v17258_v19, %v2205_v7  ;;  %v2203_v11 = vsel %vm2171_vm12, %v2109_v61, %v2187_v37  ;;  %vm2172_vm13 = vcmp.ge.f32.partialorder %v2112_v14, 0.0  ;;  %v2188_v9 = vmul.f32 0.2, %v2112_v14  ;;  %v17267_v61 = vld [vmem:[#allocation22_spill] sm:$0xff]  ;;  %v17269_v7 = vld [vmem:[#allocation21_spill] sm:$0xff] }
 0x4ab   : > { %v14071_v15 = vmax.f32 %v17260_v24, %v2203_v11  ;;  %v2206_v17 = vsel %vm2174_vm2, %v2120_v8, %v2190_v2 }
 0x4ac   : > { %17259 = vst [vmem:[#allocation77_spill] sm:$0xff] %v14066_v34  ;;  %v14076_v22 = vmax.f32 %v17264_v18, %v2206_v17  ;;  %v2204_v50 = vsel %vm2172_vm13, %v2112_v14, %v2188_v9  ;;  %v11186_v21 = vpop.f32.mrb[52].mxu1 }
 0x4ad   : > { %17261 = vst [vmem:[#allocation70_spill] sm:$0xff] %v14071_v15  ;;  %v14081_v25 = vmax.f32 %v17266_v4, %v2204_v50  ;;  %v2133_v42 = vadd.f32 %v11186_v21, %v17267_v61  ;;  %v2124_v43 = vpop.f32.mrb[53].mxu1  ;;  %v17270_v50 = vld [vmem:[#allocation65_spill] sm:$0xff]  ;;  %v17271_v21 = vld [vmem:[#allocation72_spill] sm:$0xff]  ;;  %v17289_v15 = vld [vmem:[#allocation67_spill] sm:$0xff] }
 0x4ae   : > { %v2125_v28 = vadd.f32 %v2124_v43, %v17268_v0  ;;  %v11187_v33 = vpop.f32.mrb[54].mxu1  ;;  %v11216_v37 = vpop.f32.mrb[64].mxu0  ;;  %v17272_v3 = vmax.f32 %v17270_v50, %v17271_v21 }
 0x4af   : > { %vm2177_vm14 = vcmp.ge.f32.partialorder %v2133_v42, 0.0  ;;  %v2193_v8 = vmul.f32 0.2, %v2133_v42  ;;  %v2136_v2 = vadd.f32 %v11187_v33, %v17269_v7  ;;  %v2127_v19 = vpop.f32.mrb[55].mxu1  ;;  %v2376_v14 = vadd.f32 %v11216_v37, %v13089_v56  ;;  %v2367_v11 = vpop.f32.mrb[65].mxu0  ;;  %v17274_v37 = vld [vmem:[#allocation64_spill] sm:$0xff] }
 0x4b0   : > { %vm2175_vm15 = vcmp.ge.f32.partialorder %v2125_v28, 0.0  ;;  %v2191_v9 = vmul.f32 0.2, %v2125_v28  ;;  %v2128_v36 = vadd.f32 %v2127_v19, %v13097_v59  ;;  %v2368_v24 = vadd.f32 %v2367_v11, %v17197_v52  ;;  %v11217_v17 = vpop.f32.mrb[66].mxu0 }
 0x4b1   : > { %v2209_v57 = vsel %vm2177_vm14, %v2133_v42, %v2193_v8  ;;  %vm2178_vm5 = vcmp.ge.f32.partialorder %v2136_v2, 0.0  ;;  %v2194_v10 = vmul.f32 0.2, %v2136_v2  ;;  %vm2432_vm0 = vcmp.ge.f32.partialorder %v2376_v14, 0.0  ;;  %v2370_v18 = vpop.f32.mrb[67].mxu0 }
 0x4b2   : > { %v14092_v4 = vmax.f32 %v17272_v3, %v2209_v57  ;;  %v2207_v43 = vsel %vm2175_vm15, %v2125_v28, %v2191_v9  ;;  %vm2176_vm4 = vcmp.ge.f32.partialorder %v2128_v36, 0.0  ;;  %v2192_v33 = vmul.f32 0.2, %v2128_v36 }
 0x4b3   : > { %v17275_v49 = vmax.f32 %v13780_v23, %v17274_v37  ;;  %v2210_v11 = vsel %vm2178_vm5, %v2136_v2, %v2194_v10  ;;  %v2448_v6 = vmul.f32 0.2, %v2376_v14  ;;  %vm2430_vm6 = vcmp.ge.f32.partialorder %v2368_v24, 0.0  ;;  %v17278_v23 = vld [vmem:[#allocation26_spill] sm:$0xff] }
 0x4b4   : > { %17273 = vst [vmem:[#allocation78_spill] sm:$0xff] %v14092_v4  ;;  %v17276_v42 = vmax.f32 %v13785_v38, %v13852_v53  ;;  %v2208_v52 = vsel %vm2176_vm4, %v2128_v36, %v2192_v33  ;;  %v11190_v50 = vpop.f32.mrb[56].mxu1  ;;  %v2446_v57 = vmul.f32 0.2, %v2368_v24  ;;  %v2379_v28 = vadd.f32 %v11217_v17, %v17198_v51  ;;  %v17280_v36 = vld [vmem:[#allocation24_spill] sm:$0xff]  ;;  %v17284_v53 = vld [vmem:[#allocation66_spill] sm:$0xff] }
 0x4b5   : > { %v14097_v19 = vmax.f32 %v17275_v49, %v2207_v43  ;;  %v17277_v9 = vmax.f32 %v13791_v26, %v13881_v31  ;;  %v2149_v49 = vadd.f32 %v11190_v50, %v17278_v23  ;;  %v14112_v2 = vsel %vm2432_vm0, %v2376_v14, %v2448_v6  ;;  %v2140_v10 = vpop.f32.mrb[57].mxu1  ;;  %v17282_v6 = vld [vmem:[#allocation25_spill] sm:$0xff]  ;;  %v17306_v4 = vld [vmem:[#allocation27_spill] sm:$0xff] }
 0x4b6   : > { %v14102_v8 = vmax.f32 %v17276_v42, %v2210_v11  ;;  %17279 = vst [vmem:[#allocation71_spill] sm:$0xff] %v14112_v2  ;;  %v2371_v38 = vadd.f32 %v2370_v18, %v17199_v63  ;;  %v2141_v3 = vadd.f32 %v2140_v10, %v17280_v36  ;;  %v14118_v43 = vsel %vm2430_vm6, %v2368_v24, %v2446_v57  ;;  %v11191_v17 = vpop.f32.mrb[58].mxu1  ;;  %v11220_v26 = vpop.f32.mrb[68].mxu0  ;;  %v17283_v42 = vld [vmem:[#allocation23_spill] sm:$0xff] }
 0x4b7   : > { %v14108_v21 = vmax.f32 %v17277_v9, %v2208_v52  ;;  %17281 = vst [vmem:[#allocation79_spill] sm:$0xff] %v14118_v43  ;;  %vm2433_vm9 = vcmp.ge.f32.partialorder %v2379_v28, 0.0  ;;  %vm2181_vm7 = vcmp.ge.f32.partialorder %v2149_v49, 0.0  ;;  %v2197_v52 = vmul.f32 0.2, %v2149_v49  ;;  %v2143_v33 = vpop.f32.mrb[59].mxu1 }
 0x4b8   : > { %v2152_v14 = vadd.f32 %v11191_v17, %v17282_v6  ;;  %v2383_v37 = vpop.f32.mrb[69].mxu0  ;;  %vm2179_vm8 = vcmp.ge.f32.partialorder %v2141_v3, 0.0  ;;  %v2195_v18 = vmul.f32 0.2, %v2141_v3  ;;  %v2449_v11 = vmul.f32 0.2, %v2379_v28 }
 0x4b9   : > { %v2144_v50 = vadd.f32 %v2143_v33, %v17283_v42  ;;  %v11221_v9 = vpop.f32.mrb[70].mxu0  ;;  %v2213_v24 = vsel %vm2181_vm7, %v2149_v49, %v2197_v52  ;;  %vm2431_vm10 = vcmp.ge.f32.partialorder %v2371_v38, 0.0  ;;  %v17285_v2 = vld [vmem:[#allocation75_spill] sm:$0xff]  ;;  %v17288_v43 = vld [vmem:[#allocation68_spill] sm:$0xff] }
 0x4ba   : > { %vm2182_vm11 = vcmp.ge.f32.partialorder %v2152_v14, 0.0  ;;  %v2198_v57 = vmul.f32 0.2, %v2152_v14  ;;  %v2386_v10 = vpop.f32.mrb[71].mxu0  ;;  %v17286_v34 = vmax.f32 %v17284_v53, %v17285_v2  ;;  %v2211_v31 = vsel %vm2179_vm8, %v2141_v3, %v2195_v18 }
 0x4bb   : > { %v14130_v17 = vsel %vm2433_vm9, %v2379_v28, %v2449_v11  ;;  %vm2180_vm1 = vcmp.ge.f32.partialorder %v2144_v50, 0.0  ;;  %v17290_v51 = vmax.f32 %v17288_v43, %v17289_v15  ;;  %v2196_v56 = vmul.f32 0.2, %v2144_v50  ;;  %v17293_v15 = vld [vmem:[#allocation30_spill] sm:$0xff] }
 0x4bc   : > { %v14127_v63 = vmax.f32 %v17286_v34, %v2213_v24  ;;  %v2214_v49 = vsel %vm2182_vm11, %v2152_v14, %v2198_v57  ;;  %v17292_v2 = vmax.f32 %v13824_v55, %v13908_v20  ;;  %v2447_v53 = vmul.f32 0.2, %v2371_v38  ;;  %v11194_v3 = vpop.f32.mrb[60].mxu1  ;;  %v17294_v24 = vld [vmem:[#allocation76_spill] sm:$0xff] }
 0x4bd   : > { %v14135_v33 = vmax.f32 %v17290_v51, %v2211_v31  ;;  %v2392_v28 = vadd.f32 %v11220_v26, %v17267_v61  ;;  %v2384_v18 = vadd.f32 %v2383_v37, %v17268_v0  ;;  %v2212_v11 = vsel %vm2180_vm1, %v2144_v50, %v2196_v56  ;;  %v2156_v43 = vpop.f32.mrb[61].mxu1  ;;  %v17302_v0 = vld [vmem:[#allocation69_spill] sm:$0xff] }
 0x4be   : > { %17287 = vst [vmem:[#allocation74_spill] sm:$0xff] %v14127_v63  ;;  %v14142_v34 = vmax.f32 %v17292_v2, %v2214_v49  ;;  %v2165_v51 = vadd.f32 %v11194_v3, %v17293_v15  ;;  %v2395_v31 = vadd.f32 %v11221_v9, %v17269_v7  ;;  %v2387_v14 = vadd.f32 %v2386_v10, %v13097_v59  ;;  %v11195_v49 = vpop.f32.mrb[62].mxu1  ;;  %v11224_v37 = vpop.f32.mrb[72].mxu0  ;;  %v17298_v9 = vld [vmem:[#allocation28_spill] sm:$0xff]  ;;  %v17301_v7 = vld [vmem:[#allocation73_spill] sm:$0xff] }
 0x4bf   : > { %17291 = vst [vmem:[#allocation80_spill] sm:$0xff] %v14135_v33  ;;  %v17295_v57 = vmax.f32 %v13832_v35, %v17294_v24  ;;  %v14155_v20 = vsel %vm2431_vm10, %v2371_v38, %v2447_v53  ;;  %vm2436_vm12 = vcmp.ge.f32.partialorder %v2392_v28, 0.0  ;;  %v2452_v26 = vmul.f32 0.2, %v2392_v28  ;;  %v2159_v10 = vpop.f32.mrb[63].mxu1  ;;  %v2399_v3 = vpop.f32.mrb[73].mxu0 }
 0x4c0   : > { %17297 = vst [vmem:[#allocation14_spill] sm:$0xff] %v14155_v20  ;;  %vm2185_vm2 = vcmp.ge.f32.partialorder %v2165_v51, 0.0  ;;  %v2201_v50 = vmul.f32 0.2, %v2165_v51  ;;  %v2157_v2 = vadd.f32 %v2156_v43, %v17298_v9  ;;  %vm2434_vm13 = vcmp.ge.f32.partialorder %v2384_v18, 0.0  ;;  %v11225_v53 = vpop.f32.mrb[74].mxu0 }
 0x4c1   : > { %v14152_v55 = vmax.f32 %v17295_v57, %v2212_v11  ;;  %v14160_v52 = vsel %vm2436_vm12, %v2392_v28, %v2452_v26  ;;  %v2450_v35 = vmul.f32 0.2, %v2384_v18  ;;  %v17300_v11 = vld [vmem:[#allocation29_spill] sm:$0xff]  ;;  %v2402_v56 = vpop.f32.mrb[75].mxu0  ;;  %v17303_v61 = vmax.f32 %v17301_v7, %v17302_v0 }
 0x4c2   : > { %17299 = vst [vmem:[#allocation61_spill] sm:$0xff] %v14160_v52  ;;  %v2168_v38 = vadd.f32 %v11195_v49, %v17300_v11  ;;  %v2217_v24 = vsel %vm2185_vm2, %v2165_v51, %v2201_v50  ;;  %vm2183_vm14 = vcmp.ge.f32.partialorder %v2157_v2, 0.0  ;;  %v2199_v59 = vmul.f32 0.2, %v2157_v2 }
 0x4c3   : > { %17296 = vst [vmem:[#allocation13_spill] sm:$0xff] %v14152_v55  ;;  %v14168_v43 = vmax.f32 %v17303_v61, %v2217_v24  ;;  %v14170_v20 = vsel %vm2434_vm13, %v2384_v18, %v2450_v35  ;;  %vm2437_vm5 = vcmp.ge.f32.partialorder %v2395_v31, 0.0  ;;  %v2453_v51 = vmul.f32 0.2, %v2395_v31 }
 0x4c4   : > { %vm2186_vm15 = vcmp.ge.f32.partialorder %v2168_v38, 0.0  ;;  %v2202_v28 = vmul.f32 0.2, %v2168_v38  ;;  %v2215_v26 = vsel %vm2183_vm14, %v2157_v2, %v2199_v59  ;;  %v17305_v50 = vmax.f32 %v13858_v5, %v13925_v27  ;;  %v11234_v61 = vpop.f32.mrb[64].mxu1 }
 0x4c5   : > { %17304 = vst [vmem:[#allocation62_spill] sm:$0xff] %v14168_v43  ;;  %v2160_v0 = vadd.f32 %v2159_v10, %v17306_v4  ;;  %vm2435_vm0 = vcmp.ge.f32.partialorder %v2387_v14, 0.0  ;;  %v17307_v7 = vmax.f32 %v13866_v1, %v13931_v54  ;;  %v14185_v59 = vsel %vm2437_vm5, %v2395_v31, %v2453_v51  ;;  %v2533_v24 = vpop.f32.mrb[65].mxu1 }
 0x4c6   : > { %v14177_v57 = vmax.f32 %v17305_v50, %v2215_v26  ;;  %v2218_v52 = vsel %vm2186_vm15, %v2168_v38, %v2202_v28  ;;  %v2451_v2 = vmul.f32 0.2, %v2387_v14  ;;  %v2408_v35 = vadd.f32 %v11224_v37, %v17278_v23  ;;  %v11235_v38 = vpop.f32.mrb[66].mxu1  ;;  %v11228_v28 = vpop.f32.mrb[76].mxu0 }
 0x4c7   : > { %v14183_v18 = vmax.f32 %v17307_v7, %v2218_v52  ;;  %vm2184_vm4 = vcmp.ge.f32.partialorder %v2160_v0, 0.0  ;;  %v2200_v27 = vmul.f32 0.2, %v2160_v0  ;;  %v14191_v10 = vadd.f32 %v11234_v61, %v13019_v29  ;;  %v2536_v52 = vpop.f32.mrb[67].mxu1  ;;  %v2415_v31 = vpop.f32.mrb[77].mxu0 }
 0x4c8   : > { %v14193_v26 = vsel %vm2435_vm0, %v2387_v14, %v2451_v2  ;;  %vm2440_vm6 = vcmp.ge.f32.partialorder %v2408_v35, 0.0  ;;  %v2456_v1 = vmul.f32 0.2, %v2408_v35  ;;  %v2400_v54 = vadd.f32 %v2399_v3, %v17280_v36  ;;  %v11229_v7 = vpop.f32.mrb[78].mxu0 }
 0x4c9   : > { %17308 = vst [vmem:[#allocation63_spill] sm:$0xff] %v14183_v18  ;;  %v2216_v37 = vsel %vm2184_vm4, %v2160_v0, %v2200_v27  ;;  %v14199_v50 = vmul.f32 0.2, %v14191_v10  ;;  %v17309_v61 = vmax.f32 %v13879_v48, %v13946_v13  ;;  %v2418_v3 = vpop.f32.mrb[79].mxu0  ;;  %v2534_v27 = vadd.f32 %v2533_v24, %v13021_v30 }
 0x4ca   : > { %v14206_v14 = vsel %vm2440_vm6, %v2408_v35, %v2456_v1  ;;  %vm2438_vm9 = vcmp.ge.f32.partialorder %v2400_v54, 0.0  ;;  %v2454_v2 = vmul.f32 0.2, %v2400_v54  ;;  %v2411_v51 = vadd.f32 %v11225_v53, %v17282_v6 }
 0x4cb   : > { %v14204_v5 = vmax.f32 %v17309_v61, %v2216_v37  ;;  %17310 = vst [vmem:[#allocation65_spill] sm:$0xff] %v14206_v14  ;;  %v14213_v49 = vadd.f32 %v11235_v38, %v17254_v45  ;;  %v2403_v48 = vadd.f32 %v2402_v56, %v17283_v42  ;;  %v2537_v13 = vadd.f32 %v2536_v52, %v17255_v47 }
 0x4cc   : > { %v14215_v36 = vsel %vm2438_vm9, %v2400_v54, %v2454_v2  ;;  %v2424_v35 = vadd.f32 %v11228_v28, %v17293_v15  ;;  %vm2566_vm7 = vcmp.ge.f32.partialorder %v14191_v10, 0.0  ;;  %vm2564_vm8 = vcmp.ge.f32.partialorder %v2534_v27, 0.0  ;;  %v11238_v53 = vpop.f32.mrb[68].mxu1 }
 0x4cd   : > { %17311 = vst [vmem:[#allocation72_spill] sm:$0xff] %v14215_v36  ;;  %v2572_v24 = vmul.f32 0.2, %v2534_v27  ;;  %vm2441_vm11 = vcmp.ge.f32.partialorder %v2411_v51, 0.0  ;;  %v2457_v37 = vmul.f32 0.2, %v2411_v51  ;;  %v14228_v61 = vadd.f32 %v11238_v53, %v13063_v46 }
 0x4ce   : > { %vm2567_vm10 = vcmp.ge.f32.partialorder %v14213_v49, 0.0  ;;  %v2575_v38 = vmul.f32 0.2, %v14213_v49  ;;  %vm2439_vm1 = vcmp.ge.f32.partialorder %v2403_v48, 0.0  ;;  %v2455_v56 = vmul.f32 0.2, %v2403_v48 }
 0x4cf   : > { %vm2565_vm12 = vcmp.ge.f32.partialorder %v2537_v13, 0.0  ;;  %v2573_v54 = vmul.f32 0.2, %v2537_v13  ;;  %vm2444_vm2 = vcmp.ge.f32.partialorder %v2424_v35, 0.0  ;;  %v14225_v28 = vsel %vm2441_vm11, %v2411_v51, %v2457_v37  ;;  %v2549_v1 = vpop.f32.mrb[69].mxu1  ;;  %v11268_v0 = vpop.f32.mrb[80].mxu0 }
 0x4d0   : > { %v2460_v52 = vmul.f32 0.2, %v2424_v35  ;;  %v2416_v2 = vadd.f32 %v2415_v31, %v17298_v9  ;;  %v14233_v36 = vsel %vm2439_vm1, %v2403_v48, %v2455_v56  ;;  %v2550_v33 = vadd.f32 %v2549_v1, %v13047_v40  ;;  %v11239_v63 = vpop.f32.mrb[70].mxu1  ;;  %v2792_v51 = vpop.f32.mrb[81].mxu0 }
 0x4d1   : > { %17312 = vst [vmem:[#allocation64_spill] sm:$0xff] %v14233_v36  ;;  %v2427_v14 = vadd.f32 %v11229_v7, %v17300_v11  ;;  %vm2570_vm13 = vcmp.ge.f32.partialorder %v14228_v61, 0.0  ;;  %v2578_v31 = vmul.f32 0.2, %v14228_v61  ;;  %v2552_v9 = vpop.f32.mrb[71].mxu1  ;;  %v11269_v42 = vpop.f32.mrb[82].mxu0  ;;  %v2561_v37 = vadd.f32 %v11239_v63, %v13058_v44 }
 0x4d2   : > { %v14239_v53 = vsel %vm2444_vm2, %v2424_v35, %v2460_v52  ;;  %vm2442_vm14 = vcmp.ge.f32.partialorder %v2416_v2, 0.0  ;;  %v2458_v1 = vmul.f32 0.2, %v2416_v2  ;;  %vm2568_vm15 = vcmp.ge.f32.partialorder %v2550_v33, 0.0  ;;  %v2795_v7 = vpop.f32.mrb[83].mxu0 }
 0x4d3   : > { %17313 = vst [vmem:[#allocation26_spill] sm:$0xff] %v14239_v53  ;;  %v2576_v56 = vmul.f32 0.2, %v2550_v33  ;;  %vm2445_vm5 = vcmp.ge.f32.partialorder %v2427_v14, 0.0  ;;  %v2461_v15 = vmul.f32 0.2, %v2427_v14  ;;  %v2419_v52 = vadd.f32 %v2418_v3, %v17306_v4 }
 0x4d4   : > { %v14246_v35 = vsel %vm2442_vm14, %v2416_v2, %v2458_v1  ;;  %v2553_v11 = vadd.f32 %v2552_v9, %v13045_v39  ;;  %v2580_v36 = vsel %vm2564_vm8, %v2534_v27, %v2572_v24  ;;  %vm2571_vm0 = vcmp.ge.f32.partialorder %v2561_v37, 0.0 }
 0x4d5   : > { %v14253_v53 = vsel %vm2445_vm5, %v2427_v14, %v2461_v15  ;;  %v2579_v43 = vmul.f32 0.2, %v2561_v37  ;;  %vm2443_vm4 = vcmp.ge.f32.partialorder %v2419_v52, 0.0  ;;  %v2459_v63 = vmul.f32 0.2, %v2419_v52 }
 0x4d6   : > { %17314 = vst [vmem:[#allocation25_spill] sm:$0xff] %v14253_v53  ;;  %vm2569_vm6 = vcmp.ge.f32.partialorder %v2553_v11, 0.0  ;;  %v11272_v2 = vpop.f32.mrb[84].mxu0  ;;  %v2577_v1 = vmul.f32 0.2, %v2553_v11  ;;  %v2581_v3 = vsel %vm2565_vm12, %v2537_v13, %v2573_v54  ;;  %v2582_v9 = vsel %vm2566_vm7, %v14191_v10, %v14199_v50 }
 0x4d7   : > { %v2583_v15 = vsel %vm2567_vm10, %v14213_v49, %v2575_v38  ;;  %v2808_v14 = vpop.f32.mrb[85].mxu0  ;;  %v14265_v27 = vsel %vm2443_vm4, %v2419_v52, %v2459_v63  ;;  %v2588_v24 = vpack.c.bf16 %v2581_v3, %v2580_v36  ;;  %v2801_v48 = vadd.f32 %v11268_v0, %v13019_v29 }
 0x4d8   : > { %v2589_v55 = vpack.c.bf16 %v2583_v15, %v2582_v9  ;;  %v11273_v53 = vpop.f32.mrb[86].mxu0  ;;  %v2491_v13 = vmax.f32 %v14204_v5, %v14265_v27  ;;  %v2793_v54 = vadd.f32 %v2792_v51, %v13021_v30  ;;  %v2804_v18 = vadd.f32 %v11269_v42, %v17254_v45  ;;  %v17316_v15 = vld [vmem:[#allocation16_spill] sm:$0xff] }
 0x4d9   : > { %v2584_v10 = vsel %vm2568_vm15, %v2550_v33, %v2576_v56  ;;  %v2811_v50 = vpop.f32.mrb[87].mxu0  ;;  %11240 = vmatprep.subr.bf16.mxu1 %v2588_v24  ;;  %vm2825_vm9 = vcmp.ge.f32.partialorder %v2801_v48, 0.0  ;;  %v2833_v49 = vmul.f32 0.2, %v2801_v48  ;;  %v2585_v38 = vsel %vm2569_vm6, %v2553_v11, %v2577_v1 }
 0x4da   : > { %v2796_v36 = vadd.f32 %v2795_v7, %v17255_v47  ;;  %11241 = vmatpush3.bf16.msra.mxu1 %v2588_v24  ;;  %vm2823_vm7 = vcmp.ge.f32.partialorder %v2793_v54, 0.0  ;;  %v2831_v29 = vmul.f32 0.2, %v2793_v54  ;;  %vm2826_vm8 = vcmp.ge.f32.partialorder %v2804_v18, 0.0 }
 0x4db   : > { %v2834_v0 = vmul.f32 0.2, %v2804_v18  ;;  %11242 = vmatprep.subr.bf16.mxu1 %v2589_v55  ;;  %v2590_v52 = vpack.c.bf16 %v2585_v38, %v2584_v10  ;;  %v2586_v45 = vsel %vm2570_vm13, %v14228_v61, %v2578_v31  ;;  %v2587_v42 = vsel %vm2571_vm0, %v2561_v37, %v2579_v43 }
 0x4dc   : > { %vm2824_vm11 = vcmp.ge.f32.partialorder %v2796_v36, 0.0  ;;  %v2832_v30 = vmul.f32 0.2, %v2796_v36  ;;  %v2817_v33 = vadd.f32 %v11272_v2, %v13063_v46  ;;  %v2809_v11 = vadd.f32 %v2808_v14, %v13047_v40 }
 0x4dd   : > { %v2820_v47 = vadd.f32 %v11273_v53, %v13058_v44  ;;  %v2591_v51 = vpack.c.bf16 %v2587_v42, %v2586_v45  ;;  %v2812_v7 = vadd.f32 %v2811_v50, %v13045_v39  ;;  %v2839_v56 = vsel %vm2823_vm7, %v2793_v54, %v2831_v29  ;;  %v17319_v29 = vld [vmem:[#allocation77_spill] sm:$0xff] }
 0x4de   : > { %v2840_v63 = vsel %vm2824_vm11, %v2796_v36, %v2832_v30  ;;  %11243 = vmatpush3.bf16.msra.mxu1 %v2589_v55  ;;  %vm2829_vm10 = vcmp.ge.f32.partialorder %v2817_v33, 0.0  ;;  %v2837_v1 = vmul.f32 0.2, %v2817_v33  ;;  %vm2827_vm1 = vcmp.ge.f32.partialorder %v2809_v11, 0.0 }
 0x4df   : > { %v2835_v3 = vmul.f32 0.2, %v2809_v11  ;;  %11244 = vmatprep.subr.bf16.mxu1 %v2590_v52  ;;  %vm2830_vm12 = vcmp.ge.f32.partialorder %v2820_v47, 0.0  ;;  %v2838_v61 = vmul.f32 0.2, %v2820_v47  ;;  %vm2828_vm2 = vcmp.ge.f32.partialorder %v2812_v7, 0.0 }
 0x4e0   : > { %v2836_v43 = vmul.f32 0.2, %v2812_v7  ;;  %v2847_v46 = vpack.c.bf16 %v2840_v63, %v2839_v56  ;;  %v2841_v40 = vsel %vm2825_vm9, %v2801_v48, %v2833_v49  ;;  %v2842_v44 = vsel %vm2826_vm8, %v2804_v18, %v2834_v0  ;;  %v17315_v18 = vld [vmem:[#allocation18_spill] sm:$0xff]  ;;  %v17318_v49 = vld [vmem:[#allocation15_spill] sm:$0xff] }
 0x4e1   : > { %v2843_v37 = vsel %vm2827_vm1, %v2809_v11, %v2835_v3  ;;  %v2848_v53 = vpack.c.bf16 %v2842_v44, %v2841_v40  ;;  %v2845_v31 = vsel %vm2829_vm10, %v2817_v33, %v2837_v1  ;;  %v2846_v2 = vsel %vm2830_vm12, %v2820_v47, %v2838_v61  ;;  %v17320_v0 = vld [vmem:[#allocation71_spill] sm:$0xff]  ;;  %v17322_v33 = vld [vmem:[#allocation70_spill] sm:$0xff] }
 0x4e2   : > { %v2844_v39 = vsel %vm2828_vm2, %v2812_v7, %v2836_v43  ;;  %11245 = vmatpush3.bf16.msra.mxu1 %v2590_v52  ;;  %11274 = vmatprep.subr.bf16.mxu0 %v2847_v46  ;;  %v2850_v9 = vpack.c.bf16 %v2846_v2, %v2845_v31  ;;  %v17321_v52 = vmax.f32 %v17319_v29, %v17320_v0  ;;  %v17323_v11 = vld [vmem:[#allocation79_spill] sm:$0xff]  ;;  %v17326_v61 = vld [vmem:[#allocation14_spill] sm:$0xff] }
 0x4e3   : > { %v2849_v55 = vpack.c.bf16 %v2844_v39, %v2843_v37  ;;  %11246 = vmatprep.subr.bf16.mxu1 %v2591_v51  ;;  %11275 = vmatpush3.bf16.msra.mxu0 %v2847_v46  ;;  %v17324_v47 = vmax.f32 %v17322_v33, %v17323_v11  ;;  %v17325_v56 = vmax.f32 %v14076_v22, %v14130_v17  ;;  %v17328_v40 = vld [vmem:[#allocation22_spill] sm:$0xff]  ;;  %v17329_v39 = vld [vmem:[#allocation20_spill] sm:$0xff]  ;;  %v17330_v17 = vld [vmem:[#allocation21_spill] sm:$0xff] }
 0x4e4   : > { %11276 = vmatprep.subr.bf16.mxu0 %v2848_v53  ;;  %v17327_v43 = vmax.f32 %v14081_v25, %v17326_v61 }
 0x4e6   : > { %11247 = vmatpush3.bf16.msra.mxu1 %v2591_v51 }
 0x4e7   : > { %11277 = vmatpush3.bf16.msra.mxu0 %v2848_v53 }
 0x4e8   : > { %11278 = vmatprep.subr.bf16.mxu0 %v2849_v55 }
 0x4e9   : > { %11249 = vmatmul.mubr.msk.bf16.vlgmr.msra.gmra.mrb[72].mxu1 %vm1029_vm3, %v13972_v12 }
 0x4ea   : > { %11252 = vmatprep.mubr.msk.bf16.mxu1 %vm1029_vm3, %v13979_v62 }
 0x4eb   : > { %11279 = vmatpush3.bf16.msra.mxu0 %v2849_v55 }
 0x4ec   : > { %11280 = vmatprep.subr.bf16.mxu0 %v2850_v9 }
 0x4ef   : > { %11281 = vmatpush3.bf16.msra.mxu0 %v2850_v9 }
 0x4f1   : > { %11253 = vmatmul.mubr.msk.bf16.gmra.mrb[76].mxu1 %vm1029_vm3, %v13987_v58 }
 0x4f2   : > { %11256 = vmatprep.mubr.msk.bf16.mxu1 %vm1029_vm3, %v13996_v32  ;;  %11283 = vmatmul.mubr.msk.bf16.vlgmr.msra.gmra.mrb[88].mxu0 %vm1029_vm3, %v13972_v12  ;;  %v11980_v12 = vld [vmem:[#allocation4] sm:$0xff]  }
 0x4f3   : > { %11286 = vmatprep.mubr.msk.bf16.mxu0 %vm1029_vm3, %v13979_v62  ;;  %v11981_v62 = vld [vmem:[#allocation4 + $0xe0] sm:$0xff]  }
 0x4f9   : > { %11257 = vmatmul.mubr.msk.bf16.gmra.mrb[80].mxu1 %vm1029_vm3, %v14007_v41 }
 0x4fa   : > { %11260 = vmatprep.mubr.msk.bf16.mxu1 %vm1029_vm3, %v14014_v16  ;;  %11287 = vmatmul.mubr.msk.bf16.gmra.mrb[92].mxu0 %vm1029_vm3, %v13987_v58 }
 0x4fb   : > { %11290 = vmatprep.mubr.msk.bf16.mxu0 %vm1029_vm3, %v13996_v32 }
 0x501   : > { %11261 = vmatmul.mubr.msk.bf16.gmra.mrb[84].mxu1 %vm1029_vm3, %v14025_v60 }
 0x502   : > { %11291 = vmatmul.mubr.msk.bf16.gmra.mrb[96].mxu0 %vm1029_vm3, %v14007_v41  ;;  %11370 = vmatprep.mubr.bf16.mxu1 %v11981_v62  ;;  %v17317_v41 = vld [vmem:[#allocation17_spill] sm:$0xff] }
 0x503   : > { %11294 = vmatprep.mubr.msk.bf16.mxu0 %vm1029_vm3, %v14014_v16 }
 0x50a   : > { %11295 = vmatmul.mubr.msk.bf16.gmra.mrb[100].mxu0 %vm1029_vm3, %v14025_v60 }
 0x50b   : > { %11314 = vmatprep.mubr.bf16.mxu0 %v11980_v12 }
 0x5bc   : > { %v11250_v58 = vpop.f32.mrb[72].mxu1 }
 0x5bd   : > { %v2635_v48 = vadd.f32 %v11250_v58, %v17315_v18  ;;  %v2626_v32 = vpop.f32.mrb[73].mxu1 }
 0x5be   : > { %v2627_v14 = vadd.f32 %v2626_v32, %v17316_v15  ;;  %v11251_v24 = vpop.f32.mrb[74].mxu1  ;;  %v17331_v32 = vld [vmem:[#allocation19_spill] sm:$0xff] }
 0x5bf   : > { %vm2691_vm13 = vcmp.ge.f32.partialorder %v2635_v48, 0.0  ;;  %v2707_v54 = vmul.f32 0.2, %v2635_v48  ;;  %v2638_v10 = vadd.f32 %v11251_v24, %v17317_v41  ;;  %v2629_v50 = vpop.f32.mrb[75].mxu1 }
 0x5c0   : > { %vm2689_vm14 = vcmp.ge.f32.partialorder %v2627_v14, 0.0  ;;  %v2705_v16 = vmul.f32 0.2, %v2627_v14  ;;  %v2630_v60 = vadd.f32 %v2629_v50, %v17318_v49 }
 0x5c1   : > { %v2723_v38 = vsel %vm2691_vm13, %v2635_v48, %v2707_v54  ;;  %vm2692_vm3 = vcmp.ge.f32.partialorder %v2638_v10, 0.0  ;;  %v2708_v36 = vmul.f32 0.2, %v2638_v10 }
 0x5c2   : > { %v14320_v30 = vmax.f32 %v17321_v52, %v2723_v38  ;;  %v2721_v45 = vsel %vm2689_vm14, %v2627_v14, %v2705_v16  ;;  %vm2690_vm15 = vcmp.ge.f32.partialorder %v2630_v60, 0.0  ;;  %v2706_v42 = vmul.f32 0.2, %v2630_v60  ;;  %v17333_v16 = vld [vmem:[#allocation61_spill] sm:$0xff] }
 0x5c3   : > { %v14325_v51 = vmax.f32 %v17324_v47, %v2721_v45  ;;  %v2724_v7 = vsel %vm2692_vm3, %v2638_v10, %v2708_v36 }
 0x5c4   : > { %v14330_v63 = vmax.f32 %v17325_v56, %v2724_v7  ;;  %v2722_v1 = vsel %vm2690_vm15, %v2630_v60, %v2706_v42  ;;  %v11254_v3 = vpop.f32.mrb[76].mxu1  ;;  %v17336_v42 = vmax.f32 %v14102_v8, %v14185_v59  ;;  %v17338_v8 = vld [vmem:[#allocation24_spill] sm:$0xff] }
 0x5c5   : > { %v14335_v46 = vmax.f32 %v17327_v43, %v2722_v1  ;;  %v2651_v44 = vadd.f32 %v11254_v3, %v17328_v40  ;;  %v2642_v37 = vpop.f32.mrb[77].mxu1  ;;  %v11284_v53 = vpop.f32.mrb[88].mxu0 }
 0x5c6   : > { %v2643_v31 = vadd.f32 %v2642_v37, %v17329_v39  ;;  %v11255_v2 = vpop.f32.mrb[78].mxu1  ;;  %v2894_v55 = vadd.f32 %v11284_v53, %v17315_v18  ;;  %v2885_v9 = vpop.f32.mrb[89].mxu0  ;;  %v17332_v18 = vld [vmem:[#allocation78_spill] sm:$0xff] }
 0x5c7   : > { %vm2695_vm5 = vcmp.ge.f32.partialorder %v2651_v44, 0.0  ;;  %v2711_v22 = vmul.f32 0.2, %v2651_v44  ;;  %v2654_v12 = vadd.f32 %v11255_v2, %v17330_v17  ;;  %v2645_v62 = vpop.f32.mrb[79].mxu1  ;;  %v2886_v58 = vadd.f32 %v2885_v9, %v17316_v15  ;;  %v11285_v25 = vpop.f32.mrb[90].mxu0 }
 0x5c8   : > { %vm2693_vm0 = vcmp.ge.f32.partialorder %v2643_v31, 0.0  ;;  %v2709_v48 = vmul.f32 0.2, %v2643_v31  ;;  %v2646_v14 = vadd.f32 %v2645_v62, %v17331_v32  ;;  %vm2950_vm4 = vcmp.ge.f32.partialorder %v2894_v55, 0.0  ;;  %v2888_v24 = vpop.f32.mrb[91].mxu0 }
 0x5c9   : > { %v2727_v54 = vsel %vm2695_vm5, %v2651_v44, %v2711_v22  ;;  %vm2696_vm6 = vcmp.ge.f32.partialorder %v2654_v12, 0.0  ;;  %v2712_v10 = vmul.f32 0.2, %v2654_v12  ;;  %v2966_v50 = vmul.f32 0.2, %v2894_v55 }
 0x5ca   : > { %v17334_v60 = vmax.f32 %v17332_v18, %v17333_v16  ;;  %v2725_v36 = vsel %vm2693_vm0, %v2643_v31, %v2709_v48  ;;  %vm2694_vm9 = vcmp.ge.f32.partialorder %v2646_v14, 0.0  ;;  %v2710_v29 = vmul.f32 0.2, %v2646_v14  ;;  %v17340_v48 = vld [vmem:[#allocation74_spill] sm:$0xff]  ;;  %v17343_v18 = vld [vmem:[#allocation80_spill] sm:$0xff] }
 0x5cb   : > { %v17335_v15 = vmax.f32 %v14097_v19, %v14170_v20  ;;  %v2728_v52 = vsel %vm2696_vm6, %v2654_v12, %v2712_v10  ;;  %v14353_v45 = vsel %vm2950_vm4, %v2894_v55, %v2966_v50  ;;  %vm2948_vm7 = vcmp.ge.f32.partialorder %v2886_v58, 0.0  ;;  %v17344_v16 = vld [vmem:[#allocation72_spill] sm:$0xff] }
 0x5cc   : > { %v14346_v38 = vmax.f32 %v17334_v60, %v2727_v54  ;;  %v14358_v33 = vmax.f32 %v17336_v42, %v2728_v52  ;;  %v2726_v11 = vsel %vm2694_vm9, %v2646_v14, %v2710_v29  ;;  %v11258_v47 = vpop.f32.mrb[80].mxu1  ;;  %v2998_v7 = vmax.f32 %v14320_v30, %v14353_v45  ;;  %v17341_v14 = vld [vmem:[#allocation65_spill] sm:$0xff] }
 0x5cd   : > { %v14351_v0 = vmax.f32 %v17335_v15, %v2725_v36  ;;  %v2964_v56 = vmul.f32 0.2, %v2886_v58  ;;  %v17337_v19 = vmax.f32 %v14108_v21, %v14193_v26  ;;  %v2667_v1 = vadd.f32 %v11258_v47, %v17278_v23  ;;  %v2658_v3 = vpop.f32.mrb[81].mxu1  ;;  %v11288_v43 = vpop.f32.mrb[92].mxu0 }
 0x5ce   : > { %v2897_v61 = vadd.f32 %v11285_v25, %v17317_v41  ;;  %v2659_v59 = vadd.f32 %v2658_v3, %v17338_v8  ;;  %v11259_v37 = vpop.f32.mrb[82].mxu1  ;;  %v2889_v53 = vadd.f32 %v2888_v24, %v17318_v49  ;;  %v2910_v31 = vadd.f32 %v11288_v43, %v17328_v40  ;;  %v2901_v2 = vpop.f32.mrb[93].mxu0  ;;  %v17339_v49 = vld [vmem:[#allocation23_spill] sm:$0xff] }
 0x5cf   : > { %v14365_v20 = vmax.f32 %v17337_v19, %v2726_v11  ;;  %v14370_v44 = vsel %vm2948_vm7, %v2886_v58, %v2964_v56  ;;  %vm2699_vm8 = vcmp.ge.f32.partialorder %v2667_v1, 0.0  ;;  %v2715_v21 = vmul.f32 0.2, %v2667_v1  ;;  %v2661_v9 = vpop.f32.mrb[83].mxu1  ;;  %v11289_v41 = vpop.f32.mrb[94].mxu0  ;;  %v17347_v19 = vld [vmem:[#allocation30_spill] sm:$0xff] }
 0x5d0   : > { %v2996_v26 = vmax.f32 %v14325_v51, %v14370_v44  ;;  %v2670_v55 = vadd.f32 %v11259_v37, %v17282_v6  ;;  %vm2697_vm11 = vcmp.ge.f32.partialorder %v2659_v59, 0.0  ;;  %v2713_v22 = vmul.f32 0.2, %v2659_v59  ;;  %v2904_v40 = vpop.f32.mrb[95].mxu0 }
 0x5d1   : > { %vm2951_vm10 = vcmp.ge.f32.partialorder %v2897_v61, 0.0  ;;  %v2967_v12 = vmul.f32 0.2, %v2897_v61  ;;  %v2731_v62 = vsel %vm2699_vm8, %v2667_v1, %v2715_v21  ;;  %v2662_v25 = vadd.f32 %v2661_v9, %v17339_v49 }
 0x5d2   : > { %vm2700_vm1 = vcmp.ge.f32.partialorder %v2670_v55, 0.0  ;;  %v2716_v58 = vmul.f32 0.2, %v2670_v55  ;;  %v17342_v24 = vmax.f32 %v17340_v48, %v17341_v14  ;;  %v2729_v10 = vsel %vm2697_vm11, %v2659_v59, %v2713_v22 }
 0x5d3   : > { %v2983_v50 = vsel %vm2951_vm10, %v2897_v61, %v2967_v12  ;;  %vm2949_vm12 = vcmp.ge.f32.partialorder %v2889_v53, 0.0  ;;  %v17345_v60 = vmax.f32 %v17343_v18, %v17344_v16  ;;  %vm2698_vm2 = vcmp.ge.f32.partialorder %v2662_v25, 0.0  ;;  %v17349_v12 = vld [vmem:[#allocation13_spill] sm:$0xff]  ;;  %v17353_v18 = vld [vmem:[#allocation62_spill] sm:$0xff] }
 0x5d4   : > { %v14381_v54 = vmax.f32 %v17342_v24, %v2731_v62  ;;  %v2732_v29 = vsel %vm2700_vm1, %v2670_v55, %v2716_v58  ;;  %v2999_v15 = vmax.f32 %v14330_v63, %v2983_v50  ;;  %v17346_v52 = vmax.f32 %v14142_v34, %v14225_v28  ;;  %v11262_v56 = vpop.f32.mrb[84].mxu1  ;;  %v17348_v55 = vld [vmem:[#allocation28_spill] sm:$0xff]  ;;  %v17354_v16 = vld [vmem:[#allocation26_spill] sm:$0xff] }
 0x5d5   : > { %v14386_v36 = vmax.f32 %v17345_v60, %v2729_v10  ;;  %v2714_v11 = vmul.f32 0.2, %v2662_v25  ;;  %v2965_v47 = vmul.f32 0.2, %v2889_v53  ;;  %vm2954_vm13 = vcmp.ge.f32.partialorder %v2910_v31, 0.0  ;;  %v2674_v61 = vpop.f32.mrb[85].mxu1 }
 0x5d6   : > { %v14392_v42 = vmax.f32 %v17346_v52, %v2732_v29  ;;  %v2683_v1 = vadd.f32 %v11262_v56, %v17347_v19  ;;  %v2970_v3 = vmul.f32 0.2, %v2910_v31  ;;  %v2902_v43 = vadd.f32 %v2901_v2, %v17329_v39  ;;  %v11292_v37 = vpop.f32.mrb[96].mxu0  ;;  %v11263_v28 = vpop.f32.mrb[86].mxu1  ;;  %v17350_v62 = vld [vmem:[#allocation64_spill] sm:$0xff]  ;;  %v17352_v10 = vld [vmem:[#allocation29_spill] sm:$0xff] }
 0x5d7   : > { %v2913_v59 = vadd.f32 %v11289_v41, %v17330_v17  ;;  %v2730_v63 = vsel %vm2698_vm2, %v2662_v25, %v2714_v11  ;;  %v2981_v21 = vsel %vm2949_vm12, %v2889_v53, %v2965_v47  ;;  %v2675_v34 = vadd.f32 %v2674_v61, %v17348_v55  ;;  %v2917_v22 = vpop.f32.mrb[97].mxu0  ;;  %v2677_v17 = vpop.f32.mrb[87].mxu1 }
 0x5d8   : > { %v2905_v9 = vadd.f32 %v2904_v40, %v17331_v32  ;;  %v17351_v58 = vmax.f32 %v17349_v12, %v17350_v62  ;;  %v2997_v14 = vmax.f32 %v14335_v46, %v2981_v21  ;;  %vm2703_vm14 = vcmp.ge.f32.partialorder %v2683_v1, 0.0  ;;  %v11293_v2 = vpop.f32.mrb[98].mxu0 }
 0x5d9   : > { %v2719_v39 = vmul.f32 0.2, %v2683_v1  ;;  %v2986_v41 = vsel %vm2954_vm13, %v2910_v31, %v2970_v3  ;;  %vm2701_vm3 = vcmp.ge.f32.partialorder %v2675_v34, 0.0  ;;  %v2717_v53 = vmul.f32 0.2, %v2675_v34  ;;  %v2920_v25 = vpop.f32.mrb[99].mxu0 }
 0x5da   : > { %v14403_v48 = vmax.f32 %v17351_v58, %v2730_v63  ;;  %vm2952_vm15 = vcmp.ge.f32.partialorder %v2902_v43, 0.0  ;;  %v3002_v32 = vmax.f32 %v14346_v38, %v2986_v41  ;;  %v2968_v40 = vmul.f32 0.2, %v2902_v43 }
 0x5db   : > { %v2735_v24 = vsel %vm2703_vm14, %v2683_v1, %v2719_v39  ;;  %v2686_v50 = vadd.f32 %v11263_v28, %v17352_v10  ;;  %v17355_v60 = vmax.f32 %v17353_v18, %v17354_v16  ;;  %v2733_v29 = vsel %vm2701_vm3, %v2675_v34, %v2717_v53  ;;  %v17358_v28 = vld [vmem:[#allocation25_spill] sm:$0xff] }
 0x5dc   : > { %vm2955_vm5 = vcmp.ge.f32.partialorder %v2913_v59, 0.0  ;;  %v2971_v52 = vmul.f32 0.2, %v2913_v59  ;;  %v17356_v31 = vmax.f32 %v14177_v57, %v14246_v35  ;;  %v2984_v47 = vsel %vm2952_vm15, %v2902_v43, %v2968_v40  ;;  %v17357_v35 = vld [vmem:[#allocation63_spill] sm:$0xff] }
 0x5dd   : > { %v14412_v46 = vmax.f32 %v17355_v60, %v2735_v24  ;;  %vm2704_vm0 = vcmp.ge.f32.partialorder %v2686_v50, 0.0  ;;  %v2720_v56 = vmul.f32 0.2, %v2686_v50  ;;  %v3000_v38 = vmax.f32 %v14351_v0, %v2984_v47  ;;  %v11296_v57 = vpop.f32.mrb[100].mxu0  ;;  %v11985_v47 = vld [vmem:[#allocation4 + $0xf0] sm:$0xff]  }
 0x5de   : > { %v14417_v11 = vmax.f32 %v17356_v31, %v2733_v29  ;;  %v2987_v1 = vsel %vm2955_vm5, %v2913_v59, %v2971_v52  ;;  %v2678_v3 = vadd.f32 %v2677_v17, %v17306_v4  ;;  %vm2953_vm4 = vcmp.ge.f32.partialorder %v2905_v9, 0.0  ;;  %v2933_v62 = vpop.f32.mrb[101].mxu0  ;;  %v11983_v31 = vld [vmem:[#allocation4 + $0xe8] sm:$0xff]  }
 0x5df   : > { %v2736_v61 = vsel %vm2704_vm0, %v2686_v50, %v2720_v56  ;;  %v3003_v63 = vmax.f32 %v14358_v33, %v2987_v1  ;;  %v2969_v21 = vmul.f32 0.2, %v2905_v9  ;;  %v3140_v34 = vpack.c.bf16 %v2997_v14, %v2996_v26  ;;  %v11297_v44 = vpop.f32.mrb[102].mxu0  ;;  %v11986_v56 = vld [vmem:[#allocation4 + $0x18] sm:$0xff]   ;;  %v11988_v1 = vld [vmem:[#allocation4 + $0x20] sm:$0xff]  }
 0x5e0   : > { %v17359_v43 = vmax.f32 %v17357_v35, %v17358_v28  ;;  %vm2702_vm6 = vcmp.ge.f32.partialorder %v2678_v3, 0.0  ;;  %v2718_v0 = vmul.f32 0.2, %v2678_v3  ;;  %v3141_v59 = vpack.c.bf16 %v2999_v15, %v2998_v7  ;;  %v2936_v17 = vpop.f32.mrb[103].mxu0  ;;  %v11995_v35 = vld [vmem:[#allocation4 + $0x118] sm:$0xff]   ;;  %v11996_v28 = vld [vmem:[#allocation4 + $0x40] sm:$0xff]  }
 0x5e1   : > { %v2985_v58 = vsel %vm2953_vm4, %v2905_v9, %v2969_v21  ;;  %11298 = vmatprep.subr.bf16.mxu0 %v3140_v34  ;;  %11442 = vmatprep.subr.bf16.mxu1 %v3140_v34  ;;  %v2926_v33 = vadd.f32 %v11292_v37, %v17278_v23  ;;  %v2918_v51 = vadd.f32 %v2917_v22, %v17338_v8  ;;  %v11992_v21 = vld [vmem:[#allocation4 + $0x30] sm:$0xff]  }
 0x5e2   : > { %v14428_v12 = vmax.f32 %v17359_v43, %v2736_v61  ;;  %v2734_v26 = vsel %vm2702_vm6, %v2678_v3, %v2718_v0  ;;  %v3001_v14 = vmax.f32 %v14365_v20, %v2985_v58  ;;  %11299 = vmatpush3.bf16.msra.mxu0 %v3140_v34  ;;  %11450 = vmatpush3.bf16.msra.mxu1 %v3140_v34  ;;  %v11989_v3 = vld [vmem:[#allocation4 + $0x100] sm:$0xff]   ;;  %v11990_v61 = vld [vmem:[#allocation4 + $0x28] sm:$0xff]   ;;  %v11993_v34 = vld [vmem:[#allocation4 + $0x110] sm:$0xff]   ;;  %v14452_v58 = vpop.permute.xlu0 %3428 }
 0x5e3   : > { %v2929_v39 = vadd.f32 %v11293_v2, %v17282_v6  ;;  %v2750_v30 = vmax.f32 %v2491_v13, %v2734_v26  ;;  %11300 = vmatprep.subr.bf16.mxu0 %v3141_v59  ;;  %11443 = vmatprep.subr.bf16.mxu1 %v3141_v59  ;;  %vm2958_vm9 = vcmp.ge.f32.partialorder %v2926_v33, 0.0  ;;  %v2974_v45 = vmul.f32 0.2, %v2926_v33  ;;  %v11997_v43 = vld [vmem:[#allocation4 + $0x120] sm:$0xff]   ;;  %v11999_v0 = vld [vmem:[#allocation4 + $0x128] sm:$0xff]   ;;  %v12003_v26 = vld [vmem:[#allocation4 + $0x138] sm:$0xff]  }
 0x5e4   : > { %vm2956_vm7 = vcmp.ge.f32.partialorder %v2918_v51, 0.0  ;;  %v2972_v23 = vmul.f32 0.2, %v2918_v51  ;;  %v2921_v8 = vadd.f32 %v2920_v25, %v17339_v49  ;;  %v3142_v15 = vpack.c.bf16 %v3001_v14, %v3000_v38  ;;  %v11987_v38 = vld [vmem:[#allocation4 + $0xf8] sm:$0xff]   ;;  %v12004_v14 = vld [vmem:[#allocation4 + $0x60] sm:$0xff]  }
 0x5e5   : > { %vm2959_vm8 = vcmp.ge.f32.partialorder %v2929_v39, 0.0  ;;  %v2975_v7 = vmul.f32 0.2, %v2929_v39  ;;  %v2990_v20 = vsel %vm2958_vm9, %v2926_v33, %v2974_v45  ;;  %v3143_v37 = vpack.c.bf16 %v3003_v63, %v3002_v32  ;;  %v11991_v63 = vld [vmem:[#allocation4 + $0x108] sm:$0xff]   ;;  %v14454_v33 = vpop.permute.xlu1 %3433 }
 0x5e6   : > { %v2942_v6 = vadd.f32 %v11296_v57, %v17347_v19  ;;  %v3006_v9 = vmax.f32 %v14381_v54, %v2990_v20  ;;  %v2988_v22 = vsel %vm2956_vm7, %v2918_v51, %v2972_v23  ;;  %11301 = vmatpush3.bf16.msra.mxu0 %v3141_v59  ;;  %11451 = vmatpush3.bf16.msra.mxu1 %v3141_v59  ;;  %vm2957_vm11 = vcmp.ge.f32.partialorder %v2921_v8, 0.0  ;;  %v11994_v57 = vld [vmem:[#allocation4 + $0x38] sm:$0xff]   ;;  %v12000_v59 = vld [vmem:[#allocation4 + $0x50] sm:$0xff]   ;;  %v14456_v51 = vpop.permute.xlu0 %3438  ;;  %v12006_v45 = vld [vmem:[#allocation4 + $0x68] sm:$0xff]  }
 0x5e7   : > { %v2991_v5 = vsel %vm2959_vm8, %v2929_v39, %v2975_v7  ;;  %v3004_v27 = vmax.f32 %v14386_v36, %v2988_v22  ;;  %v2973_v2 = vmul.f32 0.2, %v2921_v8  ;;  %11302 = vmatprep.subr.bf16.mxu0 %v3142_v15  ;;  %11444 = vmatprep.subr.bf16.mxu1 %v3142_v15  ;;  %v2934_v41 = vadd.f32 %v2933_v62, %v17348_v55  ;;  %v12001_v62 = vld [vmem:[#allocation4 + $0x130] sm:$0xff]   ;;  %v12005_v39 = vld [vmem:[#allocation4 + $0x140] sm:$0xff]   ;;  %v12007_v23 = vld [vmem:[#allocation4 + $0x148] sm:$0xff]  }
 0x5e8   : > { %v3007_v13 = vmax.f32 %v14392_v42, %v2991_v5  ;;  %vm2962_vm10 = vcmp.ge.f32.partialorder %v2942_v6, 0.0  ;;  %v2978_v49 = vmul.f32 0.2, %v2942_v6  ;;  %v2945_v19 = vadd.f32 %v11297_v44, %v17352_v10  ;;  %17360 = vst [vmem:[#allocation66_spill] sm:$0xff] %v14454_v33  ;;  %17361 = vst [vmem:[#allocation75_spill] sm:$0xff] %v14456_v51  ;;  %v12002_v44 = vld [vmem:[#allocation4 + $0x58] sm:$0xff]  }
 0x5e9   : > { %v2937_v54 = vadd.f32 %v2936_v17, %v17306_v4  ;;  %v2989_v53 = vsel %vm2957_vm11, %v2921_v8, %v2973_v2  ;;  %vm2960_vm1 = vcmp.ge.f32.partialorder %v2934_v41, 0.0  ;;  %v2976_v42 = vmul.f32 0.2, %v2934_v41  ;;  %v14458_v17 = vpop.permute.xlu1 %3443  ;;  %v12008_v7 = vld [vmem:[#allocation4 + $0x70] sm:$0xff]   ;;  %v12013_v22 = vld [vmem:[#allocation4 + $0x160] sm:$0xff]  }
 0x5ea   : > { %v3145_v25 = vpack.c.bf16 %v3007_v13, %v3006_v9  ;;  %v3005_v24 = vmax.f32 %v14403_v48, %v2989_v53  ;;  %11303 = vmatpush3.bf16.msra.mxu0 %v3142_v15  ;;  %11452 = vmatpush3.bf16.msra.mxu1 %v3142_v15  ;;  %v2994_v36 = vsel %vm2962_vm10, %v2942_v6, %v2978_v49  ;;  %vm2963_vm12 = vcmp.ge.f32.partialorder %v2945_v19, 0.0  ;;  %v12009_v8 = vld [vmem:[#allocation4 + $0x150] sm:$0xff]   ;;  %v12011_v6 = vld [vmem:[#allocation4 + $0x158] sm:$0xff]   ;;  %v12012_v9 = vld [vmem:[#allocation4 + $0x80] sm:$0xff]  }
 0x5eb   : > { %11304 = vmatprep.subr.bf16.mxu0 %v3143_v37  ;;  %11445 = vmatprep.subr.bf16.mxu1 %v3143_v37  ;;  %v3010_v32 = vmax.f32 %v14412_v46, %v2994_v36  ;;  %v2979_v40 = vmul.f32 0.2, %v2945_v19  ;;  %vm2961_vm2 = vcmp.ge.f32.partialorder %v2937_v54, 0.0  ;;  %v2992_v55 = vsel %vm2960_vm1, %v2934_v41, %v2976_v42  ;;  %v11982_v46 = vld [vmem:[#allocation4 + $0x8] sm:$0xff]   ;;  %17362 = vst [vmem:[#allocation68_spill] sm:$0xff] %v14458_v17  ;;  %v12019_v36 = vld [vmem:[#allocation4 + $0x178] sm:$0xff]  }
 0x5ec   : > { %v2977_v10 = vmul.f32 0.2, %v2937_v54  ;;  %v3144_v50 = vpack.c.bf16 %v3005_v24, %v3004_v27  ;;  %v3008_v4 = vmax.f32 %v14417_v11, %v2992_v55  ;;  %v11984_v11 = vld [vmem:[#allocation4 + $0x10] sm:$0xff]   ;;  %v12014_v49 = vld [vmem:[#allocation4 + $0x88] sm:$0xff]   ;;  %v12018_v24 = vld [vmem:[#allocation4 + $0x98] sm:$0xff]  }
 0x5ed   : > { %v2995_v18 = vsel %vm2963_vm12, %v2945_v19, %v2979_v40  ;;  %v14462_v20 = vpop.permute.xlu1 %3453  ;;  %v12015_v41 = vld [vmem:[#allocation4 + $0x168] sm:$0xff]   ;;  %v12016_v19 = vld [vmem:[#allocation4 + $0x90] sm:$0xff]   ;;  %v12020_v42 = vld [vmem:[#allocation4 + $0xa0] sm:$0xff]  }
 0x5ee   : > { %v3011_v48 = vmax.f32 %v14428_v12, %v2995_v18  ;;  %11305 = vmatpush3.bf16.msra.mxu0 %v3143_v37  ;;  %11453 = vmatpush3.bf16.msra.mxu1 %v3143_v37  ;;  %v2993_v16 = vsel %vm2961_vm2, %v2937_v54, %v2977_v10  ;;  %v11998_v12 = vld [vmem:[#allocation4 + $0x48] sm:$0xff]   ;;  %17364 = vst [vmem:[#allocation76_spill] sm:$0xff] %v14462_v20  ;;  %v12010_v37 = vld [vmem:[#allocation4 + $0x78] sm:$0xff]   ;;  %v12017_v54 = vld [vmem:[#allocation4 + $0x170] sm:$0xff]  }
 0x5ef   : > { %v3009_v60 = vmax.f32 %v2750_v30, %v2993_v16  ;;  %11306 = vmatprep.subr.bf16.mxu0 %v3144_v50  ;;  %11446 = vmatprep.subr.bf16.mxu1 %v3144_v50  ;;  %v14460_v30 = vpop.permute.xlu0 %3448  ;;  %v12022_v10 = vld [vmem:[#allocation4 + $0xa8] sm:$0xff]   ;;  %v12025_v18 = vld [vmem:[#allocation4 + $0x190] sm:$0xff]  }
 0x5f0   : > { %v3147_v29 = vpack.c.bf16 %v3011_v48, %v3010_v32  ;;  %17363 = vst [vmem:[#allocation67_spill] sm:$0xff] %v14460_v30  ;;  %v12021_v32 = vld [vmem:[#allocation4 + $0x180] sm:$0xff]  }
 0x5f1   : > { %v3146_v52 = vpack.c.bf16 %v3009_v60, %v3008_v4  ;;  %v14466_v5 = vpop.permute.xlu1 %3463  ;;  %v12024_v4 = vld [vmem:[#allocation4 + $0xb0] sm:$0xff]  }
 0x5f2   : > { %11307 = vmatpush3.bf16.msra.mxu0 %v3144_v50  ;;  %11454 = vmatpush3.bf16.msra.mxu1 %v3144_v50  ;;  %17366 = vst [vmem:[#allocation69_spill] sm:$0xff] %v14466_v5  ;;  %v12023_v50 = vld [vmem:[#allocation4 + $0x188] sm:$0xff]  }
 0x5f3   : > { %11308 = vmatprep.subr.bf16.mxu0 %v3145_v25  ;;  %11447 = vmatprep.subr.bf16.mxu1 %v3145_v25  ;;  %v14464_v15 = vpop.permute.xlu0 %3458 }
 0x5f4   : > { %17365 = vst [vmem:[#allocation73_spill] sm:$0xff] %v14464_v15 }
 0x5f5   : > { %v14470_v13 = vpop.permute.xlu1 %3473 }
 0x5f6   : > { %11309 = vmatpush3.bf16.msra.mxu0 %v3145_v25  ;;  %11455 = vmatpush3.bf16.msra.mxu1 %v3145_v25  ;;  %17368 = vst [vmem:[#allocation18_spill] sm:$0xff] %v14470_v13  ;;  %v17396_v13 = vld [vmem:[#allocation31_spill] sm:$0xff] }
 0x5f7   : > { %11310 = vmatprep.subr.bf16.mxu0 %v3146_v52  ;;  %11448 = vmatprep.subr.bf16.mxu1 %v3146_v52  ;;  %v14468_v27 = vpop.permute.xlu0 %3468 }
 0x5f8   : > { %17367 = vst [vmem:[#allocation27_spill] sm:$0xff] %v14468_v27  ;;  %v17398_v27 = vld [vmem:[#allocation38_spill] sm:$0xff] }
 0x5f9   : > { %v14474_v53 = vpop.permute.xlu1 %3483 }
 0x5fa   : > { %11311 = vmatpush3.bf16.msra.mxu0 %v3146_v52  ;;  %11456 = vmatpush3.bf16.msra.mxu1 %v3146_v52  ;;  %17370 = vst [vmem:[#allocation17_spill] sm:$0xff] %v14474_v53  ;;  %v12026_v52 = vld [vmem:[#allocation4 + $0xb8] sm:$0xff]  }
 0x5fb   : > { %11312 = vmatprep.subr.bf16.mxu0 %v3147_v29  ;;  %11449 = vmatprep.subr.bf16.mxu1 %v3147_v29  ;;  %v14472_v2 = vpop.permute.xlu0 %3478 }
 0x5fc   : > { %17369 = vst [vmem:[#allocation16_spill] sm:$0xff] %v14472_v2  ;;  %v17395_v2 = vld [vmem:[#allocation33_spill] sm:$0xff] }
 0x5fd   : > { %v14478_v40 = vpop.permute.xlu1 %3493 }
 0x5fe   : > { %11313 = vmatpush3.bf16.msra.mxu0 %v3147_v29  ;;  %11457 = vmatpush3.bf16.msra.mxu1 %v3147_v29  ;;  %17372 = vst [vmem:[#allocation77_spill] sm:$0xff] %v14478_v40 }
 0x5ff   : > { %v14476_v25 = vpop.permute.xlu0 %3488 }
 0x600   : > { %17371 = vst [vmem:[#allocation15_spill] sm:$0xff] %v14476_v25 }
 0x601   : > { %11315 = vmatmul.mubr.bf16.vlgmr.msra.gmra.mrb[104].mxu0 %v11982_v46  ;;  %11371 = vmatmul.mubr.bf16.vlgmr.msra.gmra.mrb[88].mxu1 %v11983_v31  ;;  %v14482_v48 = vpop.permute.xlu1 %3503  ;;  %v12027_v46 = vld [vmem:[#allocation4 + $0x198] sm:$0xff]   ;;  %v12028_v31 = vld [vmem:[#allocation4 + $0xc0] sm:$0xff]  }
 0x602   : > { %11318 = vmatprep.mubr.bf16.mxu0 %v11984_v11  ;;  %11374 = vmatprep.mubr.bf16.mxu1 %v11985_v47  ;;  %17374 = vst [vmem:[#allocation70_spill] sm:$0xff] %v14482_v48  ;;  %v12029_v11 = vld [vmem:[#allocation4 + $0x1a0] sm:$0xff]  }
 0x603   : > { %v14480_v55 = vpop.permute.xlu0 %3498 }
 0x604   : > { %17373 = vst [vmem:[#allocation71_spill] sm:$0xff] %v14480_v55 }
 0x605   : > { %v14486_v60 = vpop.permute.xlu1 %3513 }
 0x606   : > { %17376 = vst [vmem:[#allocation14_spill] sm:$0xff] %v14486_v60 }
 0x607   : > { %v14484_v16 = vpop.permute.xlu0 %3508 }
 0x608   : > { %17375 = vst [vmem:[#allocation79_spill] sm:$0xff] %v14484_v16 }
 0x609   : > { %11319 = vmatmul.mubr.bf16.gmra.mrb[108].mxu0 %v11986_v56  ;;  %11375 = vmatmul.mubr.bf16.gmra.mrb[92].mxu1 %v11987_v38  ;;  %v14490_v47 = vpop.permute.xlu1 %3523  ;;  %v12030_v38 = vld [vmem:[#allocation4 + $0xc8] sm:$0xff]  }
 0x60a   : > { %11322 = vmatprep.mubr.bf16.mxu0 %v11988_v1  ;;  %11378 = vmatprep.mubr.bf16.mxu1 %v11989_v3  ;;  %17378 = vst [vmem:[#allocation20_spill] sm:$0xff] %v14490_v47  ;;  %v12031_v1 = vld [vmem:[#allocation4 + $0x1a8] sm:$0xff]   ;;  %v12032_v3 = vld [vmem:[#allocation4 + $0xd0] sm:$0xff]   ;;  %v17394_v47 = vld [vmem:[#allocation32_spill] sm:$0xff] }
 0x60b   : > { %v14488_v29 = vpop.permute.xlu0 %3518 }
 0x60c   : > { %17377 = vst [vmem:[#allocation22_spill] sm:$0xff] %v14488_v29 }
 0x60f   : > { %v14492_v56 = vpop.permute.xlu0 %3528 }
 0x610   : > { %17379 = vst [vmem:[#allocation21_spill] sm:$0xff] %v14492_v56 }
 0x611   : > { %11323 = vmatmul.mubr.bf16.gmra.mrb[112].mxu0 %v11990_v61  ;;  %11379 = vmatmul.mubr.bf16.gmra.mrb[96].mxu1 %v11991_v63  ;;  %v12033_v61 = vld [vmem:[#allocation4 + $0x1b0] sm:$0xff]   ;;  %v14494_v63 = vpop.permute.xlu1 %3533 }
 0x612   : > { %11326 = vmatprep.mubr.bf16.mxu0 %v11992_v21  ;;  %11382 = vmatprep.mubr.bf16.mxu1 %v11993_v34  ;;  %17380 = vst [vmem:[#allocation19_spill] sm:$0xff] %v14494_v63  ;;  %v12034_v34 = vld [vmem:[#allocation4 + $0xd8] sm:$0xff]  }
 0x613   : > { %v14496_v21 = vpop.permute.xlu0 %3538 }
 0x614   : > { %17381 = vst [vmem:[#allocation78_spill] sm:$0xff] %v14496_v21 }
 0x619   : > { %11327 = vmatmul.mubr.bf16.gmra.mrb[116].mxu0 %v11994_v57  ;;  %11383 = vmatmul.mubr.bf16.gmra.mrb[100].mxu1 %v11995_v35  ;;  %v12035_v57 = vld [vmem:[#allocation4 + $0x1b8] sm:$0xff]   ;;  %v12036_v35 = vld [vmem:[#allocation4 + $0x1c0] sm:$0xff]  }
 0x61a   : > { %11330 = vmatprep.mubr.bf16.mxu0 %v11996_v28  ;;  %11386 = vmatprep.mubr.bf16.mxu1 %v11997_v43  ;;  %v14498_v28 = vpop.permute.xlu1 %3543  ;;  %v14500_v43 = vpop.permute.xlu0 %3548 }
 0x61b   : > { %17382 = vst [vmem:[#allocation61_spill] sm:$0xff] %v14498_v28  ;;  %17383 = vst [vmem:[#allocation24_spill] sm:$0xff] %v14500_v43 }
 0x621   : > { %11331 = vmatmul.mubr.bf16.gmra.mrb[120].mxu0 %v11998_v12  ;;  %11387 = vmatmul.mubr.bf16.gmra.mrb[104].mxu1 %v11999_v0  ;;  %v14502_v12 = vpop.permute.xlu1 %3553  ;;  %v3559_v0 = vpop.permute.xlu0 %3558 }
 0x622   : > { %11334 = vmatprep.mubr.bf16.mxu0 %v12000_v59  ;;  %11390 = vmatprep.mubr.bf16.mxu1 %v12001_v62  ;;  %17384 = vst [vmem:[#allocation23_spill] sm:$0xff] %v14502_v12  ;;  %v12037_v59 = vld [vmem:[#allocation4 + $0x1c8] sm:$0xff]   ;;  %v12038_v62 = vld [vmem:[#allocation4 + $0x1d0] sm:$0xff]  }
 0x629   : > { %11335 = vmatmul.mubr.bf16.gmra.mrb[124].mxu0 %v12002_v44  ;;  %11391 = vmatmul.mubr.bf16.gmra.mrb[108].mxu1 %v12003_v26  ;;  %v14504_v44 = vpop.permute.xlu1 %3563  ;;  %v3569_v26 = vpop.permute.xlu0 %3568 }
 0x62a   : > { %11338 = vmatprep.mubr.bf16.mxu0 %v12004_v14  ;;  %11394 = vmatprep.mubr.bf16.mxu1 %v12005_v39  ;;  %v12039_v14 = vld [vmem:[#allocation4 + $0x1d8] sm:$0xff]   ;;  %v12040_v39 = vld [vmem:[#allocation4 + $0x1e0] sm:$0xff]  }
 0x631   : > { %11339 = vmatmul.mubr.bf16.gmra.mrb[128].mxu0 %v12006_v45  ;;  %11395 = vmatmul.mubr.bf16.gmra.mrb[112].mxu1 %v12007_v23  ;;  %v14506_v45 = vpop.permute.xlu1 %3573  ;;  %v14508_v23 = vpop.permute.xlu0 %3578 }
 0x632   : > { %11342 = vmatprep.mubr.bf16.mxu0 %v12008_v7  ;;  %11398 = vmatprep.mubr.bf16.mxu1 %v12009_v8  ;;  %v12041_v7 = vld [vmem:[#allocation4 + $0x1e8] sm:$0xff]   ;;  %v12042_v8 = vld [vmem:[#allocation4 + $0x1f0] sm:$0xff]  }
 0x639   : > { %11343 = vmatmul.mubr.bf16.gmra.mrb[132].mxu0 %v12010_v37  ;;  %11399 = vmatmul.mubr.bf16.gmra.mrb[116].mxu1 %v12011_v6  ;;  %v14510_v37 = vpop.permute.xlu1 %3583  ;;  %v14512_v6 = vpop.permute.xlu0 %3588 }
 0x63a   : > { %11346 = vmatprep.mubr.bf16.mxu0 %v12012_v9  ;;  %11402 = vmatprep.mubr.bf16.mxu1 %v12013_v22 }
 0x63d   : > { %v14514_v9 = vpop.permute.xlu1 %3593  ;;  %v14516_v22 = vpop.permute.xlu0 %3598 }
 0x641   : > { %11347 = vmatmul.mubr.bf16.gmra.mrb[136].mxu0 %v12014_v49  ;;  %11403 = vmatmul.mubr.bf16.gmra.mrb[120].mxu1 %v12015_v41  ;;  %v12043_v49 = vld [vmem:[#allocation4 + $0x1f8] sm:$0xff]   ;;  %v14518_v41 = vpop.permute.xlu1 %3603 }
 0x642   : > { %11350 = vmatprep.mubr.bf16.mxu0 %v12016_v19  ;;  %11406 = vmatprep.mubr.bf16.mxu1 %v12017_v54  ;;  %v14520_v19 = vpop.permute.xlu0 %3608 }
 0x645   : > { %v14522_v54 = vpop.permute.xlu1 %3613 }
 0x649   : > { %11351 = vmatmul.mubr.bf16.gmra.mrb[140].mxu0 %v12018_v24  ;;  %11407 = vmatmul.mubr.bf16.gmra.mrb[124].mxu1 %v12019_v36  ;;  %v14524_v24 = vpop.permute.xlu0 %3618  ;;  %v14526_v36 = vpop.permute.xlu1 %3623 }
 0x64a   : > { %11354 = vmatprep.mubr.bf16.mxu0 %v12020_v42  ;;  %11410 = vmatprep.mubr.bf16.mxu1 %v12021_v32 }
 0x64d   : > { %v14528_v42 = vpop.permute.xlu0 %3628  ;;  %v14530_v32 = vpop.permute.xlu1 %3633 }
 0x651   : > { %11355 = vmatmul.mubr.bf16.gmra.mrb[144].mxu0 %v12022_v10  ;;  %11411 = vmatmul.mubr.bf16.gmra.mrb[128].mxu1 %v12023_v50  ;;  %v14532_v10 = vpop.permute.xlu0 %3638  ;;  %v14534_v50 = vpop.permute.xlu1 %3643 }
 0x652   : > { %11358 = vmatprep.mubr.bf16.mxu0 %v12024_v4  ;;  %11414 = vmatprep.mubr.bf16.mxu1 %v12025_v18 }
 0x655   : > { %v14536_v4 = vpop.permute.xlu0 %3648  ;;  %v14538_v18 = vpop.permute.xlu1 %3653 }
 0x659   : > { %11359 = vmatmul.mubr.bf16.gmra.mrb[148].mxu0 %v12026_v52  ;;  %11415 = vmatmul.mubr.bf16.gmra.mrb[132].mxu1 %v12027_v46  ;;  %v14540_v52 = vpop.permute.xlu0 %3658  ;;  %v14542_v46 = vpop.permute.xlu1 %3663 }
 0x65a   : > { %11362 = vmatprep.mubr.bf16.mxu0 %v12028_v31  ;;  %11418 = vmatprep.mubr.bf16.mxu1 %v12029_v11 }
 0x65d   : > { %v14544_v31 = vpop.permute.xlu0 %3668  ;;  %v14546_v11 = vpop.permute.xlu1 %3673 }
 0x661   : > { %11363 = vmatmul.mubr.bf16.gmra.mrb[152].mxu0 %v12030_v38  ;;  %11419 = vmatmul.mubr.bf16.gmra.mrb[136].mxu1 %v12031_v1  ;;  %v14548_v38 = vpop.permute.xlu0 %3678  ;;  %v14550_v1 = vpop.permute.xlu1 %3683 }
 0x662   : > { %11366 = vmatprep.mubr.bf16.mxu0 %v12032_v3  ;;  %11422 = vmatprep.mubr.bf16.mxu1 %v12033_v61  ;;  %17385 = vst [vmem:[#allocation74_spill] sm:$0xff] %v14550_v1 }
 0x665   : > { %v14552_v3 = vpop.permute.xlu0 %3688  ;;  %v14554_v61 = vpop.permute.xlu1 %3693 }
 0x669   : > { %11367 = vmatmul.mubr.bf16.gmra.mrb[156].mxu0 %v12034_v34  ;;  %11423 = vmatmul.mubr.bf16.gmra.mrb[140].mxu1 %v12035_v57  ;;  %v14556_v34 = vpop.permute.xlu0 %3698  ;;  %v14558_v57 = vpop.permute.xlu1 %3703 }
 0x66a   : > { %11426 = vmatprep.mubr.bf16.mxu1 %v12036_v35  ;;  %17386 = vst [vmem:[#allocation65_spill] sm:$0xff] %v14556_v34  ;;  %17387 = vst [vmem:[#allocation80_spill] sm:$0xff] %v14558_v57 }
 0x66d   : > { %v14560_v35 = vpop.permute.xlu0 %3708 }
 0x66e   : > { %17388 = vst [vmem:[#allocation72_spill] sm:$0xff] %v14560_v35 }
 0x671   : > { %11427 = vmatmul.mubr.bf16.gmra.mrb[144].mxu1 %v12037_v59  ;;  %v14562_v59 = vpop.permute.xlu1 %3713 }
 0x672   : > { %11430 = vmatprep.mubr.bf16.mxu1 %v12038_v62  ;;  %17389 = vst [vmem:[#allocation30_spill] sm:$0xff] %v14562_v59  ;;  %v14564_v62 = vpop.permute.xlu0 %3718 }
 0x673   : > { %17390 = vst [vmem:[#allocation28_spill] sm:$0xff] %v14564_v62 }
 0x679   : > { %11431 = vmatmul.mubr.bf16.gmra.mrb[148].mxu1 %v12039_v14  ;;  %v14566_v14 = vpop.permute.xlu1 %3723 }
 0x67a   : > { %11434 = vmatprep.mubr.bf16.mxu1 %v12040_v39  ;;  %17391 = vst [vmem:[#allocation13_spill] sm:$0xff] %v14566_v14  ;;  %v14568_v39 = vpop.permute.xlu0 %3728 }
 0x67b   : > { %17392 = vst [vmem:[#allocation64_spill] sm:$0xff] %v14568_v39 }
 0x681   : > { %11435 = vmatmul.mubr.bf16.gmra.mrb[152].mxu1 %v12041_v7 }
 0x682   : > { %11438 = vmatprep.mubr.bf16.mxu1 %v12042_v8 }
 0x689   : > { %11439 = vmatmul.mubr.bf16.gmra.mrb[156].mxu1 %v12043_v49  ;;  %v17393_v49 = vld [vmem:[#allocation34_spill] sm:$0xff] }
 0x6d4   : > { %v11316_v7 = vpop.f32.mrb[104].mxu0  ;;  %v11372_v8 = vpop.f32.mrb[88].mxu1 }
 0x6d5   : > { %v4343_v28 = vadd.f32 %v11316_v7, %v17393_v49  ;;  %v4567_v12 = vadd.f32 %v11372_v8, %v3569_v26  ;;  %v4334_v21 = vpop.f32.mrb[105].mxu0  ;;  %v4558_v43 = vpop.f32.mrb[89].mxu1 }
 0x6d6   : > { %v4335_v63 = vadd.f32 %v4334_v21, %v17394_v47  ;;  %v4559_v29 = vadd.f32 %v4558_v43, %v3559_v0  ;;  %v11317_v56 = vpop.f32.mrb[106].mxu0  ;;  %v11373_v48 = vpop.f32.mrb[90].mxu1 }
 0x6d7   : > { %v4975_v60 = vmul.f32 0.2, %v4343_v28  ;;  %v5031_v55 = vmul.f32 0.2, %v4567_v12  ;;  %v4337_v16 = vpop.f32.mrb[107].mxu0  ;;  %v4561_v53 = vpop.f32.mrb[91].mxu1  ;;  %v4346_v25 = vadd.f32 %v11317_v56, %v17395_v2  ;;  %v4570_v2 = vadd.f32 %v11373_v48, %v14506_v45 }
 0x6d8   : > { %v4973_v40 = vmul.f32 0.2, %v4335_v63  ;;  %vm4903_vm13 = vcmp.ge.f32.partialorder %v4567_v12, 0.0  ;;  %vm4847_vm14 = vcmp.ge.f32.partialorder %v4343_v28, 0.0  ;;  %v5029_v5 = vmul.f32 0.2, %v4559_v29  ;;  %v14574_v49 = vpop.permute.xlu1 %3733  ;;  %v14576_v47 = vpop.permute.xlu0 %3738 }
 0x6d9   : > { %v4338_v7 = vadd.f32 %v4337_v16, %v17396_v13  ;;  %v5159_v26 = vsel %vm4903_vm13, %v4567_v12, %v5031_v55  ;;  %v5103_v8 = vsel %vm4847_vm14, %v4343_v28, %v4975_v60  ;;  %17397 = vst [vmem:[#allocation29_spill] sm:$0xff] %v14576_v47  ;;  %vm4901_vm3 = vcmp.ge.f32.partialorder %v4559_v29, 0.0 }
 0x6da   : > { %5473 = vmax.xlane.f32.xlu1 %v5159_v26  ;;  %5361 = vmax.xlane.f32.xlu0 %v5103_v8  ;;  %vm4845_vm15 = vcmp.ge.f32.partialorder %v4335_v63, 0.0  ;;  %v4976_v0 = vmul.f32 0.2, %v4346_v25  ;;  %v5157_v16 = vsel %vm4901_vm3, %v4559_v29, %v5029_v5  ;;  %vm4848_vm0 = vcmp.ge.f32.partialorder %v4346_v25, 0.0 }
 0x6db   : > { %v4974_v14 = vmul.f32 0.2, %v4338_v7  ;;  %v5101_v28 = vsel %vm4845_vm15, %v4335_v63, %v4973_v40  ;;  %vm4846_vm5 = vcmp.ge.f32.partialorder %v4338_v7, 0.0  ;;  %v5032_v8 = vmul.f32 0.2, %v4570_v2 }
 0x6dc   : > { %v11320_v21 = vpop.f32.mrb[108].mxu0  ;;  %v11376_v43 = vpop.f32.mrb[92].mxu1  ;;  %v4562_v47 = vadd.f32 %v4561_v53, %v14504_v44  ;;  %v5104_v62 = vsel %vm4848_vm0, %v4346_v25, %v4976_v0  ;;  %vm4904_vm6 = vcmp.ge.f32.partialorder %v4570_v2, 0.0 }
 0x6dd   : > { %v4350_v56 = vpop.f32.mrb[109].mxu0  ;;  %v4574_v15 = vpop.f32.mrb[93].mxu1  ;;  %v4359_v13 = vadd.f32 %v11320_v21, %v17398_v27  ;;  %v4583_v45 = vadd.f32 %v11376_v43, %v14512_v6  ;;  %v5102_v17 = vsel %vm4846_vm5, %v4338_v7, %v4974_v14  ;;  %v17400_v21 = vld [vmem:[#allocation36_spill] sm:$0xff]  ;;  %v17401_v6 = vld [vmem:[#allocation37_spill] sm:$0xff] }
 0x6de   : > { %v11377_v55 = vpop.f32.mrb[94].mxu1  ;;  %v11321_v60 = vpop.f32.mrb[110].mxu0  ;;  %5469 = vmax.xlane.f32.xlu1 %v5157_v16  ;;  %5357 = vmax.xlane.f32.xlu0 %v5101_v28  ;;  %v5030_v63 = vmul.f32 0.2, %v4562_v47  ;;  %v4351_v16 = vadd.f32 %v4350_v56, %v17400_v21  ;;  %vm4902_vm9 = vcmp.ge.f32.partialorder %v4562_v47, 0.0  ;;  %v4575_v56 = vadd.f32 %v4574_v15, %v14508_v23  ;;  %v17404_v15 = vld [vmem:[#allocation35_spill] sm:$0xff] }
 0x6df   : > { %v4353_v12 = vpop.f32.mrb[111].mxu0  ;;  %v14580_v26 = vpop.f32.mrb[95].mxu1  ;;  %v4979_v48 = vmul.f32 0.2, %v4359_v13  ;;  %vm4851_vm4 = vcmp.ge.f32.partialorder %v4359_v13, 0.0  ;;  %v4362_v25 = vadd.f32 %v11321_v60, %v17401_v6  ;;  %vm4907_vm7 = vcmp.ge.f32.partialorder %v4583_v45, 0.0 }
 0x6e0   : > { %v14584_v27 = vpop.permute.xlu1 %3743  ;;  %v14586_v5 = vpop.permute.xlu0 %3748  ;;  %v5035_v44 = vmul.f32 0.2, %v4583_v45  ;;  %v5158_v21 = vsel %vm4902_vm9, %v4562_v47, %v5030_v63  ;;  %v4586_v20 = vadd.f32 %v11377_v55, %v14514_v9  ;;  %vm4849_vm8 = vcmp.ge.f32.partialorder %v4351_v16, 0.0 }
 0x6e1   : > { %17399 = vst [vmem:[#allocation62_spill] sm:$0xff] %v14584_v27  ;;  %v5107_v43 = vsel %vm4851_vm4, %v4359_v13, %v4979_v48  ;;  %v4977_v27 = vmul.f32 0.2, %v4351_v16  ;;  %v4980_v51 = vmul.f32 0.2, %v4362_v25  ;;  %vm4852_vm11 = vcmp.ge.f32.partialorder %v4362_v25, 0.0 }
 0x6e2   : > { %5359 = vmax.xlane.f32.xlu1 %v5102_v17  ;;  %5363 = vmax.xlane.f32.xlu0 %v5104_v62  ;;  %v5160_v17 = vsel %vm4904_vm6, %v4570_v2, %v5032_v8  ;;  %v5163_v60 = vsel %vm4907_vm7, %v4583_v45, %v5035_v44  ;;  %v5033_v8 = vmul.f32 0.2, %v4575_v56  ;;  %v4354_v23 = vadd.f32 %v4353_v12, %v17404_v15  ;;  %v17405_v48 = vld [vmem:[#allocation42_spill] sm:$0xff] }
 0x6e3   : > { %v5036_v55 = vmul.f32 0.2, %v4586_v20  ;;  %vm4905_vm10 = vcmp.ge.f32.partialorder %v4575_v56, 0.0  ;;  %vm4908_vm1 = vcmp.ge.f32.partialorder %v4586_v20, 0.0  ;;  %v4578_v15 = vadd.f32 %v14580_v26, %v14510_v37 }
 0x6e4   : > { %v11324_v40 = vpop.f32.mrb[112].mxu0  ;;  %v11380_v29 = vpop.f32.mrb[96].mxu1  ;;  %v4978_v12 = vmul.f32 0.2, %v4354_v23  ;;  %vm4850_vm2 = vcmp.ge.f32.partialorder %v4354_v23, 0.0 }
 0x6e5   : > { %v4366_v28 = vpop.f32.mrb[113].mxu0  ;;  %v14589_v53 = vpop.f32.mrb[97].mxu1  ;;  %v4375_v45 = vadd.f32 %v11324_v40, %v17405_v48  ;;  %v4599_v40 = vadd.f32 %v11380_v29, %v14520_v19  ;;  %v5161_v48 = vsel %vm4905_vm10, %v4575_v56, %v5033_v8  ;;  %vm4906_vm13 = vcmp.ge.f32.partialorder %v4578_v15, 0.0  ;;  %v17409_v29 = vld [vmem:[#allocation41_spill] sm:$0xff] }
 0x6e6   : > { %v11325_v14 = vpop.f32.mrb[114].mxu0  ;;  %v14592_v7 = vpop.f32.mrb[98].mxu1  ;;  %5369 = vmax.xlane.f32.xlu1 %v5107_v43  ;;  %5475 = vmax.xlane.f32.xlu0 %v5160_v17  ;;  %v5105_v43 = vsel %vm4849_vm8, %v4351_v16, %v4977_v27  ;;  %v5108_v17 = vsel %vm4852_vm11, %v4362_v25, %v4980_v51  ;;  %v5034_v25 = vmul.f32 0.2, %v4578_v15 }
 0x6e7   : > { %v14594_v62 = vpop.f32.mrb[115].mxu0  ;;  %v14596_v0 = vpop.f32.mrb[99].mxu1  ;;  %vm4855_vm12 = vcmp.ge.f32.partialorder %v4375_v45, 0.0  ;;  %v4378_v56 = vadd.f32 %v11325_v14, %v17409_v29  ;;  %vm4911_vm14 = vcmp.ge.f32.partialorder %v4599_v40, 0.0  ;;  %v4602_v14 = vadd.f32 %v14592_v7, %v14522_v54 }
 0x6e8   : > { %v14600_v6 = vpop.permute.xlu1 %3753  ;;  %v14602_v39 = vpop.permute.xlu0 %3758 }
 0x6e9   : > { %17402 = vst [vmem:[#allocation26_spill] sm:$0xff] %v14600_v6  ;;  %17403 = vst [vmem:[#allocation63_spill] sm:$0xff] %v14602_v39  ;;  %v4983_v39 = vmul.f32 0.2, %v4375_v45  ;;  %v5164_v6 = vsel %vm4908_vm1, %v4586_v20, %v5036_v55  ;;  %v5039_v20 = vmul.f32 0.2, %v4599_v40 }
 0x6ea   : > { %5481 = vmax.xlane.f32.xlu1 %v5163_v60  ;;  %5471 = vmax.xlane.f32.xlu0 %v5158_v21  ;;  %v4984_v30 = vmul.f32 0.2, %v4378_v56  ;;  %vm4856_vm15 = vcmp.ge.f32.partialorder %v4378_v56, 0.0  ;;  %v5040_v7 = vmul.f32 0.2, %v4602_v14  ;;  %vm4912_vm0 = vcmp.ge.f32.partialorder %v4602_v14, 0.0 }
 0x6eb   : > { %v5111_v55 = vsel %vm4855_vm12, %v4375_v45, %v4983_v39  ;;  %v5167_v29 = vsel %vm4911_vm14, %v4599_v40, %v5039_v20  ;;  %v17413_v40 = vld [vmem:[#allocation46_spill] sm:$0xff] }
 0x6ec   : > { %v14604_v2 = vpop.f32.mrb[116].mxu0  ;;  %v14606_v13 = vpop.f32.mrb[100].mxu1  ;;  %v5168_v34 = vsel %vm4912_vm0, %v4602_v14, %v5040_v7 }
 0x6ed   : > { %v14609_v47 = vpop.f32.mrb[117].mxu0  ;;  %v14611_v9 = vpop.f32.mrb[101].mxu1 }
 0x6ee   : > { %v14614_v63 = vpop.f32.mrb[118].mxu0  ;;  %v14616_v44 = vpop.f32.mrb[102].mxu1  ;;  %5365 = vmax.xlane.f32.xlu1 %v5105_v43  ;;  %5371 = vmax.xlane.f32.xlu0 %v5108_v17  ;;  %v17408_v43 = vld [vmem:[#allocation40_spill] sm:$0xff]  ;;  %v5106_v17 = vsel %vm4850_vm2, %v4354_v23, %v4978_v12 }
 0x6ef   : > { %v14618_v21 = vpop.f32.mrb[119].mxu0  ;;  %v14620_v60 = vpop.f32.mrb[103].mxu1  ;;  %v4367_v37 = vadd.f32 %v4366_v28, %v17408_v43  ;;  %v4591_v28 = vadd.f32 %v14589_v53, %v14516_v22  ;;  %v5162_v43 = vsel %vm4906_vm13, %v4578_v15, %v5034_v25  ;;  %v17412_v53 = vld [vmem:[#allocation39_spill] sm:$0xff]  ;;  %v4391_v25 = vadd.f32 %v14604_v2, %v17413_v40 }
 0x6f0   : > { %v14625_v57 = vpop.permute.xlu1 %3763  ;;  %v14627_v51 = vpop.permute.xlu0 %3768  ;;  %v4370_v12 = vadd.f32 %v14594_v62, %v17412_v53  ;;  %v4594_v53 = vadd.f32 %v14596_v0, %v14518_v41  ;;  %v4615_v2 = vadd.f32 %v14606_v13, %v14528_v42  ;;  %v17416_v41 = vld [vmem:[#allocation44_spill] sm:$0xff] }
 0x6f1   : > { %17406 = vst [vmem:[#allocation25_spill] sm:$0xff] %v14625_v57  ;;  %17407 = vst [vmem:[#allocation34_spill] sm:$0xff] %v14627_v51  ;;  %v4981_v51 = vmul.f32 0.2, %v4367_v37  ;;  %vm4853_vm3 = vcmp.ge.f32.partialorder %v4367_v37, 0.0  ;;  %vm4909_vm5 = vcmp.ge.f32.partialorder %v4591_v28, 0.0  ;;  %v4383_v0 = vadd.f32 %v14609_v47, %v17416_v41 }
 0x6f2   : > { %5477 = vmax.xlane.f32.xlu1 %v5161_v48  ;;  %5483 = vmax.xlane.f32.xlu0 %v5164_v6  ;;  %v5037_v22 = vmul.f32 0.2, %v4591_v28  ;;  %v4982_v62 = vmul.f32 0.2, %v4370_v12  ;;  %vm4859_vm4 = vcmp.ge.f32.partialorder %v4391_v25, 0.0  ;;  %vm4854_vm6 = vcmp.ge.f32.partialorder %v4370_v12, 0.0 }
 0x6f3   : > { %vm4910_vm9 = vcmp.ge.f32.partialorder %v4594_v53, 0.0  ;;  %v5043_v13 = vmul.f32 0.2, %v4615_v2  ;;  %vm4915_vm7 = vcmp.ge.f32.partialorder %v4615_v2, 0.0  ;;  %v4607_v41 = vadd.f32 %v14611_v9, %v14524_v24  ;;  %v17420_v9 = vld [vmem:[#allocation43_spill] sm:$0xff] }
 0x6f4   : > { %v14629_v27 = vpop.f32.mrb[120].mxu0  ;;  %v14631_v16 = vpop.f32.mrb[104].mxu1  ;;  %v5165_v40 = vsel %vm4909_vm5, %v4591_v28, %v5037_v22  ;;  %v17417_v28 = vld [vmem:[#allocation45_spill] sm:$0xff]  ;;  %v4985_v33 = vmul.f32 0.2, %v4383_v0  ;;  %vm4857_vm8 = vcmp.ge.f32.partialorder %v4383_v0, 0.0 }
 0x6f5   : > { %v14634_v26 = vpop.f32.mrb[121].mxu0  ;;  %v14636_v19 = vpop.f32.mrb[105].mxu1  ;;  %v4394_v14 = vadd.f32 %v14614_v63, %v17417_v28  ;;  %v4618_v63 = vadd.f32 %v14616_v44, %v14530_v32  ;;  %v5171_v28 = vsel %vm4915_vm7, %v4615_v2, %v5043_v13  ;;  %v5041_v24 = vmul.f32 0.2, %v4607_v41  ;;  %v17421_v2 = vld [vmem:[#allocation50_spill] sm:$0xff] }
 0x6f6   : > { %v14639_v8 = vpop.f32.mrb[122].mxu0  ;;  %v14641_v6 = vpop.f32.mrb[106].mxu1  ;;  %5377 = vmax.xlane.f32.xlu1 %v5111_v55  ;;  %5367 = vmax.xlane.f32.xlu0 %v5106_v17  ;;  %v5109_v17 = vsel %vm4853_vm3, %v4367_v37, %v4981_v51  ;;  %vm4913_vm10 = vcmp.ge.f32.partialorder %v4607_v41, 0.0 }
 0x6f7   : > { %v14643_v48 = vpop.f32.mrb[123].mxu0  ;;  %v14645_v57 = vpop.f32.mrb[107].mxu1  ;;  %v4988_v35 = vmul.f32 0.2, %v4394_v14  ;;  %vm4860_vm11 = vcmp.ge.f32.partialorder %v4394_v14, 0.0  ;;  %vm4916_vm1 = vcmp.ge.f32.partialorder %v4618_v63, 0.0 }
 0x6f8   : > { %v14651_v59 = vpop.permute.xlu1 %3773  ;;  %v14653_v39 = vpop.permute.xlu0 %3778  ;;  %v5044_v44 = vmul.f32 0.2, %v4618_v63 }
 0x6f9   : > { %17410 = vst [vmem:[#allocation32_spill] sm:$0xff] %v14651_v59  ;;  %17411 = vst [vmem:[#allocation33_spill] sm:$0xff] %v14653_v39  ;;  %v4987_v59 = vmul.f32 0.2, %v4391_v25 }
 0x6fa   : > { %5489 = vmax.xlane.f32.xlu1 %v5167_v29  ;;  %5479 = vmax.xlane.f32.xlu0 %v5162_v43  ;;  %v5112_v43 = vsel %vm4856_vm15, %v4378_v56, %v4984_v30 }
 0x6fb   : > { %v5115_v7 = vsel %vm4859_vm4, %v4391_v25, %v4987_v59 }
 0x6fc   : > { %v14655_v23 = vpop.f32.mrb[124].mxu0  ;;  %v14657_v45 = vpop.f32.mrb[108].mxu1 }
 0x6fd   : > { %v14661_v15 = vpop.f32.mrb[125].mxu0  ;;  %v14663_v54 = vpop.f32.mrb[109].mxu1 }
 0x6fe   : > { %v14667_v20 = vpop.f32.mrb[126].mxu0  ;;  %v14669_v55 = vpop.f32.mrb[110].mxu1  ;;  %5373 = vmax.xlane.f32.xlu1 %v5109_v17  ;;  %5379 = vmax.xlane.f32.xlu0 %v5112_v43  ;;  %v5038_v17 = vmul.f32 0.2, %v4594_v53 }
 0x6ff   : > { %v14671_v29 = vpop.f32.mrb[127].mxu0  ;;  %v14673_v39 = vpop.f32.mrb[111].mxu1 }
 0x700   : > { %v14679_v51 = vpop.permute.xlu1 %3783  ;;  %v14681_v30 = vpop.permute.xlu0 %3788 }
 0x701   : > { %17414 = vst [vmem:[#allocation31_spill] sm:$0xff] %v14679_v51  ;;  %17415 = vst [vmem:[#allocation38_spill] sm:$0xff] %v14681_v30  ;;  %v5166_v30 = vsel %vm4910_vm9, %v4594_v53, %v5038_v17  ;;  %v4407_v17 = vadd.f32 %v14629_v27, %v17421_v2  ;;  %v4631_v27 = vadd.f32 %v14631_v16, %v14536_v4 }
 0x702   : > { %5485 = vmax.xlane.f32.xlu1 %v5165_v40  ;;  %5491 = vmax.xlane.f32.xlu0 %v5168_v34  ;;  %v5110_v40 = vsel %vm4854_vm6, %v4370_v12, %v4982_v62  ;;  %v4386_v62 = vadd.f32 %v14618_v21, %v17420_v9  ;;  %v4610_v9 = vadd.f32 %v14620_v60, %v14526_v36  ;;  %v17425_v36 = vld [vmem:[#allocation48_spill] sm:$0xff] }
 0x703   : > { %v5169_v2 = vsel %vm4913_vm10, %v4607_v41, %v5041_v24  ;;  %vm4863_vm12 = vcmp.ge.f32.partialorder %v4407_v17, 0.0  ;;  %v4399_v60 = vadd.f32 %v14634_v26, %v17425_v36  ;;  %v5047_v16 = vmul.f32 0.2, %v4631_v27  ;;  %v17427_v41 = vld [vmem:[#allocation49_spill] sm:$0xff] }
 0x704   : > { %v14683_v37 = vpop.f32.mrb[128].mxu0  ;;  %v14685_v56 = vpop.f32.mrb[112].mxu1  ;;  %v4986_v21 = vmul.f32 0.2, %v4386_v62  ;;  %vm4858_vm2 = vcmp.ge.f32.partialorder %v4386_v62, 0.0  ;;  %vm4914_vm13 = vcmp.ge.f32.partialorder %v4610_v9, 0.0 }
 0x705   : > { %v14689_v43 = vpop.f32.mrb[129].mxu0  ;;  %v14691_v42 = vpop.f32.mrb[113].mxu1  ;;  %vm4919_vm14 = vcmp.ge.f32.partialorder %v4631_v27, 0.0  ;;  %vm4861_vm3 = vcmp.ge.f32.partialorder %v4399_v60, 0.0 }
 0x706   : > { %v14695_v34 = vpop.f32.mrb[130].mxu0  ;;  %v14697_v22 = vpop.f32.mrb[114].mxu1  ;;  %5385 = vmax.xlane.f32.xlu1 %v5115_v7  ;;  %5375 = vmax.xlane.f32.xlu0 %v5110_v40  ;;  %v5113_v7 = vsel %vm4857_vm8, %v4383_v0, %v4985_v33  ;;  %v5116_v40 = vsel %vm4860_vm11, %v4394_v14, %v4988_v35 }
 0x707   : > { %v14699_v51 = vpop.f32.mrb[131].mxu0  ;;  %v14701_v47 = vpop.f32.mrb[115].mxu1 }
 0x708   : > { %v14707_v1 = vpop.permute.xlu1 %3793  ;;  %v14709_v59 = vpop.permute.xlu0 %3798 }
 0x709   : > { %17418 = vst [vmem:[#allocation36_spill] sm:$0xff] %v14707_v1  ;;  %17419 = vst [vmem:[#allocation37_spill] sm:$0xff] %v14709_v59  ;;  %v4991_v1 = vmul.f32 0.2, %v4407_v17 }
 0x70a   : > { %5497 = vmax.xlane.f32.xlu1 %v5171_v28  ;;  %5487 = vmax.xlane.f32.xlu0 %v5166_v30 }
 0x70c   : > { %v14711_v12 = vpop.f32.mrb[132].mxu0  ;;  %v14713_v25 = vpop.f32.mrb[116].mxu1 }
 0x70d   : > { %v14717_v53 = vpop.f32.mrb[133].mxu0  ;;  %v14719_v32 = vpop.f32.mrb[117].mxu1 }
 0x70e   : > { %v14723_v13 = vpop.f32.mrb[134].mxu0  ;;  %v14725_v30 = vpop.f32.mrb[118].mxu1  ;;  %5381 = vmax.xlane.f32.xlu1 %v5113_v7  ;;  %5387 = vmax.xlane.f32.xlu0 %v5116_v40  ;;  %v5042_v7 = vmul.f32 0.2, %v4610_v9 }
 0x70f   : > { %17422 = vst [vmem:[#allocation35_spill] sm:$0xff] %v14725_v30  ;;  %v14727_v28 = vpop.f32.mrb[135].mxu0  ;;  %v14729_v59 = vpop.f32.mrb[119].mxu1  ;;  %v5172_v30 = vsel %vm4916_vm1, %v4618_v63, %v5044_v44  ;;  %v4410_v63 = vadd.f32 %v14639_v8, %v17427_v41  ;;  %v4989_v8 = vmul.f32 0.2, %v4399_v60 }
 0x710   : > { %v14735_v33 = vpop.permute.xlu1 %3803  ;;  %v14737_v35 = vpop.permute.xlu0 %3808 }
 0x711   : > { %17423 = vst [vmem:[#allocation42_spill] sm:$0xff] %v14735_v33  ;;  %17424 = vst [vmem:[#allocation40_spill] sm:$0xff] %v14737_v35  ;;  %v4623_v35 = vadd.f32 %v14636_v19, %v14532_v10  ;;  %v4992_v41 = vmul.f32 0.2, %v4410_v63  ;;  %vm4864_vm15 = vcmp.ge.f32.partialorder %v4410_v63, 0.0  ;;  %v17430_v10 = vld [vmem:[#allocation47_spill] sm:$0xff] }
 0x712   : > { %5493 = vmax.xlane.f32.xlu1 %v5169_v2  ;;  %5499 = vmax.xlane.f32.xlu0 %v5172_v30  ;;  %v5119_v30 = vsel %vm4863_vm12, %v4407_v17, %v4991_v1  ;;  %v5114_v2 = vsel %vm4858_vm2, %v4386_v62, %v4986_v21  ;;  %v4634_v1 = vadd.f32 %v14641_v6, %v14538_v18 }
 0x713   : > { %v5175_v62 = vsel %vm4919_vm14, %v4631_v27, %v5047_v16  ;;  %v4402_v19 = vadd.f32 %v14643_v48, %v17430_v10  ;;  %vm4917_vm5 = vcmp.ge.f32.partialorder %v4623_v35, 0.0  ;;  %v4626_v10 = vadd.f32 %v14645_v57, %v14534_v50  ;;  %v17435_v50 = vld [vmem:[#allocation52_spill] sm:$0xff] }
 0x714   : > { %v14739_v0 = vpop.f32.mrb[136].mxu0  ;;  %v14741_v14 = vpop.f32.mrb[120].mxu1  ;;  %v5048_v27 = vmul.f32 0.2, %v4634_v1  ;;  %vm4920_vm0 = vcmp.ge.f32.partialorder %v4634_v1, 0.0  ;;  %v4415_v57 = vadd.f32 %v14661_v15, %v17435_v50  ;;  %v4639_v50 = vadd.f32 %v14663_v54, %v14540_v52  ;;  %v17442_v54 = vld [vmem:[#allocation51_spill] sm:$0xff] }
 0x715   : > { %v14745_v40 = vpop.f32.mrb[137].mxu0  ;;  %v14747_v4 = vpop.f32.mrb[121].mxu1  ;;  %vm4862_vm6 = vcmp.ge.f32.partialorder %v4402_v19, 0.0  ;;  %vm4918_vm9 = vcmp.ge.f32.partialorder %v4626_v10, 0.0 }
 0x716   : > { %17426 = vst [vmem:[#allocation41_spill] sm:$0xff] %v14747_v4  ;;  %v14751_v24 = vpop.f32.mrb[138].mxu0  ;;  %v11405_v44 = vpop.f32.mrb[122].mxu1  ;;  %5393 = vmax.xlane.f32.xlu1 %v5119_v30  ;;  %5383 = vmax.xlane.f32.xlu0 %v5114_v2  ;;  %v5170_v4 = vsel %vm4914_vm13, %v4610_v9, %v5042_v7  ;;  %v5045_v30 = vmul.f32 0.2, %v4623_v35  ;;  %v17431_v7 = vld [vmem:[#allocation54_spill] sm:$0xff] }
 0x717   : > { %v14754_v33 = vadd.f32 %v11405_v44, %v14574_v49  ;;  %v14756_v26 = vpop.f32.mrb[139].mxu0  ;;  %v14758_v36 = vpop.f32.mrb[123].mxu1  ;;  %vm4865_vm8 = vcmp.ge.f32.partialorder %v4415_v57, 0.0  ;;  %v5049_v52 = vmul.f32 0.2, %v4639_v50  ;;  %vm4921_vm10 = vcmp.ge.f32.partialorder %v4639_v50, 0.0 }
 0x718   : > { %v14764_v17 = vpop.permute.xlu1 %3813  ;;  %v14766_v49 = vpop.permute.xlu0 %3818 }
 0x719   : > { %17428 = vst [vmem:[#allocation39_spill] sm:$0xff] %v14764_v17  ;;  %17429 = vst [vmem:[#allocation46_spill] sm:$0xff] %v14766_v49  ;;  %v5120_v49 = vsel %vm4864_vm15, %v4410_v63, %v4992_v41 }
 0x71a   : > { %5505 = vmax.xlane.f32.xlu1 %v5175_v62  ;;  %5495 = vmax.xlane.f32.xlu0 %v5170_v4  ;;  %v4423_v4 = vadd.f32 %v14655_v23, %v17431_v7  ;;  %v5117_v62 = vsel %vm4861_vm3, %v4399_v60, %v4989_v8  ;;  %v4647_v23 = vadd.f32 %v14657_v45, %v14544_v31 }
 0x71b   : > { %v5173_v7 = vsel %vm4917_vm5, %v4623_v35, %v5045_v30  ;;  %v17438_v35 = vld [vmem:[#allocation53_spill] sm:$0xff] }
 0x71c   : > { %v14768_v21 = vpop.f32.mrb[140].mxu0  ;;  %v11408_v44 = vpop.f32.mrb[124].mxu1  ;;  %v4995_v17 = vmul.f32 0.2, %v4423_v4  ;;  %vm4867_vm4 = vcmp.ge.f32.partialorder %v4423_v4, 0.0  ;;  %vm4923_vm7 = vcmp.ge.f32.partialorder %v4647_v23, 0.0 }
 0x71d   : > { %v14773_v9 = vadd.f32 %v11408_v44, %v14586_v5  ;;  %v14775_v18 = vpop.f32.mrb[141].mxu0  ;;  %v14777_v6 = vpop.f32.mrb[125].mxu1  ;;  %v4990_v44 = vmul.f32 0.2, %v4402_v19  ;;  %v5051_v45 = vmul.f32 0.2, %v4647_v23 }
 0x71e   : > { %v14781_v16 = vpop.f32.mrb[142].mxu0  ;;  %v14783_v2 = vpop.f32.mrb[126].mxu1  ;;  %5389 = vmax.xlane.f32.xlu1 %v5117_v62  ;;  %5395 = vmax.xlane.f32.xlu0 %v5120_v49  ;;  %v5046_v49 = vmul.f32 0.2, %v4626_v10 }
 0x71f   : > { %17432 = vst [vmem:[#allocation44_spill] sm:$0xff] %v14783_v2  ;;  %v14785_v48 = vpop.f32.mrb[143].mxu0  ;;  %v14787_v5 = vpop.f32.mrb[127].mxu1  ;;  %v5176_v2 = vsel %vm4920_vm0, %v4634_v1, %v5048_v27  ;;  %v4426_v1 = vadd.f32 %v14667_v20, %v17438_v35  ;;  %v4650_v20 = vadd.f32 %v14669_v55, %v14546_v11  ;;  %v5179_v35 = vsel %vm4923_vm7, %v4647_v23, %v5051_v45  ;;  %v17443_v23 = vld [vmem:[#allocation58_spill] sm:$0xff] }
 0x720   : > { %v14793_v60 = vpop.permute.xlu1 %3823  ;;  %v14795_v63 = vpop.permute.xlu0 %3828 }
 0x721   : > { %17433 = vst [vmem:[#allocation45_spill] sm:$0xff] %v14793_v60  ;;  %17434 = vst [vmem:[#allocation43_spill] sm:$0xff] %v14795_v63  ;;  %v5174_v63 = vsel %vm4918_vm9, %v4626_v10, %v5046_v49  ;;  %vm4868_vm11 = vcmp.ge.f32.partialorder %v4426_v1, 0.0  ;;  %v5052_v55 = vmul.f32 0.2, %v4650_v20  ;;  %v4439_v49 = vadd.f32 %v14683_v37, %v17443_v23 }
 0x722   : > { %5501 = vmax.xlane.f32.xlu1 %v5173_v7  ;;  %5507 = vmax.xlane.f32.xlu0 %v5176_v2  ;;  %v5123_v2 = vsel %vm4867_vm4, %v4423_v4, %v4995_v17  ;;  %v5118_v7 = vsel %vm4862_vm6, %v4402_v19, %v4990_v44  ;;  %v4418_v44 = vadd.f32 %v14671_v29, %v17442_v54  ;;  %vm4924_vm1 = vcmp.ge.f32.partialorder %v4650_v20, 0.0 }
 0x723   : > { %v4642_v54 = vadd.f32 %v14673_v39, %v14542_v46  ;;  %v4663_v37 = vadd.f32 %v14685_v56, %v14552_v3  ;;  %v5177_v23 = vsel %vm4921_vm10, %v4639_v50, %v5049_v52  ;;  %vm4871_vm12 = vcmp.ge.f32.partialorder %v4439_v49, 0.0  ;;  %v17447_v46 = vld [vmem:[#allocation56_spill] sm:$0xff]  ;;  %v17449_v50 = vld [vmem:[#allocation57_spill] sm:$0xff] }
 0x724   : > { %v14797_v8 = vpop.f32.mrb[144].mxu0  ;;  %v14799_v41 = vpop.f32.mrb[128].mxu1  ;;  %v4994_v29 = vmul.f32 0.2, %v4418_v44  ;;  %vm4866_vm2 = vcmp.ge.f32.partialorder %v4418_v44, 0.0  ;;  %v4431_v39 = vadd.f32 %v14689_v43, %v17447_v46  ;;  %v4655_v46 = vadd.f32 %v14691_v42, %v14548_v38  ;;  %v17453_v42 = vld [vmem:[#allocation55_spill] sm:$0xff] }
 0x725   : > { %v14803_v62 = vpop.f32.mrb[145].mxu0  ;;  %v14805_v31 = vpop.f32.mrb[129].mxu1  ;;  %vm4922_vm13 = vcmp.ge.f32.partialorder %v4642_v54, 0.0  ;;  %v5055_v56 = vmul.f32 0.2, %v4663_v37  ;;  %vm4927_vm14 = vcmp.ge.f32.partialorder %v4663_v37, 0.0 }
 0x726   : > { %17436 = vst [vmem:[#allocation50_spill] sm:$0xff] %v14803_v62  ;;  %17437 = vst [vmem:[#allocation48_spill] sm:$0xff] %v14805_v31  ;;  %v14809_v30 = vpop.f32.mrb[146].mxu0  ;;  %v14811_v27 = vpop.f32.mrb[130].mxu1  ;;  %5401 = vmax.xlane.f32.xlu1 %v5123_v2  ;;  %5391 = vmax.xlane.f32.xlu0 %v5118_v7  ;;  %v4993_v31 = vmul.f32 0.2, %v4415_v57 }
 0x727   : > { %17439 = vst [vmem:[#allocation49_spill] sm:$0xff] %v14811_v27  ;;  %v14813_v60 = vpop.f32.mrb[147].mxu0  ;;  %v14815_v15 = vpop.f32.mrb[131].mxu1  ;;  %v4996_v62 = vmul.f32 0.2, %v4426_v1  ;;  %vm4869_vm3 = vcmp.ge.f32.partialorder %v4431_v39, 0.0 }
 0x728   : > { %v14821_v27 = vpop.permute.xlu1 %3833  ;;  %v14823_v17 = vpop.permute.xlu0 %3838  ;;  %v5121_v2 = vsel %vm4865_vm8, %v4415_v57, %v4993_v31  ;;  %v5053_v38 = vmul.f32 0.2, %v4655_v46  ;;  %vm4925_vm5 = vcmp.ge.f32.partialorder %v4655_v46, 0.0 }
 0x729   : > { %17440 = vst [vmem:[#allocation47_spill] sm:$0xff] %v14821_v27  ;;  %17441 = vst [vmem:[#allocation54_spill] sm:$0xff] %v14823_v17  ;;  %v5124_v7 = vsel %vm4868_vm11, %v4426_v1, %v4996_v62  ;;  %v4999_v27 = vmul.f32 0.2, %v4439_v49 }
 0x72a   : > { %5513 = vmax.xlane.f32.xlu1 %v5179_v35  ;;  %5503 = vmax.xlane.f32.xlu0 %v5174_v63 }
 0x72c   : > { %v14825_v19 = vpop.f32.mrb[148].mxu0  ;;  %v14827_v4 = vpop.f32.mrb[132].mxu1 }
 0x72d   : > { %v14831_v10 = vpop.f32.mrb[149].mxu0  ;;  %v14833_v11 = vpop.f32.mrb[133].mxu1 }
 0x72e   : > { %v14837_v45 = vpop.f32.mrb[150].mxu0  ;;  %v14839_v63 = vpop.f32.mrb[134].mxu1  ;;  %5397 = vmax.xlane.f32.xlu1 %v5121_v2  ;;  %5403 = vmax.xlane.f32.xlu0 %v5124_v7  ;;  %v5050_v2 = vmul.f32 0.2, %v4642_v54 }
 0x72f   : > { %17444 = vst [vmem:[#allocation52_spill] sm:$0xff] %v14839_v63  ;;  %v14841_v35 = vpop.f32.mrb[151].mxu0  ;;  %v14843_v17 = vpop.f32.mrb[135].mxu1  ;;  %v5180_v63 = vsel %vm4924_vm1, %v4650_v20, %v5052_v55  ;;  %v4442_v20 = vadd.f32 %v14695_v34, %v17449_v50  ;;  %v4997_v34 = vmul.f32 0.2, %v4431_v39 }
 0x730   : > { %v14849_v57 = vpop.permute.xlu1 %3843  ;;  %v14851_v62 = vpop.permute.xlu0 %3848 }
 0x731   : > { %17445 = vst [vmem:[#allocation53_spill] sm:$0xff] %v14849_v57  ;;  %17446 = vst [vmem:[#allocation51_spill] sm:$0xff] %v14851_v62  ;;  %v5178_v62 = vsel %vm4922_vm13, %v4642_v54, %v5050_v2  ;;  %v5000_v50 = vmul.f32 0.2, %v4442_v20  ;;  %vm4872_vm15 = vcmp.ge.f32.partialorder %v4442_v20, 0.0  ;;  %v4434_v54 = vadd.f32 %v14699_v51, %v17453_v42 }
 0x732   : > { %5509 = vmax.xlane.f32.xlu1 %v5177_v23  ;;  %5515 = vmax.xlane.f32.xlu0 %v5180_v63  ;;  %v5127_v63 = vsel %vm4871_vm12, %v4439_v49, %v4999_v27  ;;  %v5122_v23 = vsel %vm4866_vm2, %v4418_v44, %v4994_v29  ;;  %v5183_v27 = vsel %vm4927_vm14, %v4663_v37, %v5055_v56 }
 0x733   : > { %v5125_v56 = vsel %vm4869_vm3, %v4431_v39, %v4997_v34  ;;  %v4998_v42 = vmul.f32 0.2, %v4434_v54  ;;  %v5181_v39 = vsel %vm4925_vm5, %v4655_v46, %v5053_v38  ;;  %vm4870_vm6 = vcmp.ge.f32.partialorder %v4434_v54, 0.0 }
 0x734   : > { %v14853_v31 = vpop.f32.mrb[152].mxu0  ;;  %v14855_v1 = vpop.f32.mrb[136].mxu1 }
 0x735   : > { %v14859_v7 = vpop.f32.mrb[153].mxu0  ;;  %v14861_v3 = vpop.f32.mrb[137].mxu1 }
 0x736   : > { %17448 = vst [vmem:[#allocation58_spill] sm:$0xff] %v14861_v3  ;;  %v14865_v52 = vpop.f32.mrb[154].mxu0  ;;  %v14867_v55 = vpop.f32.mrb[138].mxu1  ;;  %5409 = vmax.xlane.f32.xlu1 %v5127_v63  ;;  %5399 = vmax.xlane.f32.xlu0 %v5122_v23  ;;  %v5128_v23 = vsel %vm4872_vm15, %v4442_v20, %v5000_v50 }
 0x737   : > { %17450 = vst [vmem:[#allocation56_spill] sm:$0xff] %v14867_v55  ;;  %v14869_v57 = vpop.f32.mrb[155].mxu0  ;;  %v14871_v43 = vpop.f32.mrb[139].mxu1  ;;  %v4666_v55 = vadd.f32 %v14697_v22, %v14554_v61  ;;  %v4455_v22 = vadd.f32 %v14711_v12, %v14452_v58 }
 0x738   : > { %v14875_v3 = vpop.permute.xlu1 %3853  ;;  %v14879_v44 = vpop.permute.xlu0 %3858 }
 0x739   : > { %17451 = vst [vmem:[#allocation57_spill] sm:$0xff] %v14875_v3  ;;  %17452 = vst [vmem:[#allocation81_spill] sm:$0xff] %v14879_v44  ;;  %v5056_v61 = vmul.f32 0.2, %v4666_v55  ;;  %vm4928_vm0 = vcmp.ge.f32.partialorder %v4666_v55, 0.0  ;;  %v17458_v3 = vld [vmem:[#allocation74_spill] sm:$0xff] }
 0x73a   : > { %5521 = vmax.xlane.f32.xlu1 %v5183_v27  ;;  %5511 = vmax.xlane.f32.xlu0 %v5178_v62  ;;  %v4658_v58 = vadd.f32 %v14701_v47, %v17458_v3  ;;  %v5003_v12 = vmul.f32 0.2, %v4455_v22  ;;  %vm4875_vm4 = vcmp.ge.f32.partialorder %v4455_v22, 0.0  ;;  %v17465_v3 = vld [vmem:[#allocation66_spill] sm:$0xff] }
 0x73b   : > { %v5184_v20 = vsel %vm4928_vm0, %v4666_v55, %v5056_v61  ;;  %v4458_v55 = vadd.f32 %v14723_v13, %v17465_v3  ;;  %vm4936_vm0 = vcmp.ge.f32.partialorder %v14754_v33, 0.0 }
 0x73c   : > { %v14881_v49 = vpop.f32.mrb[156].mxu0  ;;  %v14883_v29 = vpop.f32.mrb[140].mxu1  ;;  %vm4926_vm9 = vcmp.ge.f32.partialorder %v4658_v58, 0.0  ;;  %v5131_v38 = vsel %vm4875_vm4, %v4455_v22, %v5003_v12  ;;  %v17471_v12 = vld [vmem:[#allocation59_spill] sm:$0xff] }
 0x73d   : > { %v14887_v2 = vpop.f32.mrb[157].mxu0  ;;  %v14889_v63 = vpop.f32.mrb[141].mxu1  ;;  %vm4876_vm11 = vcmp.ge.f32.partialorder %v4458_v55, 0.0 }
 0x73e   : > { %17454 = vst [vmem:[#allocation55_spill] sm:$0xff] %v14889_v63  ;;  %v14893_v37 = vpop.f32.mrb[158].mxu0  ;;  %v14895_v62 = vpop.f32.mrb[142].mxu1  ;;  %5405 = vmax.xlane.f32.xlu1 %v5125_v56  ;;  %5411 = vmax.xlane.f32.xlu0 %v5128_v23  ;;  %v17459_v63 = vld [vmem:[#allocation72_spill] sm:$0xff]  ;;  %v5054_v56 = vmul.f32 0.2, %v4658_v58 }
 0x73f   : > { %17455 = vst [vmem:[#allocation82_spill] sm:$0xff] %v14895_v62  ;;  %v14897_v27 = vpop.f32.mrb[159].mxu0  ;;  %v14899_v44 = vpop.f32.mrb[143].mxu1  ;;  %v4679_v62 = vadd.f32 %v14713_v25, %v17459_v63  ;;  %v17462_v23 = vld [vmem:[#allocation60_spill] sm:$0xff]  ;;  %v5126_v63 = vsel %vm4870_vm6, %v4434_v54, %v4998_v42 }
 0x740   : > { %17456 = vst [vmem:[#allocation83_spill] sm:$0xff] %v14899_v44  ;;  %v14901_v51 = vpop.permute.xlu1 %3863  ;;  %v14907_v34 = vpop.permute.xlu0 %3868 }
 0x741   : > { %17457 = vst [vmem:[#allocation84_spill] sm:$0xff] %v14901_v51  ;;  %17460 = vst [vmem:[#allocation74_spill] sm:$0xff] %v14907_v34  ;;  %v4447_v51 = vadd.f32 %v14717_v53, %v17462_v23  ;;  %v5059_v25 = vmul.f32 0.2, %v4679_v62  ;;  %vm4931_vm7 = vcmp.ge.f32.partialorder %v4679_v62, 0.0 }
 0x742   : > { %5517 = vmax.xlane.f32.xlu1 %v5181_v39  ;;  %5523 = vmax.xlane.f32.xlu0 %v5184_v20  ;;  %v17466_v39 = vld [vmem:[#allocation65_spill] sm:$0xff]  ;;  %v5182_v20 = vsel %vm4926_vm9, %v4658_v58, %v5054_v56  ;;  %v5004_v34 = vmul.f32 0.2, %v4458_v55  ;;  %vm4939_vm9 = vcmp.ge.f32.partialorder %v14773_v9, 0.0 }
 0x743   : > { %v4671_v53 = vadd.f32 %v14719_v32, %v17466_v39  ;;  %v5187_v3 = vsel %vm4931_vm7, %v4679_v62, %v5059_v25  ;;  %vm4873_vm8 = vcmp.ge.f32.partialorder %v4447_v51, 0.0  ;;  %v4450_v32 = vadd.f32 %v14727_v28, %v17471_v12  ;;  %v17474_v28 = vld [vmem:[#allocation80_spill] sm:$0xff] }
 0x744   : > { %v14909_v50 = vpop.f32.mrb[144].mxu1  ;;  %v14915_v47 = vpop.permute.xlu1 %3873 }
 0x745   : > { %17461 = vst [vmem:[#allocation72_spill] sm:$0xff] %v14909_v50  ;;  %v14913_v44 = vpop.f32.mrb[145].mxu1  ;;  %17464 = vst [vmem:[#allocation85_spill] sm:$0xff] %v14915_v47  ;;  %v14925_v23 = vpop.permute.xlu0 %3878  ;;  %v5001_v47 = vmul.f32 0.2, %v4447_v51  ;;  %v17469_v50 = vld [vmem:[#allocation35_spill] sm:$0xff] }
 0x746   : > { %17463 = vst [vmem:[#allocation60_spill] sm:$0xff] %v14913_v44  ;;  %v14919_v46 = vpop.f32.mrb[146].mxu1  ;;  %5417 = vmax.xlane.f32.xlu1 %v5131_v38  ;;  %5407 = vmax.xlane.f32.xlu0 %v5126_v63  ;;  %17467 = vst [vmem:[#allocation66_spill] sm:$0xff] %v14925_v23  ;;  %v17468_v44 = vld [vmem:[#allocation30_spill] sm:$0xff]  ;;  %v5057_v42 = vmul.f32 0.2, %v4671_v53 }
 0x747   : > { %v14921_v61 = vpop.f32.mrb[147].mxu1  ;;  %v4682_v13 = vadd.f32 %v17469_v50, %v17468_v44  ;;  %v17472_v38 = vld [vmem:[#allocation67_spill] sm:$0xff]  ;;  %v5129_v62 = vsel %vm4873_vm8, %v4447_v51, %v5001_v47  ;;  %v5132_v50 = vsel %vm4876_vm11, %v4458_v55, %v5004_v34  ;;  %vm4929_vm10 = vcmp.ge.f32.partialorder %v4671_v53, 0.0 }
 0x748   : > { %v14929_v54 = vpop.permute.xlu1 %3883  ;;  %v4471_v63 = vadd.f32 %v14739_v0, %v17472_v38  ;;  %v17476_v0 = vld [vmem:[#allocation64_spill] sm:$0xff]  ;;  %v5185_v51 = vsel %vm4929_vm10, %v4671_v53, %v5057_v42  ;;  %vm4874_vm2 = vcmp.ge.f32.partialorder %v4450_v32, 0.0  ;;  %vm5741_vm8 = vcmask 7168  }
 0x749   : > { %17470 = vst [vmem:[#allocation65_spill] sm:$0xff] %v14929_v54  ;;  %v5060_v56 = vmul.f32 0.2, %v4682_v13  ;;  %vm4932_vm1 = vcmp.ge.f32.partialorder %v4682_v13, 0.0  ;;  %v14943_v39 = vpop.permute.xlu0 %3888  ;;  %v4695_v38 = vadd.f32 %v14741_v14, %v17476_v0 }
 0x74a   : > { %5529 = vmax.xlane.f32.xlu1 %v5187_v3  ;;  %5519 = vmax.xlane.f32.xlu0 %v5182_v20  ;;  %v5002_v20 = vmul.f32 0.2, %v4450_v32  ;;  %v4674_v3 = vadd.f32 %v14729_v59, %v17474_v28  ;;  %v5007_v54 = vmul.f32 0.2, %v4471_v63  ;;  %vm4879_vm12 = vcmp.ge.f32.partialorder %v4471_v63, 0.0 }
 0x74b   : > { %v5188_v34 = vsel %vm4932_vm1, %v4682_v13, %v5060_v56  ;;  %v5063_v28 = vmul.f32 0.2, %v4695_v38  ;;  %vm4935_vm13 = vcmp.ge.f32.partialorder %v4695_v38, 0.0 }
 0x74c   : > { %v14931_v22 = vpop.f32.mrb[148].mxu1  ;;  %v14947_v12 = vpop.permute.xlu1 %3893  ;;  %v5058_v55 = vmul.f32 0.2, %v4674_v3  ;;  %v5135_v13 = vsel %vm4879_vm12, %v4471_v63, %v5007_v54  ;;  %v5130_v42 = vsel %vm4874_vm2, %v4450_v32, %v5002_v20  ;;  %vm4930_vm14 = vcmp.ge.f32.partialorder %v4674_v3, 0.0  ;;  %v17484_v63 = vld [vmem:[#allocation68_spill] sm:$0xff] }
 0x74d   : > { %v14935_v58 = vpop.f32.mrb[149].mxu1  ;;  %17475 = vst [vmem:[#allocation35_spill] sm:$0xff] %v14947_v12  ;;  %v14957_v59 = vpop.permute.xlu0 %3898  ;;  %v17480_v12 = vld [vmem:[#allocation76_spill] sm:$0xff]  ;;  %v4466_v20 = vadd.f32 %v14756_v26, %v17484_v63  ;;  %v17486_v26 = vld [vmem:[#allocation13_spill] sm:$0xff] }
 0x74e   : > { %v14939_v44 = vpop.f32.mrb[150].mxu1  ;;  %5413 = vmax.xlane.f32.xlu1 %v5129_v62  ;;  %5419 = vmax.xlane.f32.xlu0 %v5132_v50  ;;  %v17477_v62 = vld [vmem:[#allocation75_spill] sm:$0xff]  ;;  %17479 = vst [vmem:[#allocation67_spill] sm:$0xff] %v14957_v59  ;;  %v4474_v14 = vadd.f32 %v14751_v24, %v17480_v12 }
 0x74f   : > { %v14941_v25 = vpop.f32.mrb[151].mxu1  ;;  %v4463_v50 = vadd.f32 %v14745_v40, %v17477_v62  ;;  %v17482_v40 = vld [vmem:[#allocation28_spill] sm:$0xff]  ;;  %vm4878_vm6 = vcmp.ge.f32.partialorder %v4466_v20, 0.0 }
 0x750   : > { %17473 = vst [vmem:[#allocation30_spill] sm:$0xff] %v14941_v25  ;;  %v14965_v0 = vpop.permute.xlu1 %3903  ;;  %v5008_v59 = vmul.f32 0.2, %v4474_v14  ;;  %v5186_v25 = vsel %vm4930_vm14, %v4674_v3, %v5058_v55  ;;  %vm4880_vm15 = vcmp.ge.f32.partialorder %v4474_v14, 0.0 }
 0x751   : > { %17481 = vst [vmem:[#allocation80_spill] sm:$0xff] %v14965_v0  ;;  %v5005_v62 = vmul.f32 0.2, %v4463_v50  ;;  %vm4877_vm3 = vcmp.ge.f32.partialorder %v4463_v50, 0.0  ;;  %v3909_v24 = vpop.permute.xlu0 %3908 }
 0x752   : > { %5525 = vmax.xlane.f32.xlu1 %v5185_v51  ;;  %5531 = vmax.xlane.f32.xlu0 %v5188_v34  ;;  %v17483_v51 = vld [vmem:[#allocation41_spill] sm:$0xff] }
 0x753   : > { %v4687_v34 = vadd.f32 %v17483_v51, %v17482_v40  ;;  %v5064_v40 = vmul.f32 0.2, %v14754_v33  ;;  %v17485_v51 = vld [vmem:[#allocation27_spill] sm:$0xff] }
 0x754   : > { %v14951_v47 = vpop.f32.mrb[152].mxu1  ;;  %v4487_v3 = vadd.f32 %v14768_v21, %v17485_v51 }
 0x755   : > { %v14955_v23 = vpop.f32.mrb[153].mxu1  ;;  %v5061_v32 = vmul.f32 0.2, %v4687_v34  ;;  %vm4933_vm5 = vcmp.ge.f32.partialorder %v4687_v34, 0.0  ;;  %v5192_v21 = vsel %vm4936_vm0, %v14754_v33, %v5064_v40  ;;  %v17491_v40 = vld [vmem:[#allocation44_spill] sm:$0xff] }
 0x756   : > { %17478 = vst [vmem:[#allocation59_spill] sm:$0xff] %v14955_v23  ;;  %v14961_v53 = vpop.f32.mrb[154].mxu1  ;;  %5425 = vmax.xlane.f32.xlu1 %v5135_v13  ;;  %5415 = vmax.xlane.f32.xlu0 %v5130_v42  ;;  %v5191_v23 = vsel %vm4935_vm13, %v4695_v38, %v5063_v28  ;;  %v3914_v42 = vpop.permute.xlu1 %3913  ;;  %v5136_v38 = vsel %vm4880_vm15, %v4474_v14, %v5008_v59  ;;  %v5011_v63 = vmul.f32 0.2, %v4487_v3  ;;  %vm4883_vm4 = vcmp.ge.f32.partialorder %v4487_v3, 0.0  ;;  %v17487_v59 = vld [vmem:[#allocation73_spill] sm:$0xff] }
 0x757   : > { %v14963_v56 = vpop.f32.mrb[155].mxu1  ;;  %v5189_v0 = vsel %vm4933_vm5, %v4687_v34, %v5061_v32  ;;  %v4479_v14 = vadd.f32 %v14775_v18, %v17487_v59  ;;  %v17489_v34 = vld [vmem:[#allocation29_spill] sm:$0xff]  ;;  %v17490_v32 = vld [vmem:[#allocation26_spill] sm:$0xff] }
 0x758   : > { %v4703_v18 = vadd.f32 %v14777_v6, %v17489_v34  ;;  %v5285_v59 = vld [vmem:[#allocation2 + $0x1c0] sm:$0xff] }
 0x759   : > { %vm4881_vm11 = vcmp.ge.f32.partialorder %v4479_v14, 0.0 }
 0x75a   : > { %5537 = vmax.xlane.f32.xlu1 %v5191_v23  ;;  %5527 = vmax.xlane.f32.xlu0 %v5186_v25  ;;  %v5133_v25 = vsel %vm4877_vm3, %v4463_v50, %v5005_v62  ;;  %v5067_v62 = vmul.f32 0.2, %v14773_v9  ;;  %vm4937_vm1 = vcmp.ge.f32.partialorder %v4703_v18, 0.0 }
 0x75c   : > { %v11440_v54 = vpop.f32.mrb[156].mxu1 }
 0x75d   : > { %v14971_v12 = vadd.f32 %v11440_v54, %v3909_v24  ;;  %v14973_v13 = vpop.f32.mrb[157].mxu1  ;;  %v4690_v24 = vadd.f32 %v14758_v36, %v17486_v26  ;;  %v5006_v54 = vmul.f32 0.2, %v4466_v20  ;;  %v4714_v26 = vadd.f32 %v17491_v40, %v17490_v32  ;;  %v5230_v32 = vld [vmem:[#allocation2 + $0x8] sm:$0xff]  ;;  %v5232_v40 = vld [vmem:[#allocation2 + $0x18] sm:$0xff] }
 0x75e   : > { %v11441_v23 = vpop.f32.mrb[158].mxu1  ;;  %5421 = vmax.xlane.f32.xlu1 %v5133_v25  ;;  %5427 = vmax.xlane.f32.xlu0 %v5136_v38  ;;  %v5287_v25 = vld [vmem:[#allocation2 + $0x1d0] sm:$0xff] }
 0x75f   : > { %v14978_v55 = vadd.f32 %v11441_v23, %v3914_v42  ;;  %v14980_v28 = vpop.f32.mrb[159].mxu1  ;;  %v5062_v50 = vmul.f32 0.2, %v4690_v24  ;;  %v17488_v42 = vld [vmem:[#allocation18_spill] sm:$0xff]  ;;  %v5139_v23 = vsel %vm4883_vm4, %v4487_v3, %v5011_v63  ;;  %v5134_v36 = vsel %vm4878_vm6, %v4466_v20, %v5006_v54  ;;  %v5231_v38 = vld [vmem:[#allocation2 + $0x10] sm:$0xff] }
 0x760   : > { %v4490_v51 = vadd.f32 %v14781_v16, %v17488_v42  ;;  %vm4934_vm7 = vcmp.ge.f32.partialorder %v4690_v24, 0.0  ;;  %v5009_v3 = vmul.f32 0.2, %v4479_v14  ;;  %v5195_v54 = vsel %vm4939_vm9, %v14773_v9, %v5067_v62  ;;  %v5229_v42 = vld [vmem:[#allocation2] sm:$0xff] }
 0x761   : > { %v5190_v63 = vsel %vm4934_vm7, %v4690_v24, %v5062_v50  ;;  %v5068_v9 = vmul.f32 0.2, %v4714_v26  ;;  %v17493_v24 = vld [vmem:[#allocation15_spill] sm:$0xff]  ;;  %vm4940_vm12 = vcmp.ge.f32.partialorder %v4714_v26, 0.0 }
 0x762   : > { %5533 = vmax.xlane.f32.xlu1 %v5189_v0  ;;  %5539 = vmax.xlane.f32.xlu0 %v5192_v21  ;;  %v5012_v20 = vmul.f32 0.2, %v4490_v51  ;;  %vm4884_vm10 = vcmp.ge.f32.partialorder %v4490_v51, 0.0  ;;  %v4503_v50 = vadd.f32 %v14797_v8, %v17493_v24  ;;  %v5137_v62 = vsel %vm4881_vm11, %v4479_v14, %v5009_v3  ;;  %v17497_v24 = vld [vmem:[#allocation50_spill] sm:$0xff] }
 0x764   : > { %v5140_v34 = vsel %vm4884_vm10, %v4490_v51, %v5012_v20  ;;  %v5015_v14 = vmul.f32 0.2, %v4503_v50  ;;  %v17495_v51 = vld [vmem:[#allocation34_spill] sm:$0xff]  ;;  %vm4887_vm2 = vcmp.ge.f32.partialorder %v4503_v50, 0.0 }
 0x765   : > { %v4727_v3 = vadd.f32 %v14799_v41, %v17495_v51 }
 0x766   : > { %5433 = vmax.xlane.f32.xlu1 %v5139_v23  ;;  %5423 = vmax.xlane.f32.xlu0 %v5134_v36  ;;  %v5065_v36 = vmul.f32 0.2, %v4703_v18 }
 0x767   : > { %v5474_v33 = vpop.xlane.xlu1 %5473  ;;  %v5362_v0 = vpop.xlane.xlu0 %5361  ;;  %vm4943_vm14 = vcmp.ge.f32.partialorder %v4727_v3, 0.0 }
 0x768   : > { %v5671_v21 = vmax.f32 %v5287_v25, %v5474_v33  ;;  %v5615_v16 = vmax.f32 %v5231_v38, %v5362_v0  ;;  %v17492_v25 = vld [vmem:[#allocation69_spill] sm:$0xff]  ;;  %v5193_v20 = vsel %vm4937_vm1, %v4703_v18, %v5065_v36  ;;  %v5071_v18 = vmul.f32 0.2, %v4727_v3 }
 0x769   : > { %v4482_v38 = vadd.f32 %v14785_v48, %v17492_v25 }
 0x76a   : > { %5800 = vst.msk [vmem:[#allocation2 + $0x1d0] sm:$0xff] %vm5741_vm8, %v5671_v21  ;;  %5744 = vst.msk [vmem:[#allocation2 + $0x10] sm:$0xff] %vm5741_vm8, %v5615_v16  ;;  %5545 = vmax.xlane.f32.xlu1 %v5195_v54  ;;  %5535 = vmax.xlane.f32.xlu0 %v5190_v63  ;;  %v17494_v54 = vld [vmem:[#allocation62_spill] sm:$0xff] }
 0x76b   : > { %v5470_v6 = vpop.xlane.xlu1 %5469  ;;  %v5358_v23 = vpop.xlane.xlu0 %5357  ;;  %v5010_v16 = vmul.f32 0.2, %v4482_v38  ;;  %v4706_v63 = vadd.f32 %v14787_v5, %v17494_v54  ;;  %vm4882_vm13 = vcmp.ge.f32.partialorder %v4482_v38, 0.0 }
 0x76c   : > { %v5669_v33 = vmax.f32 %v5285_v59, %v5470_v6  ;;  %v5613_v0 = vmax.f32 %v5229_v42, %v5358_v23  ;;  %v5196_v42 = vsel %vm4940_vm12, %v4714_v26, %v5068_v9  ;;  %v5235_v6 = vld [vmem:[#allocation2 + $0x30] sm:$0xff]  ;;  %v5288_v23 = vld [vmem:[#allocation2 + $0x1d8] sm:$0xff]  ;;  %v17498_v26 = vld [vmem:[#allocation77_spill] sm:$0xff]  ;;  %v5143_v9 = vsel %vm4887_vm2, %v4503_v50, %v5015_v14 }
 0x76d   : > { %v4506_v36 = vadd.f32 %v14809_v30, %v17498_v26  ;;  %vm4938_vm3 = vcmp.ge.f32.partialorder %v4706_v63, 0.0 }
 0x76e   : > { %5798 = vst.msk [vmem:[#allocation2 + $0x1c0] sm:$0xff] %vm5741_vm8, %v5669_v33  ;;  %5742 = vst.msk [vmem:[#allocation2] sm:$0xff] %vm5741_vm8, %v5613_v0  ;;  %5429 = vmax.xlane.f32.xlu1 %v5137_v62  ;;  %5435 = vmax.xlane.f32.xlu0 %v5140_v34  ;;  %v5066_v33 = vmul.f32 0.2, %v4706_v63  ;;  %v17496_v0 = vld [vmem:[#allocation16_spill] sm:$0xff] }
 0x76f   : > { %v5360_v21 = vpop.xlane.xlu1 %5359  ;;  %v5364_v48 = vpop.xlane.xlu0 %5363  ;;  %v4495_v62 = vadd.f32 %v17497_v24, %v17496_v0  ;;  %v5016_v14 = vmul.f32 0.2, %v4506_v36  ;;  %vm4888_vm5 = vcmp.ge.f32.partialorder %v4506_v36, 0.0 }
 0x770   : > { %v5614_v59 = vmax.f32 %v5230_v32, %v5360_v21  ;;  %v5616_v8 = vmax.f32 %v5232_v40, %v5364_v48  ;;  %v5138_v32 = vsel %vm4882_vm13, %v4482_v38, %v5010_v16  ;;  %v5291_v40 = vld [vmem:[#allocation2 + $0x1f0] sm:$0xff]  ;;  %v5286_v21 = vld [vmem:[#allocation2 + $0x1c8] sm:$0xff] }
 0x771   : > { %v5013_v16 = vmul.f32 0.2, %v4495_v62  ;;  %vm4885_vm15 = vcmp.ge.f32.partialorder %v4495_v62, 0.0 }
 0x772   : > { %5743 = vst.msk [vmem:[#allocation2 + $0x8] sm:$0xff] %vm5741_vm8, %v5614_v59  ;;  %5745 = vst.msk [vmem:[#allocation2 + $0x18] sm:$0xff] %vm5741_vm8, %v5616_v8  ;;  %5541 = vmax.xlane.f32.xlu1 %v5193_v20  ;;  %5547 = vmax.xlane.f32.xlu0 %v5196_v42  ;;  %v17499_v59 = vld [vmem:[#allocation63_spill] sm:$0xff]  ;;  %v17500_v8 = vld [vmem:[#allocation48_spill] sm:$0xff] }
 0x773   : > { %v5370_v25 = vpop.xlane.xlu1 %5369  ;;  %v5476_v5 = vpop.xlane.xlu0 %5475  ;;  %v4719_v51 = vadd.f32 %v17500_v8, %v17499_v59  ;;  %v17501_v20 = vld [vmem:[#allocation32_spill] sm:$0xff]  ;;  %v17502_v42 = vld [vmem:[#allocation49_spill] sm:$0xff] }
 0x774   : > { %v5619_v34 = vmax.f32 %v5235_v6, %v5370_v25  ;;  %v5672_v41 = vmax.f32 %v5288_v23, %v5476_v5  ;;  %v4730_v30 = vadd.f32 %v17502_v42, %v17501_v20  ;;  %v5199_v6 = vsel %vm4943_vm14, %v4727_v3, %v5071_v18  ;;  %v5233_v25 = vld [vmem:[#allocation2 + $0x20] sm:$0xff]  ;;  %v5236_v5 = vld [vmem:[#allocation2 + $0x38] sm:$0xff] }
 0x775   : > { %v5194_v23 = vsel %vm4938_vm3, %v4706_v63, %v5066_v33  ;;  %v17504_v63 = vld [vmem:[#allocation79_spill] sm:$0xff]  ;;  %v5141_v18 = vsel %vm4885_vm15, %v4495_v62, %v5013_v16  ;;  %vm4941_vm0 = vcmp.ge.f32.partialorder %v4719_v51, 0.0  ;;  %v17505_v8 = vld [vmem:[#allocation25_spill] sm:$0xff] }
 0x776   : > { %5748 = vst.msk [vmem:[#allocation2 + $0x30] sm:$0xff] %vm5741_vm8, %v5619_v34  ;;  %5801 = vst.msk [vmem:[#allocation2 + $0x1d8] sm:$0xff] %vm5741_vm8, %v5672_v41  ;;  %5441 = vmax.xlane.f32.xlu1 %v5143_v9  ;;  %5431 = vmax.xlane.f32.xlu0 %v5138_v32  ;;  %v5069_v34 = vmul.f32 0.2, %v4719_v51  ;;  %v17503_v41 = vld [vmem:[#allocation17_spill] sm:$0xff]  ;;  %v4519_v33 = vadd.f32 %v14825_v19, %v17504_v63  ;;  %vm4944_vm4 = vcmp.ge.f32.partialorder %v4730_v30, 0.0 }
 0x777   : > { %v5482_v48 = vpop.xlane.xlu1 %5481  ;;  %v5472_v54 = vpop.xlane.xlu0 %5471  ;;  %v4498_v26 = vadd.f32 %v14813_v60, %v17503_v41  ;;  %v5072_v3 = vmul.f32 0.2, %v4730_v30  ;;  %v4722_v20 = vadd.f32 %v14815_v15, %v17505_v8 }
 0x778   : > { %v5675_v50 = vmax.f32 %v5291_v40, %v5482_v48  ;;  %v5670_v38 = vmax.f32 %v5286_v21, %v5472_v54  ;;  %v5144_v40 = vsel %vm4888_vm5, %v4506_v36, %v5016_v14  ;;  %v5289_v21 = vld [vmem:[#allocation2 + $0x1e0] sm:$0xff]  ;;  %v5292_v48 = vld [vmem:[#allocation2 + $0x1f8] sm:$0xff]  ;;  %v5019_v62 = vmul.f32 0.2, %v4519_v33  ;;  %v17506_v36 = vld [vmem:[#allocation38_spill] sm:$0xff] }
 0x779   : > { %v5014_v59 = vmul.f32 0.2, %v4498_v26  ;;  %v5200_v16 = vsel %vm4944_vm4, %v4730_v30, %v5072_v3  ;;  %v5239_v14 = vld [vmem:[#allocation2 + $0x50] sm:$0xff]  ;;  %vm4891_vm6 = vcmp.ge.f32.partialorder %v4519_v33, 0.0  ;;  %vm4886_vm9 = vcmp.ge.f32.partialorder %v4498_v26, 0.0  ;;  %v17508_v30 = vld [vmem:[#allocation14_spill] sm:$0xff] }
 0x77a   : > { %5804 = vst.msk [vmem:[#allocation2 + $0x1f0] sm:$0xff] %vm5741_vm8, %v5675_v50  ;;  %5799 = vst.msk [vmem:[#allocation2 + $0x1c8] sm:$0xff] %vm5741_vm8, %v5670_v38  ;;  %5553 = vmax.xlane.f32.xlu1 %v5199_v6  ;;  %5543 = vmax.xlane.f32.xlu0 %v5194_v23  ;;  %v4743_v50 = vadd.f32 %v14827_v4, %v17506_v36  ;;  %v5197_v38 = vsel %vm4941_vm0, %v4719_v51, %v5069_v34  ;;  %v5234_v6 = vld [vmem:[#allocation2 + $0x28] sm:$0xff]  ;;  %vm4942_vm11 = vcmp.ge.f32.partialorder %v4722_v20, 0.0 }
 0x77b   : > { %v5366_v0 = vpop.xlane.xlu1 %5365  ;;  %v5372_v24 = vpop.xlane.xlu0 %5371  ;;  %v4522_v34 = vadd.f32 %v14837_v45, %v17508_v30  ;;  %v5147_v41 = vsel %vm4891_vm6, %v4519_v33, %v5019_v62  ;;  %v5290_v3 = vld [vmem:[#allocation2 + $0x1e8] sm:$0xff]  ;;  %v17514_v30 = vld [vmem:[#allocation31_spill] sm:$0xff] }
 0x77c   : > { %v5617_v9 = vmax.f32 %v5233_v25, %v5366_v0  ;;  %v5620_v32 = vmax.f32 %v5236_v5, %v5372_v24  ;;  %v5070_v25 = vmul.f32 0.2, %v4722_v20  ;;  %v17507_v5 = vld [vmem:[#allocation71_spill] sm:$0xff]  ;;  %v5075_v51 = vmul.f32 0.2, %v4743_v50 }
 0x77d   : > { %v4511_v0 = vadd.f32 %v14831_v10, %v17507_v5  ;;  %vm4947_vm7 = vcmp.ge.f32.partialorder %v4743_v50, 0.0  ;;  %vm4892_vm1 = vcmp.ge.f32.partialorder %v4522_v34, 0.0  ;;  %v5293_v5 = vld [vmem:[#allocation2 + $0x200] sm:$0xff] }
 0x77e   : > { %5746 = vst.msk [vmem:[#allocation2 + $0x20] sm:$0xff] %vm5741_vm8, %v5617_v9  ;;  %5749 = vst.msk [vmem:[#allocation2 + $0x38] sm:$0xff] %vm5741_vm8, %v5620_v32  ;;  %5437 = vmax.xlane.f32.xlu1 %v5141_v18  ;;  %5443 = vmax.xlane.f32.xlu0 %v5144_v40  ;;  %v5142_v9 = vsel %vm4886_vm9, %v4498_v26, %v5014_v59  ;;  %v5295_v32 = vld [vmem:[#allocation2 + $0x210] sm:$0xff]  ;;  %v17509_v18 = vld [vmem:[#allocation33_spill] sm:$0xff]  ;;  %v5203_v59 = vsel %vm4947_vm7, %v4743_v50, %v5075_v51 }
 0x77f   : > { %v5478_v54 = vpop.xlane.xlu1 %5477  ;;  %v5484_v60 = vpop.xlane.xlu0 %5483  ;;  %v4735_v40 = vadd.f32 %v14833_v11, %v17509_v18  ;;  %v5198_v8 = vsel %vm4942_vm11, %v4722_v20, %v5070_v25  ;;  %vm4889_vm10 = vcmp.ge.f32.partialorder %v4511_v0, 0.0  ;;  %v17513_v20 = vld [vmem:[#allocation21_spill] sm:$0xff]  ;;  %v5238_v18 = vld [vmem:[#allocation2 + $0x48] sm:$0xff] }
 0x780   : > { %v5673_v42 = vmax.f32 %v5289_v21, %v5478_v54  ;;  %v5676_v19 = vmax.f32 %v5292_v48, %v5484_v60  ;;  %v17510_v21 = vld [vmem:[#allocation36_spill] sm:$0xff]  ;;  %v5017_v54 = vmul.f32 0.2, %v4511_v0  ;;  %v5020_v60 = vmul.f32 0.2, %v4522_v34 }
 0x781   : > { %v17511_v48 = vld [vmem:[#allocation52_spill] sm:$0xff]  ;;  %v5073_v36 = vmul.f32 0.2, %v4735_v40  ;;  %vm4945_vm12 = vcmp.ge.f32.partialorder %v4735_v40, 0.0 }
 0x782   : > { %5802 = vst.msk [vmem:[#allocation2 + $0x1e0] sm:$0xff] %vm5741_vm8, %v5673_v42  ;;  %5805 = vst.msk [vmem:[#allocation2 + $0x1f8] sm:$0xff] %vm5741_vm8, %v5676_v19  ;;  %5549 = vmax.xlane.f32.xlu1 %v5197_v38  ;;  %5555 = vmax.xlane.f32.xlu0 %v5200_v16  ;;  %v4746_v45 = vadd.f32 %v17511_v48, %v17510_v21  ;;  %v5237_v42 = vld [vmem:[#allocation2 + $0x40] sm:$0xff]  ;;  %v5240_v19 = vld [vmem:[#allocation2 + $0x58] sm:$0xff]  ;;  %v5148_v25 = vsel %vm4892_vm1, %v4522_v34, %v5020_v60 }
 0x783   : > { %v5378_v23 = vpop.xlane.xlu1 %5377  ;;  %v5368_v15 = vpop.xlane.xlu0 %5367  ;;  %v17512_v38 = vld [vmem:[#allocation70_spill] sm:$0xff]  ;;  %v17515_v34 = vld [vmem:[#allocation40_spill] sm:$0xff] }
 0x784   : > { %v5623_v24 = vmax.f32 %v5239_v14, %v5378_v23  ;;  %v5618_v4 = vmax.f32 %v5234_v6, %v5368_v15  ;;  %v4514_v16 = vadd.f32 %v14841_v35, %v17512_v38  ;;  %v5076_v50 = vmul.f32 0.2, %v4746_v45 }
 0x785   : > { %v4535_v23 = vadd.f32 %v14853_v31, %v17513_v20  ;;  %v5145_v15 = vsel %vm4889_vm10, %v4511_v0, %v5017_v54  ;;  %vm4948_vm2 = vcmp.ge.f32.partialorder %v4746_v45, 0.0 }
 0x786   : > { %5752 = vst.msk [vmem:[#allocation2 + $0x50] sm:$0xff] %vm5741_vm8, %v5623_v24  ;;  %5747 = vst.msk [vmem:[#allocation2 + $0x28] sm:$0xff] %vm5741_vm8, %v5618_v4  ;;  %5449 = vmax.xlane.f32.xlu1 %v5147_v41  ;;  %5439 = vmax.xlane.f32.xlu0 %v5142_v9  ;;  %v5296_v24 = vld [vmem:[#allocation2 + $0x218] sm:$0xff]  ;;  %v5018_v51 = vmul.f32 0.2, %v4514_v16  ;;  %v4738_v41 = vadd.f32 %v14843_v17, %v17514_v30  ;;  %vm4890_vm14 = vcmp.ge.f32.partialorder %v4514_v16, 0.0 }
 0x787   : > { %v5490_v63 = vpop.xlane.xlu1 %5489  ;;  %v5480_v10 = vpop.xlane.xlu0 %5479  ;;  %v5023_v0 = vmul.f32 0.2, %v4535_v23  ;;  %vm4895_vm13 = vcmp.ge.f32.partialorder %v4535_v23, 0.0  ;;  %v17522_v30 = vld [vmem:[#allocation20_spill] sm:$0xff] }
 0x788   : > { %v5679_v33 = vmax.f32 %v5295_v32, %v5490_v63  ;;  %v5674_v26 = vmax.f32 %v5290_v3, %v5480_v10  ;;  %v4759_v32 = vadd.f32 %v14855_v1, %v17515_v34  ;;  %v5201_v3 = vsel %vm4945_vm12, %v4735_v40, %v5073_v36  ;;  %v5243_v10 = vld [vmem:[#allocation2 + $0x70] sm:$0xff]  ;;  %v17519_v36 = vld [vmem:[#allocation58_spill] sm:$0xff] }
 0x789   : > { %v5204_v63 = vsel %vm4948_vm2, %v4746_v45, %v5076_v50  ;;  %v5074_v48 = vmul.f32 0.2, %v4738_v41  ;;  %v17517_v45 = vld [vmem:[#allocation19_spill] sm:$0xff]  ;;  %vm4946_vm15 = vcmp.ge.f32.partialorder %v4738_v41, 0.0 }
 0x78a   : > { %5808 = vst.msk [vmem:[#allocation2 + $0x210] sm:$0xff] %vm5741_vm8, %v5679_v33  ;;  %5803 = vst.msk [vmem:[#allocation2 + $0x1e8] sm:$0xff] %vm5741_vm8, %v5674_v26  ;;  %5561 = vmax.xlane.f32.xlu1 %v5203_v59  ;;  %5551 = vmax.xlane.f32.xlu0 %v5198_v8  ;;  %v17516_v33 = vld [vmem:[#allocation22_spill] sm:$0xff]  ;;  %v5079_v40 = vmul.f32 0.2, %v4759_v32  ;;  %v4538_v60 = vadd.f32 %v14865_v52, %v17517_v45  ;;  %v5151_v59 = vsel %vm4895_vm13, %v4535_v23, %v5023_v0 }
 0x78b   : > { %v5374_v11 = vpop.xlane.xlu1 %5373  ;;  %v5380_v62 = vpop.xlane.xlu0 %5379  ;;  %v4527_v26 = vadd.f32 %v14859_v7, %v17516_v33  ;;  %v5146_v8 = vsel %vm4890_vm14, %v4514_v16, %v5018_v51  ;;  %vm4951_vm3 = vcmp.ge.f32.partialorder %v4759_v32, 0.0 }
 0x78c   : > { %v5621_v14 = vmax.f32 %v5237_v42, %v5374_v11  ;;  %v5624_v6 = vmax.f32 %v5240_v19, %v5380_v62  ;;  %v5299_v42 = vld [vmem:[#allocation2 + $0x230] sm:$0xff]  ;;  %v5294_v19 = vld [vmem:[#allocation2 + $0x208] sm:$0xff]  ;;  %v17518_v62 = vld [vmem:[#allocation37_spill] sm:$0xff]  ;;  %v5024_v23 = vmul.f32 0.2, %v4538_v60  ;;  %vm4896_vm0 = vcmp.ge.f32.partialorder %v4538_v60, 0.0 }
 0x78d   : > { %v4751_v38 = vadd.f32 %v17519_v36, %v17518_v62  ;;  %v5021_v20 = vmul.f32 0.2, %v4527_v26  ;;  %vm4893_vm5 = vcmp.ge.f32.partialorder %v4527_v26, 0.0 }
 0x78e   : > { %5750 = vst.msk [vmem:[#allocation2 + $0x40] sm:$0xff] %vm5741_vm8, %v5621_v14  ;;  %5753 = vst.msk [vmem:[#allocation2 + $0x58] sm:$0xff] %vm5741_vm8, %v5624_v6  ;;  %5445 = vmax.xlane.f32.xlu1 %v5145_v15  ;;  %5451 = vmax.xlane.f32.xlu0 %v5148_v25  ;;  %v17520_v14 = vld [vmem:[#allocation39_spill] sm:$0xff]  ;;  %v17521_v6 = vld [vmem:[#allocation56_spill] sm:$0xff]  ;;  %v5207_v15 = vsel %vm4951_vm3, %v4759_v32, %v5079_v40  ;;  %v5202_v25 = vsel %vm4946_vm15, %v4738_v41, %v5074_v48 }
 0x78f   : > { %v5486_v4 = vpop.xlane.xlu1 %5485  ;;  %v5492_v35 = vpop.xlane.xlu0 %5491  ;;  %v4762_v52 = vadd.f32 %v17521_v6, %v17520_v14  ;;  %v5077_v51 = vmul.f32 0.2, %v4751_v38  ;;  %v17523_v41 = vld [vmem:[#allocation24_spill] sm:$0xff]  ;;  %vm4949_vm4 = vcmp.ge.f32.partialorder %v4751_v38, 0.0  ;;  %v17524_v48 = vld [vmem:[#allocation42_spill] sm:$0xff] }
 0x790   : > { %v5677_v9 = vmax.f32 %v5293_v5, %v5486_v4  ;;  %v5680_v31 = vmax.f32 %v5296_v24, %v5492_v35  ;;  %v5241_v5 = vld [vmem:[#allocation2 + $0x60] sm:$0xff]  ;;  %v5244_v24 = vld [vmem:[#allocation2 + $0x78] sm:$0xff]  ;;  %v4551_v32 = vadd.f32 %v14881_v49, %v17523_v41  ;;  %v4754_v33 = vadd.f32 %v14871_v43, %v17524_v48 }
 0x791   : > { %v5080_v34 = vmul.f32 0.2, %v4762_v52  ;;  %vm4952_vm6 = vcmp.ge.f32.partialorder %v4762_v52, 0.0  ;;  %v5205_v45 = vsel %vm4949_vm4, %v4751_v38, %v5077_v51  ;;  %v17527_v38 = vld [vmem:[#allocation23_spill] sm:$0xff]  ;;  %v17534_v48 = vld [vmem:[#allocation72_spill] sm:$0xff] }
 0x792   : > { %5806 = vst.msk [vmem:[#allocation2 + $0x200] sm:$0xff] %vm5741_vm8, %v5677_v9  ;;  %5809 = vst.msk [vmem:[#allocation2 + $0x218] sm:$0xff] %vm5741_vm8, %v5680_v31  ;;  %5557 = vmax.xlane.f32.xlu1 %v5201_v3  ;;  %5563 = vmax.xlane.f32.xlu0 %v5204_v63  ;;  %v4530_v9 = vadd.f32 %v14869_v57, %v17522_v30  ;;  %v5149_v3 = vsel %vm4893_vm5, %v4527_v26, %v5021_v20  ;;  %v5027_v26 = vmul.f32 0.2, %v4551_v32  ;;  %v17528_v20 = vld [vmem:[#allocation46_spill] sm:$0xff] }
 0x793   : > { %v5386_v21 = vpop.xlane.xlu1 %5385  ;;  %v5376_v17 = vpop.xlane.xlu0 %5375  ;;  %v5152_v63 = vsel %vm4896_vm0, %v4538_v60, %v5024_v23  ;;  %v5208_v60 = vsel %vm4952_vm6, %v4762_v52, %v5080_v34  ;;  %vm4899_vm9 = vcmp.ge.f32.partialorder %v4551_v32, 0.0  ;;  %v4554_v14 = vadd.f32 %v14893_v37, %v17527_v38  ;;  %v5248_v34 = vld [vmem:[#allocation2 + $0x98] sm:$0xff]  ;;  %v5251_v38 = vld [vmem:[#allocation2 + $0xb0] sm:$0xff] }
 0x794   : > { %v5627_v54 = vmax.f32 %v5243_v10, %v5386_v21  ;;  %v5622_v1 = vmax.f32 %v5238_v18, %v5376_v17  ;;  %v5297_v10 = vld [vmem:[#allocation2 + $0x220] sm:$0xff]  ;;  %v5300_v18 = vld [vmem:[#allocation2 + $0x238] sm:$0xff]  ;;  %v5022_v17 = vmul.f32 0.2, %v4530_v9  ;;  %vm4894_vm7 = vcmp.ge.f32.partialorder %v4530_v9, 0.0 }
 0x795   : > { %v5155_v6 = vsel %vm4899_vm9, %v4551_v32, %v5027_v26  ;;  %vm4950_vm10 = vcmp.ge.f32.partialorder %v4754_v33, 0.0  ;;  %v5028_v30 = vmul.f32 0.2, %v4554_v14  ;;  %vm4900_vm12 = vcmp.ge.f32.partialorder %v4554_v14, 0.0  ;;  %v5301_v26 = vld [vmem:[#allocation2 + $0x240] sm:$0xff] }
 0x796   : > { %5756 = vst.msk [vmem:[#allocation2 + $0x70] sm:$0xff] %vm5741_vm8, %v5627_v54  ;;  %5751 = vst.msk [vmem:[#allocation2 + $0x48] sm:$0xff] %vm5741_vm8, %v5622_v1  ;;  %5457 = vmax.xlane.f32.xlu1 %v5151_v59  ;;  %5447 = vmax.xlane.f32.xlu0 %v5146_v8  ;;  %v17525_v1 = vld [vmem:[#allocation43_spill] sm:$0xff]  ;;  %v5242_v8 = vld [vmem:[#allocation2 + $0x68] sm:$0xff]  ;;  %v5150_v52 = vsel %vm4894_vm7, %v4530_v9, %v5022_v17 }
 0x797   : > { %v5498_v11 = vpop.xlane.xlu1 %5497  ;;  %v5488_v7 = vpop.xlane.xlu0 %5487  ;;  %v4775_v40 = vadd.f32 %v14883_v29, %v17525_v1  ;;  %v5247_v59 = vld [vmem:[#allocation2 + $0x90] sm:$0xff]  ;;  %v5304_v1 = vld [vmem:[#allocation2 + $0x258] sm:$0xff] }
 0x798   : > { %v5683_v50 = vmax.f32 %v5299_v42, %v5498_v11  ;;  %v5678_v16 = vmax.f32 %v5294_v19, %v5488_v7  ;;  %v5078_v19 = vmul.f32 0.2, %v4754_v33  ;;  %v17526_v11 = vld [vmem:[#allocation78_spill] sm:$0xff]  ;;  %v17533_v17 = vld [vmem:[#allocation51_spill] sm:$0xff] }
 0x799   : > { %v4543_v7 = vadd.f32 %v14887_v2, %v17526_v11  ;;  %v5083_v36 = vmul.f32 0.2, %v4775_v40  ;;  %vm4955_vm11 = vcmp.ge.f32.partialorder %v4775_v40, 0.0  ;;  %v17529_v2 = vld [vmem:[#allocation55_spill] sm:$0xff] }
 0x79a   : > { %5812 = vst.msk [vmem:[#allocation2 + $0x230] sm:$0xff] %vm5741_vm8, %v5683_v50  ;;  %5807 = vst.msk [vmem:[#allocation2 + $0x208] sm:$0xff] %vm5741_vm8, %v5678_v16  ;;  %5569 = vmax.xlane.f32.xlu1 %v5207_v15  ;;  %5559 = vmax.xlane.f32.xlu0 %v5202_v25  ;;  %v5303_v50 = vld [vmem:[#allocation2 + $0x250] sm:$0xff]  ;;  %v5298_v16 = vld [vmem:[#allocation2 + $0x228] sm:$0xff]  ;;  %v4767_v23 = vadd.f32 %v17529_v2, %v17528_v20 }
 0x79b   : > { %v5382_v4 = vpop.xlane.xlu1 %5381  ;;  %v5388_v35 = vpop.xlane.xlu0 %5387  ;;  %v5025_v51 = vmul.f32 0.2, %v4543_v7  ;;  %v5211_v9 = vsel %vm4955_vm11, %v4775_v40, %v5083_v36  ;;  %vm4897_vm1 = vcmp.ge.f32.partialorder %v4543_v7, 0.0  ;;  %v17535_v40 = vld [vmem:[#allocation45_spill] sm:$0xff] }
 0x79c   : > { %v5625_v31 = vmax.f32 %v5241_v5, %v5382_v4  ;;  %v5628_v0 = vmax.f32 %v5244_v24, %v5388_v35  ;;  %v17530_v5 = vld [vmem:[#allocation47_spill] sm:$0xff]  ;;  %v17531_v24 = vld [vmem:[#allocation82_spill] sm:$0xff]  ;;  %v5081_v41 = vmul.f32 0.2, %v4767_v23  ;;  %vm4953_vm2 = vcmp.ge.f32.partialorder %v4767_v23, 0.0 }
 0x79d   : > { %v4778_v37 = vadd.f32 %v17531_v24, %v17530_v5  ;;  %v17540_v5 = vld [vmem:[#allocation74_spill] sm:$0xff] }
 0x79e   : > { %5754 = vst.msk [vmem:[#allocation2 + $0x60] sm:$0xff] %vm5741_vm8, %v5625_v31  ;;  %5757 = vst.msk [vmem:[#allocation2 + $0x78] sm:$0xff] %vm5741_vm8, %v5628_v0  ;;  %5453 = vmax.xlane.f32.xlu1 %v5149_v3  ;;  %5459 = vmax.xlane.f32.xlu0 %v5152_v63  ;;  %v5206_v31 = vsel %vm4950_vm10, %v4754_v33, %v5078_v19  ;;  %v5245_v0 = vld [vmem:[#allocation2 + $0x80] sm:$0xff]  ;;  %v4791_v33 = vadd.f32 %v17534_v48, %v17533_v17 }
 0x79f   : > { %v5494_v21 = vpop.xlane.xlu1 %5493  ;;  %v5500_v57 = vpop.xlane.xlu0 %5499  ;;  %v5084_v63 = vmul.f32 0.2, %v4778_v37  ;;  %vm4956_vm13 = vcmp.ge.f32.partialorder %v4778_v37, 0.0  ;;  %v5209_v19 = vsel %vm4953_vm2, %v4767_v23, %v5081_v41  ;;  %v4807_v24 = vadd.f32 %v14931_v22, %v17540_v5  ;;  %v17543_v17 = vld [vmem:[#allocation85_spill] sm:$0xff] }
 0x7a0   : > { %v5681_v54 = vmax.f32 %v5297_v10, %v5494_v21  ;;  %v5684_v49 = vmax.f32 %v5300_v18, %v5500_v57  ;;  %v17532_v10 = vld [vmem:[#allocation61_spill] sm:$0xff]  ;;  %v5087_v11 = vmul.f32 0.2, %v4791_v33  ;;  %vm4959_vm3 = vcmp.ge.f32.partialorder %v4791_v33, 0.0 }
 0x7a1   : > { %v4546_v18 = vadd.f32 %v14897_v27, %v17532_v10  ;;  %v5212_v36 = vsel %vm4956_vm13, %v4778_v37, %v5084_v63  ;;  %v5091_v41 = vmul.f32 0.2, %v4807_v24  ;;  %v5249_v10 = vld [vmem:[#allocation2 + $0xa0] sm:$0xff]  ;;  %vm4963_vm0 = vcmp.ge.f32.partialorder %v4807_v24, 0.0 }
 0x7a2   : > { %5810 = vst.msk [vmem:[#allocation2 + $0x220] sm:$0xff] %vm5741_vm8, %v5681_v54  ;;  %5813 = vst.msk [vmem:[#allocation2 + $0x238] sm:$0xff] %vm5741_vm8, %v5684_v49  ;;  %5565 = vmax.xlane.f32.xlu1 %v5205_v45  ;;  %5571 = vmax.xlane.f32.xlu0 %v5208_v60  ;;  %v5153_v54 = vsel %vm4897_vm1, %v4543_v7, %v5025_v51  ;;  %v5156_v49 = vsel %vm4900_vm12, %v4554_v14, %v5028_v30  ;;  %v17536_v45 = vld [vmem:[#allocation83_spill] sm:$0xff]  ;;  %v17537_v7 = vld [vmem:[#allocation54_spill] sm:$0xff]  ;;  %vm4971_vm13 = vcmp.ge.f32.partialorder %v14971_v12, 0.0 }
 0x7a3   : > { %v5394_v42 = vpop.xlane.xlu1 %5393  ;;  %v5384_v43 = vpop.xlane.xlu0 %5383  ;;  %v4770_v27 = vadd.f32 %v17536_v45, %v17535_v40  ;;  %v5246_v14 = vld [vmem:[#allocation2 + $0x88] sm:$0xff]  ;;  %vm4898_vm14 = vcmp.ge.f32.partialorder %v4546_v18, 0.0  ;;  %v5215_v37 = vsel %vm4959_vm3, %v4791_v33, %v5087_v11  ;;  %v17541_v51 = vld [vmem:[#allocation53_spill] sm:$0xff]  ;;  %v4810_v48 = vadd.f32 %v14939_v44, %v17543_v17  ;;  %v5308_v45 = vld [vmem:[#allocation2 + $0x278] sm:$0xff] }
 0x7a4   : > { %v5631_v62 = vmax.f32 %v5247_v59, %v5394_v42  ;;  %v5626_v29 = vmax.f32 %v5242_v8, %v5384_v43  ;;  %v5026_v8 = vmul.f32 0.2, %v4546_v18  ;;  %v4786_v30 = vadd.f32 %v14921_v61, %v17541_v51  ;;  %v5305_v40 = vld [vmem:[#allocation2 + $0x260] sm:$0xff]  ;;  %v17546_v11 = vld [vmem:[#allocation66_spill] sm:$0xff] }
 0x7a5   : > { %vm4954_vm15 = vcmp.ge.f32.partialorder %v4770_v27, 0.0  ;;  %vm4964_vm7 = vcmp.ge.f32.partialorder %v4810_v48, 0.0 }
 0x7a6   : > { %5760 = vst.msk [vmem:[#allocation2 + $0x90] sm:$0xff] %vm5741_vm8, %v5631_v62  ;;  %5755 = vst.msk [vmem:[#allocation2 + $0x68] sm:$0xff] %vm5741_vm8, %v5626_v29  ;;  %5465 = vmax.xlane.f32.xlu1 %v5155_v6  ;;  %5455 = vmax.xlane.f32.xlu0 %v5150_v52  ;;  %v17538_v62 = vld [vmem:[#allocation60_spill] sm:$0xff]  ;;  %v5082_v6 = vmul.f32 0.2, %v4770_v27  ;;  %v5154_v2 = vsel %vm4898_vm14, %v4546_v18, %v5026_v8  ;;  %vm4958_vm6 = vcmp.ge.f32.partialorder %v4786_v30, 0.0 }
 0x7a7   : > { %v5506_v15 = vpop.xlane.xlu1 %5505  ;;  %v5496_v25 = vpop.xlane.xlu0 %5495  ;;  %v4783_v29 = vadd.f32 %v17538_v62, %v17537_v7  ;;  %v5252_v18 = vld [vmem:[#allocation2 + $0xb8] sm:$0xff]  ;;  %v5086_v61 = vmul.f32 0.2, %v4786_v30  ;;  %v17547_v7 = vld [vmem:[#allocation59_spill] sm:$0xff] }
 0x7a8   : > { %v5687_v4 = vmax.f32 %v5303_v50, %v5506_v15  ;;  %v5682_v35 = vmax.f32 %v5298_v16, %v5496_v25  ;;  %v17539_v15 = vld [vmem:[#allocation57_spill] sm:$0xff]  ;;  %v17544_v8 = vld [vmem:[#allocation84_spill] sm:$0xff]  ;;  %v4815_v62 = vadd.f32 %v17547_v7, %v17546_v11 }
 0x7a9   : > { %v5085_v23 = vmul.f32 0.2, %v4783_v29  ;;  %v4794_v25 = vadd.f32 %v14919_v46, %v17539_v15  ;;  %vm4957_vm5 = vcmp.ge.f32.partialorder %v4783_v29, 0.0 }
 0x7aa   : > { %5816 = vst.msk [vmem:[#allocation2 + $0x250] sm:$0xff] %vm5741_vm8, %v5687_v4  ;;  %5811 = vst.msk [vmem:[#allocation2 + $0x228] sm:$0xff] %vm5741_vm8, %v5682_v35  ;;  %5577 = vmax.xlane.f32.xlu1 %v5211_v9  ;;  %5567 = vmax.xlane.f32.xlu0 %v5206_v31  ;;  %v5307_v4 = vld [vmem:[#allocation2 + $0x270] sm:$0xff]  ;;  %v5302_v35 = vld [vmem:[#allocation2 + $0x248] sm:$0xff]  ;;  %vm4965_vm10 = vcmp.ge.f32.partialorder %v4815_v62, 0.0 }
 0x7ab   : > { %v5390_v32 = vpop.xlane.xlu1 %5389  ;;  %v5396_v3 = vpop.xlane.xlu0 %5395  ;;  %v5088_v22 = vmul.f32 0.2, %v4794_v25  ;;  %v5213_v63 = vsel %vm4957_vm5, %v4783_v29, %v5085_v23  ;;  %vm4960_vm4 = vcmp.ge.f32.partialorder %v4794_v25, 0.0  ;;  %v17548_v23 = vld [vmem:[#allocation35_spill] sm:$0xff] }
 0x7ac   : > { %v5629_v21 = vmax.f32 %v5245_v0, %v5390_v32  ;;  %v5632_v57 = vmax.f32 %v5248_v34, %v5396_v3  ;;  %v5210_v34 = vsel %vm4954_vm15, %v4770_v27, %v5082_v6  ;;  %v17542_v32 = vld [vmem:[#allocation81_spill] sm:$0xff]  ;;  %v4826_v15 = vadd.f32 %v14961_v53, %v17548_v23 }
 0x7ad   : > { %v4799_v3 = vadd.f32 %v14935_v58, %v17542_v32  ;;  %vm4972_vm15 = vcmp.ge.f32.partialorder %v14978_v55, 0.0 }
 0x7ae   : > { %5758 = vst.msk [vmem:[#allocation2 + $0x80] sm:$0xff] %vm5741_vm8, %v5629_v21  ;;  %5761 = vst.msk [vmem:[#allocation2 + $0x98] sm:$0xff] %vm5741_vm8, %v5632_v57  ;;  %5461 = vmax.xlane.f32.xlu1 %v5153_v54  ;;  %5467 = vmax.xlane.f32.xlu0 %v5156_v49  ;;  %v4823_v49 = vadd.f32 %v14951_v47, %v14943_v39  ;;  %vm4968_vm2 = vcmp.ge.f32.partialorder %v4826_v15, 0.0 }
 0x7af   : > { %v5502_v60 = vpop.xlane.xlu1 %5501  ;;  %v5508_v59 = vpop.xlane.xlu0 %5507  ;;  %v5089_v58 = vmul.f32 0.2, %v4799_v3  ;;  %vm4961_vm9 = vcmp.ge.f32.partialorder %v4799_v3, 0.0 }
 0x7b0   : > { %v5685_v42 = vmax.f32 %v5301_v26, %v5502_v60  ;;  %v5688_v43 = vmax.f32 %v5304_v1, %v5508_v59  ;;  %v5219_v26 = vsel %vm4963_vm0, %v4807_v24, %v5091_v41  ;;  %v5216_v1 = vsel %vm4960_vm4, %v4794_v25, %v5088_v22  ;;  %v17549_v25 = vld [vmem:[#allocation67_spill] sm:$0xff]  ;;  %v5253_v22 = vld [vmem:[#allocation2 + $0xc0] sm:$0xff]  ;;  %v5256_v41 = vld [vmem:[#allocation2 + $0xd8] sm:$0xff] }
 0x7b1   : > { %v5214_v60 = vsel %vm4958_vm6, %v4786_v30, %v5086_v61  ;;  %v5092_v59 = vmul.f32 0.2, %v4810_v48  ;;  %v5095_v47 = vmul.f32 0.2, %v4823_v49  ;;  %v5217_v29 = vsel %vm4961_vm9, %v4799_v3, %v5089_v58  ;;  %v17550_v30 = vld [vmem:[#allocation65_spill] sm:$0xff]  ;;  %v17551_v61 = vld [vmem:[#allocation80_spill] sm:$0xff] }
 0x7b2   : > { %5814 = vst.msk [vmem:[#allocation2 + $0x240] sm:$0xff] %vm5741_vm8, %v5685_v42  ;;  %5817 = vst.msk [vmem:[#allocation2 + $0x258] sm:$0xff] %vm5741_vm8, %v5688_v43  ;;  %5573 = vmax.xlane.f32.xlu1 %v5209_v19  ;;  %5579 = vmax.xlane.f32.xlu0 %v5212_v36  ;;  %v17545_v42 = vld [vmem:[#allocation30_spill] sm:$0xff]  ;;  %v5255_v36 = vld [vmem:[#allocation2 + $0xd0] sm:$0xff]  ;;  %vm4967_vm11 = vcmp.ge.f32.partialorder %v4823_v49, 0.0  ;;  %v4831_v5 = vadd.f32 %v14973_v13, %v17549_v25 }
 0x7b3   : > { %v5402_v52 = vpop.xlane.xlu1 %5401  ;;  %v5392_v50 = vpop.xlane.xlu0 %5391  ;;  %v4802_v43 = vadd.f32 %v17545_v42, %v17544_v8  ;;  %v5223_v24 = vsel %vm4967_vm11, %v4823_v49, %v5095_v47  ;;  %v5100_v42 = vmul.f32 0.2, %v14978_v55  ;;  %v5258_v25 = vld [vmem:[#allocation2 + $0xe8] sm:$0xff] }
 0x7b4   : > { %v5635_v16 = vmax.f32 %v5251_v38, %v5402_v52  ;;  %v5630_v20 = vmax.f32 %v5246_v14, %v5392_v50  ;;  %v5250_v38 = vld [vmem:[#allocation2 + $0xa8] sm:$0xff]  ;;  %v5097_v13 = vmul.f32 0.2, %v4831_v5  ;;  %vm4969_vm12 = vcmp.ge.f32.partialorder %v4831_v5, 0.0 }
 0x7b5   : > { %v5090_v52 = vmul.f32 0.2, %v4802_v43  ;;  %vm4962_vm1 = vcmp.ge.f32.partialorder %v4802_v43, 0.0 }
 0x7b6   : > { %5764 = vst.msk [vmem:[#allocation2 + $0xb0] sm:$0xff] %vm5741_vm8, %v5635_v16  ;;  %5759 = vst.msk [vmem:[#allocation2 + $0x88] sm:$0xff] %vm5741_vm8, %v5630_v20  ;;  %5585 = vmax.xlane.f32.xlu1 %v5215_v37  ;;  %5463 = vmax.xlane.f32.xlu0 %v5154_v2  ;;  %v5220_v20 = vsel %vm4964_vm7, %v4810_v48, %v5092_v59  ;;  %v5093_v2 = vmul.f32 0.2, %v4815_v62  ;;  %v5311_v37 = vld [vmem:[#allocation2 + $0x290] sm:$0xff]  ;;  %v5309_v48 = vld [vmem:[#allocation2 + $0x280] sm:$0xff] }
 0x7b7   : > { %v5514_v9 = vpop.xlane.xlu1 %5513  ;;  %v5504_v31 = vpop.xlane.xlu0 %5503 }
 0x7b8   : > { %v5691_v0 = vmax.f32 %v5307_v4, %v5514_v9  ;;  %v5686_v46 = vmax.f32 %v5302_v35, %v5504_v31  ;;  %v5306_v4 = vld [vmem:[#allocation2 + $0x268] sm:$0xff]  ;;  %v4818_v9 = vadd.f32 %v14963_v56, %v17550_v30 }
 0x7ba   : > { %5820 = vst.msk [vmem:[#allocation2 + $0x270] sm:$0xff] %vm5741_vm8, %v5691_v0  ;;  %5815 = vst.msk [vmem:[#allocation2 + $0x248] sm:$0xff] %vm5741_vm8, %v5686_v46  ;;  %5581 = vmax.xlane.f32.xlu1 %v5213_v63  ;;  %5575 = vmax.xlane.f32.xlu0 %v5210_v34  ;;  %v5096_v0 = vmul.f32 0.2, %v4826_v15  ;;  %v5221_v46 = vsel %vm4965_vm10, %v4815_v62, %v5093_v2  ;;  %v5218_v34 = vsel %vm4962_vm1, %v4802_v43, %v5090_v52 }
 0x7bb   : > { %v5398_v21 = vpop.xlane.xlu1 %5397  ;;  %v5404_v57 = vpop.xlane.xlu0 %5403  ;;  %v5094_v63 = vmul.f32 0.2, %v4818_v9  ;;  %vm4966_vm14 = vcmp.ge.f32.partialorder %v4818_v9, 0.0  ;;  %v5228_v62 = vsel %vm4972_vm15, %v14978_v55, %v5100_v42  ;;  %v5324_v42 = vld [vmem:[#allocation2 + $0x2f8] sm:$0xff] }
 0x7bc   : > { %v5633_v33 = vmax.f32 %v5249_v10, %v5398_v21  ;;  %v5636_v54 = vmax.f32 %v5252_v18, %v5404_v57  ;;  %v5099_v18 = vmul.f32 0.2, %v14971_v12  ;;  %v4834_v21 = vadd.f32 %v14980_v28, %v17551_v61  ;;  %v5267_v61 = vld [vmem:[#allocation2 + $0x130] sm:$0xff] }
 0x7bd   : > { %v5225_v57 = vsel %vm4969_vm12, %v4831_v5, %v5097_v13  ;;  %v5224_v17 = vsel %vm4968_vm2, %v4826_v15, %v5096_v0  ;;  %v5263_v15 = vld [vmem:[#allocation2 + $0x110] sm:$0xff]  ;;  %v5261_v0 = vld [vmem:[#allocation2 + $0x100] sm:$0xff]  ;;  %v5264_v13 = vld [vmem:[#allocation2 + $0x118] sm:$0xff] }
 0x7be   : > { %5762 = vst.msk [vmem:[#allocation2 + $0xa0] sm:$0xff] %vm5741_vm8, %v5633_v33  ;;  %5765 = vst.msk [vmem:[#allocation2 + $0xb8] sm:$0xff] %vm5741_vm8, %v5636_v54  ;;  %5593 = vmax.xlane.f32.xlu1 %v5219_v26  ;;  %5587 = vmax.xlane.f32.xlu0 %v5216_v1  ;;  %v5312_v33 = vld [vmem:[#allocation2 + $0x298] sm:$0xff]  ;;  %v5098_v1 = vmul.f32 0.2, %v4834_v21  ;;  %v5227_v28 = vsel %vm4971_vm13, %v14971_v12, %v5099_v18  ;;  %vm4970_vm3 = vcmp.ge.f32.partialorder %v4834_v21, 0.0 }
 0x7bf   : > { %v5510_v27 = vpop.xlane.xlu1 %5509  ;;  %v5516_v44 = vpop.xlane.xlu0 %5515 }
 0x7c0   : > { %v5689_v19 = vmax.f32 %v5305_v40, %v5510_v27  ;;  %v5692_v39 = vmax.f32 %v5308_v45, %v5516_v44  ;;  %v5222_v40 = vsel %vm4966_vm14, %v4818_v9, %v5094_v63  ;;  %v5259_v45 = vld [vmem:[#allocation2 + $0xf0] sm:$0xff]  ;;  %v5254_v27 = vld [vmem:[#allocation2 + $0xc8] sm:$0xff]  ;;  %v5226_v43 = vsel %vm4970_vm3, %v4834_v21, %v5098_v1 }
 0x7c1   : > { %v5262_v21 = vld [vmem:[#allocation2 + $0x108] sm:$0xff] }
 0x7c2   : > { %5818 = vst.msk [vmem:[#allocation2 + $0x260] sm:$0xff] %vm5741_vm8, %v5689_v19  ;;  %5821 = vst.msk [vmem:[#allocation2 + $0x278] sm:$0xff] %vm5741_vm8, %v5692_v39  ;;  %5589 = vmax.xlane.f32.xlu1 %v5217_v29  ;;  %5583 = vmax.xlane.f32.xlu0 %v5214_v60  ;;  %v5315_v19 = vld [vmem:[#allocation2 + $0x2b0] sm:$0xff]  ;;  %v5310_v39 = vld [vmem:[#allocation2 + $0x288] sm:$0xff] }
 0x7c3   : > { %v5410_v14 = vpop.xlane.xlu1 %5409  ;;  %v5400_v6 = vpop.xlane.xlu0 %5399  ;;  %v5257_v29 = vld [vmem:[#allocation2 + $0xe0] sm:$0xff] }
 0x7c4   : > { %v5639_v50 = vmax.f32 %v5255_v36, %v5410_v14  ;;  %v5634_v16 = vmax.f32 %v5250_v38, %v5400_v6  ;;  %v5260_v36 = vld [vmem:[#allocation2 + $0xf8] sm:$0xff] }
 0x7c6   : > { %5768 = vst.msk [vmem:[#allocation2 + $0xd0] sm:$0xff] %vm5741_vm8, %v5639_v50  ;;  %5763 = vst.msk [vmem:[#allocation2 + $0xa8] sm:$0xff] %vm5741_vm8, %v5634_v16  ;;  %5601 = vmax.xlane.f32.xlu1 %v5223_v24  ;;  %5595 = vmax.xlane.f32.xlu0 %v5220_v20  ;;  %v5313_v50 = vld [vmem:[#allocation2 + $0x2a0] sm:$0xff]  ;;  %v5316_v16 = vld [vmem:[#allocation2 + $0x2b8] sm:$0xff] }
 0x7c7   : > { %v5522_v35 = vpop.xlane.xlu1 %5521  ;;  %v5512_v51 = vpop.xlane.xlu0 %5511 }
 0x7c8   : > { %v5695_v53 = vmax.f32 %v5311_v37, %v5522_v35  ;;  %v5690_v31 = vmax.f32 %v5306_v4, %v5512_v51  ;;  %v5319_v35 = vld [vmem:[#allocation2 + $0x2d0] sm:$0xff]  ;;  %v5314_v51 = vld [vmem:[#allocation2 + $0x2a8] sm:$0xff] }
 0x7ca   : > { %5824 = vst.msk [vmem:[#allocation2 + $0x290] sm:$0xff] %vm5741_vm8, %v5695_v53  ;;  %5819 = vst.msk [vmem:[#allocation2 + $0x268] sm:$0xff] %vm5741_vm8, %v5690_v31  ;;  %5597 = vmax.xlane.f32.xlu1 %v5221_v46  ;;  %5591 = vmax.xlane.f32.xlu0 %v5218_v34 }
 0x7cb   : > { %v5406_v32 = vpop.xlane.xlu1 %5405  ;;  %v5412_v3 = vpop.xlane.xlu0 %5411 }
 0x7cc   : > { %v5637_v56 = vmax.f32 %v5253_v22, %v5406_v32  ;;  %v5640_v10 = vmax.f32 %v5256_v41, %v5412_v3  ;;  %v5317_v32 = vld [vmem:[#allocation2 + $0x2c0] sm:$0xff]  ;;  %v5320_v3 = vld [vmem:[#allocation2 + $0x2d8] sm:$0xff] }
 0x7ce   : > { %5766 = vst.msk [vmem:[#allocation2 + $0xc0] sm:$0xff] %vm5741_vm8, %v5637_v56  ;;  %5769 = vst.msk [vmem:[#allocation2 + $0xd8] sm:$0xff] %vm5741_vm8, %v5640_v10  ;;  %5605 = vmax.xlane.f32.xlu1 %v5225_v57  ;;  %5603 = vmax.xlane.f32.xlu0 %v5224_v17 }
 0x7cf   : > { %v5518_v54 = vpop.xlane.xlu1 %5517  ;;  %v5524_v58 = vpop.xlane.xlu0 %5523 }
 0x7d0   : > { %v5693_v49 = vmax.f32 %v5309_v48, %v5518_v54  ;;  %v5696_v26 = vmax.f32 %v5312_v33, %v5524_v58  ;;  %v5323_v54 = vld [vmem:[#allocation2 + $0x2f0] sm:$0xff]  ;;  %v5318_v58 = vld [vmem:[#allocation2 + $0x2c8] sm:$0xff] }
 0x7d2   : > { %5822 = vst.msk [vmem:[#allocation2 + $0x280] sm:$0xff] %vm5741_vm8, %v5693_v49  ;;  %5825 = vst.msk [vmem:[#allocation2 + $0x298] sm:$0xff] %vm5741_vm8, %v5696_v26  ;;  %5609 = vmax.xlane.f32.xlu1 %v5227_v28  ;;  %5599 = vmax.xlane.f32.xlu0 %v5222_v40  ;;  %v5265_v40 = vld [vmem:[#allocation2 + $0x120] sm:$0xff] }
 0x7d3   : > { %v5418_v44 = vpop.xlane.xlu1 %5417  ;;  %v5408_v60 = vpop.xlane.xlu0 %5407 }
 0x7d4   : > { %v5643_v59 = vmax.f32 %v5259_v45, %v5418_v44  ;;  %v5638_v8 = vmax.f32 %v5254_v27, %v5408_v60  ;;  %v5268_v45 = vld [vmem:[#allocation2 + $0x138] sm:$0xff] }
 0x7d6   : > { %5772 = vst.msk [vmem:[#allocation2 + $0xf0] sm:$0xff] %vm5741_vm8, %v5643_v59  ;;  %5767 = vst.msk [vmem:[#allocation2 + $0xc8] sm:$0xff] %vm5741_vm8, %v5638_v8  ;;  %5607 = vmax.xlane.f32.xlu0 %v5226_v43  ;;  %v5321_v8 = vld [vmem:[#allocation2 + $0x2e0] sm:$0xff] }
 0x7d7   : > { %v5530_v12 = vpop.xlane.xlu1 %5529  ;;  %v5520_v47 = vpop.xlane.xlu0 %5519 }
 0x7d8   : > { %v5699_v11 = vmax.f32 %v5315_v19, %v5530_v12  ;;  %v5694_v7 = vmax.f32 %v5310_v39, %v5520_v47  ;;  %v5271_v47 = vld [vmem:[#allocation2 + $0x150] sm:$0xff] }
 0x7da   : > { %5828 = vst.msk [vmem:[#allocation2 + $0x2b0] sm:$0xff] %vm5741_vm8, %v5699_v11  ;;  %5823 = vst.msk [vmem:[#allocation2 + $0x288] sm:$0xff] %vm5741_vm8, %v5694_v7  ;;  %5611 = vmax.xlane.f32.xlu0 %v5228_v62  ;;  %v5266_v11 = vld [vmem:[#allocation2 + $0x128] sm:$0xff] }
 0x7db   : > { %v5414_v38 = vpop.xlane.xlu1 %5413  ;;  %v5420_v14 = vpop.xlane.xlu0 %5419 }
 0x7dc   : > { %v5641_v6 = vmax.f32 %v5257_v29, %v5414_v38  ;;  %v5644_v52 = vmax.f32 %v5260_v36, %v5420_v14  ;;  %v5327_v38 = vld [vmem:[#allocation2 + $0x310] sm:$0xff]  ;;  %v5322_v14 = vld [vmem:[#allocation2 + $0x2e8] sm:$0xff] }
 0x7de   : > { %5770 = vst.msk [vmem:[#allocation2 + $0xe0] sm:$0xff] %vm5741_vm8, %v5641_v6  ;;  %5773 = vst.msk [vmem:[#allocation2 + $0xf8] sm:$0xff] %vm5741_vm8, %v5644_v52 }
 0x7df   : > { %v5526_v20 = vpop.xlane.xlu1 %5525  ;;  %v5532_v2 = vpop.xlane.xlu0 %5531 }
 0x7e0   : > { %v5697_v55 = vmax.f32 %v5313_v50, %v5526_v20  ;;  %v5700_v23 = vmax.f32 %v5316_v16, %v5532_v2  ;;  %v5269_v20 = vld [vmem:[#allocation2 + $0x140] sm:$0xff]  ;;  %v5272_v2 = vld [vmem:[#allocation2 + $0x158] sm:$0xff] }
 0x7e2   : > { %5826 = vst.msk [vmem:[#allocation2 + $0x2a0] sm:$0xff] %vm5741_vm8, %v5697_v55  ;;  %5829 = vst.msk [vmem:[#allocation2 + $0x2b8] sm:$0xff] %vm5741_vm8, %v5700_v23 }
 0x7e3   : > { %v5426_v5 = vpop.xlane.xlu1 %5425  ;;  %v5416_v24 = vpop.xlane.xlu0 %5415 }
 0x7e4   : > { %v5647_v37 = vmax.f32 %v5263_v15, %v5426_v5  ;;  %v5642_v4 = vmax.f32 %v5258_v25, %v5416_v24  ;;  %v5325_v5 = vld [vmem:[#allocation2 + $0x300] sm:$0xff]  ;;  %v5328_v24 = vld [vmem:[#allocation2 + $0x318] sm:$0xff] }
 0x7e6   : > { %5776 = vst.msk [vmem:[#allocation2 + $0x110] sm:$0xff] %vm5741_vm8, %v5647_v37  ;;  %5771 = vst.msk [vmem:[#allocation2 + $0xe8] sm:$0xff] %vm5741_vm8, %v5642_v4 }
 0x7e7   : > { %v5538_v30 = vpop.xlane.xlu1 %5537  ;;  %v5528_v9 = vpop.xlane.xlu0 %5527 }
 0x7e8   : > { %v5703_v53 = vmax.f32 %v5319_v35, %v5538_v30  ;;  %v5698_v31 = vmax.f32 %v5314_v51, %v5528_v9  ;;  %v5275_v30 = vld [vmem:[#allocation2 + $0x170] sm:$0xff]  ;;  %v5270_v9 = vld [vmem:[#allocation2 + $0x148] sm:$0xff] }
 0x7ea   : > { %5832 = vst.msk [vmem:[#allocation2 + $0x2d0] sm:$0xff] %vm5741_vm8, %v5703_v53  ;;  %5827 = vst.msk [vmem:[#allocation2 + $0x2a8] sm:$0xff] %vm5741_vm8, %v5698_v31 }
 0x7eb   : > { %v5422_v46 = vpop.xlane.xlu1 %5421  ;;  %v5428_v34 = vpop.xlane.xlu0 %5427 }
 0x7ec   : > { %v5645_v22 = vmax.f32 %v5261_v0, %v5422_v46  ;;  %v5648_v41 = vmax.f32 %v5264_v13, %v5428_v34  ;;  %v5331_v46 = vld [vmem:[#allocation2 + $0x330] sm:$0xff]  ;;  %v5326_v34 = vld [vmem:[#allocation2 + $0x308] sm:$0xff] }
 0x7ee   : > { %5774 = vst.msk [vmem:[#allocation2 + $0x100] sm:$0xff] %vm5741_vm8, %v5645_v22  ;;  %5777 = vst.msk [vmem:[#allocation2 + $0x118] sm:$0xff] %vm5741_vm8, %v5648_v41 }
 0x7ef   : > { %v5534_v63 = vpop.xlane.xlu1 %5533  ;;  %v5540_v56 = vpop.xlane.xlu0 %5539 }
 0x7f0   : > { %v5701_v10 = vmax.f32 %v5317_v32, %v5534_v63  ;;  %v5704_v18 = vmax.f32 %v5320_v3, %v5540_v56  ;;  %v5273_v63 = vld [vmem:[#allocation2 + $0x160] sm:$0xff]  ;;  %v5276_v56 = vld [vmem:[#allocation2 + $0x178] sm:$0xff] }
 0x7f2   : > { %5830 = vst.msk [vmem:[#allocation2 + $0x2c0] sm:$0xff] %vm5741_vm8, %v5701_v10  ;;  %5833 = vst.msk [vmem:[#allocation2 + $0x2d8] sm:$0xff] %vm5741_vm8, %v5704_v18 }
 0x7f3   : > { %v5434_v57 = vpop.xlane.xlu1 %5433  ;;  %v5424_v17 = vpop.xlane.xlu0 %5423 }
 0x7f4   : > { %v5651_v48 = vmax.f32 %v5267_v61, %v5434_v57  ;;  %v5646_v33 = vmax.f32 %v5262_v21, %v5424_v17  ;;  %v5329_v57 = vld [vmem:[#allocation2 + $0x320] sm:$0xff]  ;;  %v5332_v17 = vld [vmem:[#allocation2 + $0x338] sm:$0xff] }
 0x7f6   : > { %5780 = vst.msk [vmem:[#allocation2 + $0x130] sm:$0xff] %vm5741_vm8, %v5651_v48  ;;  %5775 = vst.msk [vmem:[#allocation2 + $0x108] sm:$0xff] %vm5741_vm8, %v5646_v33 }
 0x7f7   : > { %v5546_v49 = vpop.xlane.xlu1 %5545  ;;  %v5536_v26 = vpop.xlane.xlu0 %5535 }
 0x7f8   : > { %v5707_v1 = vmax.f32 %v5323_v54, %v5546_v49  ;;  %v5702_v28 = vmax.f32 %v5318_v58, %v5536_v26  ;;  %v5279_v49 = vld [vmem:[#allocation2 + $0x190] sm:$0xff]  ;;  %v5274_v26 = vld [vmem:[#allocation2 + $0x168] sm:$0xff] }
 0x7fa   : > { %5836 = vst.msk [vmem:[#allocation2 + $0x2f0] sm:$0xff] %vm5741_vm8, %v5707_v1  ;;  %5831 = vst.msk [vmem:[#allocation2 + $0x2c8] sm:$0xff] %vm5741_vm8, %v5702_v28 }
 0x7fb   : > { %v5430_v27 = vpop.xlane.xlu1 %5429  ;;  %v5436_v44 = vpop.xlane.xlu0 %5435 }
 0x7fc   : > { %v5649_v60 = vmax.f32 %v5265_v40, %v5430_v27  ;;  %v5652_v59 = vmax.f32 %v5268_v45, %v5436_v44  ;;  %v5335_v27 = vld [vmem:[#allocation2 + $0x350] sm:$0xff]  ;;  %v5330_v44 = vld [vmem:[#allocation2 + $0x328] sm:$0xff] }
 0x7fe   : > { %5778 = vst.msk [vmem:[#allocation2 + $0x120] sm:$0xff] %vm5741_vm8, %v5649_v60  ;;  %5781 = vst.msk [vmem:[#allocation2 + $0x138] sm:$0xff] %vm5741_vm8, %v5652_v59 }
 0x7ff   : > { %v5542_v43 = vpop.xlane.xlu1 %5541  ;;  %v5548_v19 = vpop.xlane.xlu0 %5547 }
 0x800   : > { %v5705_v39 = vmax.f32 %v5321_v8, %v5542_v43  ;;  %v5708_v12 = vmax.f32 %v5324_v42, %v5548_v19  ;;  %v5277_v43 = vld [vmem:[#allocation2 + $0x180] sm:$0xff]  ;;  %v5280_v19 = vld [vmem:[#allocation2 + $0x198] sm:$0xff] }
 0x802   : > { %5834 = vst.msk [vmem:[#allocation2 + $0x2e0] sm:$0xff] %vm5741_vm8, %v5705_v39  ;;  %5837 = vst.msk [vmem:[#allocation2 + $0x2f8] sm:$0xff] %vm5741_vm8, %v5708_v12 }
 0x803   : > { %v5442_v7 = vpop.xlane.xlu1 %5441  ;;  %v5432_v62 = vpop.xlane.xlu0 %5431 }
 0x804   : > { %v5655_v29 = vmax.f32 %v5271_v47, %v5442_v7  ;;  %v5650_v36 = vmax.f32 %v5266_v11, %v5432_v62  ;;  %v5333_v7 = vld [vmem:[#allocation2 + $0x340] sm:$0xff]  ;;  %v5336_v62 = vld [vmem:[#allocation2 + $0x358] sm:$0xff] }
 0x806   : > { %5784 = vst.msk [vmem:[#allocation2 + $0x150] sm:$0xff] %vm5741_vm8, %v5655_v29  ;;  %5779 = vst.msk [vmem:[#allocation2 + $0x128] sm:$0xff] %vm5741_vm8, %v5650_v36 }
 0x807   : > { %v5554_v6 = vpop.xlane.xlu1 %5553  ;;  %v5544_v52 = vpop.xlane.xlu0 %5543 }
 0x808   : > { %v5711_v50 = vmax.f32 %v5327_v38, %v5554_v6  ;;  %v5706_v16 = vmax.f32 %v5322_v14, %v5544_v52  ;;  %v5283_v6 = vld [vmem:[#allocation2 + $0x1b0] sm:$0xff]  ;;  %v5278_v52 = vld [vmem:[#allocation2 + $0x188] sm:$0xff] }
 0x80a   : > { %5840 = vst.msk [vmem:[#allocation2 + $0x310] sm:$0xff] %vm5741_vm8, %v5711_v50  ;;  %5835 = vst.msk [vmem:[#allocation2 + $0x2e8] sm:$0xff] %vm5741_vm8, %v5706_v16 }
 0x80b   : > { %v5438_v55 = vpop.xlane.xlu1 %5437  ;;  %v5444_v23 = vpop.xlane.xlu0 %5443 }
 0x80c   : > { %v5653_v15 = vmax.f32 %v5269_v20, %v5438_v55  ;;  %v5656_v25 = vmax.f32 %v5272_v2, %v5444_v23  ;;  %v5339_v55 = vld [vmem:[#allocation2 + $0x370] sm:$0xff]  ;;  %v5334_v23 = vld [vmem:[#allocation2 + $0x348] sm:$0xff] }
 0x80e   : > { %5782 = vst.msk [vmem:[#allocation2 + $0x140] sm:$0xff] %vm5741_vm8, %v5653_v15  ;;  %5785 = vst.msk [vmem:[#allocation2 + $0x158] sm:$0xff] %vm5741_vm8, %v5656_v25 }
 0x80f   : > { %v5550_v37 = vpop.xlane.xlu1 %5549  ;;  %v5556_v4 = vpop.xlane.xlu0 %5555 }
 0x810   : > { %v5709_v35 = vmax.f32 %v5325_v5, %v5550_v37  ;;  %v5712_v51 = vmax.f32 %v5328_v24, %v5556_v4  ;;  %v5281_v37 = vld [vmem:[#allocation2 + $0x1a0] sm:$0xff]  ;;  %v5284_v4 = vld [vmem:[#allocation2 + $0x1b8] sm:$0xff] }
 0x812   : > { %5838 = vst.msk [vmem:[#allocation2 + $0x300] sm:$0xff] %vm5741_vm8, %v5709_v35  ;;  %5841 = vst.msk [vmem:[#allocation2 + $0x318] sm:$0xff] %vm5741_vm8, %v5712_v51 }
 0x813   : > { %v5450_v53 = vpop.xlane.xlu1 %5449  ;;  %v5440_v31 = vpop.xlane.xlu0 %5439 }
 0x814   : > { %v5659_v0 = vmax.f32 %v5275_v30, %v5450_v53  ;;  %v5654_v13 = vmax.f32 %v5270_v9, %v5440_v31  ;;  %v5337_v53 = vld [vmem:[#allocation2 + $0x360] sm:$0xff]  ;;  %v5340_v31 = vld [vmem:[#allocation2 + $0x378] sm:$0xff] }
 0x816   : > { %5788 = vst.msk [vmem:[#allocation2 + $0x170] sm:$0xff] %vm5741_vm8, %v5659_v0  ;;  %5783 = vst.msk [vmem:[#allocation2 + $0x148] sm:$0xff] %vm5741_vm8, %v5654_v13 }
 0x817   : > { %v5562_v22 = vpop.xlane.xlu1 %5561  ;;  %v5552_v41 = vpop.xlane.xlu0 %5551 }
 0x818   : > { %v5715_v32 = vmax.f32 %v5331_v46, %v5562_v22  ;;  %v5710_v3 = vmax.f32 %v5326_v34, %v5552_v41  ;;  %v5343_v22 = vld [vmem:[#allocation2 + $0x390] sm:$0xff]  ;;  %v5282_v41 = vld [vmem:[#allocation2 + $0x1a8] sm:$0xff] }
 0x81a   : > { %5844 = vst.msk [vmem:[#allocation2 + $0x330] sm:$0xff] %vm5741_vm8, %v5715_v32  ;;  %5839 = vst.msk [vmem:[#allocation2 + $0x308] sm:$0xff] %vm5741_vm8, %v5710_v3 }
 0x81b   : > { %v5446_v10 = vpop.xlane.xlu1 %5445  ;;  %v5452_v18 = vpop.xlane.xlu0 %5451 }
 0x81c   : > { %v5657_v61 = vmax.f32 %v5273_v63, %v5446_v10  ;;  %v5660_v21 = vmax.f32 %v5276_v56, %v5452_v18  ;;  %v5341_v10 = vld [vmem:[#allocation2 + $0x380] sm:$0xff]  ;;  %v5338_v18 = vld [vmem:[#allocation2 + $0x368] sm:$0xff] }
 0x81e   : > { %5786 = vst.msk [vmem:[#allocation2 + $0x160] sm:$0xff] %vm5741_vm8, %v5657_v61  ;;  %5789 = vst.msk [vmem:[#allocation2 + $0x178] sm:$0xff] %vm5741_vm8, %v5660_v21 }
 0x81f   : > { %v5558_v48 = vpop.xlane.xlu1 %5557  ;;  %v5564_v33 = vpop.xlane.xlu0 %5563 }
 0x820   : > { %v5713_v54 = vmax.f32 %v5329_v57, %v5558_v48  ;;  %v5716_v58 = vmax.f32 %v5332_v17, %v5564_v33  ;;  %v5347_v48 = vld [vmem:[#allocation2 + $0x3b0] sm:$0xff]  ;;  %v5344_v33 = vld [vmem:[#allocation2 + $0x398] sm:$0xff] }
 0x822   : > { %5842 = vst.msk [vmem:[#allocation2 + $0x320] sm:$0xff] %vm5741_vm8, %v5713_v54  ;;  %5845 = vst.msk [vmem:[#allocation2 + $0x338] sm:$0xff] %vm5741_vm8, %v5716_v58 }
 0x823   : > { %v5458_v1 = vpop.xlane.xlu1 %5457  ;;  %v5448_v28 = vpop.xlane.xlu0 %5447 }
 0x824   : > { %v5663_v40 = vmax.f32 %v5279_v49, %v5458_v1  ;;  %v5658_v45 = vmax.f32 %v5274_v26, %v5448_v28  ;;  %v5345_v1 = vld [vmem:[#allocation2 + $0x3a0] sm:$0xff]  ;;  %v5342_v28 = vld [vmem:[#allocation2 + $0x388] sm:$0xff] }
 0x826   : > { %5792 = vst.msk [vmem:[#allocation2 + $0x190] sm:$0xff] %vm5741_vm8, %v5663_v40  ;;  %5787 = vst.msk [vmem:[#allocation2 + $0x168] sm:$0xff] %vm5741_vm8, %v5658_v45 }
 0x827   : > { %v5570_v60 = vpop.xlane.xlu1 %5569  ;;  %v5560_v59 = vpop.xlane.xlu0 %5559 }
 0x828   : > { %v5719_v8 = vmax.f32 %v5335_v27, %v5570_v60  ;;  %v5714_v42 = vmax.f32 %v5330_v44, %v5560_v59  ;;  %v5351_v60 = vld [vmem:[#allocation2 + $0x3d0] sm:$0xff]  ;;  %v5348_v59 = vld [vmem:[#allocation2 + $0x3b8] sm:$0xff] }
 0x82a   : > { %5848 = vst.msk [vmem:[#allocation2 + $0x350] sm:$0xff] %vm5741_vm8, %v5719_v8  ;;  %5843 = vst.msk [vmem:[#allocation2 + $0x328] sm:$0xff] %vm5741_vm8, %v5714_v42 }
 0x82b   : > { %v5454_v39 = vpop.xlane.xlu1 %5453  ;;  %v5460_v12 = vpop.xlane.xlu0 %5459 }
 0x82c   : > { %v5661_v47 = vmax.f32 %v5277_v43, %v5454_v39  ;;  %v5664_v11 = vmax.f32 %v5280_v19, %v5460_v12  ;;  %v5349_v39 = vld [vmem:[#allocation2 + $0x3c0] sm:$0xff]  ;;  %v5346_v12 = vld [vmem:[#allocation2 + $0x3a8] sm:$0xff] }
 0x82e   : > { %5790 = vst.msk [vmem:[#allocation2 + $0x180] sm:$0xff] %vm5741_vm8, %v5661_v47  ;;  %5793 = vst.msk [vmem:[#allocation2 + $0x198] sm:$0xff] %vm5741_vm8, %v5664_v11 }
 0x82f   : > { %v5566_v29 = vpop.xlane.xlu1 %5565  ;;  %v5572_v36 = vpop.xlane.xlu0 %5571 }
 0x830   : > { %v5717_v38 = vmax.f32 %v5333_v7, %v5566_v29  ;;  %v5720_v14 = vmax.f32 %v5336_v62, %v5572_v36  ;;  %v5353_v29 = vld [vmem:[#allocation2 + $0x3e0] sm:$0xff]  ;;  %v5352_v36 = vld [vmem:[#allocation2 + $0x3d8] sm:$0xff] }
 0x832   : > { %5846 = vst.msk [vmem:[#allocation2 + $0x340] sm:$0xff] %vm5741_vm8, %v5717_v38  ;;  %5849 = vst.msk [vmem:[#allocation2 + $0x358] sm:$0xff] %vm5741_vm8, %v5720_v14 }
 0x833   : > { %v5466_v50 = vpop.xlane.xlu1 %5465  ;;  %v5456_v16 = vpop.xlane.xlu0 %5455 }
 0x834   : > { %v5667_v20 = vmax.f32 %v5283_v6, %v5466_v50  ;;  %v5662_v2 = vmax.f32 %v5278_v52, %v5456_v16  ;;  %v5355_v50 = vld [vmem:[#allocation2 + $0x3f0] sm:$0xff]  ;;  %v5350_v16 = vld [vmem:[#allocation2 + $0x3c8] sm:$0xff] }
 0x836   : > { %5796 = vst.msk [vmem:[#allocation2 + $0x1b0] sm:$0xff] %vm5741_vm8, %v5667_v20  ;;  %5791 = vst.msk [vmem:[#allocation2 + $0x188] sm:$0xff] %vm5741_vm8, %v5662_v2 }
 0x837   : > { %v5578_v15 = vpop.xlane.xlu1 %5577  ;;  %v5568_v25 = vpop.xlane.xlu0 %5567 }
 0x838   : > { %v5723_v5 = vmax.f32 %v5339_v55, %v5578_v15  ;;  %v5718_v24 = vmax.f32 %v5334_v23, %v5568_v25  ;;  %v5354_v15 = vld [vmem:[#allocation2 + $0x3e8] sm:$0xff] }
 0x83a   : > { %5852 = vst.msk [vmem:[#allocation2 + $0x370] sm:$0xff] %vm5741_vm8, %v5723_v5  ;;  %5847 = vst.msk [vmem:[#allocation2 + $0x348] sm:$0xff] %vm5741_vm8, %v5718_v24  ;;  %v5356_v24 = vld [vmem:[#allocation2 + $0x3f8] sm:$0xff] }
 0x83b   : > { %v5462_v35 = vpop.xlane.xlu1 %5461  ;;  %v5468_v51 = vpop.xlane.xlu0 %5467 }
 0x83c   : > { %v5665_v30 = vmax.f32 %v5281_v37, %v5462_v35  ;;  %v5668_v9 = vmax.f32 %v5284_v4, %v5468_v51 }
 0x83e   : > { %5794 = vst.msk [vmem:[#allocation2 + $0x1a0] sm:$0xff] %vm5741_vm8, %v5665_v30  ;;  %5797 = vst.msk [vmem:[#allocation2 + $0x1b8] sm:$0xff] %vm5741_vm8, %v5668_v9 }
 0x83f   : > { %v5574_v0 = vpop.xlane.xlu1 %5573  ;;  %v5580_v13 = vpop.xlane.xlu0 %5579 }
 0x840   : > { %v5721_v46 = vmax.f32 %v5337_v53, %v5574_v0  ;;  %v5724_v34 = vmax.f32 %v5340_v31, %v5580_v13 }
 0x842   : > { %5850 = vst.msk [vmem:[#allocation2 + $0x360] sm:$0xff] %vm5741_vm8, %v5721_v46  ;;  %5853 = vst.msk [vmem:[#allocation2 + $0x378] sm:$0xff] %vm5741_vm8, %v5724_v34 }
 0x843   : > { %v5586_v32 = vpop.xlane.xlu1 %5585  ;;  %v5464_v3 = vpop.xlane.xlu0 %5463 }
 0x844   : > { %v5727_v63 = vmax.f32 %v5343_v22, %v5586_v32  ;;  %v5666_v56 = vmax.f32 %v5282_v41, %v5464_v3 }
 0x846   : > { %5856 = vst.msk [vmem:[#allocation2 + $0x390] sm:$0xff] %vm5741_vm8, %v5727_v63  ;;  %5795 = vst.msk [vmem:[#allocation2 + $0x1a8] sm:$0xff] %vm5741_vm8, %v5666_v56 }
 0x847   : > { %v5582_v61 = vpop.xlane.xlu1 %5581  ;;  %v5576_v21 = vpop.xlane.xlu0 %5575 }
 0x848   : > { %v5725_v57 = vmax.f32 %v5341_v10, %v5582_v61  ;;  %v5722_v17 = vmax.f32 %v5338_v18, %v5576_v21 }
 0x84a   : > { %5854 = vst.msk [vmem:[#allocation2 + $0x380] sm:$0xff] %vm5741_vm8, %v5725_v57  ;;  %5851 = vst.msk [vmem:[#allocation2 + $0x368] sm:$0xff] %vm5741_vm8, %v5722_v17 }
 0x84b   : > { %v5594_v54 = vpop.xlane.xlu1 %5593  ;;  %v5588_v58 = vpop.xlane.xlu0 %5587 }
 0x84c   : > { %v5731_v49 = vmax.f32 %v5347_v48, %v5594_v54  ;;  %v5728_v26 = vmax.f32 %v5344_v33, %v5588_v58 }
 0x84e   : > { %5860 = vst.msk [vmem:[#allocation2 + $0x3b0] sm:$0xff] %vm5741_vm8, %v5731_v49  ;;  %5857 = vst.msk [vmem:[#allocation2 + $0x398] sm:$0xff] %vm5741_vm8, %v5728_v26 }
 0x84f   : > { %v5590_v40 = vpop.xlane.xlu1 %5589  ;;  %v5584_v45 = vpop.xlane.xlu0 %5583 }
 0x850   : > { %v5729_v27 = vmax.f32 %v5345_v1, %v5590_v40  ;;  %v5726_v44 = vmax.f32 %v5342_v28, %v5584_v45 }
 0x852   : > { %5858 = vst.msk [vmem:[#allocation2 + $0x3a0] sm:$0xff] %vm5741_vm8, %v5729_v27  ;;  %5855 = vst.msk [vmem:[#allocation2 + $0x388] sm:$0xff] %vm5741_vm8, %v5726_v44 }
 0x853   : > { %v5602_v8 = vpop.xlane.xlu1 %5601  ;;  %v5596_v42 = vpop.xlane.xlu0 %5595 }
 0x854   : > { %v5735_v43 = vmax.f32 %v5351_v60, %v5602_v8  ;;  %v5732_v19 = vmax.f32 %v5348_v59, %v5596_v42 }
 0x856   : > { %5864 = vst.msk [vmem:[#allocation2 + $0x3d0] sm:$0xff] %vm5741_vm8, %v5735_v43  ;;  %5861 = vst.msk [vmem:[#allocation2 + $0x3b8] sm:$0xff] %vm5741_vm8, %v5732_v19 }
 0x857   : > { %v5598_v47 = vpop.xlane.xlu1 %5597  ;;  %v5592_v11 = vpop.xlane.xlu0 %5591 }
 0x858   : > { %v5733_v7 = vmax.f32 %v5349_v39, %v5598_v47  ;;  %v5730_v62 = vmax.f32 %v5346_v12, %v5592_v11 }
 0x85a   : > { %5862 = vst.msk [vmem:[#allocation2 + $0x3c0] sm:$0xff] %vm5741_vm8, %v5733_v7  ;;  %5859 = vst.msk [vmem:[#allocation2 + $0x3a8] sm:$0xff] %vm5741_vm8, %v5730_v62 }
 0x85b   : > { %v5606_v38 = vpop.xlane.xlu1 %5605  ;;  %v5604_v14 = vpop.xlane.xlu0 %5603 }
 0x85c   : > { %v5737_v6 = vmax.f32 %v5353_v29, %v5606_v38  ;;  %v5736_v52 = vmax.f32 %v5352_v36, %v5604_v14 }
 0x85e   : > { %5866 = vst.msk [vmem:[#allocation2 + $0x3e0] sm:$0xff] %vm5741_vm8, %v5737_v6  ;;  %5865 = vst.msk [vmem:[#allocation2 + $0x3d8] sm:$0xff] %vm5741_vm8, %v5736_v52 }
 0x85f   : > { %v5610_v20 = vpop.xlane.xlu1 %5609  ;;  %v5600_v2 = vpop.xlane.xlu0 %5599 }
 0x860   : > { %v5739_v55 = vmax.f32 %v5355_v50, %v5610_v20  ;;  %v5734_v23 = vmax.f32 %v5350_v16, %v5600_v2 }
 0x862   : > { %5868 = vst.msk [vmem:[#allocation2 + $0x3f0] sm:$0xff] %vm5741_vm8, %v5739_v55  ;;  %5863 = vst.msk [vmem:[#allocation2 + $0x3c8] sm:$0xff] %vm5741_vm8, %v5734_v23 }
 0x863   : > { %v5608_v25 = vpop.xlane.xlu0 %5607 }
 0x864   : > { %v5738_v5 = vmax.f32 %v5354_v15, %v5608_v25  ;;  %5873 = sbr.rel (%p10246_p0) target bundleno = 3654 (0xe46), region = 129 }
 0x866   : > { %5867 = vst.msk [vmem:[#allocation2 + $0x3e8] sm:$0xff] %vm5741_vm8, %v5738_v5 }
 0x867   : > { %v5612_v37 = vpop.xlane.xlu0 %5611 }
 0x868   : > { %v5740_v4 = vmax.f32 %v5356_v24, %v5612_v37 }
 0x86a   : > { %5869 = vst.msk [vmem:[#allocation2 + $0x3f8] sm:$0xff] %vm5741_vm8, %v5740_v4 }
 0x86b   : > { %v5906_v35 = vld [vmem:[#allocation2 + $0x100] sm:$0xff]  ;;  %v5907_v51 = vld [vmem:[#allocation2 + $0x108] sm:$0xff]  ;;  %v5908_v30 = vld [vmem:[#allocation2 + $0x110] sm:$0xff]  ;;  %v12287_v9 = vmov 0   ;;  %s17552_s7 = sld [smem:[#allocation109_spill]]  ;;  %s17571_s12 = sld [smem:[#allocation110_spill]] }
 0x86c   : > { %7955 = vmatprep.subr.bf16.mxu0 %v12287_v9  ;;  %v15230_v53 = vpack.c.bf16 %v5907_v51, %v5906_v35  ;;  %v5909_v31 = vld [vmem:[#allocation2 + $0x118] sm:$0xff]  ;;  %7666 = vmatprep.subr.bf16.mxu1 %v12287_v9  ;;  %v5910_v13 = vld [vmem:[#allocation2 + $0x120] sm:$0xff]  ;;  %v5911_v46 = vld [vmem:[#allocation2 + $0x128] sm:$0xff]  ;;  %s17599_s3 = sld [smem:[#allocation111_spill]]  ;;  %s17600_s8 = sld [smem:[#allocation112_spill]] }
 0x86d   : > { %v15234_v0 = vpack.c.bf16 %v5909_v31, %v5908_v30  ;;  %v15238_v34 = vpack.c.bf16 %v5911_v46, %v5910_v13  ;;  %v5912_v22 = vld [vmem:[#allocation2 + $0x130] sm:$0xff]  ;;  %v5913_v41 = vld [vmem:[#allocation2 + $0x138] sm:$0xff]  ;;  %v5914_v56 = vld [vmem:[#allocation2 + $0x140] sm:$0xff]  ;;  %s17601_s27 = sld [smem:[#allocation113_spill]] }
 0x86e   : > { %7956 = vmatpush1.bf16.msra.mxu0 %v15230_v53  ;;  %v15247_v3 = vpack.c.bf16 %v5913_v41, %v5912_v22  ;;  %v5915_v10 = vld [vmem:[#allocation2 + $0x148] sm:$0xff]  ;;  %v5916_v21 = vld [vmem:[#allocation2 + $0x150] sm:$0xff]  ;;  %v5917_v57 = vld [vmem:[#allocation2 + $0x158] sm:$0xff] }
 0x86f   : > { %7957 = vmatprep.subr.bf16.mxu0 %v12287_v9  ;;  %v15258_v61 = vpack.c.bf16 %v5915_v10, %v5914_v56  ;;  %v15262_v17 = vpack.c.bf16 %v5917_v57, %v5916_v21  ;;  %v5918_v48 = vld [vmem:[#allocation2 + $0x160] sm:$0xff]  ;;  %v5919_v33 = vld [vmem:[#allocation2 + $0x168] sm:$0xff]  ;;  %v5876_v26 = vld [vmem:[#allocation2 + $0x10] sm:$0xff] }
 0x870   : > { %v5874_v54 = vld [vmem:[#allocation2] sm:$0xff]  ;;  %v5875_v58 = vld [vmem:[#allocation2 + $0x8] sm:$0xff]  ;;  %v5877_v1 = vld [vmem:[#allocation2 + $0x18] sm:$0xff]  ;;  %v15266_v28 = vpack.c.bf16 %v5919_v33, %v5918_v48 }
 0x871   : > { %v15244_v32 = vld [vmem:[%s17552_s7 + $0x8] sm:$0xff]  ;;  %v6002_v49 = vpack.c.bf16 %v5875_v58, %v5874_v54  ;;  %v6003_v40 = vpack.c.bf16 %v5877_v1, %v5876_v26  ;;  %v5920_v45 = vld [vmem:[#allocation2 + $0x170] sm:$0xff]  ;;  %v5921_v27 = vld [vmem:[#allocation2 + $0x178] sm:$0xff] }
 0x872   : > { %7958 = vmatpush1.bf16.msra.mxu0 %v15234_v0  ;;  %v15252_v63 = vld [vmem:[%s17552_s7 + $0x28] sm:$0xff]  ;;  %v5878_v44 = vld [vmem:[#allocation2 + $0x20] sm:$0xff]  ;;  %v15271_v59 = vpack.c.bf16 %v5921_v27, %v5920_v45  ;;  %v5880_v19 = vld [vmem:[#allocation2 + $0x30] sm:$0xff] }
 0x873   : > { %7959 = vmatprep.subr.bf16.mxu0 %v12287_v9  ;;  %v10250_v18 = vcombine.high %v15244_v32, %v15252_v63  ;;  %7667 = vmatpush1.bf16.msra.mxu1 %v6002_v49  ;;  %v5879_v60 = vld [vmem:[#allocation2 + $0x28] sm:$0xff]  ;;  %v5922_v8 = vld [vmem:[#allocation2 + $0x180] sm:$0xff]  ;;  %v5881_v39 = vld [vmem:[#allocation2 + $0x38] sm:$0xff]  ;;  %s17602_s6 = smov %s17601_s27 }
 0x874   : > { %7668 = vmatprep.subr.bf16.mxu1 %v12287_v9  ;;  %v5923_v42 = vld [vmem:[#allocation2 + $0x188] sm:$0xff]  ;;  %v6004_v43 = vpack.c.bf16 %v5879_v60, %v5878_v44  ;;  %v6005_v47 = vpack.c.bf16 %v5881_v39, %v5880_v19  ;;  %v5924_v11 = vld [vmem:[#allocation2 + $0x190] sm:$0xff]  ;;  %v5925_v7 = vld [vmem:[#allocation2 + $0x198] sm:$0xff] }
 0x875   : > { %7987 = vmatprep.mubr.bf16.mxu0 %v10250_v18  ;;  %v15276_v12 = vpack.c.bf16 %v5923_v42, %v5922_v8  ;;  %v5882_v62 = vld [vmem:[#allocation2 + $0x40] sm:$0xff]  ;;  %v5883_v29 = vld [vmem:[#allocation2 + $0x48] sm:$0xff]  ;;  %v15281_v36 = vpack.c.bf16 %v5925_v7, %v5924_v11  ;;  %v5884_v52 = vld [vmem:[#allocation2 + $0x50] sm:$0xff] }
 0x876   : > { %7960 = vmatpush1.bf16.msra.mxu0 %v15238_v34  ;;  %v5926_v38 = vld [vmem:[#allocation2 + $0x1a0] sm:$0xff]  ;;  %v5927_v14 = vld [vmem:[#allocation2 + $0x1a8] sm:$0xff]  ;;  %v6006_v6 = vpack.c.bf16 %v5883_v29, %v5882_v62  ;;  %v5885_v50 = vld [vmem:[#allocation2 + $0x58] sm:$0xff] }
 0x877   : > { %7961 = vmatprep.subr.bf16.mxu0 %v12287_v9  ;;  %7669 = vmatpush1.bf16.msra.mxu1 %v6003_v40  ;;  %v15286_v16 = vpack.c.bf16 %v5927_v14, %v5926_v38  ;;  %v6007_v20 = vpack.c.bf16 %v5885_v50, %v5884_v52  ;;  %v5928_v2 = vld [vmem:[#allocation2 + $0x1b0] sm:$0xff]  ;;  %v5929_v55 = vld [vmem:[#allocation2 + $0x1b8] sm:$0xff]  ;;  %v5886_v23 = vld [vmem:[#allocation2 + $0x60] sm:$0xff] }
 0x878   : > { %7670 = vmatprep.subr.bf16.mxu1 %v12287_v9  ;;  %v5887_v15 = vld [vmem:[#allocation2 + $0x68] sm:$0xff]  ;;  %v15291_v25 = vpack.c.bf16 %v5929_v55, %v5928_v2  ;;  %v5930_v5 = vld [vmem:[#allocation2 + $0x1c0] sm:$0xff]  ;;  %v5888_v4 = vld [vmem:[#allocation2 + $0x70] sm:$0xff] }
 0x879   : > { %v5931_v24 = vld [vmem:[#allocation2 + $0x1c8] sm:$0xff]  ;;  %v6008_v37 = vpack.c.bf16 %v5887_v15, %v5886_v23  ;;  %v5889_v35 = vld [vmem:[#allocation2 + $0x78] sm:$0xff]  ;;  %v5932_v31 = vld [vmem:[#allocation2 + $0x1d0] sm:$0xff] }
 0x87a   : > { %7962 = vmatpush1.bf16.msra.mxu0 %v15247_v3  ;;  %v15296_v51 = vpack.c.bf16 %v5931_v24, %v5930_v5  ;;  %v6009_v30 = vpack.c.bf16 %v5889_v35, %v5888_v4  ;;  %v5933_v13 = vld [vmem:[#allocation2 + $0x1d8] sm:$0xff]  ;;  %v5890_v46 = vld [vmem:[#allocation2 + $0x80] sm:$0xff]  ;;  %v5891_v22 = vld [vmem:[#allocation2 + $0x88] sm:$0xff] }
 0x87b   : > { %7963 = vmatprep.subr.bf16.mxu0 %v12287_v9  ;;  %7671 = vmatpush1.bf16.msra.mxu1 %v6004_v43  ;;  %v15301_v41 = vpack.c.bf16 %v5933_v13, %v5932_v31  ;;  %v5934_v56 = vld [vmem:[#allocation2 + $0x1e0] sm:$0xff]  ;;  %v5935_v10 = vld [vmem:[#allocation2 + $0x1e8] sm:$0xff]  ;;  %v6010_v18 = vpack.c.bf16 %v5891_v22, %v5890_v46  ;;  %v5892_v21 = vld [vmem:[#allocation2 + $0x90] sm:$0xff]  ;;  %v10249_v43 = vcombine.low %v15244_v32, %v15252_v63 }
 0x87c   : > { %7672 = vmatprep.subr.bf16.mxu1 %v12287_v9  ;;  %v5893_v57 = vld [vmem:[#allocation2 + $0x98] sm:$0xff]  ;;  %v15306_v48 = vpack.c.bf16 %v5935_v10, %v5934_v56  ;;  %v5936_v54 = vld [vmem:[#allocation2 + $0x1f0] sm:$0xff]  ;;  %v5894_v49 = vld [vmem:[#allocation2 + $0xa0] sm:$0xff] }
 0x87d   : > { %v6011_v33 = vpack.c.bf16 %v5893_v57, %v5892_v21  ;;  %v5937_v58 = vld [vmem:[#allocation2 + $0x1f8] sm:$0xff]  ;;  %v5895_v26 = vld [vmem:[#allocation2 + $0xa8] sm:$0xff]  ;;  %v5938_v44 = vld [vmem:[#allocation2 + $0x200] sm:$0xff] }
 0x87e   : > { %7964 = vmatpush1.bf16.msra.mxu0 %v15258_v61  ;;  %v15311_v1 = vpack.c.bf16 %v5937_v58, %v5936_v54  ;;  %v6075_v40 = vld [vmem:[%s17552_s7 + $0x48] sm:$0xff]  ;;  %v6012_v27 = vpack.c.bf16 %v5895_v26, %v5894_v49  ;;  %v5896_v8 = vld [vmem:[#allocation2 + $0xb0] sm:$0xff]  ;;  %v5897_v42 = vld [vmem:[#allocation2 + $0xb8] sm:$0xff] }
 0x87f   : > { %7965 = vmatprep.subr.bf16.mxu0 %v12287_v9  ;;  %7673 = vmatpush1.bf16.msra.mxu1 %v6005_v47  ;;  %v6079_v45 = vld [vmem:[%s17552_s7 + $0x68] sm:$0xff]  ;;  %v5940_v47 = vld [vmem:[#allocation2 + $0x210] sm:$0xff]  ;;  %v5941_v11 = vld [vmem:[#allocation2 + $0x218] sm:$0xff]  ;;  %v6013_v7 = vpack.c.bf16 %v5897_v42, %v5896_v8 }
 0x880   : > { %7674 = vmatprep.subr.bf16.mxu1 %v12287_v9  ;;  %v5939_v60 = vld [vmem:[#allocation2 + $0x208] sm:$0xff]  ;;  %v10258_v19 = vcombine.high %v6075_v40, %v6079_v45  ;;  %v5898_v62 = vld [vmem:[#allocation2 + $0xc0] sm:$0xff]  ;;  %v6035_v63 = vpack.c.bf16 %v5941_v11, %v5940_v47  ;;  %v5900_v50 = vld [vmem:[#allocation2 + $0xd0] sm:$0xff]  ;;  %v10257_v2 = vcombine.low %v6075_v40, %v6079_v45 }
 0x881   : > { %v6034_v39 = vpack.c.bf16 %v5939_v60, %v5938_v44  ;;  %v5899_v29 = vld [vmem:[#allocation2 + $0xc8] sm:$0xff]  ;;  %v5942_v14 = vld [vmem:[#allocation2 + $0x220] sm:$0xff]  ;;  %v5944_v15 = vld [vmem:[#allocation2 + $0x230] sm:$0xff] }
 0x882   : > { %7966 = vmatpush1.bf16.msra.mxu0 %v15262_v17  ;;  %v6083_v32 = vld [vmem:[%s17552_s7 + $0x88] sm:$0xff]  ;;  %v6014_v52 = vpack.c.bf16 %v5899_v29, %v5898_v62  ;;  %v5945_v5 = vld [vmem:[#allocation2 + $0x238] sm:$0xff]  ;;  %v5946_v13 = vld [vmem:[#allocation2 + $0x240] sm:$0xff] }
 0x883   : > { %7967 = vmatprep.subr.bf16.mxu0 %v12287_v9  ;;  %7675 = vmatpush1.bf16.msra.mxu1 %v6006_v6  ;;  %v6087_v38 = vld [vmem:[%s17552_s7 + $0xa8] sm:$0xff]  ;;  %v5904_v56 = vld [vmem:[#allocation2 + $0xf0] sm:$0xff]  ;;  %v5905_v10 = vld [vmem:[#allocation2 + $0xf8] sm:$0xff] }
 0x884   : > { %7676 = vmatprep.subr.bf16.mxu1 %v12287_v9  ;;  %v5943_v6 = vld [vmem:[#allocation2 + $0x228] sm:$0xff]  ;;  %v10266_v55 = vcombine.high %v6083_v32, %v6087_v38  ;;  %v5949_v54 = vld [vmem:[#allocation2 + $0x258] sm:$0xff]  ;;  %v6017_v58 = vpack.c.bf16 %v5905_v10, %v5904_v56  ;;  %v6066_v49 = vld [vmem:[%s17552_s7] sm:$0xff] }
 0x885   : > { %v6036_v23 = vpack.c.bf16 %v5943_v6, %v5942_v14  ;;  %v5903_v4 = vld [vmem:[#allocation2 + $0xe8] sm:$0xff]  ;;  %v6070_v26 = vld [vmem:[%s17552_s7 + $0x20] sm:$0xff]  ;;  %v5952_v47 = vld [vmem:[#allocation2 + $0x270] sm:$0xff] }
 0x886   : > { %7968 = vmatpush1.bf16.msra.mxu0 %v15266_v28  ;;  %v6091_v35 = vld [vmem:[%s17552_s7 + $0xc8] sm:$0xff]  ;;  %v10248_v40 = vcombine.high %v6066_v49, %v6070_v26  ;;  %v10247_v44 = vcombine.low %v6066_v49, %v6070_v26  ;;  %v5950_v8 = vld [vmem:[#allocation2 + $0x260] sm:$0xff]  ;;  %v5953_v11 = vld [vmem:[#allocation2 + $0x278] sm:$0xff] }
 0x887   : > { %7969 = vmatprep.subr.bf16.mxu0 %v12287_v9  ;;  %7677 = vmatpush1.bf16.msra.mxu1 %v6007_v20  ;;  %v5901_v20 = vld [vmem:[#allocation2 + $0xd8] sm:$0xff]  ;;  %v6095_v31 = vld [vmem:[%s17552_s7 + $0xe8] sm:$0xff]  ;;  %v6078_v62 = vld [vmem:[%s17552_s7 + $0x60] sm:$0xff] }
 0x888   : > { %7678 = vmatprep.subr.bf16.mxu1 %v12287_v9  ;;  %v6015_v24 = vpack.c.bf16 %v5901_v20, %v5900_v50  ;;  %v5947_v46 = vld [vmem:[#allocation2 + $0x248] sm:$0xff]  ;;  %v10274_v21 = vcombine.high %v6091_v35, %v6095_v31  ;;  %7698 = vmatprep.mubr.bf16.mxu1 %v10248_v40  ;;  %v5954_v14 = vld [vmem:[#allocation2 + $0x280] sm:$0xff]  ;;  %v5964_v40 = vld [vmem:[#allocation2 + $0x2d0] sm:$0xff] }
 0x889   : > { %v6038_v57 = vpack.c.bf16 %v5947_v46, %v5946_v13  ;;  %v6099_v45 = vld [vmem:[%s17552_s7 + $0x108] sm:$0xff]  ;;  %v5960_v46 = vld [vmem:[#allocation2 + $0x2b0] sm:$0xff]  ;;  %v6090_v56 = vld [vmem:[%s17552_s7 + $0xc0] sm:$0xff] }
 0x88a   : > { %7970 = vmatpush1.bf16.msra.mxu0 %v15271_v59  ;;  %v6103_v60 = vld [vmem:[%s17552_s7 + $0x128] sm:$0xff]  ;;  %v6094_v10 = vld [vmem:[%s17552_s7 + $0xe0] sm:$0xff] }
 0x88b   : > { %7971 = vmatprep.subr.bf16.mxu0 %v12287_v9  ;;  %7679 = vmatpush1.bf16.msra.mxu1 %v6008_v37  ;;  %v5902_v37 = vld [vmem:[#allocation2 + $0xe0] sm:$0xff]  ;;  %v5951_v42 = vld [vmem:[#allocation2 + $0x268] sm:$0xff] }
 0x88c   : > { %7680 = vmatprep.subr.bf16.mxu1 %v12287_v9  ;;  %v6016_v22 = vpack.c.bf16 %v5903_v4, %v5902_v37  ;;  %v5955_v6 = vld [vmem:[#allocation2 + $0x288] sm:$0xff] }
 0x88d   : > { %v6042_v20 = vpack.c.bf16 %v5955_v6, %v5954_v14  ;;  %v6119_v4 = vld [vmem:[%s17552_s7 + $0x1a8] sm:$0xff] }
 0x88e   : > { %7972 = vmatpush1.bf16.msra.mxu0 %v15276_v12  ;;  %v6143_v14 = vld [vmem:[%s17552_s7 + $0x268] sm:$0xff] }
 0x88f   : > { %7973 = vmatprep.subr.bf16.mxu0 %v12287_v9  ;;  %7681 = vmatpush1.bf16.msra.mxu1 %v6009_v30  ;;  %v6037_v30 = vpack.c.bf16 %v5945_v5, %v5944_v15  ;;  %v6086_v15 = vld [vmem:[%s17552_s7 + $0xa0] sm:$0xff]  ;;  %v6115_v5 = vld [vmem:[%s17552_s7 + $0x188] sm:$0xff] }
 0x890   : > { %7682 = vmatprep.subr.bf16.mxu1 %v12287_v9 }
 0x892   : > { %7974 = vmatpush1.bf16.msra.mxu0 %v15281_v36 }
 0x893   : > { %7975 = vmatprep.subr.bf16.mxu0 %v12287_v9  ;;  %7683 = vmatpush1.bf16.msra.mxu1 %v6010_v18  ;;  %v10265_v18 = vcombine.low %v6083_v32, %v6087_v38  ;;  %v6107_v32 = vld [vmem:[%s17552_s7 + $0x148] sm:$0xff] }
 0x894   : > { %7684 = vmatprep.subr.bf16.mxu1 %v12287_v9  ;;  %v6111_v38 = vld [vmem:[%s17552_s7 + $0x168] sm:$0xff] }
 0x895   : > { %v10290_v50 = vcombine.high %v6107_v32, %v6111_v38 }
 0x896   : > { %7976 = vmatpush1.bf16.msra.mxu0 %v15286_v16 }
 0x897   : > { %7977 = vmatprep.subr.bf16.mxu0 %v12287_v9  ;;  %7685 = vmatpush1.bf16.msra.mxu1 %v6011_v33  ;;  %v5948_v33 = vld [vmem:[#allocation2 + $0x250] sm:$0xff] }
 0x898   : > { %7686 = vmatprep.subr.bf16.mxu1 %v12287_v9 }
 0x89a   : > { %7978 = vmatpush1.bf16.msra.mxu0 %v15291_v25 }
 0x89b   : > { %7979 = vmatprep.subr.bf16.mxu0 %v12287_v9  ;;  %7687 = vmatpush1.bf16.msra.mxu1 %v6012_v27  ;;  %v6039_v27 = vpack.c.bf16 %v5949_v54, %v5948_v33  ;;  %v6127_v33 = vld [vmem:[%s17552_s7 + $0x1e8] sm:$0xff]  ;;  %v5962_v54 = vld [vmem:[#allocation2 + $0x2c0] sm:$0xff] }
 0x89c   : > { %7688 = vmatprep.subr.bf16.mxu1 %v12287_v9 }
 0x89e   : > { %7980 = vmatpush1.bf16.msra.mxu0 %v15296_v51 }
 0x89f   : > { %7981 = vmatprep.subr.bf16.mxu0 %v12287_v9  ;;  %7689 = vmatpush1.bf16.msra.mxu1 %v6013_v7  ;;  %v6074_v7 = vld [vmem:[%s17552_s7 + $0x40] sm:$0xff] }
 0x8a0   : > { %7690 = vmatprep.subr.bf16.mxu1 %v12287_v9  ;;  %v10256_v29 = vcombine.high %v6074_v7, %v6078_v62 }
 0x8a2   : > { %7982 = vmatpush1.bf16.msra.mxu0 %v15301_v41 }
 0x8a3   : > { %7983 = vmatprep.subr.bf16.mxu0 %v12287_v9  ;;  %7691 = vmatpush1.bf16.msra.mxu1 %v6014_v52  ;;  %v10281_v52 = vcombine.low %v6099_v45, %v6103_v60 }
 0x8a4   : > { %7692 = vmatprep.subr.bf16.mxu1 %v12287_v9 }
 0x8a6   : > { %7984 = vmatpush1.bf16.msra.mxu0 %v15306_v48 }
 0x8a7   : > { %7985 = vmatprep.subr.bf16.mxu0 %v12287_v9  ;;  %7693 = vmatpush1.bf16.msra.mxu1 %v6015_v24 }
 0x8a8   : > { %7694 = vmatprep.subr.bf16.mxu1 %v12287_v9 }
 0x8aa   : > { %7986 = vmatpush1.bf16.msra.mxu0 %v15311_v1 }
 0x8ab   : > { %8244 = vmatprep.subr.bf16.mxu0 %v12287_v9  ;;  %7695 = vmatpush1.bf16.msra.mxu1 %v6016_v22  ;;  %v5961_v22 = vld [vmem:[#allocation2 + $0x2b8] sm:$0xff] }
 0x8ac   : > { %7696 = vmatprep.subr.bf16.mxu1 %v12287_v9 }
 0x8ad   : > { %7988 = vmatmul.mubr.bf16.vlgmr.msra.gmra.mrb[0].mxu0 %v10249_v43  ;;  %v10273_v43 = vcombine.low %v6091_v35, %v6095_v31  ;;  %v5958_v35 = vld [vmem:[#allocation2 + $0x2a0] sm:$0xff]  ;;  %v10298_v31 = vcombine.high %v6115_v5, %v6119_v4 }
 0x8ae   : > { %7995 = vmatprep.mubr.bf16.mxu0 %v10258_v19  ;;  %8245 = vmatpush1.bf16.msra.mxu0 %v6034_v39  ;;  %v10282_v19 = vcombine.high %v6099_v45, %v6103_v60  ;;  %v6040_v39 = vpack.c.bf16 %v5951_v42, %v5950_v8  ;;  %v5965_v45 = vld [vmem:[#allocation2 + $0x2d8] sm:$0xff]  ;;  %v6131_v60 = vld [vmem:[%s17552_s7 + $0x208] sm:$0xff] }
 0x8af   : > { %8246 = vmatprep.subr.bf16.mxu0 %v12287_v9  ;;  %7697 = vmatpush1.bf16.msra.mxu1 %v6017_v58  ;;  %v10297_v58 = vcombine.low %v6115_v5, %v6119_v4  ;;  %v6047_v8 = vpack.c.bf16 %v5965_v45, %v5964_v40 }
 0x8b0   : > { %11458 = vmatprep.subr.bf16.mxu1 %v12287_v9 }
 0x8b2   : > { %8247 = vmatpush1.bf16.msra.mxu0 %v6035_v63  ;;  %7699 = vmatmul.mubr.bf16.vlgmr.msra.gmra.mrb[0].mxu1 %v10247_v44  ;;  %v6041_v63 = vpack.c.bf16 %v5953_v11, %v5952_v47  ;;  %v6102_v44 = vld [vmem:[%s17552_s7 + $0x120] sm:$0xff] }
 0x8b3   : > { %8248 = vmatprep.subr.bf16.mxu0 %v12287_v9  ;;  %11474 = vmatpush1.bf16.msra.mxu1 %v15230_v53  ;;  %v10255_v53 = vcombine.low %v6074_v7, %v6078_v62  ;;  %v5968_v7 = vld [vmem:[#allocation2 + $0x2f0] sm:$0xff]  ;;  %v5969_v62 = vld [vmem:[#allocation2 + $0x2f8] sm:$0xff] }
 0x8b4   : > { %11459 = vmatprep.subr.bf16.mxu1 %v12287_v9  ;;  %7706 = vmatprep.mubr.bf16.mxu1 %v10256_v29  ;;  %v6106_v29 = vld [vmem:[%s17552_s7 + $0x140] sm:$0xff] }
 0x8b5   : > { %7996 = vmatmul.mubr.bf16.gmra.mrb[4].mxu0 %v10257_v2  ;;  %v5956_v2 = vld [vmem:[#allocation2 + $0x290] sm:$0xff] }
 0x8b6   : > { %8003 = vmatprep.mubr.bf16.mxu0 %v10266_v55  ;;  %8249 = vmatpush1.bf16.msra.mxu0 %v6036_v23  ;;  %v5957_v55 = vld [vmem:[#allocation2 + $0x298] sm:$0xff]  ;;  %v6082_v23 = vld [vmem:[%s17552_s7 + $0x80] sm:$0xff] }
 0x8b7   : > { %8250 = vmatprep.subr.bf16.mxu0 %v12287_v9  ;;  %11475 = vmatpush1.bf16.msra.mxu1 %v15234_v0  ;;  %v10264_v0 = vcombine.high %v6082_v23, %v6086_v15  ;;  %v6043_v24 = vpack.c.bf16 %v5957_v55, %v5956_v2  ;;  %v10263_v37 = vcombine.low %v6082_v23, %v6086_v15  ;;  %v6147_v2 = vld [vmem:[%s17552_s7 + $0x288] sm:$0xff]  ;;  %v6122_v15 = vld [vmem:[%s17552_s7 + $0x1c0] sm:$0xff] }
 0x8b8   : > { %11460 = vmatprep.subr.bf16.mxu1 %v12287_v9  ;;  %v6151_v55 = vld [vmem:[%s17552_s7 + $0x2a8] sm:$0xff] }
 0x8b9   : > { %v10329_v4 = vcombine.low %v6147_v2, %v6151_v55 }
 0x8ba   : > { %8251 = vmatpush1.bf16.msra.mxu0 %v6037_v30  ;;  %7707 = vmatmul.mubr.bf16.gmra.mrb[4].mxu1 %v10255_v53  ;;  %v10289_v30 = vcombine.low %v6107_v32, %v6111_v38  ;;  %v6110_v32 = vld [vmem:[%s17552_s7 + $0x160] sm:$0xff]  ;;  %v6139_v38 = vld [vmem:[%s17552_s7 + $0x248] sm:$0xff] }
 0x8bb   : > { %8252 = vmatprep.subr.bf16.mxu0 %v12287_v9  ;;  %11476 = vmatpush1.bf16.msra.mxu1 %v15238_v34  ;;  %v5959_v34 = vld [vmem:[#allocation2 + $0x2a8] sm:$0xff]  ;;  %v10287_v53 = vcombine.low %v6106_v29, %v6110_v32  ;;  %v10322_v6 = vcombine.high %v6139_v38, %v6143_v14  ;;  %v10321_v23 = vcombine.low %v6139_v38, %v6143_v14  ;;  %v6068_v14 = vld [vmem:[%s17552_s7 + $0x10] sm:$0xff] }
 0x8bc   : > { %11461 = vmatprep.subr.bf16.mxu1 %v12287_v9  ;;  %7714 = vmatprep.mubr.bf16.mxu1 %v10264_v0  ;;  %v6044_v13 = vpack.c.bf16 %v5959_v34, %v5958_v35  ;;  %v6126_v0 = vld [vmem:[%s17552_s7 + $0x1e0] sm:$0xff] }
 0x8bd   : > { %8004 = vmatmul.mubr.bf16.gmra.mrb[8].mxu0 %v10265_v18  ;;  %v6123_v18 = vld [vmem:[%s17552_s7 + $0x1c8] sm:$0xff]  ;;  %v10304_v5 = vcombine.high %v6122_v15, %v6126_v0  ;;  %v6130_v35 = vld [vmem:[%s17552_s7 + $0x200] sm:$0xff] }
 0x8be   : > { %8011 = vmatprep.mubr.bf16.mxu0 %v10274_v21  ;;  %8253 = vmatpush1.bf16.msra.mxu0 %v6038_v57  ;;  %v6045_v21 = vpack.c.bf16 %v5961_v22, %v5960_v46  ;;  %v10271_v57 = vcombine.low %v6090_v56, %v6094_v10  ;;  %v10306_v49 = vcombine.high %v6123_v18, %v6127_v33  ;;  %v6134_v34 = vld [vmem:[%s17552_s7 + $0x220] sm:$0xff] }
 0x8bf   : > { %8254 = vmatprep.subr.bf16.mxu0 %v12287_v9  ;;  %11477 = vmatpush1.bf16.msra.mxu1 %v15247_v3  ;;  %v10272_v3 = vcombine.high %v6090_v56, %v6094_v10  ;;  %v6142_v56 = vld [vmem:[%s17552_s7 + $0x260] sm:$0xff] }
 0x8c0   : > { %11462 = vmatprep.subr.bf16.mxu1 %v12287_v9 }
 0x8c2   : > { %8255 = vmatpush1.bf16.msra.mxu0 %v6039_v27  ;;  %7715 = vmatmul.mubr.bf16.gmra.mrb[8].mxu1 %v10263_v37  ;;  %v6098_v27 = vld [vmem:[%s17552_s7 + $0x100] sm:$0xff]  ;;  %v6159_v37 = vld [vmem:[%s17552_s7 + $0x2e8] sm:$0xff] }
 0x8c3   : > { %8256 = vmatprep.subr.bf16.mxu0 %v12287_v9  ;;  %11478 = vmatpush1.bf16.msra.mxu1 %v15258_v61  ;;  %v5963_v61 = vld [vmem:[#allocation2 + $0x2c8] sm:$0xff]  ;;  %v10279_v42 = vcombine.low %v6098_v27, %v6102_v44 }
 0x8c4   : > { %11463 = vmatprep.subr.bf16.mxu1 %v12287_v9  ;;  %7722 = vmatprep.mubr.bf16.mxu1 %v10272_v3  ;;  %v6046_v26 = vpack.c.bf16 %v5963_v61, %v5962_v54  ;;  %v6150_v54 = vld [vmem:[%s17552_s7 + $0x2a0] sm:$0xff] }
 0x8c5   : > { %8012 = vmatmul.mubr.bf16.gmra.mrb[12].mxu0 %v10273_v43  ;;  %v6135_v43 = vld [vmem:[%s17552_s7 + $0x228] sm:$0xff] }
 0x8c6   : > { %8019 = vmatprep.mubr.bf16.mxu0 %v10282_v19  ;;  %8257 = vmatpush1.bf16.msra.mxu0 %v6040_v39  ;;  %v5966_v19 = vld [vmem:[#allocation2 + $0x2e0] sm:$0xff]  ;;  %v10305_v39 = vcombine.low %v6123_v18, %v6127_v33  ;;  %v10314_v47 = vcombine.high %v6131_v60, %v6135_v43  ;;  %v6171_v18 = vld [vmem:[%s17552_s7 + $0x348] sm:$0xff] }
 0x8c7   : > { %8258 = vmatprep.subr.bf16.mxu0 %v12287_v9  ;;  %11479 = vmatpush1.bf16.msra.mxu1 %v15262_v17  ;;  %v10280_v17 = vcombine.high %v6098_v27, %v6102_v44  ;;  %v6146_v33 = vld [vmem:[%s17552_s7 + $0x280] sm:$0xff] }
 0x8c8   : > { %11464 = vmatprep.subr.bf16.mxu1 %v12287_v9  ;;  %v10328_v61 = vcombine.high %v6146_v33, %v6150_v54  ;;  %v6154_v27 = vld [vmem:[%s17552_s7 + $0x2c0] sm:$0xff] }
 0x8c9   : > { %v6158_v44 = vld [vmem:[%s17552_s7 + $0x2e0] sm:$0xff] }
 0x8ca   : > { %8259 = vmatpush1.bf16.msra.mxu0 %v6041_v63  ;;  %7723 = vmatmul.mubr.bf16.gmra.mrb[12].mxu1 %v10271_v57  ;;  %v6049_v63 = vpack.c.bf16 %v5969_v62, %v5968_v7  ;;  %v6195_v7 = vld [vmem:[%s17552_s7 + $0x408] sm:$0xff] }
 0x8cb   : > { %8260 = vmatprep.subr.bf16.mxu0 %v12287_v9  ;;  %11480 = vmatpush1.bf16.msra.mxu1 %v15266_v28  ;;  %v5967_v28 = vld [vmem:[#allocation2 + $0x2e8] sm:$0xff] }
 0x8cc   : > { %11465 = vmatprep.subr.bf16.mxu1 %v12287_v9  ;;  %7730 = vmatprep.mubr.bf16.mxu1 %v10280_v17  ;;  %v6048_v11 = vpack.c.bf16 %v5967_v28, %v5966_v19  ;;  %v10336_v17 = vcombine.high %v6154_v27, %v6158_v44  ;;  %v6162_v28 = vld [vmem:[%s17552_s7 + $0x300] sm:$0xff]  ;;  %v6199_v62 = vld [vmem:[%s17552_s7 + $0x428] sm:$0xff] }
 0x8cd   : > { %8020 = vmatmul.mubr.bf16.gmra.mrb[16].mxu0 %v10281_v52  ;;  %v6114_v52 = vld [vmem:[%s17552_s7 + $0x180] sm:$0xff] }
 0x8ce   : > { %8027 = vmatprep.mubr.bf16.mxu0 %v10290_v50  ;;  %8261 = vmatpush1.bf16.msra.mxu0 %v6042_v20  ;;  %v6118_v50 = vld [vmem:[%s17552_s7 + $0x1a0] sm:$0xff] }
 0x8cf   : > { %8262 = vmatprep.subr.bf16.mxu0 %v12287_v9  ;;  %11481 = vmatpush1.bf16.msra.mxu1 %v15271_v59  ;;  %v10288_v59 = vcombine.high %v6106_v29, %v6110_v32  ;;  %v10295_v20 = vcombine.low %v6114_v52, %v6118_v50  ;;  %v10378_v32 = vcombine.high %v6195_v7, %v6199_v62 }
 0x8d0   : > { %11466 = vmatprep.subr.bf16.mxu1 %v12287_v9 }
 0x8d2   : > { %8263 = vmatpush1.bf16.msra.mxu0 %v6043_v24  ;;  %7731 = vmatmul.mubr.bf16.gmra.mrb[16].mxu1 %v10279_v42  ;;  %v6155_v24 = vld [vmem:[%s17552_s7 + $0x2c8] sm:$0xff] }
 0x8d3   : > { %8264 = vmatprep.subr.bf16.mxu0 %v12287_v9  ;;  %11482 = vmatpush1.bf16.msra.mxu1 %v15276_v12  ;;  %v10313_v12 = vcombine.low %v6131_v60, %v6135_v43  ;;  %v10337_v46 = vcombine.low %v6155_v24, %v6159_v37  ;;  %v10335_v60 = vcombine.low %v6154_v27, %v6158_v44  ;;  %v6191_v42 = vld [vmem:[%s17552_s7 + $0x3e8] sm:$0xff]  ;;  %v6202_v27 = vld [vmem:[%s17552_s7 + $0x440] sm:$0xff] }
 0x8d4   : > { %11467 = vmatprep.subr.bf16.mxu1 %v12287_v9  ;;  %7738 = vmatprep.mubr.bf16.mxu1 %v10288_v59  ;;  %v6170_v59 = vld [vmem:[%s17552_s7 + $0x340] sm:$0xff] }
 0x8d5   : > { %8028 = vmatmul.mubr.bf16.gmra.mrb[20].mxu0 %v10289_v30  ;;  %v10312_v30 = vcombine.high %v6130_v35, %v6134_v34  ;;  %v6206_v44 = vld [vmem:[%s17552_s7 + $0x460] sm:$0xff] }
 0x8d6   : > { %8035 = vmatprep.mubr.bf16.mxu0 %v10298_v31  ;;  %8265 = vmatpush1.bf16.msra.mxu0 %v6044_v13  ;;  %v6163_v31 = vld [vmem:[%s17552_s7 + $0x308] sm:$0xff] }
 0x8d7   : > { %8266 = vmatprep.subr.bf16.mxu0 %v12287_v9  ;;  %11483 = vmatpush1.bf16.msra.mxu1 %v15281_v36  ;;  %v10296_v36 = vcombine.high %v6114_v52, %v6118_v50  ;;  %v6167_v13 = vld [vmem:[%s17552_s7 + $0x328] sm:$0xff]  ;;  %v6178_v50 = vld [vmem:[%s17552_s7 + $0x380] sm:$0xff] }
 0x8d8   : > { %11468 = vmatprep.subr.bf16.mxu1 %v12287_v9  ;;  %v10346_v22 = vcombine.high %v6163_v31, %v6167_v13 }
 0x8da   : > { %8267 = vmatpush1.bf16.msra.mxu0 %v6045_v21  ;;  %7739 = vmatmul.mubr.bf16.gmra.mrb[20].mxu1 %v10287_v53  ;;  %v10345_v21 = vcombine.low %v6163_v31, %v6167_v13  ;;  %v6088_v31 = vld [vmem:[%s17552_s7 + $0xb0] sm:$0xff]  ;;  %v5974_v13 = vld [vmem:[#allocation2 + $0x320] sm:$0xff] }
 0x8db   : > { %8268 = vmatprep.subr.bf16.mxu0 %v12287_v9  ;;  %11484 = vmatpush1.bf16.msra.mxu1 %v15286_v16  ;;  %v10330_v16 = vcombine.high %v6147_v2, %v6151_v55  ;;  %v6076_v2 = vld [vmem:[%s17552_s7 + $0x50] sm:$0xff] }
 0x8dc   : > { %11469 = vmatprep.subr.bf16.mxu1 %v12287_v9  ;;  %7746 = vmatprep.mubr.bf16.mxu1 %v10296_v36  ;;  %v6182_v36 = vld [vmem:[%s17552_s7 + $0x3a0] sm:$0xff] }
 0x8dd   : > { %8036 = vmatmul.mubr.bf16.gmra.mrb[24].mxu0 %v10297_v58  ;;  %v10327_v58 = vcombine.low %v6146_v33, %v6150_v54  ;;  %v10359_v55 = vcombine.low %v6178_v50, %v6182_v36 }
 0x8de   : > { %8043 = vmatprep.mubr.bf16.mxu0 %v10306_v49  ;;  %8269 = vmatpush1.bf16.msra.mxu0 %v6046_v26  ;;  %v6179_v49 = vld [vmem:[%s17552_s7 + $0x388] sm:$0xff] }
 0x8df   : > { %8270 = vmatprep.subr.bf16.mxu0 %v12287_v9  ;;  %11485 = vmatpush1.bf16.msra.mxu1 %v15291_v25  ;;  %v10303_v25 = vcombine.low %v6122_v15, %v6126_v0  ;;  %v6183_v26 = vld [vmem:[%s17552_s7 + $0x3a8] sm:$0xff] }
 0x8e0   : > { %11470 = vmatprep.subr.bf16.mxu1 %v12287_v9  ;;  %v10362_v45 = vcombine.high %v6179_v49, %v6183_v26  ;;  %v10361_v43 = vcombine.low %v6179_v49, %v6183_v26  ;;  %v5971_v15 = vld [vmem:[#allocation2 + $0x308] sm:$0xff] }
 0x8e1   : > { %v5979_v49 = vld [vmem:[#allocation2 + $0x348] sm:$0xff] }
 0x8e2   : > { %8271 = vmatpush1.bf16.msra.mxu0 %v6047_v8  ;;  %7747 = vmatmul.mubr.bf16.gmra.mrb[24].mxu1 %v10295_v20  ;;  %v6187_v8 = vld [vmem:[%s17552_s7 + $0x3c8] sm:$0xff]  ;;  %v10360_v20 = vcombine.high %v6178_v50, %v6182_v36 }
 0x8e3   : > { %8272 = vmatprep.subr.bf16.mxu0 %v12287_v9  ;;  %11486 = vmatpush1.bf16.msra.mxu1 %v15296_v51  ;;  %v10338_v51 = vcombine.high %v6155_v24, %v6159_v37  ;;  %v10370_v19 = vcombine.high %v6187_v8, %v6191_v42  ;;  %v10369_v29 = vcombine.low %v6187_v8, %v6191_v42  ;;  %v5972_v24 = vld [vmem:[#allocation2 + $0x310] sm:$0xff]  ;;  %v5973_v37 = vld [vmem:[#allocation2 + $0x318] sm:$0xff] }
 0x8e4   : > { %11471 = vmatprep.subr.bf16.mxu1 %v12287_v9  ;;  %7754 = vmatprep.mubr.bf16.mxu1 %v10304_v5  ;;  %v5981_v8 = vld [vmem:[#allocation2 + $0x358] sm:$0xff]  ;;  %v10383_v42 = vcombine.low %v6202_v27, %v6206_v44 }
 0x8e5   : > { %8044 = vmatmul.mubr.bf16.gmra.mrb[28].mxu0 %v10305_v39  ;;  %v6166_v39 = vld [vmem:[%s17552_s7 + $0x320] sm:$0xff] }
 0x8e6   : > { %8051 = vmatprep.mubr.bf16.mxu0 %v10314_v47  ;;  %8273 = vmatpush1.bf16.msra.mxu0 %v6048_v11  ;;  %v10344_v47 = vcombine.high %v6162_v28, %v6166_v39  ;;  %v10343_v11 = vcombine.low %v6162_v28, %v6166_v39  ;;  %v6104_v28 = vld [vmem:[%s17552_s7 + $0x130] sm:$0xff] }
 0x8e7   : > { %8274 = vmatprep.subr.bf16.mxu0 %v12287_v9  ;;  %11487 = vmatpush1.bf16.msra.mxu1 %v15301_v41  ;;  %v10311_v41 = vcombine.low %v6130_v35, %v6134_v34  ;;  %v6084_v34 = vld [vmem:[%s17552_s7 + $0x90] sm:$0xff] }
 0x8e8   : > { %11472 = vmatprep.subr.bf16.mxu1 %v12287_v9  ;;  %v10267_v26 = vcombine.low %v6084_v34, %v6088_v31 }
 0x8ea   : > { %8275 = vmatpush1.bf16.msra.mxu0 %v6049_v63  ;;  %7755 = vmatmul.mubr.bf16.gmra.mrb[28].mxu1 %v10303_v25  ;;  %v6174_v63 = vld [vmem:[%s17552_s7 + $0x360] sm:$0xff] }
 0x8eb   : > { %8533 = vmatprep.subr.bf16.mxu0 %v12287_v9  ;;  %11488 = vmatpush1.bf16.msra.mxu1 %v15306_v48  ;;  %v6138_v48 = vld [vmem:[%s17552_s7 + $0x240] sm:$0xff]  ;;  %v10352_v53 = vcombine.high %v6170_v59, %v6174_v63  ;;  %v10351_v38 = vcombine.low %v6170_v59, %v6174_v63  ;;  %v6112_v59 = vld [vmem:[%s17552_s7 + $0x170] sm:$0xff] }
 0x8ec   : > { %11473 = vmatprep.subr.bf16.mxu1 %v12287_v9  ;;  %7762 = vmatprep.mubr.bf16.mxu1 %v10312_v30  ;;  %v10320_v10 = vcombine.high %v6138_v48, %v6142_v56  ;;  %v10319_v3 = vcombine.low %v6138_v48, %v6142_v56  ;;  %v6051_v30 = vpack.c.bf16 %v5973_v37, %v5972_v24  ;;  %v6128_v24 = vld [vmem:[%s17552_s7 + $0x1f0] sm:$0xff] }
 0x8ed   : > { %8052 = vmatmul.mubr.bf16.gmra.mrb[32].mxu0 %v10313_v12  ;;  %v6072_v12 = vld [vmem:[%s17552_s7 + $0x30] sm:$0xff]  ;;  %v10268_v48 = vcombine.high %v6084_v34, %v6088_v31 }
 0x8ee   : > { %8059 = vmatprep.mubr.bf16.mxu0 %v10322_v6  ;;  %v10377_v6 = vcombine.low %v6195_v7, %v6199_v62  ;;  %v10252_v52 = vcombine.high %v6068_v14, %v6072_v12  ;;  %v10251_v0 = vcombine.low %v6068_v14, %v6072_v12  ;;  %v6214_v7 = vld [vmem:[%s17552_s7 + $0x4a0] sm:$0xff] }
 0x8ef   : > { %11489 = vmatpush1.bf16.msra.mxu1 %v15311_v1  ;;  %v6175_v1 = vld [vmem:[%s17552_s7 + $0x368] sm:$0xff]  ;;  %v6222_v14 = vld [vmem:[%s17552_s7 + $0x4e0] sm:$0xff] }
 0x8f0   : > { %v10354_v57 = vcombine.high %v6171_v18, %v6175_v1  ;;  %v10353_v40 = vcombine.low %v6171_v18, %v6175_v1  ;;  %v6194_v18 = vld [vmem:[%s17552_s7 + $0x400] sm:$0xff] }
 0x8f1   : > { %v6198_v1 = vld [vmem:[%s17552_s7 + $0x420] sm:$0xff] }
 0x8f2   : > { %7763 = vmatmul.mubr.bf16.gmra.mrb[32].mxu1 %v10311_v41  ;;  %v10375_v54 = vcombine.low %v6194_v18, %v6198_v1 }
 0x8f3   : > { %7770 = vmatprep.mubr.bf16.mxu1 %v10320_v10  ;;  %v5976_v10 = vld [vmem:[#allocation2 + $0x330] sm:$0xff] }
 0x8f5   : > { %8060 = vmatmul.mubr.bf16.gmra.mrb[36].mxu0 %v10321_v23  ;;  %v6080_v23 = vld [vmem:[%s17552_s7 + $0x70] sm:$0xff] }
 0x8f6   : > { %8067 = vmatprep.mubr.bf16.mxu0 %v10330_v16  ;;  %v5970_v16 = vld [vmem:[#allocation2 + $0x300] sm:$0xff]  ;;  %v10260_v5 = vcombine.high %v6076_v2, %v6080_v23 }
 0x8f7   : > { %v6050_v25 = vpack.c.bf16 %v5971_v15, %v5970_v16  ;;  %v6226_v16 = vld [vmem:[%s17552_s7 + $0x500] sm:$0xff] }
 0x8f8   : > { %v6230_v15 = vld [vmem:[%s17552_s7 + $0x520] sm:$0xff] }
 0x8fa   : > { %7771 = vmatmul.mubr.bf16.gmra.mrb[36].mxu1 %v10319_v3  ;;  %v5977_v3 = vld [vmem:[#allocation2 + $0x338] sm:$0xff] }
 0x8fb   : > { %7778 = vmatprep.mubr.bf16.mxu1 %v10328_v61  ;;  %v6053_v33 = vpack.c.bf16 %v5977_v3, %v5976_v10  ;;  %v6096_v61 = vld [vmem:[%s17552_s7 + $0xf0] sm:$0xff]  ;;  %v6242_v10 = vld [vmem:[%s17552_s7 + $0x580] sm:$0xff] }
 0x8fc   : > { %v6246_v3 = vld [vmem:[%s17552_s7 + $0x5a0] sm:$0xff] }
 0x8fd   : > { %8068 = vmatmul.mubr.bf16.gmra.mrb[40].mxu0 %v10329_v4  ;;  %v6186_v4 = vld [vmem:[%s17552_s7 + $0x3c0] sm:$0xff] }
 0x8fe   : > { %8075 = vmatprep.mubr.bf16.mxu0 %v10338_v51  ;;  %v6190_v51 = vld [vmem:[%s17552_s7 + $0x3e0] sm:$0xff] }
 0x8ff   : > { %v10368_v35 = vcombine.high %v6186_v4, %v6190_v51  ;;  %v10367_v41 = vcombine.low %v6186_v4, %v6190_v51  ;;  %v6234_v51 = vld [vmem:[%s17552_s7 + $0x540] sm:$0xff] }
 0x902   : > { %7779 = vmatmul.mubr.bf16.gmra.mrb[40].mxu1 %v10327_v58  ;;  %v5978_v58 = vld [vmem:[#allocation2 + $0x340] sm:$0xff] }
 0x903   : > { %7786 = vmatprep.mubr.bf16.mxu1 %v10336_v17  ;;  %v10384_v17 = vcombine.high %v6202_v27, %v6206_v44  ;;  %v6148_v44 = vld [vmem:[%s17552_s7 + $0x290] sm:$0xff] }
 0x905   : > { %8076 = vmatmul.mubr.bf16.gmra.mrb[44].mxu0 %v10337_v46  ;;  %v5975_v46 = vld [vmem:[#allocation2 + $0x328] sm:$0xff] }
 0x906   : > { %8083 = vmatprep.mubr.bf16.mxu0 %v10346_v22  ;;  %v10259_v22 = vcombine.low %v6076_v2, %v6080_v23  ;;  %v6052_v56 = vpack.c.bf16 %v5975_v46, %v5974_v13  ;;  %v6120_v2 = vld [vmem:[%s17552_s7 + $0x1b0] sm:$0xff] }
 0x907   : > { %v6132_v46 = vld [vmem:[%s17552_s7 + $0x210] sm:$0xff] }
 0x90a   : > { %7787 = vmatmul.mubr.bf16.gmra.mrb[44].mxu1 %v10335_v60  ;;  %v5980_v60 = vld [vmem:[#allocation2 + $0x350] sm:$0xff] }
 0x90b   : > { %7794 = vmatprep.mubr.bf16.mxu1 %v10344_v47 }
 0x90d   : > { %8084 = vmatmul.mubr.bf16.gmra.mrb[48].mxu0 %v10345_v21  ;;  %v10376_v21 = vcombine.high %v6194_v18, %v6198_v1  ;;  %v10424_v18 = vcombine.high %v6242_v10, %v6246_v3  ;;  %v10423_v1 = vcombine.low %v6242_v10, %v6246_v3  ;;  %v6188_v3 = vld [vmem:[%s17552_s7 + $0x3d0] sm:$0xff] }
 0x90e   : > { %8091 = vmatprep.mubr.bf16.mxu0 %v10354_v57  ;;  %v6092_v57 = vld [vmem:[%s17552_s7 + $0xd0] sm:$0xff] }
 0x90f   : > { %v10275_v39 = vcombine.low %v6092_v57, %v6096_v61 }
 0x912   : > { %7795 = vmatmul.mubr.bf16.gmra.mrb[48].mxu1 %v10343_v11  ;;  %v6210_v11 = vld [vmem:[%s17552_s7 + $0x480] sm:$0xff] }
 0x913   : > { %7802 = vmatprep.mubr.bf16.mxu1 %v10352_v53  ;;  %v10392_v62 = vcombine.high %v6210_v11, %v6214_v7 }
 0x915   : > { %8092 = vmatmul.mubr.bf16.gmra.mrb[52].mxu0 %v10353_v40  ;;  %v10276_v40 = vcombine.high %v6092_v57, %v6096_v61  ;;  %v6144_v57 = vld [vmem:[%s17552_s7 + $0x270] sm:$0xff]  ;;  %v6250_v61 = vld [vmem:[%s17552_s7 + $0x5c0] sm:$0xff] }
 0x916   : > { %8099 = vmatprep.mubr.bf16.mxu0 %v10362_v45  ;;  %v6054_v45 = vpack.c.bf16 %v5979_v49, %v5978_v58  ;;  %v6254_v58 = vld [vmem:[%s17552_s7 + $0x5e0] sm:$0xff] }
 0x917   : > { %v10432_v49 = vcombine.high %v6250_v61, %v6254_v58 }
 0x91a   : > { %7803 = vmatmul.mubr.bf16.gmra.mrb[52].mxu1 %v10351_v38  ;;  %v6218_v38 = vld [vmem:[%s17552_s7 + $0x4c0] sm:$0xff] }
 0x91b   : > { %7810 = vmatprep.mubr.bf16.mxu1 %v10360_v20  ;;  %v10400_v12 = vcombine.high %v6218_v38, %v6222_v14  ;;  %v10399_v50 = vcombine.low %v6218_v38, %v6222_v14  ;;  %v6116_v20 = vld [vmem:[%s17552_s7 + $0x190] sm:$0xff] }
 0x91c   : > { %v10300_v23 = vcombine.high %v6116_v20, %v6120_v2  ;;  %v10299_v37 = vcombine.low %v6116_v20, %v6120_v2  ;;  %v6164_v14 = vld [vmem:[%s17552_s7 + $0x310] sm:$0xff] }
 0x91d   : > { %8100 = vmatmul.mubr.bf16.gmra.mrb[56].mxu0 %v10361_v43  ;;  %v6055_v43 = vpack.c.bf16 %v5981_v8, %v5980_v60 }
 0x91e   : > { %8107 = vmatprep.mubr.bf16.mxu0 %v10370_v19  ;;  %v6100_v19 = vld [vmem:[%s17552_s7 + $0x110] sm:$0xff] }
 0x91f   : > { %v10284_v47 = vcombine.high %v6100_v19, %v6104_v28  ;;  %v10283_v63 = vcombine.low %v6100_v19, %v6104_v28 }
 0x922   : > { %7811 = vmatmul.mubr.bf16.gmra.mrb[56].mxu1 %v10359_v55 }
 0x923   : > { %7818 = vmatprep.mubr.bf16.mxu1 %v10368_v35  ;;  %v6238_v35 = vld [vmem:[%s17552_s7 + $0x560] sm:$0xff] }
 0x924   : > { %v10416_v34 = vcombine.high %v6234_v51, %v6238_v35  ;;  %v10415_v31 = vcombine.low %v6234_v51, %v6238_v35  ;;  %v6180_v35 = vld [vmem:[%s17552_s7 + $0x390] sm:$0xff] }
 0x925   : > { %8108 = vmatmul.mubr.bf16.gmra.mrb[60].mxu0 %v10369_v29  ;;  %v10391_v29 = vcombine.low %v6210_v11, %v6214_v7 }
 0x926   : > { %8115 = vmatprep.mubr.bf16.mxu0 %v10378_v32  ;;  %v6108_v32 = vld [vmem:[%s17552_s7 + $0x150] sm:$0xff] }
 0x927   : > { %v10292_v53 = vcombine.high %v6108_v32, %v6112_v59  ;;  %v10291_v55 = vcombine.low %v6108_v32, %v6112_v59  ;;  %v5988_v59 = vld [vmem:[#allocation2 + $0x390] sm:$0xff] }
 0x92a   : > { %7819 = vmatmul.mubr.bf16.gmra.mrb[60].mxu1 %v10367_v41  ;;  %v5985_v41 = vld [vmem:[#allocation2 + $0x378] sm:$0xff] }
 0x92b   : > { %7826 = vmatprep.mubr.bf16.mxu1 %v10376_v21  ;;  %v6140_v21 = vld [vmem:[%s17552_s7 + $0x250] sm:$0xff] }
 0x92c   : > { %v10323_v60 = vcombine.low %v6140_v21, %v6144_v57 }
 0x92d   : > { %8116 = vmatmul.mubr.bf16.gmra.mrb[64].mxu0 %v10377_v6  ;;  %v5982_v6 = vld [vmem:[#allocation2 + $0x360] sm:$0xff] }
 0x92e   : > { %8276 = vmatprep.mubr.bf16.mxu0 %v10252_v52  ;;  %v5983_v52 = vld [vmem:[#allocation2 + $0x368] sm:$0xff] }
 0x92f   : > { %v6056_v36 = vpack.c.bf16 %v5983_v52, %v5982_v6 }
 0x932   : > { %7827 = vmatmul.mubr.bf16.gmra.mrb[64].mxu1 %v10375_v54  ;;  %v10324_v54 = vcombine.high %v6140_v21, %v6144_v57  ;;  %v5994_v57 = vld [vmem:[#allocation2 + $0x3c0] sm:$0xff] }
 0x933   : > { %7834 = vmatprep.mubr.bf16.mxu1 %v10384_v17  ;;  %v6152_v17 = vld [vmem:[%s17552_s7 + $0x2b0] sm:$0xff] }
 0x934   : > { %v10332_v8 = vcombine.high %v6148_v44, %v6152_v17  ;;  %v10331_v11 = vcombine.low %v6148_v44, %v6152_v17  ;;  %v6196_v44 = vld [vmem:[%s17552_s7 + $0x410] sm:$0xff] }
 0x935   : > { %8277 = vmatmul.mubr.bf16.vlgmr.msra.gmra.mrb[0].mxu0 %v10251_v0  ;;  %v10408_v0 = vcombine.high %v6226_v16, %v6230_v15  ;;  %v6200_v17 = vld [vmem:[%s17552_s7 + $0x430] sm:$0xff] }
 0x936   : > { %8284 = vmatprep.mubr.bf16.mxu0 %v10260_v5  ;;  %8534 = vmatpush1.bf16.msra.mxu0 %v6050_v25  ;;  %v10407_v5 = vcombine.low %v6226_v16, %v6230_v15  ;;  %v6124_v25 = vld [vmem:[%s17552_s7 + $0x1d0] sm:$0xff] }
 0x937   : > { %8535 = vmatprep.subr.bf16.mxu0 %v12287_v9  ;;  %v10308_v4 = vcombine.high %v6124_v25, %v6128_v24 }
 0x93a   : > { %8536 = vmatpush1.bf16.msra.mxu0 %v6051_v30  ;;  %7835 = vmatmul.mubr.bf16.gmra.mrb[68].mxu1 %v10383_v42  ;;  %v5984_v30 = vld [vmem:[#allocation2 + $0x370] sm:$0xff]  ;;  %v6258_v42 = vld [vmem:[%s17552_s7 + $0x600] sm:$0xff] }
 0x93b   : > { %8537 = vmatprep.subr.bf16.mxu0 %v12287_v9  ;;  %7842 = vmatprep.mubr.bf16.mxu1 %v10392_v62  ;;  %v6057_v13 = vpack.c.bf16 %v5985_v41, %v5984_v30  ;;  %v6266_v62 = vld [vmem:[%s17552_s7 + $0x640] sm:$0xff] }
 0x93d   : > { %8285 = vmatmul.mubr.bf16.gmra.mrb[4].mxu0 %v10259_v22  ;;  %v6136_v22 = vld [vmem:[%s17552_s7 + $0x230] sm:$0xff] }
 0x93e   : > { %8292 = vmatprep.mubr.bf16.mxu0 %v10268_v48  ;;  %8538 = vmatpush1.bf16.msra.mxu0 %v6052_v56  ;;  %v10307_v48 = vcombine.low %v6124_v25, %v6128_v24  ;;  %v10316_v56 = vcombine.high %v6132_v46, %v6136_v22  ;;  %v5990_v24 = vld [vmem:[#allocation2 + $0x3a0] sm:$0xff] }
 0x93f   : > { %8539 = vmatprep.subr.bf16.mxu0 %v12287_v9 }
 0x942   : > { %8540 = vmatpush1.bf16.msra.mxu0 %v6053_v33  ;;  %7843 = vmatmul.mubr.bf16.gmra.mrb[72].mxu1 %v10391_v29  ;;  %v10315_v33 = vcombine.low %v6132_v46, %v6136_v22  ;;  %v6270_v29 = vld [vmem:[%s17552_s7 + $0x660] sm:$0xff]  ;;  %v5992_v22 = vld [vmem:[#allocation2 + $0x3b0] sm:$0xff] }
 0x943   : > { %8541 = vmatprep.subr.bf16.mxu0 %v12287_v9  ;;  %7850 = vmatprep.mubr.bf16.mxu1 %v10400_v12  ;;  %v10448_v32 = vcombine.high %v6266_v62, %v6270_v29  ;;  %v6168_v12 = vld [vmem:[%s17552_s7 + $0x330] sm:$0xff] }
 0x944   : > { %v10348_v52 = vcombine.high %v6164_v14, %v6168_v12  ;;  %v10347_v16 = vcombine.low %v6164_v14, %v6168_v12  ;;  %v6318_v14 = vld [vmem:[%s17552_s7 + $0x7e0] sm:$0xff] }
 0x945   : > { %8293 = vmatmul.mubr.bf16.gmra.mrb[8].mxu0 %v10267_v26  ;;  %v5986_v26 = vld [vmem:[#allocation2 + $0x380] sm:$0xff] }
 0x946   : > { %8300 = vmatprep.mubr.bf16.mxu0 %v10276_v40  ;;  %8542 = vmatpush1.bf16.msra.mxu0 %v6054_v45  ;;  %v5987_v40 = vld [vmem:[#allocation2 + $0x388] sm:$0xff]  ;;  %v10431_v45 = vcombine.low %v6250_v61, %v6254_v58  ;;  %v6298_v61 = vld [vmem:[%s17552_s7 + $0x740] sm:$0xff] }
 0x947   : > { %8543 = vmatprep.subr.bf16.mxu0 %v12287_v9  ;;  %v6058_v27 = vpack.c.bf16 %v5987_v40, %v5986_v26  ;;  %v6302_v58 = vld [vmem:[%s17552_s7 + $0x760] sm:$0xff]  ;;  %v5996_v26 = vld [vmem:[#allocation2 + $0x3d0] sm:$0xff]  ;;  %v5997_v40 = vld [vmem:[#allocation2 + $0x3d8] sm:$0xff] }
 0x94a   : > { %8544 = vmatpush1.bf16.msra.mxu0 %v6055_v43  ;;  %7851 = vmatmul.mubr.bf16.gmra.mrb[76].mxu1 %v10399_v50  ;;  %v6262_v43 = vld [vmem:[%s17552_s7 + $0x620] sm:$0xff] }
 0x94b   : > { %8545 = vmatprep.subr.bf16.mxu0 %v12287_v9  ;;  %7858 = vmatprep.mubr.bf16.mxu1 %v10408_v0  ;;  %v10440_v19 = vcombine.high %v6258_v42, %v6262_v43  ;;  %v10439_v28 = vcombine.low %v6258_v42, %v6262_v43  ;;  %v6274_v50 = vld [vmem:[%s17552_s7 + $0x680] sm:$0xff]  ;;  %v5999_v43 = vld [vmem:[#allocation2 + $0x3e8] sm:$0xff] }
 0x94c   : > { %v6282_v0 = vld [vmem:[%s17552_s7 + $0x6c0] sm:$0xff] }
 0x94d   : > { %8301 = vmatmul.mubr.bf16.gmra.mrb[12].mxu0 %v10275_v39  ;;  %v6156_v39 = vld [vmem:[%s17552_s7 + $0x2d0] sm:$0xff]  ;;  %v5998_v42 = vld [vmem:[#allocation2 + $0x3e0] sm:$0xff] }
 0x94e   : > { %8308 = vmatprep.mubr.bf16.mxu0 %v10284_v47  ;;  %8546 = vmatpush1.bf16.msra.mxu0 %v6056_v36  ;;  %v6160_v47 = vld [vmem:[%s17552_s7 + $0x2f0] sm:$0xff]  ;;  %v6278_v36 = vld [vmem:[%s17552_s7 + $0x6a0] sm:$0xff] }
 0x94f   : > { %8547 = vmatprep.subr.bf16.mxu0 %v12287_v9  ;;  %v10340_v7 = vcombine.high %v6156_v39, %v6160_v47  ;;  %v10339_v6 = vcombine.low %v6156_v39, %v6160_v47  ;;  %v10456_v20 = vcombine.high %v6274_v50, %v6278_v36  ;;  %v10455_v2 = vcombine.low %v6274_v50, %v6278_v36  ;;  %v6310_v39 = vld [vmem:[%s17552_s7 + $0x7a0] sm:$0xff] }
 0x952   : > { %7859 = vmatmul.mubr.bf16.gmra.mrb[80].mxu1 %v10407_v5  ;;  %8548 = vmatpush1.bf16.msra.mxu0 %v6057_v13  ;;  %v6286_v5 = vld [vmem:[%s17552_s7 + $0x6e0] sm:$0xff] }
 0x953   : > { %7866 = vmatprep.mubr.bf16.mxu1 %v10416_v34  ;;  %8549 = vmatprep.subr.bf16.mxu0 %v12287_v9  ;;  %v10464_v25 = vcombine.high %v6282_v0, %v6286_v5  ;;  %v6184_v34 = vld [vmem:[%s17552_s7 + $0x3b0] sm:$0xff]  ;;  %v6294_v13 = vld [vmem:[%s17552_s7 + $0x720] sm:$0xff] }
 0x954   : > { %v10364_v41 = vcombine.high %v6180_v35, %v6184_v34 }
 0x955   : > { %8309 = vmatmul.mubr.bf16.gmra.mrb[16].mxu0 %v10283_v63  ;;  %v5989_v63 = vld [vmem:[#allocation2 + $0x398] sm:$0xff] }
 0x956   : > { %8316 = vmatprep.mubr.bf16.mxu0 %v10292_v53  ;;  %8550 = vmatpush1.bf16.msra.mxu0 %v6058_v27  ;;  %v10447_v53 = vcombine.low %v6266_v62, %v6270_v29  ;;  %v6059_v38 = vpack.c.bf16 %v5989_v63, %v5988_v59  ;;  %v6063_v27 = vpack.c.bf16 %v5997_v40, %v5996_v26  ;;  %v6208_v59 = vld [vmem:[%s17552_s7 + $0x470] sm:$0xff] }
 0x957   : > { %8551 = vmatprep.subr.bf16.mxu0 %v12287_v9  ;;  %v10379_v63 = vcombine.low %v6196_v44, %v6200_v17 }
 0x95a   : > { %7867 = vmatmul.mubr.bf16.gmra.mrb[84].mxu1 %v10415_v31  ;;  %8552 = vmatpush1.bf16.msra.mxu0 %v6059_v38  ;;  %v6290_v31 = vld [vmem:[%s17552_s7 + $0x700] sm:$0xff] }
 0x95b   : > { %7874 = vmatprep.mubr.bf16.mxu1 %v10424_v18  ;;  %8553 = vmatprep.subr.bf16.mxu0 %v12287_v9  ;;  %v10472_v46 = vcombine.high %v6290_v31, %v6294_v13  ;;  %v6192_v18 = vld [vmem:[%s17552_s7 + $0x3f0] sm:$0xff]  ;;  %v6314_v38 = vld [vmem:[%s17552_s7 + $0x7c0] sm:$0xff] }
 0x95c   : > { %v10372_v21 = vcombine.high %v6188_v3, %v6192_v18  ;;  %v10496_v12 = vcombine.high %v6314_v38, %v6318_v14 }
 0x95d   : > { %8317 = vmatmul.mubr.bf16.gmra.mrb[20].mxu0 %v10291_v55  ;;  %v6172_v55 = vld [vmem:[%s17552_s7 + $0x350] sm:$0xff] }
 0x95e   : > { %8324 = vmatprep.mubr.bf16.mxu0 %v10300_v23  ;;  %v6176_v23 = vld [vmem:[%s17552_s7 + $0x370] sm:$0xff] }
 0x95f   : > { %v10356_v15 = vcombine.high %v6172_v55, %v6176_v23  ;;  %v10355_v30 = vcombine.low %v6172_v55, %v6176_v23 }
 0x962   : > { %7875 = vmatmul.mubr.bf16.gmra.mrb[88].mxu1 %v10423_v1  ;;  %v10363_v1 = vcombine.low %v6180_v35, %v6184_v34  ;;  %v6232_v35 = vld [vmem:[%s17552_s7 + $0x530] sm:$0xff] }
 0x963   : > { %7882 = vmatprep.mubr.bf16.mxu1 %v10432_v49  ;;  %v10480_v49 = vcombine.high %v6298_v61, %v6302_v58 }
 0x965   : > { %8325 = vmatmul.mubr.bf16.gmra.mrb[24].mxu0 %v10299_v37  ;;  %v5991_v37 = vld [vmem:[#allocation2 + $0x3a8] sm:$0xff] }
 0x966   : > { %8332 = vmatprep.mubr.bf16.mxu0 %v10308_v4  ;;  %v10463_v4 = vcombine.low %v6282_v0, %v6286_v5  ;;  %v6060_v51 = vpack.c.bf16 %v5991_v37, %v5990_v24  ;;  %v6215_v24 = vld [vmem:[%s17552_s7 + $0x4a8] sm:$0xff] }
 0x968   : > { %8554 = vmatpush1.bf16.msra.mxu0 %v6060_v51  ;;  %v6228_v51 = vld [vmem:[%s17552_s7 + $0x510] sm:$0xff] }
 0x969   : > { %8555 = vmatprep.subr.bf16.mxu0 %v12287_v9 }
 0x96a   : > { %7883 = vmatmul.mubr.bf16.gmra.mrb[92].mxu1 %v10431_v45  ;;  %v10479_v45 = vcombine.low %v6298_v61, %v6302_v58  ;;  %v6235_v58 = vld [vmem:[%s17552_s7 + $0x548] sm:$0xff] }
 0x96b   : > { %7890 = vmatprep.mubr.bf16.mxu1 %v10440_v19  ;;  %v6064_v19 = vpack.c.bf16 %v5999_v43, %v5998_v42 }
 0x96d   : > { %8333 = vmatmul.mubr.bf16.gmra.mrb[28].mxu0 %v10307_v48  ;;  %v5993_v48 = vld [vmem:[#allocation2 + $0x3b8] sm:$0xff] }
 0x96e   : > { %8340 = vmatprep.mubr.bf16.mxu0 %v10316_v56  ;;  %v10471_v56 = vcombine.low %v6290_v31, %v6294_v13  ;;  %v6061_v10 = vpack.c.bf16 %v5993_v48, %v5992_v22  ;;  %v6223_v31 = vld [vmem:[%s17552_s7 + $0x4e8] sm:$0xff]  ;;  %v6236_v22 = vld [vmem:[%s17552_s7 + $0x550] sm:$0xff] }
 0x96f   : > { %v6240_v48 = vld [vmem:[%s17552_s7 + $0x570] sm:$0xff] }
 0x970   : > { %8556 = vmatpush1.bf16.msra.mxu0 %v6061_v10  ;;  %v10420_v10 = vcombine.high %v6236_v22, %v6240_v48 }
 0x971   : > { %8557 = vmatprep.subr.bf16.mxu0 %v12287_v9 }
 0x972   : > { %7891 = vmatmul.mubr.bf16.gmra.mrb[96].mxu1 %v10439_v28  ;;  %v6306_v28 = vld [vmem:[%s17552_s7 + $0x780] sm:$0xff] }
 0x973   : > { %7898 = vmatprep.mubr.bf16.mxu1 %v10448_v32  ;;  %v10488_v47 = vcombine.high %v6306_v28, %v6310_v39  ;;  %v10487_v62 = vcombine.low %v6306_v28, %v6310_v39  ;;  %v6204_v32 = vld [vmem:[%s17552_s7 + $0x450] sm:$0xff] }
 0x974   : > { %v10387_v50 = vcombine.low %v6204_v32, %v6208_v59  ;;  %v6264_v28 = vld [vmem:[%s17552_s7 + $0x630] sm:$0xff] }
 0x975   : > { %8341 = vmatmul.mubr.bf16.gmra.mrb[32].mxu0 %v10315_v33  ;;  %v5995_v33 = vld [vmem:[#allocation2 + $0x3c8] sm:$0xff] }
 0x976   : > { %8348 = vmatprep.mubr.bf16.mxu0 %v10324_v54  ;;  %v6062_v54 = vpack.c.bf16 %v5995_v33, %v5994_v57  ;;  %v6244_v57 = vld [vmem:[%s17552_s7 + $0x590] sm:$0xff] }
 0x977   : > { %v6248_v33 = vld [vmem:[%s17552_s7 + $0x5b0] sm:$0xff] }
 0x978   : > { %8558 = vmatpush1.bf16.msra.mxu0 %v6062_v54  ;;  %v10419_v54 = vcombine.low %v6236_v22, %v6240_v48  ;;  %v10428_v61 = vcombine.high %v6244_v57, %v6248_v33  ;;  %v6283_v22 = vld [vmem:[%s17552_s7 + $0x6c8] sm:$0xff] }
 0x979   : > { %8559 = vmatprep.subr.bf16.mxu0 %v12287_v9  ;;  %v6287_v48 = vld [vmem:[%s17552_s7 + $0x6e8] sm:$0xff] }
 0x97a   : > { %7899 = vmatmul.mubr.bf16.gmra.mrb[100].mxu1 %v10447_v53  ;;  %v10388_v53 = vcombine.high %v6204_v32, %v6208_v59  ;;  %v6268_v32 = vld [vmem:[%s17552_s7 + $0x650] sm:$0xff] }
 0x97b   : > { %7906 = vmatprep.mubr.bf16.mxu1 %v10456_v20  ;;  %v6203_v20 = vld [vmem:[%s17552_s7 + $0x448] sm:$0xff]  ;;  %v6272_v59 = vld [vmem:[%s17552_s7 + $0x670] sm:$0xff] }
 0x97c   : > { %8560 = vmatpush1.bf16.msra.mxu0 %v6063_v27  ;;  %v6256_v27 = vld [vmem:[%s17552_s7 + $0x5f0] sm:$0xff] }
 0x97d   : > { %8349 = vmatmul.mubr.bf16.gmra.mrb[36].mxu0 %v10323_v60  ;;  %v10371_v60 = vcombine.low %v6188_v3, %v6192_v18  ;;  %8561 = vmatprep.subr.bf16.mxu0 %v12287_v9  ;;  %v6227_v3 = vld [vmem:[%s17552_s7 + $0x508] sm:$0xff] }
 0x97e   : > { %8356 = vmatprep.mubr.bf16.mxu0 %v10332_v8  ;;  %v10380_v8 = vcombine.high %v6196_v44, %v6200_v17  ;;  %v6231_v18 = vld [vmem:[%s17552_s7 + $0x528] sm:$0xff]  ;;  %v10427_v44 = vcombine.low %v6244_v57, %v6248_v33 }
 0x980   : > { %8562 = vmatpush1.bf16.msra.mxu0 %v6064_v19  ;;  %v6260_v19 = vld [vmem:[%s17552_s7 + $0x610] sm:$0xff] }
 0x981   : > { %8563 = vmatprep.subr.bf16.mxu0 %v12287_v9  ;;  %v6212_v9 = vld [vmem:[%s17552_s7 + $0x490] sm:$0xff] }
 0x982   : > { %7907 = vmatmul.mubr.bf16.gmra.mrb[104].mxu1 %v10455_v2  ;;  %v6207_v2 = vld [vmem:[%s17552_s7 + $0x468] sm:$0xff] }
 0x983   : > { %7914 = vmatprep.mubr.bf16.mxu1 %v10464_v25  ;;  %v10386_v55 = vcombine.high %v6203_v20, %v6207_v2  ;;  %v10385_v23 = vcombine.low %v6203_v20, %v6207_v2  ;;  %v6211_v25 = vld [vmem:[%s17552_s7 + $0x488] sm:$0xff] }
 0x984   : > { %v10394_v37 = vcombine.high %v6211_v25, %v6215_v24  ;;  %v6267_v20 = vld [vmem:[%s17552_s7 + $0x648] sm:$0xff] }
 0x985   : > { %8357 = vmatmul.mubr.bf16.gmra.mrb[40].mxu0 %v10331_v11  ;;  %v6000_v11 = vld [vmem:[#allocation2 + $0x3f0] sm:$0xff]  ;;  %v6271_v2 = vld [vmem:[%s17552_s7 + $0x668] sm:$0xff] }
 0x986   : > { %8364 = vmatprep.mubr.bf16.mxu0 %v10340_v7  ;;  %v6001_v7 = vld [vmem:[#allocation2 + $0x3f8] sm:$0xff] }
 0x987   : > { %v6065_v29 = vpack.c.bf16 %v6001_v7, %v6000_v11  ;;  %v6251_v11 = vld [vmem:[%s17552_s7 + $0x5c8] sm:$0xff] }
 0x988   : > { %v6255_v7 = vld [vmem:[%s17552_s7 + $0x5e8] sm:$0xff] }
 0x989   : > { %8564 = vmatpush1.bf16.msra.mxu0 %v6065_v29  ;;  %v10433_v29 = vcombine.low %v6251_v11, %v6255_v7 }
 0x98a   : > { %7915 = vmatmul.mubr.bf16.gmra.mrb[108].mxu1 %v10463_v4  ;;  %v10393_v4 = vcombine.low %v6211_v25, %v6215_v24  ;;  %v6275_v25 = vld [vmem:[%s17552_s7 + $0x688] sm:$0xff] }
 0x98b   : > { %7922 = vmatprep.mubr.bf16.mxu1 %v10472_v46  ;;  %v6279_v24 = vld [vmem:[%s17552_s7 + $0x6a8] sm:$0xff] }
 0x98d   : > { %8365 = vmatmul.mubr.bf16.gmra.mrb[44].mxu0 %v10339_v6  ;;  %v10495_v6 = vcombine.low %v6314_v38, %v6318_v14  ;;  %v6259_v38 = vld [vmem:[%s17552_s7 + $0x608] sm:$0xff] }
 0x98e   : > { %8372 = vmatprep.mubr.bf16.mxu0 %v10348_v52  ;;  %v6216_v52 = vld [vmem:[%s17552_s7 + $0x4b0] sm:$0xff]  ;;  %v6263_v14 = vld [vmem:[%s17552_s7 + $0x628] sm:$0xff] }
 0x98f   : > { %v10396_v36 = vcombine.high %v6212_v9, %v6216_v52  ;;  %v10395_v0 = vcombine.low %v6212_v9, %v6216_v52  ;;  %v6276_v9 = vld [vmem:[%s17552_s7 + $0x690] sm:$0xff] }
 0x990   : > { %v6280_v52 = vld [vmem:[%s17552_s7 + $0x6b0] sm:$0xff] }
 0x992   : > { %7923 = vmatmul.mubr.bf16.gmra.mrb[112].mxu1 %v10471_v56  ;;  %v10411_v56 = vcombine.low %v6228_v51, %v6232_v35 }
 0x993   : > { %7930 = vmatprep.mubr.bf16.mxu1 %v10480_v49  ;;  %v6239_v49 = vld [vmem:[%s17552_s7 + $0x568] sm:$0xff] }
 0x994   : > { %v10418_v26 = vcombine.high %v6235_v58, %v6239_v49  ;;  %v10417_v40 = vcombine.low %v6235_v58, %v6239_v49  ;;  %v6291_v58 = vld [vmem:[%s17552_s7 + $0x708] sm:$0xff] }
 0x995   : > { %8373 = vmatmul.mubr.bf16.gmra.mrb[48].mxu0 %v10347_v16  ;;  %v6220_v16 = vld [vmem:[%s17552_s7 + $0x4d0] sm:$0xff]  ;;  %v6295_v49 = vld [vmem:[%s17552_s7 + $0x728] sm:$0xff] }
 0x996   : > { %8380 = vmatprep.mubr.bf16.mxu0 %v10356_v15  ;;  %v6224_v15 = vld [vmem:[%s17552_s7 + $0x4f0] sm:$0xff] }
 0x997   : > { %v10404_v5 = vcombine.high %v6220_v16, %v6224_v15  ;;  %v10403_v34 = vcombine.low %v6220_v16, %v6224_v15  ;;  %v6284_v16 = vld [vmem:[%s17552_s7 + $0x6d0] sm:$0xff] }
 0x998   : > { %v6288_v15 = vld [vmem:[%s17552_s7 + $0x6f0] sm:$0xff] }
 0x99a   : > { %7931 = vmatmul.mubr.bf16.gmra.mrb[116].mxu1 %v10479_v45  ;;  %v6252_v45 = vld [vmem:[%s17552_s7 + $0x5d0] sm:$0xff] }
 0x99b   : > { %7938 = vmatprep.mubr.bf16.mxu1 %v10488_v47  ;;  %v10436_v17 = vcombine.high %v6252_v45, %v6256_v27  ;;  %v10435_v39 = vcombine.low %v6252_v45, %v6256_v27  ;;  %v10444_v47 = vcombine.high %v6260_v19, %v6264_v28  ;;  %v10473_v45 = vcombine.low %v6291_v58, %v6295_v49 }
 0x99d   : > { %8381 = vmatmul.mubr.bf16.gmra.mrb[52].mxu0 %v10355_v30  ;;  %v10412_v30 = vcombine.high %v6228_v51, %v6232_v35  ;;  %v10457_v51 = vcombine.low %v6275_v25, %v6279_v24 }
 0x99e   : > { %8388 = vmatprep.mubr.bf16.mxu0 %v10364_v41  ;;  %v6219_v41 = vld [vmem:[%s17552_s7 + $0x4c8] sm:$0xff] }
 0x99f   : > { %v10402_v13 = vcombine.high %v6219_v41, %v6223_v31  ;;  %v10401_v46 = vcombine.low %v6219_v41, %v6223_v31 }
 0x9a2   : > { %7939 = vmatmul.mubr.bf16.gmra.mrb[120].mxu1 %v10487_v62  ;;  %v10434_v62 = vcombine.high %v6251_v11, %v6255_v7 }
 0x9a3   : > { %7946 = vmatprep.mubr.bf16.mxu1 %v10496_v12  ;;  %v10442_v12 = vcombine.high %v6259_v38, %v6263_v14 }
 0x9a5   : > { %8389 = vmatmul.mubr.bf16.gmra.mrb[56].mxu0 %v10363_v1  ;;  %v10410_v1 = vcombine.high %v6227_v3, %v6231_v18 }
 0x9a6   : > { %8396 = vmatprep.mubr.bf16.mxu0 %v10372_v21  ;;  %v10409_v21 = vcombine.low %v6227_v3, %v6231_v18  ;;  %v10465_v3 = vcombine.low %v6283_v22, %v6287_v48 }
 0x9aa   : > { %7947 = vmatmul.mubr.bf16.gmra.mrb[124].mxu1 %v10495_v6  ;;  %v10441_v6 = vcombine.low %v6259_v38, %v6263_v14  ;;  %v6307_v38 = vld [vmem:[%s17552_s7 + $0x788] sm:$0xff] }
 0x9ab   : > { %8123 = vmatprep.mubr.bf16.mxu1 %v10386_v55  ;;  %v10450_v55 = vcombine.high %v6267_v20, %v6271_v2  ;;  %v6311_v14 = vld [vmem:[%s17552_s7 + $0x7a8] sm:$0xff] }
 0x9ad   : > { %8397 = vmatmul.mubr.bf16.gmra.mrb[60].mxu0 %v10371_v60  ;;  %v6243_v60 = vld [vmem:[%s17552_s7 + $0x588] sm:$0xff] }
 0x9ae   : > { %8404 = vmatprep.mubr.bf16.mxu0 %v10380_v8  ;;  %v6247_v8 = vld [vmem:[%s17552_s7 + $0x5a8] sm:$0xff] }
 0x9af   : > { %v10426_v42 = vcombine.high %v6243_v60, %v6247_v8  ;;  %v10425_v43 = vcombine.low %v6243_v60, %v6247_v8 }
 0x9b2   : > { %8124 = vmatmul.mubr.bf16.vlgmr.msra.gmra.mrb[68].mxu1 %v10385_v23  ;;  %v10449_v23 = vcombine.low %v6267_v20, %v6271_v2 }
 0x9b3   : > { %8131 = vmatprep.mubr.bf16.mxu1 %v10394_v37  ;;  %v10458_v37 = vcombine.high %v6275_v25, %v6279_v24 }
 0x9b5   : > { %8405 = vmatmul.mubr.bf16.gmra.mrb[64].mxu0 %v10379_v63  ;;  %v10443_v63 = vcombine.low %v6260_v19, %v6264_v28  ;;  %v6299_v19 = vld [vmem:[%s17552_s7 + $0x748] sm:$0xff] }
 0x9b6   : > { %8412 = vmatprep.mubr.bf16.mxu0 %v10388_v53  ;;  %v10452_v53 = vcombine.high %v6268_v32, %v6272_v59  ;;  %v6303_v28 = vld [vmem:[%s17552_s7 + $0x768] sm:$0xff] }
 0x9b7   : > { %v10481_v11 = vcombine.low %v6299_v19, %v6303_v28 }
 0x9ba   : > { %8132 = vmatmul.mubr.bf16.gmra.mrb[72].mxu1 %v10393_v4  ;;  %v15903_v4 = vpop.f32.mrb[0].mxu1 }
 0x9bb   : > { %8139 = vmatprep.mubr.bf16.mxu1 %v10402_v13  ;;  %v7702_v35 = vpop.f32.mrb[1].mxu1  ;;  %v10467_v13 = vcombine.low %v6284_v16, %v6288_v15 }
 0x9bc   : > { %v15911_v41 = vpop.f32.mrb[2].mxu1 }
 0x9bd   : > { %8413 = vmatmul.mubr.bf16.gmra.mrb[68].mxu0 %v10387_v50  ;;  %v10451_v50 = vcombine.low %v6268_v32, %v6272_v59  ;;  %v7705_v31 = vpop.f32.mrb[3].mxu1 }
 0x9be   : > { %8420 = vmatprep.mubr.bf16.mxu0 %v10396_v36  ;;  %v10460_v36 = vcombine.high %v6276_v9, %v6280_v52 }
 0x9c2   : > { %8140 = vmatmul.mubr.bf16.gmra.mrb[76].mxu1 %v10401_v46 }
 0x9c3   : > { %8147 = vmatprep.mubr.bf16.mxu1 %v10410_v1  ;;  %v6300_v1 = vld [vmem:[%s17552_s7 + $0x750] sm:$0xff] }
 0x9c5   : > { %8421 = vmatmul.mubr.bf16.gmra.mrb[72].mxu0 %v10395_v0  ;;  %v10459_v0 = vcombine.low %v6276_v9, %v6280_v52  ;;  %v10489_v9 = vcombine.low %v6307_v38, %v6311_v14 }
 0x9c6   : > { %8428 = vmatprep.mubr.bf16.mxu0 %v10404_v5  ;;  %v10468_v5 = vcombine.high %v6284_v16, %v6288_v15  ;;  %v6315_v16 = vld [vmem:[%s17552_s7 + $0x7c8] sm:$0xff] }
 0x9c7   : > { %v6319_v15 = vld [vmem:[%s17552_s7 + $0x7e8] sm:$0xff] }
 0x9c8   : > { %v10497_v25 = vcombine.low %v6315_v16, %v6319_v15 }
 0x9ca   : > { %8148 = vmatmul.mubr.bf16.gmra.mrb[80].mxu1 %v10409_v21  ;;  %v6304_v21 = vld [vmem:[%s17552_s7 + $0x770] sm:$0xff] }
 0x9cb   : > { %8155 = vmatprep.mubr.bf16.mxu1 %v10418_v26  ;;  %v10474_v26 = vcombine.high %v6291_v58, %v6295_v49 }
 0x9cd   : > { %8429 = vmatmul.mubr.bf16.gmra.mrb[76].mxu0 %v10403_v34  ;;  %v6292_v34 = vld [vmem:[%s17552_s7 + $0x710] sm:$0xff] }
 0x9ce   : > { %8436 = vmatprep.mubr.bf16.mxu0 %v10412_v30  ;;  %v6296_v30 = vld [vmem:[%s17552_s7 + $0x730] sm:$0xff] }
 0x9cf   : > { %v10476_v46 = vcombine.high %v6292_v34, %v6296_v30 }
 0x9d2   : > { %8156 = vmatmul.mubr.bf16.gmra.mrb[84].mxu1 %v10417_v40 }
 0x9d3   : > { %8163 = vmatprep.mubr.bf16.mxu1 %v10426_v42  ;;  %v10483_v42 = vcombine.low %v6300_v1, %v6304_v21 }
 0x9d5   : > { %8437 = vmatmul.mubr.bf16.gmra.mrb[80].mxu0 %v10411_v56  ;;  %v10466_v56 = vcombine.high %v6283_v22, %v6287_v48  ;;  %v6085_v22 = vld [vmem:[%s17552_s7 + $0x98] sm:$0xff] }
 0x9d6   : > { %8444 = vmatprep.mubr.bf16.mxu0 %v10420_v10  ;;  %v15919_v10 = vpop.f32.mrb[4].mxu1  ;;  %v6089_v48 = vld [vmem:[%s17552_s7 + $0xb8] sm:$0xff] }
 0x9d7   : > { %v7710_v18 = vpop.f32.mrb[5].mxu1 }
 0x9d8   : > { %v15927_v57 = vpop.f32.mrb[6].mxu1 }
 0x9d9   : > { %v7713_v33 = vpop.f32.mrb[7].mxu1 }
 0x9da   : > { %8164 = vmatmul.mubr.bf16.gmra.mrb[88].mxu1 %v10425_v43  ;;  %v15935_v40 = vpop.f32.mrb[8].mxu1 }
 0x9db   : > { %8171 = vmatprep.mubr.bf16.mxu1 %v10434_v62  ;;  %v7718_v27 = vpop.f32.mrb[9].mxu1  ;;  %v6316_v62 = vld [vmem:[%s17552_s7 + $0x7d0] sm:$0xff] }
 0x9dc   : > { %v15943_v60 = vpop.f32.mrb[10].mxu1 }
 0x9dd   : > { %8445 = vmatmul.mubr.bf16.gmra.mrb[84].mxu0 %v10419_v54  ;;  %v10475_v54 = vcombine.low %v6292_v34, %v6296_v30  ;;  %v7721_v8 = vpop.f32.mrb[11].mxu1 }
 0x9de   : > { %8452 = vmatprep.mubr.bf16.mxu0 %v10428_v61  ;;  %v10484_v61 = vcombine.high %v6300_v1, %v6304_v21  ;;  %v10270_v1 = vcombine.high %v6085_v22, %v6089_v48  ;;  %v6105_v8 = vld [vmem:[%s17552_s7 + $0x138] sm:$0xff] }
 0x9e2   : > { %8172 = vmatmul.mubr.bf16.gmra.mrb[92].mxu1 %v10433_v29  ;;  %v6320_v29 = vld [vmem:[%s17552_s7 + $0x7f0] sm:$0xff] }
 0x9e3   : > { %8179 = vmatprep.mubr.bf16.mxu1 %v10442_v12  ;;  %v10490_v12 = vcombine.high %v6307_v38, %v6311_v14 }
 0x9e5   : > { %8453 = vmatmul.mubr.bf16.gmra.mrb[88].mxu0 %v10427_v44  ;;  %v6308_v44 = vld [vmem:[%s17552_s7 + $0x790] sm:$0xff] }
 0x9e6   : > { %8460 = vmatprep.mubr.bf16.mxu0 %v10436_v17  ;;  %v6312_v17 = vld [vmem:[%s17552_s7 + $0x7b0] sm:$0xff] }
 0x9e7   : > { %v10492_v43 = vcombine.high %v6308_v44, %v6312_v17 }
 0x9ea   : > { %8180 = vmatmul.mubr.bf16.gmra.mrb[96].mxu1 %v10441_v6 }
 0x9eb   : > { %8187 = vmatprep.mubr.bf16.mxu1 %v10450_v55  ;;  %v10499_v55 = vcombine.low %v6316_v62, %v6320_v29 }
 0x9ed   : > { %8461 = vmatmul.mubr.bf16.gmra.mrb[92].mxu0 %v10435_v39  ;;  %v10482_v39 = vcombine.high %v6299_v19, %v6303_v28 }
 0x9ee   : > { %8468 = vmatprep.mubr.bf16.mxu0 %v10444_v47  ;;  %v15951_v47 = vpop.f32.mrb[12].mxu1 }
 0x9ef   : > { %v7726_v7 = vpop.f32.mrb[13].mxu1 }
 0x9f0   : > { %v15959_v32 = vpop.f32.mrb[14].mxu1  ;;  %v6109_v7 = vld [vmem:[%s17552_s7 + $0x158] sm:$0xff] }
 0x9f1   : > { %v7729_v59 = vpop.f32.mrb[15].mxu1 }
 0x9f2   : > { %8188 = vmatmul.mubr.bf16.gmra.mrb[100].mxu1 %v10449_v23  ;;  %v15967_v6 = vpop.f32.mrb[16].mxu1 }
 0x9f3   : > { %8195 = vmatprep.mubr.bf16.mxu1 %v10458_v37  ;;  %v7734_v52 = vpop.f32.mrb[17].mxu1  ;;  %v6077_v37 = vld [vmem:[%s17552_s7 + $0x58] sm:$0xff] }
 0x9f4   : > { %v15975_v20 = vpop.f32.mrb[18].mxu1 }
 0x9f5   : > { %8469 = vmatmul.mubr.bf16.gmra.mrb[96].mxu0 %v10443_v63  ;;  %v10491_v63 = vcombine.low %v6308_v44, %v6312_v17  ;;  %v7737_v2 = vpop.f32.mrb[19].mxu1  ;;  %v6101_v17 = vld [vmem:[%s17552_s7 + $0x118] sm:$0xff] }
 0x9f6   : > { %8476 = vmatprep.mubr.bf16.mxu0 %v10452_v53  ;;  %v10500_v53 = vcombine.high %v6316_v62, %v6320_v29  ;;  %v10286_v28 = vcombine.high %v6101_v17, %v6105_v8  ;;  %v6113_v62 = vld [vmem:[%s17552_s7 + $0x178] sm:$0xff] }
 0x9fa   : > { %8196 = vmatmul.mubr.bf16.gmra.mrb[104].mxu1 %v10457_v51  ;;  %v6081_v51 = vld [vmem:[%s17552_s7 + $0x78] sm:$0xff] }
 0x9fb   : > { %8203 = vmatprep.mubr.bf16.mxu1 %v10466_v56  ;;  %v10262_v31 = vcombine.high %v6077_v37, %v6081_v51  ;;  %v10261_v18 = vcombine.low %v6077_v37, %v6081_v51 }
 0x9fd   : > { %8477 = vmatmul.mubr.bf16.gmra.mrb[100].mxu0 %v10451_v50  ;;  %v6069_v50 = vld [vmem:[%s17552_s7 + $0x18] sm:$0xff] }
 0x9fe   : > { %8484 = vmatprep.mubr.bf16.mxu0 %v10460_v36  ;;  %v6073_v36 = vld [vmem:[%s17552_s7 + $0x38] sm:$0xff] }
 0x9ff   : > { %v10254_v23 = vcombine.high %v6069_v50, %v6073_v36  ;;  %v10253_v30 = vcombine.low %v6069_v50, %v6073_v36  ;;  %v10293_v36 = vcombine.low %v6109_v7, %v6113_v62 }
 0xa02   : > { %8204 = vmatmul.mubr.bf16.gmra.mrb[108].mxu1 %v10465_v3 }
 0xa03   : > { %8211 = vmatprep.mubr.bf16.mxu1 %v10474_v26  ;;  %v10269_v26 = vcombine.low %v6085_v22, %v6089_v48 }
 0xa05   : > { %8485 = vmatmul.mubr.bf16.gmra.mrb[104].mxu0 %v10459_v0  ;;  %v10498_v0 = vcombine.high %v6315_v16, %v6319_v15  ;;  %v6125_v16 = vld [vmem:[%s17552_s7 + $0x1d8] sm:$0xff] }
 0xa06   : > { %8492 = vmatprep.mubr.bf16.mxu0 %v10468_v5  ;;  %v15983_v5 = vpop.f32.mrb[20].mxu1  ;;  %v6129_v15 = vld [vmem:[%s17552_s7 + $0x1f8] sm:$0xff] }
 0xa07   : > { %v7742_v24 = vpop.f32.mrb[21].mxu1  ;;  %v10310_v37 = vcombine.high %v6125_v16, %v6129_v15  ;;  %v10309_v48 = vcombine.low %v6125_v16, %v6129_v15 }
 0xa08   : > { %v15991_v35 = vpop.f32.mrb[22].mxu1 }
 0xa09   : > { %v7745_v34 = vpop.f32.mrb[23].mxu1 }
 0xa0a   : > { %8212 = vmatmul.mubr.bf16.gmra.mrb[112].mxu1 %v10473_v45 }
 0xa0b   : > { %8219 = vmatprep.mubr.bf16.mxu1 %v10482_v39 }
 0xa0d   : > { %8493 = vmatmul.mubr.bf16.gmra.mrb[108].mxu0 %v10467_v13  ;;  %v15993_v13 = vpop.f32.mrb[24].mxu1 }
 0xa0e   : > { %8500 = vmatprep.mubr.bf16.mxu0 %v10476_v46  ;;  %v7750_v46 = vpop.f32.mrb[25].mxu1 }
 0xa0f   : > { %v16001_v56 = vpop.f32.mrb[26].mxu1 }
 0xa10   : > { %v7753_v3 = vpop.f32.mrb[27].mxu1 }
 0xa11   : > { %v16003_v21 = vpop.f32.mrb[28].mxu1 }
 0xa12   : > { %8220 = vmatmul.mubr.bf16.gmra.mrb[116].mxu1 %v10481_v11  ;;  %v7758_v33 = vpop.f32.mrb[29].mxu1 }
 0xa13   : > { %8227 = vmatprep.mubr.bf16.mxu1 %v10490_v12  ;;  %v16011_v58 = vpop.f32.mrb[30].mxu1  ;;  %v6117_v12 = vld [vmem:[%s17552_s7 + $0x198] sm:$0xff] }
 0xa14   : > { %v7761_v49 = vpop.f32.mrb[31].mxu1  ;;  %v6141_v33 = vld [vmem:[%s17552_s7 + $0x258] sm:$0xff] }
 0xa15   : > { %8501 = vmatmul.mubr.bf16.gmra.mrb[112].mxu0 %v10475_v54  ;;  %v6093_v54 = vld [vmem:[%s17552_s7 + $0xd8] sm:$0xff]  ;;  %v16013_v27 = vpop.f32.mrb[32].mxu1 }
 0xa16   : > { %8508 = vmatprep.mubr.bf16.mxu0 %v10484_v61  ;;  %v6097_v61 = vld [vmem:[%s17552_s7 + $0xf8] sm:$0xff]  ;;  %v7766_v44 = vpop.f32.mrb[33].mxu1 }
 0xa17   : > { %v10278_v45 = vcombine.high %v6093_v54, %v6097_v61  ;;  %v10277_v19 = vcombine.low %v6093_v54, %v6097_v61  ;;  %v6145_v54 = vld [vmem:[%s17552_s7 + $0x278] sm:$0xff] }
 0xa1a   : > { %8228 = vmatmul.mubr.bf16.gmra.mrb[120].mxu1 %v10489_v9  ;;  %v6121_v9 = vld [vmem:[%s17552_s7 + $0x1b8] sm:$0xff] }
 0xa1b   : > { %8235 = vmatprep.mubr.bf16.mxu1 %v10498_v0  ;;  %v10302_v2 = vcombine.high %v6117_v12, %v6121_v9  ;;  %v10301_v24 = vcombine.low %v6117_v12, %v6121_v9 }
 0xa1d   : > { %8509 = vmatmul.mubr.bf16.gmra.mrb[116].mxu0 %v10483_v42  ;;  %v16021_v42 = vpop.f32.mrb[34].mxu1 }
 0xa1e   : > { %8516 = vmatprep.mubr.bf16.mxu0 %v10492_v43  ;;  %v7769_v43 = vpop.f32.mrb[35].mxu1 }
 0xa1f   : > { %v16023_v39 = vpop.f32.mrb[36].mxu1  ;;  %v6153_v43 = vld [vmem:[%s17552_s7 + $0x2b8] sm:$0xff] }
 0xa20   : > { %v7774_v11 = vpop.f32.mrb[37].mxu1 }
 0xa21   : > { %v16031_v29 = vpop.f32.mrb[38].mxu1  ;;  %v10325_v11 = vcombine.low %v6141_v33, %v6145_v54 }
 0xa22   : > { %8236 = vmatmul.mubr.bf16.gmra.mrb[124].mxu1 %v10497_v25  ;;  %v7777_v59 = vpop.f32.mrb[39].mxu1 }
 0xa23   : > { %v16033_v38 = vpop.f32.mrb[40].mxu1 }
 0xa24   : > { %v7782_v14 = vpop.f32.mrb[41].mxu1 }
 0xa25   : > { %8517 = vmatmul.mubr.bf16.gmra.mrb[120].mxu0 %v10491_v63  ;;  %v10285_v63 = vcombine.low %v6101_v17, %v6105_v8  ;;  %v16041_v52 = vpop.f32.mrb[42].mxu1  ;;  %v6149_v8 = vld [vmem:[%s17552_s7 + $0x298] sm:$0xff] }
 0xa26   : > { %8524 = vmatprep.mubr.bf16.mxu0 %v10500_v53  ;;  %v10294_v53 = vcombine.high %v6109_v7, %v6113_v62  ;;  %v7785_v50 = vpop.f32.mrb[43].mxu1  ;;  %v10334_v7 = vcombine.high %v6149_v8, %v6153_v43  ;;  %v10333_v9 = vcombine.low %v6149_v8, %v6153_v43  ;;  %v6189_v43 = vld [vmem:[%s17552_s7 + $0x3d8] sm:$0xff] }
 0xa2d   : > { %8525 = vmatmul.mubr.bf16.gmra.mrb[124].mxu0 %v10499_v55  ;;  %v16043_v55 = vpop.f32.mrb[44].mxu1 }
 0xa2e   : > { %8565 = vmatprep.mubr.bf16.mxu0 %v10254_v23  ;;  %v7790_v23 = vpop.f32.mrb[45].mxu1 }
 0xa2f   : > { %v16051_v0 = vpop.f32.mrb[46].mxu1 }
 0xa30   : > { %v7793_v25 = vpop.f32.mrb[47].mxu1 }
 0xa31   : > { %v16053_v51 = vpop.f32.mrb[48].mxu1 }
 0xa32   : > { %v7798_v34 = vpop.f32.mrb[49].mxu1 }
 0xa33   : > { %v16061_v46 = vpop.f32.mrb[50].mxu1  ;;  %v6173_v34 = vld [vmem:[%s17552_s7 + $0x358] sm:$0xff] }
 0xa34   : > { %v7801_v22 = vpop.f32.mrb[51].mxu1 }
 0xa35   : > { %8566 = vmatmul.mubr.bf16.vlgmr.msra.gmra.mrb[0].mxu0 %v10253_v30  ;;  %v6133_v30 = vld [vmem:[%s17552_s7 + $0x218] sm:$0xff] }
 0xa36   : > { %8573 = vmatprep.mubr.bf16.mxu0 %v10262_v31  ;;  %v6137_v31 = vld [vmem:[%s17552_s7 + $0x238] sm:$0xff] }
 0xa37   : > { %v10318_v3 = vcombine.high %v6133_v30, %v6137_v31 }
 0xa3d   : > { %8574 = vmatmul.mubr.bf16.gmra.mrb[4].mxu0 %v10261_v18  ;;  %v16063_v18 = vpop.f32.mrb[52].mxu1 }
 0xa3e   : > { %8581 = vmatprep.mubr.bf16.mxu0 %v10270_v1  ;;  %v7806_v1 = vpop.f32.mrb[53].mxu1 }
 0xa3f   : > { %v16071_v61 = vpop.f32.mrb[54].mxu1  ;;  %v6181_v1 = vld [vmem:[%s17552_s7 + $0x398] sm:$0xff] }
 0xa40   : > { %v7809_v49 = vpop.f32.mrb[55].mxu1 }
 0xa41   : > { %v16073_v44 = vpop.f32.mrb[56].mxu1 }
 0xa42   : > { %v7814_v17 = vpop.f32.mrb[57].mxu1 }
 0xa45   : > { %8582 = vmatmul.mubr.bf16.gmra.mrb[8].mxu0 %v10269_v26  ;;  %v10317_v26 = vcombine.low %v6133_v30, %v6137_v31  ;;  %v6177_v30 = vld [vmem:[%s17552_s7 + $0x378] sm:$0xff] }
 0xa46   : > { %8589 = vmatprep.mubr.bf16.mxu0 %v10278_v45  ;;  %v10326_v45 = vcombine.high %v6141_v33, %v6145_v54  ;;  %v10358_v22 = vcombine.high %v6173_v34, %v6177_v30  ;;  %v6185_v33 = vld [vmem:[%s17552_s7 + $0x3b8] sm:$0xff] }
 0xa4d   : > { %8590 = vmatmul.mubr.bf16.gmra.mrb[12].mxu0 %v10277_v19  ;;  %v16081_v19 = vpop.f32.mrb[58].mxu1 }
 0xa4e   : > { %8597 = vmatprep.mubr.bf16.mxu0 %v10286_v28  ;;  %v7817_v28 = vpop.f32.mrb[59].mxu1 }
 0xa4f   : > { %v16083_v62 = vpop.f32.mrb[60].mxu1  ;;  %v6193_v28 = vld [vmem:[%s17552_s7 + $0x3f8] sm:$0xff] }
 0xa50   : > { %v7822_v59 = vpop.f32.mrb[61].mxu1 }
 0xa51   : > { %v16091_v14 = vpop.f32.mrb[62].mxu1  ;;  %v10365_v59 = vcombine.low %v6181_v1, %v6185_v33 }
 0xa52   : > { %v7825_v12 = vpop.f32.mrb[63].mxu1 }
 0xa53   : > { %v16099_v15 = vpop.f32.mrb[64].mxu1 }
 0xa54   : > { %v7830_v25 = vpop.f32.mrb[65].mxu1 }
 0xa55   : > { %8598 = vmatmul.mubr.bf16.gmra.mrb[16].mxu0 %v10285_v63  ;;  %v6157_v63 = vld [vmem:[%s17552_s7 + $0x2d8] sm:$0xff] }
 0xa56   : > { %8605 = vmatprep.mubr.bf16.mxu0 %v10294_v53  ;;  %v6161_v53 = vld [vmem:[%s17552_s7 + $0x2f8] sm:$0xff] }
 0xa57   : > { %v10342_v50 = vcombine.high %v6157_v63, %v6161_v53  ;;  %v10341_v23 = vcombine.low %v6157_v63, %v6161_v53  ;;  %v10374_v63 = vcombine.high %v6189_v43, %v6193_v28 }
 0xa5d   : > { %8606 = vmatmul.mubr.bf16.gmra.mrb[20].mxu0 %v10293_v36  ;;  %v6165_v36 = vld [vmem:[%s17552_s7 + $0x318] sm:$0xff] }
 0xa5e   : > { %8613 = vmatprep.mubr.bf16.mxu0 %v10302_v2  ;;  %v6169_v2 = vld [vmem:[%s17552_s7 + $0x338] sm:$0xff] }
 0xa5f   : > { %v10350_v16 = vcombine.high %v6165_v36, %v6169_v2  ;;  %v10349_v31 = vcombine.low %v6165_v36, %v6169_v2 }
 0xa65   : > { %8614 = vmatmul.mubr.bf16.gmra.mrb[24].mxu0 %v10301_v24  ;;  %v16101_v24 = vpop.f32.mrb[66].mxu1 }
 0xa66   : > { %8621 = vmatprep.mubr.bf16.mxu0 %v10310_v37  ;;  %v7833_v37 = vpop.f32.mrb[67].mxu1 }
 0xa6d   : > { %8622 = vmatmul.mubr.bf16.gmra.mrb[28].mxu0 %v10309_v48 }
 0xa6e   : > { %8629 = vmatprep.mubr.bf16.mxu0 %v10318_v3 }
 0xa75   : > { %8630 = vmatmul.mubr.bf16.gmra.mrb[32].mxu0 %v10317_v26  ;;  %v10357_v26 = vcombine.low %v6173_v34, %v6177_v30  ;;  %v6205_v34 = vld [vmem:[%s17552_s7 + $0x458] sm:$0xff] }
 0xa76   : > { %8637 = vmatprep.mubr.bf16.mxu0 %v10326_v45  ;;  %v10366_v45 = vcombine.high %v6181_v1, %v6185_v33  ;;  %v6209_v30 = vld [vmem:[%s17552_s7 + $0x478] sm:$0xff] }
 0xa77   : > { %v10390_v1 = vcombine.high %v6205_v34, %v6209_v30 }
 0xa7d   : > { %8638 = vmatmul.mubr.bf16.gmra.mrb[36].mxu0 %v10325_v11 }
 0xa7e   : > { %8645 = vmatprep.mubr.bf16.mxu0 %v10334_v7 }
 0xa85   : > { %8646 = vmatmul.mubr.bf16.gmra.mrb[40].mxu0 %v10333_v9  ;;  %v16109_v48 = vpop.f32.mrb[68].mxu1  ;;  %v6197_v9 = vld [vmem:[%s17552_s7 + $0x418] sm:$0xff] }
 0xa86   : > { %8653 = vmatprep.mubr.bf16.mxu0 %v10342_v50  ;;  %v8127_v3 = vpop.f32.mrb[69].mxu1  ;;  %v6201_v50 = vld [vmem:[%s17552_s7 + $0x438] sm:$0xff] }
 0xa87   : > { %v16117_v54 = vpop.f32.mrb[70].mxu1  ;;  %v10381_v3 = vcombine.low %v6197_v9, %v6201_v50 }
 0xa88   : > { %v8130_v49 = vpop.f32.mrb[71].mxu1 }
 0xa8d   : > { %8654 = vmatmul.mubr.bf16.gmra.mrb[44].mxu0 %v10341_v23  ;;  %v16119_v17 = vpop.f32.mrb[72].mxu1  ;;  %v10373_v23 = vcombine.low %v6189_v43, %v6193_v28  ;;  %v10389_v28 = vcombine.low %v6205_v34, %v6209_v30  ;;  %v6229_v30 = vld [vmem:[%s17552_s7 + $0x518] sm:$0xff] }
 0xa8e   : > { %8661 = vmatprep.mubr.bf16.mxu0 %v10350_v16  ;;  %v8135_v8 = vpop.f32.mrb[73].mxu1  ;;  %v10382_v16 = vcombine.high %v6197_v9, %v6201_v50  ;;  %v6225_v9 = vld [vmem:[%s17552_s7 + $0x4f8] sm:$0xff] }
 0xa8f   : > { %v16127_v11 = vpop.f32.mrb[74].mxu1 }
 0xa90   : > { %v8138_v7 = vpop.f32.mrb[75].mxu1 }
 0xa95   : > { %8662 = vmatmul.mubr.bf16.gmra.mrb[48].mxu0 %v10349_v31  ;;  %v16129_v53 = vpop.f32.mrb[76].mxu1 }
 0xa96   : > { %8669 = vmatprep.mubr.bf16.mxu0 %v10358_v22  ;;  %v8143_v12 = vpop.f32.mrb[77].mxu1 }
 0xa97   : > { %v16137_v36 = vpop.f32.mrb[78].mxu1  ;;  %v6221_v12 = vld [vmem:[%s17552_s7 + $0x4d8] sm:$0xff] }
 0xa98   : > { %v8146_v2 = vpop.f32.mrb[79].mxu1 }
 0xa9d   : > { %8670 = vmatmul.mubr.bf16.gmra.mrb[52].mxu0 %v10357_v26  ;;  %v16139_v25 = vpop.f32.mrb[80].mxu1  ;;  %v6213_v26 = vld [vmem:[%s17552_s7 + $0x498] sm:$0xff] }
 0xa9e   : > { %8677 = vmatprep.mubr.bf16.mxu0 %v10366_v45  ;;  %v8151_v37 = vpop.f32.mrb[81].mxu1  ;;  %v6217_v45 = vld [vmem:[%s17552_s7 + $0x4b8] sm:$0xff] }
 0xa9f   : > { %v16147_v31 = vpop.f32.mrb[82].mxu1  ;;  %v10398_v7 = vcombine.high %v6213_v26, %v6217_v45 }
 0xaa0   : > { %v8154_v22 = vpop.f32.mrb[83].mxu1 }
 0xaa1   : > { %v6233_v22 = vld [vmem:[%s17552_s7 + $0x538] sm:$0xff] }
 0xaa5   : > { %8678 = vmatmul.mubr.bf16.gmra.mrb[56].mxu0 %v10365_v59  ;;  %v16149_v33 = vpop.f32.mrb[84].mxu1 }
 0xaa6   : > { %8685 = vmatprep.mubr.bf16.mxu0 %v10374_v63  ;;  %v8159_v49 = vpop.f32.mrb[85].mxu1 }
 0xaa7   : > { %v16157_v8 = vpop.f32.mrb[86].mxu1  ;;  %v10405_v49 = vcombine.low %v6221_v12, %v6225_v9 }
 0xaa8   : > { %v8162_v43 = vpop.f32.mrb[87].mxu1 }
 0xaa9   : > { %v10414_v43 = vcombine.high %v6229_v30, %v6233_v22 }
 0xaad   : > { %8686 = vmatmul.mubr.bf16.gmra.mrb[60].mxu0 %v10373_v23  ;;  %v16159_v59 = vpop.f32.mrb[88].mxu1  ;;  %v10397_v23 = vcombine.low %v6213_v26, %v6217_v45 }
 0xaae   : > { %8693 = vmatprep.mubr.bf16.mxu0 %v10382_v16  ;;  %17553 = vst [vmem:[#allocation86_spill] sm:$0xff] %v16159_v59  ;;  %v8167_v63 = vpop.f32.mrb[89].mxu1  ;;  %v10406_v16 = vcombine.high %v6221_v12, %v6225_v9 }
 0xaaf   : > { %v16167_v50 = vpop.f32.mrb[90].mxu1 }
 0xab0   : > { %17554 = vst [vmem:[#allocation87_spill] sm:$0xff] %v16167_v50  ;;  %v8170_v2 = vpop.f32.mrb[91].mxu1  ;;  %v6324_v50 = vld [vmem:[%s17571_s12 + $0x10] sm:$0xff] }
 0xab5   : > { %8694 = vmatmul.mubr.bf16.gmra.mrb[64].mxu0 %v10381_v3  ;;  %v16169_v37 = vpop.f32.mrb[92].mxu1 }
 0xab6   : > { %8701 = vmatprep.mubr.bf16.mxu0 %v10390_v1  ;;  %17555 = vst [vmem:[#allocation88_spill] sm:$0xff] %v16169_v37  ;;  %v8175_v34 = vpop.f32.mrb[93].mxu1  ;;  %v12062_v37 = vld [vmem:[#allocation6 + $0x4] ss:$16 sps:$4 sm:$0xff]  }
 0xab7   : > { %v16177_v3 = vpop.f32.mrb[94].mxu1  ;;  %v6245_v34 = vld [vmem:[%s17552_s7 + $0x598] sm:$0xff]  ;;  %9494 = vmatprep.mubr.bf16.mxu1 %v12062_v37 }
 0xab8   : > { %17556 = vst [vmem:[#allocation89_spill] sm:$0xff] %v16177_v3  ;;  %v8178_v1 = vpop.f32.mrb[95].mxu1 }
 0xab9   : > { %v6249_v1 = vld [vmem:[%s17552_s7 + $0x5b8] sm:$0xff] }
 0xabd   : > { %8702 = vmatmul.mubr.bf16.gmra.mrb[68].mxu0 %v10389_v28  ;;  %v16179_v26 = vpop.f32.mrb[96].mxu1  ;;  %v6237_v28 = vld [vmem:[%s17552_s7 + $0x558] sm:$0xff] }
 0xabe   : > { %8709 = vmatprep.mubr.bf16.mxu0 %v10398_v7  ;;  %17557 = vst [vmem:[#allocation90_spill] sm:$0xff] %v16179_v26  ;;  %v8183_v45 = vpop.f32.mrb[97].mxu1  ;;  %v6241_v7 = vld [vmem:[%s17552_s7 + $0x578] sm:$0xff] }
 0xabf   : > { %v16187_v63 = vpop.f32.mrb[98].mxu1  ;;  %v10421_v45 = vcombine.low %v6237_v28, %v6241_v7 }
 0xac0   : > { %17558 = vst [vmem:[#allocation91_spill] sm:$0xff] %v16187_v63  ;;  %v8186_v2 = vpop.f32.mrb[99].mxu1 }
 0xac1   : > { %v10430_v2 = vcombine.high %v6245_v34, %v6249_v1 }
 0xac5   : > { %8710 = vmatmul.mubr.bf16.gmra.mrb[72].mxu0 %v10397_v23  ;;  %v10413_v23 = vcombine.low %v6229_v30, %v6233_v22  ;;  %v16189_v12 = vpop.f32.mrb[100].mxu1 }
 0xac6   : > { %8717 = vmatprep.mubr.bf16.mxu0 %v10406_v16  ;;  %v10422_v16 = vcombine.high %v6237_v28, %v6241_v7  ;;  %17559 = vst [vmem:[#allocation92_spill] sm:$0xff] %v16189_v12  ;;  %v8191_v9 = vpop.f32.mrb[101].mxu1 }
 0xacd   : > { %8718 = vmatmul.mubr.bf16.gmra.mrb[76].mxu0 %v10405_v49  ;;  %v16197_v49 = vpop.f32.mrb[102].mxu1 }
 0xace   : > { %8725 = vmatprep.mubr.bf16.mxu0 %v10414_v43  ;;  %17560 = vst [vmem:[#allocation93_spill] sm:$0xff] %v16197_v49  ;;  %v8194_v43 = vpop.f32.mrb[103].mxu1  ;;  %v10429_v49 = vcombine.low %v6245_v34, %v6249_v1 }
 0xacf   : > { %v16199_v30 = vpop.f32.mrb[104].mxu1 }
 0xad0   : > { %17561 = vst [vmem:[#allocation94_spill] sm:$0xff] %v16199_v30  ;;  %v8199_v22 = vpop.f32.mrb[105].mxu1 }
 0xad1   : > { %v16207_v9 = vpop.f32.mrb[106].mxu1 }
 0xad2   : > { %17562 = vst [vmem:[#allocation95_spill] sm:$0xff] %v16207_v9  ;;  %v8202_v12 = vpop.f32.mrb[107].mxu1 }
 0xad5   : > { %8726 = vmatmul.mubr.bf16.gmra.mrb[80].mxu0 %v10413_v23  ;;  %v6253_v23 = vld [vmem:[%s17552_s7 + $0x5d8] sm:$0xff]  ;;  %v16209_v28 = vpop.f32.mrb[108].mxu1 }
 0xad6   : > { %8733 = vmatprep.mubr.bf16.mxu0 %v10422_v16  ;;  %v6257_v16 = vld [vmem:[%s17552_s7 + $0x5f8] sm:$0xff]  ;;  %17563 = vst [vmem:[#allocation96_spill] sm:$0xff] %v16209_v28  ;;  %v8207_v7 = vpop.f32.mrb[109].mxu1 }
 0xad7   : > { %v10438_v43 = vcombine.high %v6253_v23, %v6257_v16  ;;  %v16217_v22 = vpop.f32.mrb[110].mxu1  ;;  %v10437_v9 = vcombine.low %v6253_v23, %v6257_v16 }
 0xad8   : > { %17564 = vst [vmem:[#allocation97_spill] sm:$0xff] %v16217_v22  ;;  %v8210_v30 = vpop.f32.mrb[111].mxu1 }
 0xadd   : > { %8734 = vmatmul.mubr.bf16.gmra.mrb[84].mxu0 %v10421_v45  ;;  %v6261_v45 = vld [vmem:[%s17552_s7 + $0x618] sm:$0xff]  ;;  %v16219_v34 = vpop.f32.mrb[112].mxu1 }
 0xade   : > { %8741 = vmatprep.mubr.bf16.mxu0 %v10430_v2  ;;  %v6265_v2 = vld [vmem:[%s17552_s7 + $0x638] sm:$0xff]  ;;  %17565 = vst [vmem:[#allocation98_spill] sm:$0xff] %v16219_v34  ;;  %v8215_v1 = vpop.f32.mrb[113].mxu1 }
 0xadf   : > { %v10446_v12 = vcombine.high %v6261_v45, %v6265_v2  ;;  %v16227_v7 = vpop.f32.mrb[114].mxu1  ;;  %v10445_v22 = vcombine.low %v6261_v45, %v6265_v2 }
 0xae0   : > { %17566 = vst [vmem:[#allocation99_spill] sm:$0xff] %v16227_v7  ;;  %v8218_v28 = vpop.f32.mrb[115].mxu1 }
 0xae5   : > { %8742 = vmatmul.mubr.bf16.gmra.mrb[88].mxu0 %v10429_v49  ;;  %v6269_v49 = vld [vmem:[%s17552_s7 + $0x658] sm:$0xff]  ;;  %v16229_v23 = vpop.f32.mrb[116].mxu1 }
 0xae6   : > { %8749 = vmatprep.mubr.bf16.mxu0 %v10438_v43  ;;  %v6273_v43 = vld [vmem:[%s17552_s7 + $0x678] sm:$0xff]  ;;  %17567 = vst [vmem:[#allocation100_spill] sm:$0xff] %v16229_v23  ;;  %v8223_v16 = vpop.f32.mrb[117].mxu1 }
 0xae7   : > { %v10454_v30 = vcombine.high %v6269_v49, %v6273_v43  ;;  %v16237_v1 = vpop.f32.mrb[118].mxu1  ;;  %v10453_v7 = vcombine.low %v6269_v49, %v6273_v43  ;;  %v6322_v49 = vld [vmem:[%s17571_s12] sm:$0xff] }
 0xae8   : > { %17568 = vst [vmem:[#allocation101_spill] sm:$0xff] %v16237_v1  ;;  %v8226_v34 = vpop.f32.mrb[119].mxu1 }
 0xaed   : > { %8750 = vmatmul.mubr.bf16.gmra.mrb[92].mxu0 %v10437_v9  ;;  %v6277_v9 = vld [vmem:[%s17552_s7 + $0x698] sm:$0xff]  ;;  %v16239_v45 = vpop.f32.mrb[120].mxu1 }
 0xaee   : > { %8757 = vmatprep.mubr.bf16.mxu0 %v10446_v12  ;;  %v6281_v12 = vld [vmem:[%s17552_s7 + $0x6b8] sm:$0xff]  ;;  %17569 = vst [vmem:[#allocation102_spill] sm:$0xff] %v16239_v45  ;;  %v8231_v2 = vpop.f32.mrb[121].mxu1 }
 0xaef   : > { %v10462_v28 = vcombine.high %v6277_v9, %v6281_v12  ;;  %v16247_v16 = vpop.f32.mrb[122].mxu1  ;;  %v10461_v1 = vcombine.low %v6277_v9, %v6281_v12  ;;  %v7701_v2 = vadd.f32 %v15903_v4, %v6322_v49  ;;  %v6297_v9 = vld [vmem:[%s17552_s7 + $0x738] sm:$0xff] }
 0xaf0   : > { %17570 = vst [vmem:[#allocation103_spill] sm:$0xff] %v16247_v16  ;;  %v8234_v23 = vpop.f32.mrb[123].mxu1 }
 0xaf1   : > { %v6293_v23 = vld [vmem:[%s17552_s7 + $0x718] sm:$0xff] }
 0xaf2   : > { %v10478_v26 = vcombine.high %v6293_v23, %v6297_v9 }
 0xaf5   : > { %8758 = vmatmul.mubr.bf16.gmra.mrb[96].mxu0 %v10445_v22  ;;  %v6285_v22 = vld [vmem:[%s17552_s7 + $0x6d8] sm:$0xff]  ;;  %v16252_v43 = vpop.f32.mrb[124].mxu1 }
 0xaf6   : > { %8765 = vmatprep.mubr.bf16.mxu0 %v10454_v30  ;;  %v6289_v30 = vld [vmem:[%s17552_s7 + $0x6f8] sm:$0xff]  ;;  %17572 = vst [vmem:[#allocation104_spill] sm:$0xff] %v16252_v43 }
 0xaf7   : > { %v10470_v34 = vcombine.high %v6285_v22, %v6289_v30 }
 0xafd   : > { %8766 = vmatmul.mubr.bf16.gmra.mrb[100].mxu0 %v10453_v7  ;;  %v6323_v7 = vld [vmem:[%s17571_s12 + $0x8] sm:$0xff] }
 0xafe   : > { %8773 = vmatprep.mubr.bf16.mxu0 %v10462_v28  ;;  %v8239_v28 = vpop.f32.mrb[125].mxu1  ;;  %v7704_v63 = vadd.f32 %v15911_v41, %v6323_v7  ;;  %v6325_v41 = vld [vmem:[%s17571_s12 + $0x18] sm:$0xff] }
 0xaff   : > { %v16264_v12 = vpop.f32.mrb[126].mxu1 }
 0xb00   : > { %17573 = vst [vmem:[#allocation105_spill] sm:$0xff] %v16264_v12  ;;  %v8242_v43 = vpop.f32.mrb[127].mxu1 }
 0xb05   : > { %8774 = vmatmul.mubr.bf16.gmra.mrb[104].mxu0 %v10461_v1 }
 0xb06   : > { %8781 = vmatprep.mubr.bf16.mxu0 %v10470_v34  ;;  %v10469_v34 = vcombine.low %v6285_v22, %v6289_v30  ;;  %v6305_v30 = vld [vmem:[%s17552_s7 + $0x778] sm:$0xff] }
 0xb08   : > { %v8567_v1 = vpop.f32.mrb[0].mxu0 }
 0xb09   : > { %v11491_v16 = vadd.f32 %v8567_v1, %v7701_v2  ;;  %v8569_v45 = vpop.f32.mrb[1].mxu0 }
 0xb0a   : > { %v8570_v28 = vpop.f32.mrb[2].mxu0  ;;  %v7709_v45 = vadd.f32 %v15919_v10, %v6324_v50  ;;  %v10477_v50 = vcombine.low %v6293_v23, %v6297_v9 }
 0xb0b   : > { %v8886_v4 = vmul.f32 0.2, %v11491_v16  ;;  %v11493_v49 = vadd.f32 %v8570_v28, %v7704_v63  ;;  %v8572_v3 = vpop.f32.mrb[3].mxu0  ;;  %vm8822_vm5 = vcmp.ge.f32.partialorder %v11491_v16, 0.0  ;;  %v6301_v63 = vld [vmem:[%s17552_s7 + $0x758] sm:$0xff]  ;;  %v6326_v28 = vld [vmem:[%s17571_s12 + $0x20] sm:$0xff] }
 0xb0c   : > { %v10486_v2 = vcombine.high %v6301_v63, %v6305_v30  ;;  %v7717_v23 = vadd.f32 %v15935_v40, %v6326_v28  ;;  %v6328_v28 = vld [vmem:[%s17571_s12 + $0x30] sm:$0xff] }
 0xb0d   : > { %vm8823_vm0 = vcmp.ge.f32.partialorder %v11493_v49, 0.0  ;;  %v8887_v12 = vmul.f32 0.2, %v11493_v49  ;;  %8782 = vmatmul.mubr.bf16.gmra.mrb[108].mxu0 %v10469_v34  ;;  %v16274_v22 = vsel %vm8822_vm5, %v11491_v16, %v8886_v4 }
 0xb0e   : > { %8789 = vmatprep.mubr.bf16.mxu0 %v10478_v26  ;;  %v7712_v26 = vadd.f32 %v15927_v57, %v6325_v41  ;;  %v6327_v57 = vld [vmem:[%s17571_s12 + $0x28] sm:$0xff]  ;;  %v6309_v41 = vld [vmem:[%s17552_s7 + $0x798] sm:$0xff] }
 0xb0f   : > { %v16276_v3 = vsel %vm8823_vm0, %v11493_v49, %v8887_v12 }
 0xb10   : > { %v8575_v43 = vpop.f32.mrb[4].mxu0 }
 0xb11   : > { %v11495_v7 = vadd.f32 %v8575_v43, %v7709_v45  ;;  %v8577_v10 = vpop.f32.mrb[5].mxu0  ;;  %v6313_v45 = vld [vmem:[%s17552_s7 + $0x7b8] sm:$0xff] }
 0xb12   : > { %v8578_v16 = vpop.f32.mrb[6].mxu0  ;;  %v7720_v10 = vadd.f32 %v15943_v60, %v6327_v57  ;;  %v6329_v60 = vld [vmem:[%s17571_s12 + $0x38] sm:$0xff] }
 0xb13   : > { %v8888_v12 = vmul.f32 0.2, %v11495_v7  ;;  %v11497_v1 = vadd.f32 %v8578_v16, %v7712_v26  ;;  %v8580_v34 = vpop.f32.mrb[7].mxu0  ;;  %vm8824_vm4 = vcmp.ge.f32.partialorder %v11495_v7, 0.0 }
 0xb15   : > { %vm8825_vm6 = vcmp.ge.f32.partialorder %v11497_v1, 0.0  ;;  %v8889_v4 = vmul.f32 0.2, %v11497_v1  ;;  %8790 = vmatmul.mubr.bf16.gmra.mrb[112].mxu0 %v10477_v50  ;;  %v16294_v9 = vsel %vm8824_vm4, %v11495_v7, %v8888_v12  ;;  %v10485_v7 = vcombine.low %v6301_v63, %v6305_v30 }
 0xb16   : > { %8797 = vmatprep.mubr.bf16.mxu0 %v10486_v2  ;;  %v10494_v2 = vcombine.high %v6309_v41, %v6313_v45  ;;  %v7725_v63 = vadd.f32 %v15951_v47, %v6328_v28 }
 0xb17   : > { %v16296_v49 = vsel %vm8825_vm6, %v11497_v1, %v8889_v4 }
 0xb18   : > { %v8583_v26 = vpop.f32.mrb[8].mxu0 }
 0xb19   : > { %v11499_v50 = vadd.f32 %v8583_v26, %v7717_v23  ;;  %v8585_v40 = vpop.f32.mrb[9].mxu0  ;;  %v6317_v23 = vld [vmem:[%s17552_s7 + $0x7d8] sm:$0xff] }
 0xb1a   : > { %v8586_v16 = vpop.f32.mrb[10].mxu0  ;;  %v6321_v26 = vld [vmem:[%s17552_s7 + $0x7f8] sm:$0xff] }
 0xb1b   : > { %v8890_v12 = vmul.f32 0.2, %v11499_v50  ;;  %v11501_v1 = vadd.f32 %v8586_v16, %v7720_v10  ;;  %v8588_v34 = vpop.f32.mrb[11].mxu0  ;;  %vm8826_vm9 = vcmp.ge.f32.partialorder %v11499_v50, 0.0 }
 0xb1d   : > { %vm8827_vm7 = vcmp.ge.f32.partialorder %v11501_v1, 0.0  ;;  %v8891_v4 = vmul.f32 0.2, %v11501_v1  ;;  %8798 = vmatmul.mubr.bf16.gmra.mrb[116].mxu0 %v10485_v7  ;;  %v16314_v30 = vsel %vm8826_vm9, %v11499_v50, %v8890_v12  ;;  %v7728_v7 = vadd.f32 %v15959_v32, %v6329_v60  ;;  %v6331_v32 = vld [vmem:[%s17571_s12 + $0x48] sm:$0xff] }
 0xb1e   : > { %8805 = vmatprep.mubr.bf16.mxu0 %v10494_v2  ;;  %v10493_v50 = vcombine.low %v6309_v41, %v6313_v45  ;;  %v10502_v12 = vcombine.high %v6317_v23, %v6321_v26 }
 0xb1f   : > { %v16316_v57 = vsel %vm8827_vm7, %v11501_v1, %v8891_v4  ;;  %v6330_v4 = vld [vmem:[%s17571_s12 + $0x40] sm:$0xff] }
 0xb20   : > { %v8591_v40 = vpop.f32.mrb[12].mxu0  ;;  %v7733_v41 = vadd.f32 %v15967_v6, %v6330_v4  ;;  %v6332_v6 = vld [vmem:[%s17571_s12 + $0x50] sm:$0xff] }
 0xb21   : > { %v11503_v16 = vadd.f32 %v8591_v40, %v7725_v63  ;;  %v8593_v47 = vpop.f32.mrb[13].mxu0 }
 0xb22   : > { %v8594_v2 = vpop.f32.mrb[14].mxu0 }
 0xb23   : > { %v8892_v1 = vmul.f32 0.2, %v11503_v16  ;;  %v11505_v34 = vadd.f32 %v8594_v2, %v7728_v7  ;;  %v8596_v28 = vpop.f32.mrb[15].mxu0  ;;  %vm8828_vm11 = vcmp.ge.f32.partialorder %v11503_v16, 0.0  ;;  %v7736_v7 = vadd.f32 %v15975_v20, %v6331_v32 }
 0xb24   : > { %v7741_v20 = vadd.f32 %v15983_v5, %v6332_v6  ;;  %v6334_v5 = vld [vmem:[%s17571_s12 + $0x60] sm:$0xff] }
 0xb25   : > { %vm8829_vm10 = vcmp.ge.f32.partialorder %v11505_v34, 0.0  ;;  %v8893_v43 = vmul.f32 0.2, %v11505_v34  ;;  %8806 = vmatmul.mubr.bf16.gmra.mrb[120].mxu0 %v10493_v50  ;;  %v16334_v45 = vsel %vm8828_vm11, %v11503_v16, %v8892_v1  ;;  %v10501_v50 = vcombine.low %v6317_v23, %v6321_v26  ;;  %v6333_v16 = vld [vmem:[%s17571_s12 + $0x58] sm:$0xff] }
 0xb26   : > { %8813 = vmatprep.mubr.bf16.mxu0 %v10502_v12  ;;  %v7744_v1 = vadd.f32 %v15991_v35, %v6333_v16 }
 0xb27   : > { %v16336_v60 = vsel %vm8829_vm10, %v11505_v34, %v8893_v43 }
 0xb28   : > { %v9081_v63 = vpack.c.bf16 %v16336_v60, %v16334_v45  ;;  %v8599_v40 = vpop.f32.mrb[16].mxu0 }
 0xb29   : > { %v11507_v47 = vadd.f32 %v8599_v40, %v7733_v41  ;;  %v8601_v2 = vpop.f32.mrb[17].mxu0 }
 0xb2a   : > { %v8602_v28 = vpop.f32.mrb[18].mxu0 }
 0xb2b   : > { %v8894_v10 = vmul.f32 0.2, %v11507_v47  ;;  %v11509_v37 = vadd.f32 %v8602_v28, %v7736_v7  ;;  %v8604_v59 = vpop.f32.mrb[19].mxu0  ;;  %vm8830_vm1 = vcmp.ge.f32.partialorder %v11507_v47, 0.0 }
 0xb2d   : > { %vm8831_vm12 = vcmp.ge.f32.partialorder %v11509_v37, 0.0  ;;  %v8895_v43 = vmul.f32 0.2, %v11509_v37  ;;  %8814 = vmatmul.mubr.bf16.gmra.mrb[124].mxu0 %v10501_v50  ;;  %v16348_v12 = vsel %vm8830_vm1, %v11507_v47, %v8894_v10  ;;  %v6335_v10 = vld [vmem:[%s17571_s12 + $0x68] sm:$0xff]  ;;  %v7749_v47 = vadd.f32 %v15993_v13, %v6334_v5  ;;  %v6336_v13 = vld [vmem:[%s17571_s12 + $0x70] sm:$0xff] }
 0xb2e   : > { %v7752_v6 = vadd.f32 %v16001_v56, %v6335_v10 }
 0xb2f   : > { %v16350_v23 = vsel %vm8831_vm12, %v11509_v37, %v8895_v43 }
 0xb30   : > { %v9082_v59 = vpack.c.bf16 %v16350_v23, %v16348_v12  ;;  %v8607_v26 = vpop.f32.mrb[20].mxu0 }
 0xb31   : > { %v11511_v34 = vadd.f32 %v8607_v26, %v7741_v20  ;;  %v8609_v4 = vpop.f32.mrb[21].mxu0 }
 0xb32   : > { %v8610_v32 = vpop.f32.mrb[22].mxu0 }
 0xb33   : > { %v8896_v41 = vmul.f32 0.2, %v11511_v34  ;;  %v11513_v40 = vadd.f32 %v8610_v32, %v7744_v1  ;;  %v8612_v7 = vpop.f32.mrb[23].mxu0  ;;  %vm8832_vm2 = vcmp.ge.f32.partialorder %v11511_v34, 0.0  ;;  %v6337_v32 = vld [vmem:[%s17571_s12 + $0x78] sm:$0xff] }
 0xb34   : > { %v17574_v7 = vpack.c.bf16 %v16276_v3, %v16274_v22 }
 0xb35   : > { %vm8833_vm13 = vcmp.ge.f32.partialorder %v11513_v40, 0.0  ;;  %v8897_v37 = vmul.f32 0.2, %v11513_v40  ;;  %v16362_v35 = vsel %vm8832_vm2, %v11511_v34, %v8896_v41  ;;  %v7757_v41 = vadd.f32 %v16003_v21, %v6336_v13  ;;  %v6338_v21 = vld [vmem:[%s17571_s12 + $0x80] sm:$0xff] }
 0xb37   : > { %v16364_v2 = vsel %vm8833_vm13, %v11513_v40, %v8897_v37  ;;  %v7760_v37 = vadd.f32 %v16011_v58, %v6337_v32 }
 0xb38   : > { %v9083_v50 = vpack.c.bf16 %v16364_v2, %v16362_v35  ;;  %v8615_v28 = vpop.f32.mrb[24].mxu0 }
 0xb39   : > { %v11515_v43 = vadd.f32 %v8615_v28, %v7749_v47  ;;  %v8617_v16 = vpop.f32.mrb[25].mxu0 }
 0xb3a   : > { %v8618_v20 = vpop.f32.mrb[26].mxu0 }
 0xb3b   : > { %v8898_v26 = vmul.f32 0.2, %v11515_v43  ;;  %v11517_v1 = vadd.f32 %v8618_v20, %v7752_v6  ;;  %v8620_v4 = vpop.f32.mrb[27].mxu0  ;;  %vm8834_vm14 = vcmp.ge.f32.partialorder %v11515_v43, 0.0 }
 0xb3d   : > { %vm8835_vm3 = vcmp.ge.f32.partialorder %v11517_v1, 0.0  ;;  %v8899_v34 = vmul.f32 0.2, %v11517_v1  ;;  %v16376_v56 = vsel %vm8834_vm14, %v11515_v43, %v8898_v26  ;;  %v6339_v26 = vld [vmem:[%s17571_s12 + $0x88] sm:$0xff] }
 0xb3e   : > { %v7768_v32 = vadd.f32 %v16021_v42, %v6339_v26 }
 0xb3f   : > { %v16378_v40 = vsel %vm8835_vm3, %v11517_v1, %v8899_v34  ;;  %v7765_v1 = vadd.f32 %v16013_v27, %v6338_v21  ;;  %v6340_v27 = vld [vmem:[%s17571_s12 + $0x90] sm:$0xff] }
 0xb40   : > { %v8623_v5 = vpop.f32.mrb[28].mxu0 }
 0xb41   : > { %v11519_v10 = vadd.f32 %v8623_v5, %v7757_v41  ;;  %v8625_v47 = vpop.f32.mrb[29].mxu0 }
 0xb42   : > { %v8626_v28 = vpop.f32.mrb[30].mxu0 }
 0xb43   : > { %v8900_v6 = vmul.f32 0.2, %v11519_v10  ;;  %v11521_v16 = vadd.f32 %v8626_v28, %v7760_v37  ;;  %v8628_v20 = vpop.f32.mrb[31].mxu0  ;;  %vm8836_vm15 = vcmp.ge.f32.partialorder %v11519_v10, 0.0 }
 0xb45   : > { %vm8837_vm5 = vcmp.ge.f32.partialorder %v11521_v16, 0.0  ;;  %v8901_v43 = vmul.f32 0.2, %v11521_v16  ;;  %v16390_v58 = vsel %vm8836_vm15, %v11519_v10, %v8900_v6  ;;  %v6341_v6 = vld [vmem:[%s17571_s12 + $0x98] sm:$0xff] }
 0xb47   : > { %v16392_v4 = vsel %vm8837_vm5, %v11521_v16, %v8901_v43  ;;  %v7773_v16 = vadd.f32 %v16023_v39, %v6340_v27  ;;  %v6342_v39 = vld [vmem:[%s17571_s12 + $0xa0] sm:$0xff] }
 0xb48   : > { %v8631_v34 = vpop.f32.mrb[32].mxu0 }
 0xb49   : > { %v11523_v41 = vadd.f32 %v8631_v34, %v7765_v1  ;;  %v8633_v5 = vpop.f32.mrb[33].mxu0  ;;  %v7776_v1 = vadd.f32 %v16031_v29, %v6341_v6  ;;  %v6343_v29 = vld [vmem:[%s17571_s12 + $0xa8] sm:$0xff] }
 0xb4a   : > { %v8634_v37 = vpop.f32.mrb[34].mxu0  ;;  %v7784_v22 = vadd.f32 %v16041_v52, %v6343_v29  ;;  %v6345_v52 = vld [vmem:[%s17571_s12 + $0xb8] sm:$0xff] }
 0xb4b   : > { %v8902_v47 = vmul.f32 0.2, %v11523_v41  ;;  %v11525_v28 = vadd.f32 %v8634_v37, %v7768_v32  ;;  %v8636_v20 = vpop.f32.mrb[35].mxu0  ;;  %vm8838_vm0 = vcmp.ge.f32.partialorder %v11523_v41, 0.0 }
 0xb4d   : > { %vm8839_vm4 = vcmp.ge.f32.partialorder %v11525_v28, 0.0  ;;  %v8903_v10 = vmul.f32 0.2, %v11525_v28  ;;  %v8966_v42 = vsel %vm8838_vm0, %v11523_v41, %v8902_v47  ;;  %v7781_v47 = vadd.f32 %v16033_v38, %v6342_v39  ;;  %v6344_v38 = vld [vmem:[%s17571_s12 + $0xb0] sm:$0xff] }
 0xb4f   : > { %v8967_v21 = vsel %vm8839_vm4, %v11525_v28, %v8903_v10 }
 0xb50   : > { %v8639_v43 = vpop.f32.mrb[36].mxu0  ;;  %v9086_v26 = vpack.c.bf16 %v8967_v21, %v8966_v42 }
 0xb51   : > { %v11527_v34 = vadd.f32 %v8639_v43, %v7773_v16  ;;  %v8641_v32 = vpop.f32.mrb[37].mxu0  ;;  %v17575_v43 = vpack.c.bf16 %v16296_v49, %v16294_v9  ;;  %v7792_v9 = vadd.f32 %v16051_v0, %v6345_v52  ;;  %v6347_v0 = vld [vmem:[%s17571_s12 + $0xc8] sm:$0xff] }
 0xb52   : > { %v8642_v5 = vpop.f32.mrb[38].mxu0  ;;  %10780 = vmatprep.subr.bf16.mxu1 %v9086_v26 }
 0xb53   : > { %v8904_v37 = vmul.f32 0.2, %v11527_v34  ;;  %v11529_v20 = vadd.f32 %v8642_v5, %v7776_v1  ;;  %v8644_v13 = vpop.f32.mrb[39].mxu0  ;;  %10781 = vmatpush3.bf16.msra.mxu1 %v17574_v7  ;;  %vm8840_vm6 = vcmp.ge.f32.partialorder %v11527_v34, 0.0  ;;  %v7789_v1 = vadd.f32 %v16043_v55, %v6344_v38  ;;  %v6346_v55 = vld [vmem:[%s17571_s12 + $0xc0] sm:$0xff] }
 0xb55   : > { %vm8841_vm9 = vcmp.ge.f32.partialorder %v11529_v20, 0.0  ;;  %v8905_v41 = vmul.f32 0.2, %v11529_v20  ;;  %v8968_v28 = vsel %vm8840_vm6, %v11527_v34, %v8904_v37 }
 0xb57   : > { %v8969_v27 = vsel %vm8841_vm9, %v11529_v20, %v8905_v41 }
 0xb58   : > { %v8647_v13 = vpop.f32.mrb[40].mxu0  ;;  %v9087_v10 = vpack.c.bf16 %v8969_v27, %v8968_v28  ;;  %v17576_v28 = vpack.c.bf16 %v16316_v57, %v16314_v30  ;;  %v7800_v30 = vadd.f32 %v16061_v46, %v6347_v0  ;;  %v6349_v46 = vld [vmem:[%s17571_s12 + $0xd8] sm:$0xff] }
 0xb59   : > { %v11531_v3 = vadd.f32 %v8647_v13, %v7781_v47  ;;  %v8649_v7 = vpop.f32.mrb[41].mxu0  ;;  %v7797_v13 = vadd.f32 %v16053_v51, %v6346_v55  ;;  %v6348_v51 = vld [vmem:[%s17571_s12 + $0xd0] sm:$0xff]  ;;  %v7808_v45 = vadd.f32 %v16071_v61, %v6349_v46  ;;  %v6351_v61 = vld [vmem:[%s17571_s12 + $0xe8] sm:$0xff] }
 0xb5a   : > { %v8650_v6 = vpop.f32.mrb[42].mxu0  ;;  %10782 = vmatprep.subr.bf16.mxu1 %v9087_v10  ;;  %v7816_v12 = vadd.f32 %v16081_v19, %v6351_v61  ;;  %v6353_v19 = vld [vmem:[%s17571_s12 + $0xf8] sm:$0xff] }
 0xb5b   : > { %v8906_v16 = vmul.f32 0.2, %v11531_v3  ;;  %v11533_v42 = vadd.f32 %v8650_v6, %v7784_v22  ;;  %v8652_v21 = vpop.f32.mrb[43].mxu0  ;;  %10783 = vmatpush3.bf16.msra.mxu1 %v17575_v43  ;;  %vm8842_vm7 = vcmp.ge.f32.partialorder %v11531_v3, 0.0  ;;  %v7824_v35 = vadd.f32 %v16091_v14, %v6353_v19  ;;  %v6355_v14 = vld [vmem:[%s17571_s12 + $0x108] sm:$0xff] }
 0xb5d   : > { %vm8843_vm11 = vcmp.ge.f32.partialorder %v11533_v42, 0.0  ;;  %v8907_v26 = vmul.f32 0.2, %v11533_v42  ;;  %v8970_v34 = vsel %vm8842_vm7, %v11531_v3, %v8906_v16 }
 0xb5f   : > { %v8971_v32 = vsel %vm8843_vm11, %v11533_v42, %v8907_v26  ;;  %v7805_v26 = vadd.f32 %v16063_v18, %v6348_v51  ;;  %v6350_v18 = vld [vmem:[%s17571_s12 + $0xe0] sm:$0xff] }
 0xb60   : > { %v8655_v5 = vpop.f32.mrb[44].mxu0  ;;  %v9088_v37 = vpack.c.bf16 %v8971_v32, %v8970_v34 }
 0xb61   : > { %v11535_v49 = vadd.f32 %v8655_v5, %v7789_v1  ;;  %v8657_v20 = vpop.f32.mrb[45].mxu0 }
 0xb62   : > { %v8658_v39 = vpop.f32.mrb[46].mxu0  ;;  %10784 = vmatprep.subr.bf16.mxu1 %v9088_v37 }
 0xb63   : > { %v8908_v41 = vmul.f32 0.2, %v11535_v49  ;;  %v11537_v29 = vadd.f32 %v8658_v39, %v7792_v9  ;;  %v8660_v47 = vpop.f32.mrb[47].mxu0  ;;  %10785 = vmatpush3.bf16.msra.mxu1 %v17576_v28  ;;  %vm8844_vm10 = vcmp.ge.f32.partialorder %v11535_v49, 0.0  ;;  %v7813_v39 = vadd.f32 %v16073_v44, %v6350_v18  ;;  %v6352_v44 = vld [vmem:[%s17571_s12 + $0xf0] sm:$0xff] }
 0xb65   : > { %vm8845_vm1 = vcmp.ge.f32.partialorder %v11537_v29, 0.0  ;;  %v8909_v27 = vmul.f32 0.2, %v11537_v29  ;;  %v8972_v10 = vsel %vm8844_vm10, %v11535_v49, %v8908_v41 }
 0xb67   : > { %v8973_v22 = vsel %vm8845_vm1, %v11537_v29, %v8909_v27 }
 0xb68   : > { %v8663_v3 = vpop.f32.mrb[48].mxu0  ;;  %v9089_v7 = vpack.c.bf16 %v8973_v22, %v8972_v10  ;;  %v7821_v22 = vadd.f32 %v16083_v62, %v6352_v44  ;;  %v6354_v62 = vld [vmem:[%s17571_s12 + $0x100] sm:$0xff] }
 0xb69   : > { %v11539_v57 = vadd.f32 %v8663_v3, %v7797_v13  ;;  %v8665_v6 = vpop.f32.mrb[49].mxu0 }
 0xb6a   : > { %v8666_v16 = vpop.f32.mrb[50].mxu0  ;;  %10786 = vmatprep.subr.bf16.mxu1 %v9089_v7 }
 0xb6b   : > { %v8910_v42 = vmul.f32 0.2, %v11539_v57  ;;  %v11541_v21 = vadd.f32 %v8666_v16, %v7800_v30  ;;  %v8668_v43 = vpop.f32.mrb[51].mxu0  ;;  %10787 = vmatpush3.bf16.msra.mxu1 %v9081_v63  ;;  %vm8846_vm12 = vcmp.ge.f32.partialorder %v11539_v57, 0.0 }
 0xb6c   : > { %v17577_v43 = vpack.c.bf16 %v16378_v40, %v16376_v56  ;;  %v7832_v56 = vadd.f32 %v16101_v24, %v6355_v14 }
 0xb6d   : > { %vm8847_vm2 = vcmp.ge.f32.partialorder %v11541_v21, 0.0  ;;  %v8911_v38 = vmul.f32 0.2, %v11541_v21  ;;  %v8974_v52 = vsel %vm8846_vm12, %v11539_v57, %v8910_v42 }
 0xb6f   : > { %v8975_v1 = vsel %vm8847_vm2, %v11541_v21, %v8911_v38  ;;  %v7829_v38 = vadd.f32 %v16099_v15, %v6354_v62  ;;  %v6356_v15 = vld [vmem:[%s17571_s12 + $0x110] sm:$0xff] }
 0xb70   : > { %v8671_v34 = vpop.f32.mrb[52].mxu0  ;;  %v9090_v32 = vpack.c.bf16 %v8975_v1, %v8974_v52  ;;  %v11558_v18 = vadd.f32 %v16109_v48, %v6356_v15  ;;  %v6358_v48 = vld [vmem:[%s17571_s12 + $0x120] sm:$0xff] }
 0xb71   : > { %v11543_v60 = vadd.f32 %v8671_v34, %v7805_v26  ;;  %v8673_v63 = vpop.f32.mrb[53].mxu0 }
 0xb72   : > { %v8674_v5 = vpop.f32.mrb[54].mxu0  ;;  %10788 = vmatprep.subr.bf16.mxu1 %v9090_v32 }
 0xb73   : > { %v8912_v37 = vmul.f32 0.2, %v11543_v60  ;;  %v11545_v9 = vadd.f32 %v8674_v5, %v7808_v45  ;;  %v8676_v49 = vpop.f32.mrb[55].mxu0  ;;  %10789 = vmatpush3.bf16.msra.mxu1 %v9082_v59  ;;  %vm8848_vm13 = vcmp.ge.f32.partialorder %v11543_v60, 0.0  ;;  %v12060_v45 = vld [vmem:[#allocation6] ss:$16 sps:$4 sm:$0xff]  }
 0xb74   : > { %v6357_v49 = vld [vmem:[%s17571_s12 + $0x118] sm:$0xff] }
 0xb75   : > { %vm8849_vm14 = vcmp.ge.f32.partialorder %v11545_v9, 0.0  ;;  %v8913_v20 = vmul.f32 0.2, %v11545_v9  ;;  %v8976_v41 = vsel %vm8848_vm13, %v11543_v60, %v8912_v37  ;;  %v17578_v37 = vpack.c.bf16 %v16392_v4, %v16390_v58 }
 0xb77   : > { %v8977_v29 = vsel %vm8849_vm14, %v11545_v9, %v8913_v20  ;;  %v12063_v9 = vld [vmem:[#allocation6 + $0x24] ss:$16 sps:$4 sm:$0xff]  }
 0xb78   : > { %v8679_v47 = vpop.f32.mrb[56].mxu0  ;;  %v9091_v28 = vpack.c.bf16 %v8977_v29, %v8976_v41 }
 0xb79   : > { %v11547_v23 = vadd.f32 %v8679_v47, %v7813_v39  ;;  %v8681_v59 = vpop.f32.mrb[57].mxu0  ;;  %v11560_v39 = vadd.f32 %v16117_v54, %v6357_v49  ;;  %v11562_v54 = vadd.f32 %v16119_v17, %v6358_v48  ;;  %v6360_v17 = vld [vmem:[%s17571_s12 + $0x130] sm:$0xff] }
 0xb7a   : > { %v8682_v55 = vpop.f32.mrb[58].mxu0  ;;  %10790 = vmatprep.subr.bf16.mxu1 %v9091_v28  ;;  %v12065_v28 = vld [vmem:[#allocation6 + $0x20] ss:$16 sps:$4 sm:$0xff]  }
 0xb7b   : > { %v8914_v27 = vmul.f32 0.2, %v11547_v23  ;;  %v11549_v0 = vadd.f32 %v8682_v55, %v7816_v12  ;;  %v8684_v13 = vpop.f32.mrb[59].mxu0  ;;  %10791 = vmatpush3.bf16.msra.mxu1 %v9083_v50  ;;  %vm8850_vm3 = vcmp.ge.f32.partialorder %v11547_v23, 0.0  ;;  %v12066_v55 = vld [vmem:[#allocation6 + $0x44] ss:$16 sps:$4 sm:$0xff]  }
 0xb7d   : > { %vm8851_vm15 = vcmp.ge.f32.partialorder %v11549_v0, 0.0  ;;  %v8915_v10 = vmul.f32 0.2, %v11549_v0  ;;  %v8978_v3 = vsel %vm8850_vm3, %v11547_v23, %v8914_v27 }
 0xb7f   : > { %v8979_v7 = vsel %vm8851_vm15, %v11549_v0, %v8915_v10  ;;  %v6359_v0 = vld [vmem:[%s17571_s12 + $0x128] sm:$0xff] }
 0xb80   : > { %v8687_v30 = vpop.f32.mrb[60].mxu0  ;;  %v9092_v57 = vpack.c.bf16 %v8979_v7, %v8978_v3 }
 0xb81   : > { %v11551_v2 = vadd.f32 %v8687_v30, %v7821_v22  ;;  %v8689_v50 = vpop.f32.mrb[61].mxu0  ;;  %v11564_v22 = vadd.f32 %v16127_v11, %v6359_v0  ;;  %v11566_v11 = vadd.f32 %v16129_v53, %v6360_v17  ;;  %v6362_v53 = vld [vmem:[%s17571_s12 + $0x140] sm:$0xff] }
 0xb82   : > { %v8690_v6 = vpop.f32.mrb[62].mxu0  ;;  %10792 = vmatprep.subr.bf16.mxu1 %v9092_v57  ;;  %v12068_v57 = vld [vmem:[#allocation6 + $0x40] ss:$16 sps:$4 sm:$0xff]  }
 0xb83   : > { %v8916_v16 = vmul.f32 0.2, %v11551_v2  ;;  %v11553_v42 = vadd.f32 %v8690_v6, %v7824_v35  ;;  %v8692_v21 = vpop.f32.mrb[63].mxu0  ;;  %10793 = vmatpush3.bf16.msra.mxu1 %v17577_v43  ;;  %vm8852_vm5 = vcmp.ge.f32.partialorder %v11551_v2, 0.0  ;;  %v12069_v6 = vld [vmem:[#allocation6 + $0x64] ss:$16 sps:$4 sm:$0xff]  }
 0xb85   : > { %vm8853_vm0 = vcmp.ge.f32.partialorder %v11553_v42, 0.0  ;;  %v8917_v51 = vmul.f32 0.2, %v11553_v42  ;;  %v8980_v46 = vsel %vm8852_vm5, %v11551_v2, %v8916_v16 }
 0xb87   : > { %v8981_v26 = vsel %vm8853_vm0, %v11553_v42, %v8917_v51  ;;  %v6361_v42 = vld [vmem:[%s17571_s12 + $0x138] sm:$0xff] }
 0xb88   : > { %v8695_v52 = vpop.f32.mrb[64].mxu0  ;;  %v9093_v1 = vpack.c.bf16 %v8981_v26, %v8980_v46  ;;  %v11568_v14 = vadd.f32 %v16137_v36, %v6361_v42  ;;  %v11570_v36 = vadd.f32 %v16139_v25, %v6362_v53  ;;  %v6364_v25 = vld [vmem:[%s17571_s12 + $0x150] sm:$0xff]  ;;  %v6369_v53 = vld [vmem:[%s17571_s12 + $0x178] sm:$0xff] }
 0xb89   : > { %v11555_v40 = vadd.f32 %v8695_v52, %v7829_v38  ;;  %v8697_v34 = vpop.f32.mrb[65].mxu0  ;;  %v12071_v52 = vld [vmem:[#allocation6 + $0x60] ss:$16 sps:$4 sm:$0xff]  }
 0xb8a   : > { %v8698_v32 = vpop.f32.mrb[66].mxu0  ;;  %10794 = vmatprep.subr.bf16.mxu1 %v9093_v1  ;;  %v12072_v34 = vld [vmem:[#allocation6 + $0x84] ss:$16 sps:$4 sm:$0xff]  }
 0xb8b   : > { %v8918_v60 = vmul.f32 0.2, %v11555_v40  ;;  %v11557_v63 = vadd.f32 %v8698_v32, %v7832_v56  ;;  %v8700_v5 = vpop.f32.mrb[67].mxu0  ;;  %10795 = vmatpush3.bf16.msra.mxu1 %v17578_v37  ;;  %vm8854_vm4 = vcmp.ge.f32.partialorder %v11555_v40, 0.0  ;;  %v17580_v42 = vld [vmem:[#allocation87_spill] sm:$0xff] }
 0xb8d   : > { %vm8855_vm6 = vcmp.ge.f32.partialorder %v11557_v63, 0.0  ;;  %v8919_v24 = vmul.f32 0.2, %v11557_v63  ;;  %v16492_v20 = vsel %vm8854_vm4, %v11555_v40, %v8918_v60 }
 0xb8e   : > { %9495 = vmatmul.mubr.bf16.vlgmr.msra.gmra.mrb[128].mxu1 %v12060_v45  ;;  %v6363_v45 = vld [vmem:[%s17571_s12 + $0x148] sm:$0xff] }
 0xb8f   : > { %v16494_v61 = vsel %vm8855_vm6, %v11557_v63, %v8919_v24  ;;  %9502 = vmatprep.mubr.bf16.mxu1 %v12063_v9  ;;  %v11572_v9 = vadd.f32 %v16147_v31, %v6363_v45  ;;  %v11574_v31 = vadd.f32 %v16149_v33, %v6364_v25  ;;  %v6366_v33 = vld [vmem:[%s17571_s12 + $0x160] sm:$0xff] }
 0xb90   : > { %v9094_v58 = vpack.c.bf16 %v16494_v61, %v16492_v20  ;;  %v8703_v4 = vpop.f32.mrb[68].mxu0 }
 0xb91   : > { %v11559_v41 = vadd.f32 %v11558_v18, %v8703_v4  ;;  %v8705_v29 = vpop.f32.mrb[69].mxu0  ;;  %v12074_v18 = vld [vmem:[#allocation6 + $0x80] ss:$16 sps:$4 sm:$0xff]  }
 0xb92   : > { %v8706_v47 = vpop.f32.mrb[70].mxu0  ;;  %v12075_v29 = vld [vmem:[#allocation6 + $0xa4] ss:$16 sps:$4 sm:$0xff]  }
 0xb93   : > { %v8920_v12 = vmul.f32 0.2, %v11559_v41  ;;  %v11561_v23 = vadd.f32 %v11560_v39, %v8706_v47  ;;  %v8708_v59 = vpop.f32.mrb[71].mxu0  ;;  %vm8856_vm9 = vcmp.ge.f32.partialorder %v11559_v41, 0.0 }
 0xb95   : > { %vm8857_vm7 = vcmp.ge.f32.partialorder %v11561_v23, 0.0  ;;  %v8921_v27 = vmul.f32 0.2, %v11561_v23  ;;  %v16506_v13 = vsel %vm8856_vm9, %v11559_v41, %v8920_v12 }
 0xb96   : > { %9503 = vmatmul.mubr.bf16.gmra.mrb[132].mxu1 %v12065_v28  ;;  %v6365_v28 = vld [vmem:[%s17571_s12 + $0x158] sm:$0xff] }
 0xb97   : > { %v16508_v44 = vsel %vm8857_vm7, %v11561_v23, %v8921_v27  ;;  %9510 = vmatprep.mubr.bf16.mxu1 %v12066_v55  ;;  %v11576_v48 = vadd.f32 %v16157_v8, %v6365_v28  ;;  %v17579_v8 = vld [vmem:[#allocation86_spill] sm:$0xff]  ;;  %v12084_v28 = vld [vmem:[#allocation6 + $0x104] ss:$16 sps:$4 sm:$0xff]  }
 0xb98   : > { %v9095_v10 = vpack.c.bf16 %v16508_v44, %v16506_v13  ;;  %v8711_v19 = vpop.f32.mrb[72].mxu0 }
 0xb99   : > { %v11563_v3 = vadd.f32 %v11562_v54, %v8711_v19  ;;  %v8713_v7 = vpop.f32.mrb[73].mxu0  ;;  %v12077_v19 = vld [vmem:[#allocation6 + $0xa0] ss:$16 sps:$4 sm:$0xff]  }
 0xb9a   : > { %v8714_v30 = vpop.f32.mrb[74].mxu0 }
 0xb9b   : > { %v8922_v35 = vmul.f32 0.2, %v11563_v3  ;;  %v11565_v2 = vadd.f32 %v11564_v22, %v8714_v30  ;;  %v8716_v50 = vpop.f32.mrb[75].mxu0  ;;  %vm8858_vm11 = vcmp.ge.f32.partialorder %v11563_v3, 0.0  ;;  %v12078_v30 = vld [vmem:[#allocation6 + $0xc4] ss:$16 sps:$4 sm:$0xff]  }
 0xb9d   : > { %vm8859_vm10 = vcmp.ge.f32.partialorder %v11565_v2, 0.0  ;;  %v8923_v16 = vmul.f32 0.2, %v11565_v2  ;;  %v16520_v21 = vsel %vm8858_vm11, %v11563_v3, %v8922_v35  ;;  %v6367_v35 = vld [vmem:[%s17571_s12 + $0x168] sm:$0xff] }
 0xb9e   : > { %9511 = vmatmul.mubr.bf16.gmra.mrb[136].mxu1 %v12068_v57 }
 0xb9f   : > { %v16522_v43 = vsel %vm8859_vm10, %v11565_v2, %v8923_v16  ;;  %9518 = vmatprep.mubr.bf16.mxu1 %v12069_v6  ;;  %v11578_v2 = vadd.f32 %v17579_v8, %v6366_v33  ;;  %v12086_v8 = vld [vmem:[#allocation6 + $0x100] ss:$16 sps:$4 sm:$0xff]  }
 0xba0   : > { %v9096_v62 = vpack.c.bf16 %v16522_v43, %v16520_v21  ;;  %v8719_v51 = vpop.f32.mrb[76].mxu0 }
 0xba1   : > { %v11567_v38 = vadd.f32 %v11566_v11, %v8719_v51  ;;  %v8721_v46 = vpop.f32.mrb[77].mxu0  ;;  %v11580_v11 = vadd.f32 %v17580_v42, %v6367_v35 }
 0xba2   : > { %v8722_v26 = vpop.f32.mrb[78].mxu0  ;;  %v12080_v46 = vld [vmem:[#allocation6 + $0xc0] ss:$16 sps:$4 sm:$0xff]  }
 0xba3   : > { %v8924_v1 = vmul.f32 0.2, %v11567_v38  ;;  %v11569_v56 = vadd.f32 %v11568_v14, %v8722_v26  ;;  %v8724_v40 = vpop.f32.mrb[79].mxu0  ;;  %vm8860_vm1 = vcmp.ge.f32.partialorder %v11567_v38, 0.0 }
 0xba4   : > { %v6368_v40 = vld [vmem:[%s17571_s12 + $0x170] sm:$0xff] }
 0xba5   : > { %vm8861_vm12 = vcmp.ge.f32.partialorder %v11569_v56, 0.0  ;;  %v8925_v32 = vmul.f32 0.2, %v11569_v56  ;;  %v16534_v60 = vsel %vm8860_vm1, %v11567_v38, %v8924_v1 }
 0xba6   : > { %9519 = vmatmul.mubr.bf16.gmra.mrb[140].mxu1 %v12071_v52 }
 0xba7   : > { %v16536_v63 = vsel %vm8861_vm12, %v11569_v56, %v8925_v32  ;;  %9526 = vmatprep.mubr.bf16.mxu1 %v12072_v34  ;;  %v12081_v56 = vld [vmem:[#allocation6 + $0xe4] ss:$16 sps:$4 sm:$0xff]   ;;  %v17581_v32 = vld [vmem:[#allocation88_spill] sm:$0xff] }
 0xba8   : > { %v9097_v5 = vpack.c.bf16 %v16536_v63, %v16534_v60  ;;  %v8727_v37 = vpop.f32.mrb[80].mxu0  ;;  %v11582_v45 = vadd.f32 %v17581_v32, %v6368_v40 }
 0xba9   : > { %v11571_v15 = vadd.f32 %v11570_v36, %v8727_v37  ;;  %v8729_v24 = vpop.f32.mrb[81].mxu0 }
 0xbaa   : > { %v8730_v49 = vpop.f32.mrb[82].mxu0  ;;  %v17582_v24 = vld [vmem:[#allocation89_spill] sm:$0xff] }
 0xbab   : > { %v8926_v4 = vmul.f32 0.2, %v11571_v15  ;;  %v11573_v39 = vadd.f32 %v11572_v9, %v8730_v49  ;;  %v8732_v41 = vpop.f32.mrb[83].mxu0  ;;  %vm8862_vm2 = vcmp.ge.f32.partialorder %v11571_v15, 0.0  ;;  %v11584_v49 = vadd.f32 %v17582_v24, %v6369_v53  ;;  %v12089_v24 = vld [vmem:[#allocation6 + $0x120] ss:$16 sps:$4 sm:$0xff]  }
 0xbac   : > { %v12083_v41 = vld [vmem:[#allocation6 + $0xe0] ss:$16 sps:$4 sm:$0xff]  }
 0xbad   : > { %vm8863_vm13 = vcmp.ge.f32.partialorder %v11573_v39, 0.0  ;;  %v8927_v47 = vmul.f32 0.2, %v11573_v39  ;;  %v16548_v12 = vsel %vm8862_vm2, %v11571_v15, %v8926_v4 }
 0xbae   : > { %9527 = vmatmul.mubr.bf16.gmra.mrb[144].mxu1 %v12074_v18 }
 0xbaf   : > { %v16550_v23 = vsel %vm8863_vm13, %v11573_v39, %v8927_v47  ;;  %9534 = vmatprep.mubr.bf16.mxu1 %v12075_v29 }
 0xbb0   : > { %v9098_v59 = vpack.c.bf16 %v16550_v23, %v16548_v12  ;;  %v8735_v55 = vpop.f32.mrb[84].mxu0 }
 0xbb1   : > { %v11575_v27 = vadd.f32 %v11574_v31, %v8735_v55  ;;  %v8737_v0 = vpop.f32.mrb[85].mxu0  ;;  %v6370_v31 = vld [vmem:[%s17571_s12 + $0x180] sm:$0xff] }
 0xbb2   : > { %v8738_v54 = vpop.f32.mrb[86].mxu0 }
 0xbb3   : > { %v8928_v22 = vmul.f32 0.2, %v11575_v27  ;;  %v11577_v3 = vadd.f32 %v11576_v48, %v8738_v54  ;;  %v8740_v7 = vpop.f32.mrb[87].mxu0  ;;  %vm8864_vm14 = vcmp.ge.f32.partialorder %v11575_v27, 0.0  ;;  %v6371_v48 = vld [vmem:[%s17571_s12 + $0x188] sm:$0xff] }
 0xbb4   : > { %v17584_v7 = vld [vmem:[#allocation91_spill] sm:$0xff] }
 0xbb5   : > { %vm8865_vm3 = vcmp.ge.f32.partialorder %v11577_v3, 0.0  ;;  %v8929_v57 = vmul.f32 0.2, %v11577_v3  ;;  %v16562_v50 = vsel %vm8864_vm14, %v11575_v27, %v8928_v22  ;;  %v17583_v27 = vld [vmem:[#allocation90_spill] sm:$0xff] }
 0xbb6   : > { %9535 = vmatmul.mubr.bf16.gmra.mrb[148].mxu1 %v12077_v19  ;;  %v11586_v0 = vadd.f32 %v17583_v27, %v6370_v31 }
 0xbb7   : > { %v16564_v6 = vsel %vm8865_vm3, %v11577_v3, %v8929_v57  ;;  %9542 = vmatprep.mubr.bf16.mxu1 %v12078_v30  ;;  %v11588_v30 = vadd.f32 %v17584_v7, %v6371_v48  ;;  %v12092_v7 = vld [vmem:[#allocation6 + $0x140] ss:$16 sps:$4 sm:$0xff]  }
 0xbb8   : > { %v9099_v17 = vpack.c.bf16 %v16564_v6, %v16562_v50  ;;  %v8743_v16 = vpop.f32.mrb[88].mxu0 }
 0xbb9   : > { %v11579_v51 = vadd.f32 %v11578_v2, %v8743_v16  ;;  %v8745_v14 = vpop.f32.mrb[89].mxu0 }
 0xbba   : > { %v8746_v38 = vpop.f32.mrb[90].mxu0 }
 0xbbb   : > { %v8930_v26 = vmul.f32 0.2, %v11579_v51  ;;  %v11581_v52 = vadd.f32 %v11580_v11, %v8746_v38  ;;  %v8748_v1 = vpop.f32.mrb[91].mxu0  ;;  %vm8866_vm15 = vcmp.ge.f32.partialorder %v11579_v51, 0.0  ;;  %v12087_v11 = vld [vmem:[#allocation6 + $0x124] ss:$16 sps:$4 sm:$0xff]  }
 0xbbc   : > { %v6373_v38 = vld [vmem:[%s17571_s12 + $0x198] sm:$0xff] }
 0xbbd   : > { %vm8867_vm5 = vcmp.ge.f32.partialorder %v11581_v52, 0.0  ;;  %v8931_v34 = vmul.f32 0.2, %v11581_v52  ;;  %v16576_v36 = vsel %vm8866_vm15, %v11579_v51, %v8930_v26  ;;  %v6372_v51 = vld [vmem:[%s17571_s12 + $0x190] sm:$0xff] }
 0xbbe   : > { %9543 = vmatmul.mubr.bf16.gmra.mrb[152].mxu1 %v12080_v46  ;;  %v17585_v46 = vld [vmem:[#allocation92_spill] sm:$0xff] }
 0xbbf   : > { %v16578_v37 = vsel %vm8867_vm5, %v11581_v52, %v8931_v34  ;;  %9550 = vmatprep.mubr.bf16.mxu1 %v12081_v56  ;;  %v11590_v26 = vadd.f32 %v17585_v46, %v6372_v51  ;;  %v17586_v34 = vld [vmem:[#allocation93_spill] sm:$0xff] }
 0xbc0   : > { %v9100_v9 = vpack.c.bf16 %v16578_v37, %v16576_v36  ;;  %v8751_v15 = vpop.f32.mrb[92].mxu0  ;;  %v11592_v53 = vadd.f32 %v17586_v34, %v6373_v38  ;;  %v12113_v36 = vld [vmem:[#allocation6 + $0x28] ss:$16 sps:$4 sm:$0xff]   ;;  %v12114_v37 = vld [vmem:[#allocation6 + $0x4c] ss:$16 sps:$4 sm:$0xff]  }
 0xbc1   : > { %v11583_v18 = vadd.f32 %v11582_v45, %v8751_v15  ;;  %v8753_v4 = vpop.f32.mrb[93].mxu0 }
 0xbc2   : > { %v8754_v39 = vpop.f32.mrb[94].mxu0 }
 0xbc3   : > { %v8932_v29 = vmul.f32 0.2, %v11583_v18  ;;  %v11585_v25 = vadd.f32 %v11584_v49, %v8754_v39  ;;  %v8756_v47 = vpop.f32.mrb[95].mxu0  ;;  %vm8868_vm0 = vcmp.ge.f32.partialorder %v11583_v18, 0.0  ;;  %v12090_v39 = vld [vmem:[#allocation6 + $0x144] ss:$16 sps:$4 sm:$0xff]  }
 0xbc4   : > { %v17587_v47 = vld [vmem:[#allocation94_spill] sm:$0xff] }
 0xbc5   : > { %vm8869_vm4 = vcmp.ge.f32.partialorder %v11585_v25, 0.0  ;;  %v8933_v55 = vmul.f32 0.2, %v11585_v25  ;;  %v16590_v54 = vsel %vm8868_vm0, %v11583_v18, %v8932_v29 }
 0xbc6   : > { %9551 = vmatmul.mubr.bf16.gmra.mrb[156].mxu1 %v12083_v41  ;;  %v6374_v41 = vld [vmem:[%s17571_s12 + $0x1a0] sm:$0xff] }
 0xbc7   : > { %v16592_v19 = vsel %vm8869_vm4, %v11585_v25, %v8933_v55  ;;  %9558 = vmatprep.mubr.bf16.mxu1 %v12084_v28  ;;  %v6375_v25 = vld [vmem:[%s17571_s12 + $0x1a8] sm:$0xff]  ;;  %v11594_v28 = vadd.f32 %v17587_v47, %v6374_v41  ;;  %v12098_v47 = vld [vmem:[#allocation6 + $0x180] ss:$16 sps:$4 sm:$0xff]  }
 0xbc8   : > { %v9101_v22 = vpack.c.bf16 %v16592_v19, %v16590_v54  ;;  %v8759_v3 = vpop.f32.mrb[96].mxu0  ;;  %v12125_v54 = vld [vmem:[#allocation6 + $0xa8] ss:$16 sps:$4 sm:$0xff]   ;;  %v12126_v19 = vld [vmem:[#allocation6 + $0xcc] ss:$16 sps:$4 sm:$0xff]  }
 0xbc9   : > { %v11587_v33 = vadd.f32 %v11586_v0, %v8759_v3  ;;  %v8761_v57 = vpop.f32.mrb[97].mxu0 }
 0xbca   : > { %v8762_v35 = vpop.f32.mrb[98].mxu0 }
 0xbcb   : > { %v8934_v2 = vmul.f32 0.2, %v11587_v33  ;;  %v11589_v16 = vadd.f32 %v11588_v30, %v8762_v35  ;;  %v8764_v42 = vpop.f32.mrb[99].mxu0  ;;  %vm8870_vm6 = vcmp.ge.f32.partialorder %v11587_v33, 0.0  ;;  %v12093_v35 = vld [vmem:[#allocation6 + $0x164] ss:$16 sps:$4 sm:$0xff]  }
 0xbcc   : > { %v17589_v42 = vld [vmem:[#allocation96_spill] sm:$0xff] }
 0xbcd   : > { %vm8871_vm9 = vcmp.ge.f32.partialorder %v11589_v16, 0.0  ;;  %v8935_v14 = vmul.f32 0.2, %v11589_v16  ;;  %v8998_v52 = vsel %vm8870_vm6, %v11587_v33, %v8934_v2 }
 0xbce   : > { %9559 = vmatmul.mubr.bf16.gmra.mrb[160].mxu1 %v12086_v8  ;;  %v6376_v8 = vld [vmem:[%s17571_s12 + $0x1b0] sm:$0xff] }
 0xbcf   : > { %v8999_v1 = vsel %vm8871_vm9, %v11589_v16, %v8935_v14  ;;  %9566 = vmatprep.mubr.bf16.mxu1 %v12087_v11  ;;  %v6377_v16 = vld [vmem:[%s17571_s12 + $0x1b8] sm:$0xff]  ;;  %v11598_v11 = vadd.f32 %v17589_v42, %v6376_v8  ;;  %v12101_v8 = vld [vmem:[#allocation6 + $0x1a0] ss:$16 sps:$4 sm:$0xff]  }
 0xbd0   : > { %v8767_v56 = vpop.f32.mrb[100].mxu0  ;;  %v9102_v40 = vpack.c.bf16 %v8999_v1, %v8998_v52  ;;  %v12095_v1 = vld [vmem:[#allocation6 + $0x160] ss:$16 sps:$4 sm:$0xff]  }
 0xbd1   : > { %v11591_v32 = vadd.f32 %v11590_v26, %v8767_v56  ;;  %v8769_v45 = vpop.f32.mrb[101].mxu0 }
 0xbd2   : > { %v8770_v15 = vpop.f32.mrb[102].mxu0  ;;  %10892 = vmatprep.subr.bf16.mxu1 %v9102_v40 }
 0xbd3   : > { %v8936_v49 = vmul.f32 0.2, %v11591_v32  ;;  %v11593_v18 = vadd.f32 %v11592_v53, %v8770_v15  ;;  %v8772_v4 = vpop.f32.mrb[103].mxu0  ;;  %10893 = vmatpush3.bf16.msra.mxu1 %v9094_v58  ;;  %vm8872_vm7 = vcmp.ge.f32.partialorder %v11591_v32, 0.0  ;;  %v17588_v58 = vld [vmem:[#allocation95_spill] sm:$0xff]  ;;  %v6379_v15 = vld [vmem:[%s17571_s12 + $0x1c8] sm:$0xff] }
 0xbd4   : > { %v11596_v48 = vadd.f32 %v17588_v58, %v6375_v25  ;;  %v12096_v53 = vld [vmem:[#allocation6 + $0x184] ss:$16 sps:$4 sm:$0xff]  }
 0xbd5   : > { %vm8873_vm11 = vcmp.ge.f32.partialorder %v11593_v18, 0.0  ;;  %v8937_v29 = vmul.f32 0.2, %v11593_v18  ;;  %v9000_v31 = vsel %vm8872_vm7, %v11591_v32, %v8936_v49  ;;  %v6378_v32 = vld [vmem:[%s17571_s12 + $0x1c0] sm:$0xff] }
 0xbd6   : > { %9567 = vmatmul.mubr.bf16.gmra.mrb[164].mxu1 %v12089_v24  ;;  %v17591_v24 = vld [vmem:[#allocation98_spill] sm:$0xff] }
 0xbd7   : > { %v9001_v55 = vsel %vm8873_vm11, %v11593_v18, %v8937_v29  ;;  %9574 = vmatprep.mubr.bf16.mxu1 %v12090_v39  ;;  %v11602_v49 = vadd.f32 %v17591_v24, %v6378_v32 }
 0xbd8   : > { %v8775_v20 = vpop.f32.mrb[104].mxu0  ;;  %v9103_v61 = vpack.c.bf16 %v9001_v55, %v9000_v31 }
 0xbd9   : > { %v11595_v27 = vadd.f32 %v11594_v28, %v8775_v20  ;;  %v8777_v0 = vpop.f32.mrb[105].mxu0  ;;  %v12099_v20 = vld [vmem:[#allocation6 + $0x1a4] ss:$16 sps:$4 sm:$0xff]  }
 0xbda   : > { %v8778_v3 = vpop.f32.mrb[106].mxu0  ;;  %10894 = vmatprep.subr.bf16.mxu1 %v9103_v61  ;;  %v6380_v61 = vld [vmem:[%s17571_s12 + $0x1d0] sm:$0xff] }
 0xbdb   : > { %v8938_v30 = vmul.f32 0.2, %v11595_v27  ;;  %v11597_v33 = vadd.f32 %v11596_v48, %v8778_v3  ;;  %v8780_v57 = vpop.f32.mrb[107].mxu0  ;;  %10895 = vmatpush3.bf16.msra.mxu1 %v9095_v10  ;;  %vm8874_vm10 = vcmp.ge.f32.partialorder %v11595_v27, 0.0  ;;  %v17590_v10 = vld [vmem:[#allocation97_spill] sm:$0xff]  ;;  %v6381_v48 = vld [vmem:[%s17571_s12 + $0x1d8] sm:$0xff] }
 0xbdc   : > { %v11600_v38 = vadd.f32 %v17590_v10, %v6377_v16 }
 0xbdd   : > { %vm8875_vm1 = vcmp.ge.f32.partialorder %v11597_v33, 0.0  ;;  %v8939_v2 = vmul.f32 0.2, %v11597_v33  ;;  %v9002_v51 = vsel %vm8874_vm10, %v11595_v27, %v8938_v30  ;;  %v17593_v27 = vld [vmem:[#allocation100_spill] sm:$0xff] }
 0xbde   : > { %9575 = vmatmul.mubr.bf16.gmra.mrb[168].mxu1 %v12092_v7  ;;  %v11606_v0 = vadd.f32 %v17593_v27, %v6380_v61  ;;  %v12108_v27 = vld [vmem:[#allocation6 + $0x8] ss:$16 sps:$4 sm:$0xff]  }
 0xbdf   : > { %v9003_v14 = vsel %vm8875_vm1, %v11597_v33, %v8939_v2  ;;  %9582 = vmatprep.mubr.bf16.mxu1 %v12093_v35 }
 0xbe0   : > { %v8783_v13 = vpop.f32.mrb[108].mxu0  ;;  %v9104_v44 = vpack.c.bf16 %v9003_v14, %v9002_v51  ;;  %v6382_v51 = vld [vmem:[%s17571_s12 + $0x1e0] sm:$0xff] }
 0xbe1   : > { %v11599_v46 = vadd.f32 %v11598_v11, %v8783_v13  ;;  %v8785_v26 = vpop.f32.mrb[109].mxu0  ;;  %v12102_v11 = vld [vmem:[#allocation6 + $0x1c4] ss:$16 sps:$4 sm:$0xff]   ;;  %v6383_v13 = vld [vmem:[%s17571_s12 + $0x1e8] sm:$0xff] }
 0xbe2   : > { %v8786_v52 = vpop.f32.mrb[110].mxu0  ;;  %10896 = vmatprep.subr.bf16.mxu1 %v9104_v44  ;;  %v17595_v44 = vld [vmem:[#allocation102_spill] sm:$0xff] }
 0xbe3   : > { %v8940_v56 = vmul.f32 0.2, %v11599_v46  ;;  %v11601_v40 = vadd.f32 %v11600_v38, %v8786_v52  ;;  %v8788_v34 = vpop.f32.mrb[111].mxu0  ;;  %10897 = vmatpush3.bf16.msra.mxu1 %v9096_v62  ;;  %vm8876_vm12 = vcmp.ge.f32.partialorder %v11599_v46, 0.0  ;;  %v17592_v62 = vld [vmem:[#allocation99_spill] sm:$0xff]  ;;  %v11610_v10 = vadd.f32 %v17595_v44, %v6382_v51 }
 0xbe4   : > { %v11604_v39 = vadd.f32 %v17592_v62, %v6379_v15  ;;  %v6384_v15 = vld [vmem:[%s17571_s12 + $0x1f0] sm:$0xff] }
 0xbe5   : > { %vm8877_vm2 = vcmp.ge.f32.partialorder %v11601_v40, 0.0  ;;  %v8941_v45 = vmul.f32 0.2, %v11601_v40  ;;  %v9004_v18 = vsel %vm8876_vm12, %v11599_v46, %v8940_v56 }
 0xbe6   : > { %9583 = vmatmul.mubr.bf16.gmra.mrb[172].mxu1 %v12095_v1 }
 0xbe7   : > { %v9005_v4 = vsel %vm8877_vm2, %v11601_v40, %v8941_v45  ;;  %9590 = vmatprep.mubr.bf16.mxu1 %v12096_v53  ;;  %v12104_v40 = vld [vmem:[#allocation6 + $0x1c0] ss:$16 sps:$4 sm:$0xff]   ;;  %v12105_v45 = vld [vmem:[#allocation6 + $0x1e4] ss:$16 sps:$4 sm:$0xff]  }
 0xbe8   : > { %v8791_v21 = vpop.f32.mrb[112].mxu0  ;;  %v9105_v43 = vpack.c.bf16 %v9005_v4, %v9004_v18  ;;  %v17597_v18 = vld [vmem:[#allocation104_spill] sm:$0xff] }
 0xbe9   : > { %v11603_v41 = vadd.f32 %v11602_v49, %v8791_v21  ;;  %v8793_v29 = vpop.f32.mrb[113].mxu0  ;;  %v6385_v49 = vld [vmem:[%s17571_s12 + $0x1f8] sm:$0xff]  ;;  %v11614_v4 = vadd.f32 %v17597_v18, %v6384_v15 }
 0xbea   : > { %v8794_v25 = vpop.f32.mrb[114].mxu0  ;;  %10898 = vmatprep.subr.bf16.mxu1 %v9105_v43 }
 0xbeb   : > { %v8942_v28 = vmul.f32 0.2, %v11603_v41  ;;  %v11605_v31 = vadd.f32 %v11604_v39, %v8794_v25  ;;  %v8796_v55 = vpop.f32.mrb[115].mxu0  ;;  %10899 = vmatpush3.bf16.msra.mxu1 %v9097_v5  ;;  %vm8878_vm13 = vcmp.ge.f32.partialorder %v11603_v41, 0.0  ;;  %v17594_v5 = vld [vmem:[#allocation101_spill] sm:$0xff] }
 0xbec   : > { %v11608_v30 = vadd.f32 %v17594_v5, %v6381_v48  ;;  %v12107_v25 = vld [vmem:[#allocation6 + $0x1e0] ss:$16 sps:$4 sm:$0xff]   ;;  %v12110_v55 = vld [vmem:[#allocation6 + $0xc] ss:$16 sps:$4 sm:$0xff]  }
 0xbed   : > { %vm8879_vm14 = vcmp.ge.f32.partialorder %v11605_v31, 0.0  ;;  %v8943_v58 = vmul.f32 0.2, %v11605_v31  ;;  %v9006_v3 = vsel %vm8878_vm13, %v11603_v41, %v8942_v28  ;;  %v12123_v5 = vld [vmem:[#allocation6 + $0xac] ss:$16 sps:$4 sm:$0xff]  }
 0xbee   : > { %9591 = vmatmul.mubr.bf16.gmra.mrb[176].mxu1 %v12098_v47 }
 0xbef   : > { %v9007_v7 = vsel %vm8879_vm14, %v11605_v31, %v8943_v58  ;;  %9598 = vmatprep.mubr.bf16.mxu1 %v12099_v20 }
 0xbf0   : > { %v8799_v60 = vpop.f32.mrb[116].mxu0  ;;  %v9106_v63 = vpack.c.bf16 %v9007_v7, %v9006_v3  ;;  %v12117_v3 = vld [vmem:[#allocation6 + $0x6c] ss:$16 sps:$4 sm:$0xff]   ;;  %v12119_v7 = vld [vmem:[#allocation6 + $0x68] ss:$16 sps:$4 sm:$0xff]  }
 0xbf1   : > { %v11607_v33 = vadd.f32 %v11606_v0, %v8799_v60  ;;  %v8801_v57 = vpop.f32.mrb[117].mxu0  ;;  %v12111_v0 = vld [vmem:[#allocation6 + $0x2c] ss:$16 sps:$4 sm:$0xff]  }
 0xbf2   : > { %v8802_v35 = vpop.f32.mrb[118].mxu0  ;;  %10900 = vmatprep.subr.bf16.mxu1 %v9106_v63  ;;  %v12120_v60 = vld [vmem:[#allocation6 + $0x8c] ss:$16 sps:$4 sm:$0xff]   ;;  %v12122_v63 = vld [vmem:[#allocation6 + $0x88] ss:$16 sps:$4 sm:$0xff]  }
 0xbf3   : > { %v8944_v2 = vmul.f32 0.2, %v11607_v33  ;;  %v11609_v16 = vadd.f32 %v11608_v30, %v8802_v35  ;;  %v8804_v42 = vpop.f32.mrb[119].mxu0  ;;  %10901 = vmatpush3.bf16.msra.mxu1 %v9098_v59  ;;  %vm8880_vm3 = vcmp.ge.f32.partialorder %v11607_v33, 0.0  ;;  %v17596_v59 = vld [vmem:[#allocation103_spill] sm:$0xff] }
 0xbf4   : > { %v11612_v26 = vadd.f32 %v17596_v59, %v6383_v13  ;;  %v12129_v30 = vld [vmem:[#allocation6 + $0xec] ss:$16 sps:$4 sm:$0xff]   ;;  %v12134_v35 = vld [vmem:[#allocation6 + $0x108] ss:$16 sps:$4 sm:$0xff]  }
 0xbf5   : > { %vm8881_vm15 = vcmp.ge.f32.partialorder %v11609_v16, 0.0  ;;  %v8945_v14 = vmul.f32 0.2, %v11609_v16  ;;  %v9008_v38 = vsel %vm8880_vm3, %v11607_v33, %v8944_v2  ;;  %v12131_v33 = vld [vmem:[#allocation6 + $0xe8] ss:$16 sps:$4 sm:$0xff]  }
 0xbf6   : > { %9599 = vmatmul.mubr.bf16.gmra.mrb[180].mxu1 %v12101_v8  ;;  %v12132_v57 = vld [vmem:[#allocation6 + $0x10c] ss:$16 sps:$4 sm:$0xff]   ;;  %v12137_v2 = vld [vmem:[#allocation6 + $0x128] ss:$16 sps:$4 sm:$0xff]  }
 0xbf7   : > { %v9009_v46 = vsel %vm8881_vm15, %v11609_v16, %v8945_v14  ;;  %9606 = vmatprep.mubr.bf16.mxu1 %v12102_v11  ;;  %v12135_v8 = vld [vmem:[#allocation6 + $0x12c] ss:$16 sps:$4 sm:$0xff]   ;;  %v12140_v42 = vld [vmem:[#allocation6 + $0x148] ss:$16 sps:$4 sm:$0xff]  }
 0xbf8   : > { %v8807_v12 = vpop.f32.mrb[120].mxu0  ;;  %v9107_v23 = vpack.c.bf16 %v9009_v46, %v9008_v38  ;;  %v12138_v16 = vld [vmem:[#allocation6 + $0x14c] ss:$16 sps:$4 sm:$0xff]   ;;  %v12143_v13 = vld [vmem:[#allocation6 + $0x168] ss:$16 sps:$4 sm:$0xff]  }
 0xbf9   : > { %v11611_v52 = vadd.f32 %v11610_v10, %v8807_v12  ;;  %v8809_v1 = vpop.f32.mrb[121].mxu0  ;;  %v12141_v11 = vld [vmem:[#allocation6 + $0x16c] ss:$16 sps:$4 sm:$0xff]  }
 0xbfa   : > { %v8810_v56 = vpop.f32.mrb[122].mxu0  ;;  %10902 = vmatprep.subr.bf16.mxu1 %v9107_v23  ;;  %v12144_v38 = vld [vmem:[#allocation6 + $0x18c] ss:$16 sps:$4 sm:$0xff]  }
 0xbfb   : > { %v8946_v34 = vmul.f32 0.2, %v11611_v52  ;;  %v11613_v53 = vadd.f32 %v11612_v26, %v8810_v56  ;;  %v8812_v32 = vpop.f32.mrb[123].mxu0  ;;  %10903 = vmatpush3.bf16.msra.mxu1 %v9099_v17  ;;  %vm8882_vm5 = vcmp.ge.f32.partialorder %v11611_v52, 0.0  ;;  %v17598_v17 = vld [vmem:[#allocation105_spill] sm:$0xff] }
 0xbfc   : > { %v11616_v62 = vadd.f32 %v17598_v17, %v6385_v49  ;;  %v12146_v26 = vld [vmem:[#allocation6 + $0x188] ss:$16 sps:$4 sm:$0xff]   ;;  %v12147_v56 = vld [vmem:[#allocation6 + $0x1ac] ss:$16 sps:$4 sm:$0xff]  }
 0xbfd   : > { %vm8883_vm0 = vcmp.ge.f32.partialorder %v11613_v53, 0.0  ;;  %v8947_v24 = vmul.f32 0.2, %v11613_v53  ;;  %v9010_v21 = vsel %vm8882_vm5, %v11611_v52, %v8946_v34  ;;  %v12150_v49 = vld [vmem:[#allocation6 + $0x1cc] ss:$16 sps:$4 sm:$0xff]  }
 0xbfe   : > { %9607 = vmatmul.mubr.bf16.gmra.mrb[184].mxu1 %v12104_v40 }
 0xbff   : > { %v9011_v43 = vsel %vm8883_vm0, %v11613_v53, %v8947_v24  ;;  %9614 = vmatprep.mubr.bf16.mxu1 %v12105_v45  ;;  %v12149_v45 = vld [vmem:[#allocation6 + $0x1a8] ss:$16 sps:$4 sm:$0xff]  }
 0xc00   : > { %v8815_v50 = vpop.f32.mrb[124].mxu0  ;;  %v9108_v6 = vpack.c.bf16 %v9011_v43, %v9010_v21 }
 0xc01   : > { %v11615_v39 = vadd.f32 %v11614_v4, %v8815_v50  ;;  %v8817_v41 = vpop.f32.mrb[125].mxu0  ;;  %v12152_v50 = vld [vmem:[#allocation6 + $0x1c8] ss:$16 sps:$4 sm:$0xff]  }
 0xc02   : > { %v8818_v29 = vpop.f32.mrb[126].mxu0  ;;  %10904 = vmatprep.subr.bf16.mxu1 %v9108_v6 }
 0xc03   : > { %v8948_v47 = vmul.f32 0.2, %v11615_v39  ;;  %v11617_v28 = vadd.f32 %v11616_v62, %v8818_v29  ;;  %v8820_v31 = vpop.f32.mrb[127].mxu0  ;;  %10905 = vmatpush3.bf16.msra.mxu1 %v9100_v9  ;;  %vm8884_vm4 = vcmp.ge.f32.partialorder %v11615_v39, 0.0  ;;  %v12116_v9 = vld [vmem:[#allocation6 + $0x48] ss:$16 sps:$4 sm:$0xff]  }
 0xc04   : > { %v12153_v62 = vld [vmem:[#allocation6 + $0x1ec] ss:$16 sps:$4 sm:$0xff]  }
 0xc05   : > { %vm8885_vm6 = vcmp.ge.f32.partialorder %v11617_v28, 0.0  ;;  %v8949_v20 = vmul.f32 0.2, %v11617_v28  ;;  %v9012_v61 = vsel %vm8884_vm4, %v11615_v39, %v8948_v47  ;;  %v12155_v47 = vld [vmem:[#allocation6 + $0x1e8] ss:$16 sps:$4 sm:$0xff]  }
 0xc06   : > { %9615 = vmatmul.mubr.bf16.gmra.mrb[188].mxu1 %v12107_v25 }
 0xc07   : > { %v9013_v58 = vsel %vm8885_vm6, %v11617_v28, %v8949_v20  ;;  %9655 = vmatprep.mubr.bf16.mxu1 %v12110_v55 }
 0xc08   : > { %v9109_v48 = vpack.c.bf16 %v9013_v58, %v9012_v61 }
 0xc0a   : > { %10906 = vmatprep.subr.bf16.mxu1 %v9109_v48 }
 0xc0b   : > { %10907 = vmatpush3.bf16.msra.mxu1 %v9101_v22  ;;  %v12128_v22 = vld [vmem:[#allocation6 + $0xc8] ss:$16 sps:$4 sm:$0xff]  }
 0xc0e   : > { %9656 = vmatmul.mubr.bf16.vlgmr.msra.gmra.mrb[192].mxu1 %v12108_v27 }
 0xc0f   : > { %9663 = vmatprep.mubr.bf16.mxu1 %v12111_v0 }
 0xc16   : > { %9664 = vmatmul.mubr.bf16.gmra.mrb[196].mxu1 %v12113_v36 }
 0xc17   : > { %9671 = vmatprep.mubr.bf16.mxu1 %v12114_v37 }
 0xc1e   : > { %9672 = vmatmul.mubr.bf16.gmra.mrb[200].mxu1 %v12116_v9 }
 0xc1f   : > { %9679 = vmatprep.mubr.bf16.mxu1 %v12117_v3 }
 0xc26   : > { %9680 = vmatmul.mubr.bf16.gmra.mrb[204].mxu1 %v12119_v7 }
 0xc27   : > { %9687 = vmatprep.mubr.bf16.mxu1 %v12120_v60 }
 0xc2e   : > { %9688 = vmatmul.mubr.bf16.gmra.mrb[208].mxu1 %v12122_v63 }
 0xc2f   : > { %9695 = vmatprep.mubr.bf16.mxu1 %v12123_v5 }
 0xc36   : > { %9696 = vmatmul.mubr.bf16.gmra.mrb[212].mxu1 %v12125_v54 }
 0xc37   : > { %9703 = vmatprep.mubr.bf16.mxu1 %v12126_v19 }
 0xc3e   : > { %9704 = vmatmul.mubr.bf16.gmra.mrb[216].mxu1 %v12128_v22 }
 0xc3f   : > { %9711 = vmatprep.mubr.bf16.mxu1 %v12129_v30 }
 0xc46   : > { %9712 = vmatmul.mubr.bf16.gmra.mrb[220].mxu1 %v12131_v33 }
 0xc47   : > { %9719 = vmatprep.mubr.bf16.mxu1 %v12132_v57 }
 0xc4e   : > { %9720 = vmatmul.mubr.bf16.gmra.mrb[224].mxu1 %v12134_v35 }
 0xc4f   : > { %9727 = vmatprep.mubr.bf16.mxu1 %v12135_v8 }
 0xc56   : > { %9728 = vmatmul.mubr.bf16.gmra.mrb[228].mxu1 %v12137_v2 }
 0xc57   : > { %9735 = vmatprep.mubr.bf16.mxu1 %v12138_v16 }
 0xc5e   : > { %9736 = vmatmul.mubr.bf16.gmra.mrb[232].mxu1 %v12140_v42 }
 0xc5f   : > { %9743 = vmatprep.mubr.bf16.mxu1 %v12141_v11 }
 0xc61   : > { %v10796_v51 = vpop.f32.mrb[128].mxu1 }
 0xc62   : > { %v10797_v14 = vpop.f32.mrb[129].mxu1 }
 0xc63   : > { %v16677_v44 = vadd.f32 %v10797_v14, %v10796_v51  ;;  %v10799_v10 = vpop.f32.mrb[130].mxu1 }
 0xc64   : > { %v10800_v46 = vpop.f32.mrb[131].mxu1 }
 0xc65   : > { %v16679_v12 = vadd.f32 %v10800_v46, %v10799_v10 }
 0xc66   : > { %9744 = vmatmul.mubr.bf16.gmra.mrb[236].mxu1 %v12143_v13 }
 0xc67   : > { %9751 = vmatprep.mubr.bf16.mxu1 %v12144_v38 }
 0xc69   : > { %v10802_v23 = vpop.f32.mrb[132].mxu1 }
 0xc6a   : > { %v10803_v59 = vpop.f32.mrb[133].mxu1 }
 0xc6b   : > { %v16681_v52 = vadd.f32 %v10803_v59, %v10802_v23  ;;  %v10805_v1 = vpop.f32.mrb[134].mxu1 }
 0xc6c   : > { %v10806_v40 = vpop.f32.mrb[135].mxu1 }
 0xc6d   : > { %v16683_v34 = vadd.f32 %v10806_v40, %v10805_v1 }
 0xc6e   : > { %9752 = vmatmul.mubr.bf16.gmra.mrb[240].mxu1 %v12146_v26 }
 0xc6f   : > { %9759 = vmatprep.mubr.bf16.mxu1 %v12147_v56 }
 0xc71   : > { %v10808_v53 = vpop.f32.mrb[136].mxu1 }
 0xc72   : > { %v10809_v32 = vpop.f32.mrb[137].mxu1 }
 0xc73   : > { %v16685_v15 = vadd.f32 %v10809_v32, %v10808_v53  ;;  %v10811_v24 = vpop.f32.mrb[138].mxu1 }
 0xc74   : > { %v10812_v18 = vpop.f32.mrb[139].mxu1 }
 0xc75   : > { %v16687_v4 = vadd.f32 %v10812_v18, %v10811_v24 }
 0xc76   : > { %9760 = vmatmul.mubr.bf16.gmra.mrb[244].mxu1 %v12149_v45 }
 0xc77   : > { %9767 = vmatprep.mubr.bf16.mxu1 %v12150_v49 }
 0xc79   : > { %v10814_v21 = vpop.f32.mrb[140].mxu1 }
 0xc7a   : > { %v10815_v43 = vpop.f32.mrb[141].mxu1 }
 0xc7b   : > { %v16689_v6 = vadd.f32 %v10815_v43, %v10814_v21  ;;  %v10817_v17 = vpop.f32.mrb[142].mxu1 }
 0xc7c   : > { %v10818_v39 = vpop.f32.mrb[143].mxu1 }
 0xc7d   : > { %v16691_v41 = vadd.f32 %v10818_v39, %v10817_v17 }
 0xc7e   : > { %9768 = vmatmul.mubr.bf16.gmra.mrb[248].mxu1 %v12152_v50 }
 0xc7f   : > { %9775 = vmatprep.mubr.bf16.mxu1 %v12153_v62 }
 0xc81   : > { %v10820_v29 = vpop.f32.mrb[144].mxu1 }
 0xc82   : > { %v10821_v25 = vpop.f32.mrb[145].mxu1 }
 0xc83   : > { %v16693_v28 = vadd.f32 %v10821_v25, %v10820_v29  ;;  %v10823_v31 = vpop.f32.mrb[146].mxu1 }
 0xc84   : > { %v10824_v55 = vpop.f32.mrb[147].mxu1 }
 0xc85   : > { %v16695_v20 = vadd.f32 %v10824_v55, %v10823_v31 }
 0xc86   : > { %9776 = vmatmul.mubr.bf16.gmra.mrb[252].mxu1 %v12155_v47 }
 0xc89   : > { %v10826_v61 = vpop.f32.mrb[148].mxu1 }
 0xc8a   : > { %v10827_v58 = vpop.f32.mrb[149].mxu1 }
 0xc8b   : > { %v16697_v48 = vadd.f32 %v10827_v58, %v10826_v61  ;;  %v10829_v27 = vpop.f32.mrb[150].mxu1 }
 0xc8c   : > { %v10830_v0 = vpop.f32.mrb[151].mxu1 }
 0xc8d   : > { %v16699_v36 = vadd.f32 %v10830_v0, %v10829_v27 }
 0xc91   : > { %v10832_v37 = vpop.f32.mrb[152].mxu1 }
 0xc92   : > { %v10833_v9 = vpop.f32.mrb[153].mxu1 }
 0xc93   : > { %v16701_v3 = vadd.f32 %v10833_v9, %v10832_v37  ;;  %v10835_v7 = vpop.f32.mrb[154].mxu1 }
 0xc94   : > { %v10836_v60 = vpop.f32.mrb[155].mxu1 }
 0xc95   : > { %v16703_v63 = vadd.f32 %v10836_v60, %v10835_v7 }
 0xc99   : > { %v10838_v5 = vpop.f32.mrb[156].mxu1 }
 0xc9a   : > { %v10839_v54 = vpop.f32.mrb[157].mxu1 }
 0xc9b   : > { %v16705_v19 = vadd.f32 %v10839_v54, %v10838_v5  ;;  %v10841_v22 = vpop.f32.mrb[158].mxu1 }
 0xc9c   : > { %v10842_v30 = vpop.f32.mrb[159].mxu1 }
 0xc9d   : > { %v16707_v33 = vadd.f32 %v10842_v30, %v10841_v22 }
 0xca1   : > { %v10844_v57 = vpop.f32.mrb[160].mxu1 }
 0xca2   : > { %v10845_v35 = vpop.f32.mrb[161].mxu1 }
 0xca3   : > { %v16709_v8 = vadd.f32 %v10845_v35, %v10844_v57  ;;  %v10847_v2 = vpop.f32.mrb[162].mxu1  ;;  %v9110_v57 = vld [vmem:[%s17599_s3] sm:$0xff] }
 0xca4   : > { %v10848_v16 = vpop.f32.mrb[163].mxu1 }
 0xca5   : > { %v16711_v42 = vadd.f32 %v10848_v16, %v10847_v2  ;;  %v9111_v2 = vld [vmem:[%s17599_s3 + $0x8] sm:$0xff] }
 0xca9   : > { %v10850_v11 = vpop.f32.mrb[164].mxu1 }
 0xcaa   : > { %v10851_v51 = vpop.f32.mrb[165].mxu1 }
 0xcab   : > { %v16713_v14 = vadd.f32 %v10851_v51, %v10850_v11  ;;  %v10853_v13 = vpop.f32.mrb[166].mxu1  ;;  %v9497_v11 = vadd.f32 %v16677_v44, %v9110_v57 }
 0xcac   : > { %v10854_v10 = vpop.f32.mrb[167].mxu1 }
 0xcad   : > { %v16715_v38 = vadd.f32 %v10854_v10, %v10853_v13 }
 0xcb1   : > { %v10856_v46 = vpop.f32.mrb[168].mxu1 }
 0xcb2   : > { %v10857_v23 = vpop.f32.mrb[169].mxu1 }
 0xcb3   : > { %v16717_v59 = vadd.f32 %v10857_v23, %v10856_v46  ;;  %v10859_v26 = vpop.f32.mrb[170].mxu1  ;;  %v9500_v46 = vadd.f32 %v16679_v12, %v9111_v2  ;;  %v9113_v12 = vld [vmem:[%s17599_s3 + $0x18] sm:$0xff] }
 0xcb4   : > { %v10860_v1 = vpop.f32.mrb[171].mxu1 }
 0xcb5   : > { %v16719_v56 = vadd.f32 %v10860_v1, %v10859_v26 }
 0xcb9   : > { %v10862_v40 = vpop.f32.mrb[172].mxu1 }
 0xcba   : > { %v10863_v53 = vpop.f32.mrb[173].mxu1 }
 0xcbb   : > { %v16721_v32 = vadd.f32 %v10863_v53, %v10862_v40  ;;  %v10865_v45 = vpop.f32.mrb[174].mxu1  ;;  %v9112_v53 = vld [vmem:[%s17599_s3 + $0x10] sm:$0xff] }
 0xcbc   : > { %v10866_v24 = vpop.f32.mrb[175].mxu1 }
 0xcbd   : > { %v16723_v49 = vadd.f32 %v10866_v24, %v10865_v45  ;;  %v12158_v45 = vld [vmem:[%s17600_s8 + $0x4] ss:$8 sps:$4 sm:$0x1f]  }
 0xcbe   : > { %9942 = vmatprep.mubr.bf16.mxu1 %v12158_v45  ;;  %v9117_v45 = vld [vmem:[%s17599_s3 + $0x38] sm:$0xff] }
 0xcc1   : > { %v10868_v18 = vpop.f32.mrb[176].mxu1 }
 0xcc2   : > { %v10869_v21 = vpop.f32.mrb[177].mxu1 }
 0xcc3   : > { %v16725_v43 = vadd.f32 %v10869_v21, %v10868_v18  ;;  %v10871_v50 = vpop.f32.mrb[178].mxu1  ;;  %v9505_v21 = vadd.f32 %v16681_v52, %v9112_v53  ;;  %v9114_v52 = vld [vmem:[%s17599_s3 + $0x20] sm:$0xff] }
 0xcc4   : > { %v10872_v17 = vpop.f32.mrb[179].mxu1 }
 0xcc5   : > { %v16727_v62 = vadd.f32 %v10872_v17, %v10871_v50 }
 0xcc9   : > { %v10874_v39 = vpop.f32.mrb[180].mxu1 }
 0xcca   : > { %v10875_v29 = vpop.f32.mrb[181].mxu1 }
 0xccb   : > { %v16729_v25 = vadd.f32 %v10875_v29, %v10874_v39  ;;  %v10877_v47 = vpop.f32.mrb[182].mxu1 }
 0xccc   : > { %v10878_v31 = vpop.f32.mrb[183].mxu1 }
 0xccd   : > { %v16731_v55 = vadd.f32 %v10878_v31, %v10877_v47 }
 0xcd1   : > { %v10880_v61 = vpop.f32.mrb[184].mxu1 }
 0xcd2   : > { %v10881_v58 = vpop.f32.mrb[185].mxu1 }
 0xcd3   : > { %v16733_v27 = vadd.f32 %v10881_v58, %v10880_v61  ;;  %v10883_v0 = vpop.f32.mrb[186].mxu1  ;;  %v9508_v61 = vadd.f32 %v16683_v34, %v9113_v12 }
 0xcd4   : > { %v10884_v37 = vpop.f32.mrb[187].mxu1 }
 0xcd5   : > { %v16735_v9 = vadd.f32 %v10884_v37, %v10883_v0 }
 0xcd9   : > { %v10886_v7 = vpop.f32.mrb[188].mxu1 }
 0xcda   : > { %v10887_v60 = vpop.f32.mrb[189].mxu1 }
 0xcdb   : > { %v16737_v5 = vadd.f32 %v10887_v60, %v10886_v7  ;;  %v10889_v54 = vpop.f32.mrb[190].mxu1 }
 0xcdc   : > { %v10890_v22 = vpop.f32.mrb[191].mxu1 }
 0xcdd   : > { %v16739_v30 = vadd.f32 %v10890_v22, %v10889_v54  ;;  %v9115_v22 = vld [vmem:[%s17599_s3 + $0x28] sm:$0xff] }
 0xce1   : > { %v10908_v35 = vpop.f32.mrb[192].mxu1 }
 0xce2   : > { %v10909_v16 = vpop.f32.mrb[193].mxu1 }
 0xce3   : > { %v10910_v51 = vadd.f32 %v10909_v16, %v10908_v35  ;;  %v10911_v13 = vpop.f32.mrb[194].mxu1  ;;  %v9513_v35 = vadd.f32 %v16685_v15, %v9114_v52  ;;  %v9116_v15 = vld [vmem:[%s17599_s3 + $0x30] sm:$0xff] }
 0xce4   : > { %v10912_v10 = vpop.f32.mrb[195].mxu1 }
 0xce5   : > { %v9658_v23 = vadd.f32 %v10910_v51, %v9497_v11  ;;  %v10913_v26 = vadd.f32 %v10912_v10, %v10911_v13  ;;  %v9516_v10 = vadd.f32 %v16687_v4, %v9115_v22 }
 0xce7   : > { %v9816_v1 = vmul.f32 0.2, %v9658_v23  ;;  %v9661_v40 = vadd.f32 %v10913_v26, %v9500_v46  ;;  %vm9784_vm9 = vcmp.ge.f32.partialorder %v9658_v23, 0.0 }
 0xce9   : > { %vm9785_vm7 = vcmp.ge.f32.partialorder %v9661_v40, 0.0  ;;  %v9817_v44 = vmul.f32 0.2, %v9661_v40  ;;  %v10914_v24 = vpop.f32.mrb[196].mxu1  ;;  %v16759_v50 = vsel %vm9784_vm9, %v9658_v23, %v9816_v1 }
 0xcea   : > { %v10915_v18 = vpop.f32.mrb[197].mxu1 }
 0xceb   : > { %v16761_v17 = vsel %vm9785_vm7, %v9661_v40, %v9817_v44  ;;  %v10916_v39 = vadd.f32 %v10915_v18, %v10914_v24  ;;  %v10917_v29 = vpop.f32.mrb[198].mxu1  ;;  %v9521_v24 = vadd.f32 %v16689_v6, %v9116_v15  ;;  %v9118_v6 = vld [vmem:[%s17599_s3 + $0x40] sm:$0xff] }
 0xcec   : > { %v10918_v47 = vpop.f32.mrb[199].mxu1  ;;  %v9882_v31 = vpack.c.bf16 %v16761_v17, %v16759_v50  ;;  %v9529_v22 = vadd.f32 %v16693_v28, %v9118_v6  ;;  %v9120_v28 = vld [vmem:[%s17599_s3 + $0x50] sm:$0xff] }
 0xced   : > { %v9666_v58 = vadd.f32 %v10916_v39, %v9505_v21  ;;  %v10919_v0 = vadd.f32 %v10918_v47, %v10917_v29  ;;  %v9524_v47 = vadd.f32 %v16691_v41, %v9117_v45 }
 0xcef   : > { %v9818_v37 = vmul.f32 0.2, %v9666_v58  ;;  %v9669_v7 = vadd.f32 %v10919_v0, %v9508_v61  ;;  %vm9786_vm11 = vcmp.ge.f32.partialorder %v9666_v58, 0.0 }
 0xcf1   : > { %vm9787_vm10 = vcmp.ge.f32.partialorder %v9669_v7, 0.0  ;;  %v9819_v60 = vmul.f32 0.2, %v9669_v7  ;;  %v10920_v54 = vpop.f32.mrb[200].mxu1  ;;  %v16773_v34 = vsel %vm9786_vm11, %v9666_v58, %v9818_v37 }
 0xcf2   : > { %v10921_v57 = vpop.f32.mrb[201].mxu1 }
 0xcf3   : > { %v16775_v2 = vsel %vm9787_vm10, %v9669_v7, %v9819_v60  ;;  %v10922_v16 = vadd.f32 %v10921_v57, %v10920_v54  ;;  %v10923_v11 = vpop.f32.mrb[202].mxu1  ;;  %v9119_v60 = vld [vmem:[%s17599_s3 + $0x48] sm:$0xff] }
 0xcf4   : > { %v10924_v51 = vpop.f32.mrb[203].mxu1  ;;  %v9883_v13 = vpack.c.bf16 %v16775_v2, %v16773_v34 }
 0xcf5   : > { %v9674_v46 = vadd.f32 %v10922_v16, %v9513_v35  ;;  %v10925_v23 = vadd.f32 %v10924_v51, %v10923_v11 }
 0xcf7   : > { %v9820_v26 = vmul.f32 0.2, %v9674_v46  ;;  %v9677_v1 = vadd.f32 %v10925_v23, %v9516_v10  ;;  %vm9788_vm1 = vcmp.ge.f32.partialorder %v9674_v46, 0.0  ;;  %v9532_v10 = vadd.f32 %v16695_v20, %v9119_v60  ;;  %v9123_v60 = vld [vmem:[%s17599_s3 + $0x68] sm:$0xff] }
 0xcf9   : > { %vm9789_vm12 = vcmp.ge.f32.partialorder %v9677_v1, 0.0  ;;  %v9821_v40 = vmul.f32 0.2, %v9677_v1  ;;  %v10926_v53 = vpop.f32.mrb[204].mxu1  ;;  %v16787_v4 = vsel %vm9788_vm1, %v9674_v46, %v9820_v26 }
 0xcfa   : > { %v10927_v44 = vpop.f32.mrb[205].mxu1 }
 0xcfb   : > { %v16789_v12 = vsel %vm9789_vm12, %v9677_v1, %v9821_v40  ;;  %v10928_v18 = vadd.f32 %v10927_v44, %v10926_v53  ;;  %v10929_v21 = vpop.f32.mrb[206].mxu1  ;;  %v9121_v53 = vld [vmem:[%s17599_s3 + $0x58] sm:$0xff]  ;;  %v9537_v44 = vadd.f32 %v16697_v48, %v9120_v28  ;;  %v9122_v48 = vld [vmem:[%s17599_s3 + $0x60] sm:$0xff] }
 0xcfc   : > { %v10930_v39 = vpop.f32.mrb[207].mxu1  ;;  %v9884_v29 = vpack.c.bf16 %v16789_v12, %v16787_v4 }
 0xcfd   : > { %v9682_v61 = vadd.f32 %v10928_v18, %v9521_v24  ;;  %v10931_v58 = vadd.f32 %v10930_v39, %v10929_v21 }
 0xcff   : > { %v9822_v0 = vmul.f32 0.2, %v9682_v61  ;;  %v9685_v37 = vadd.f32 %v10931_v58, %v9524_v47  ;;  %vm9790_vm2 = vcmp.ge.f32.partialorder %v9682_v61, 0.0 }
 0xd01   : > { %vm9791_vm13 = vcmp.ge.f32.partialorder %v9685_v37, 0.0  ;;  %v9823_v7 = vmul.f32 0.2, %v9685_v37  ;;  %v10932_v52 = vpop.f32.mrb[208].mxu1  ;;  %v16801_v41 = vsel %vm9790_vm2, %v9682_v61, %v9822_v0  ;;  %v9540_v61 = vadd.f32 %v16699_v36, %v9121_v53 }
 0xd02   : > { %v10933_v54 = vpop.f32.mrb[209].mxu1 }
 0xd03   : > { %v16803_v57 = vsel %vm9791_vm13, %v9685_v37, %v9823_v7  ;;  %v10934_v35 = vadd.f32 %v10933_v54, %v10932_v52  ;;  %v10935_v16 = vpop.f32.mrb[210].mxu1 }
 0xd04   : > { %v10936_v11 = vpop.f32.mrb[211].mxu1  ;;  %v9885_v51 = vpack.c.bf16 %v16803_v57, %v16801_v41 }
 0xd05   : > { %v9690_v46 = vadd.f32 %v10934_v35, %v9529_v22  ;;  %v10937_v23 = vadd.f32 %v10936_v11, %v10935_v16  ;;  %v9545_v22 = vadd.f32 %v16701_v3, %v9122_v48  ;;  %v9124_v3 = vld [vmem:[%s17599_s3 + $0x70] sm:$0xff] }
 0xd07   : > { %v9824_v26 = vmul.f32 0.2, %v9690_v46  ;;  %v9693_v1 = vadd.f32 %v10937_v23, %v9532_v10  ;;  %vm9792_vm14 = vcmp.ge.f32.partialorder %v9690_v46, 0.0  ;;  %v9548_v23 = vadd.f32 %v16703_v63, %v9123_v60 }
 0xd09   : > { %vm9793_vm3 = vcmp.ge.f32.partialorder %v9693_v1, 0.0  ;;  %v9825_v15 = vmul.f32 0.2, %v9693_v1  ;;  %v10938_v40 = vpop.f32.mrb[212].mxu1  ;;  %v16815_v20 = vsel %vm9792_vm14, %v9690_v46, %v9824_v26 }
 0xd0a   : > { %v10939_v45 = vpop.f32.mrb[213].mxu1 }
 0xd0b   : > { %v16817_v24 = vsel %vm9793_vm3, %v9693_v1, %v9825_v15  ;;  %v10940_v18 = vadd.f32 %v10939_v45, %v10938_v40  ;;  %v10941_v21 = vpop.f32.mrb[214].mxu1  ;;  %v9125_v45 = vld [vmem:[%s17599_s3 + $0x78] sm:$0xff] }
 0xd0c   : > { %v10942_v39 = vpop.f32.mrb[215].mxu1  ;;  %v9886_v47 = vpack.c.bf16 %v16817_v24, %v16815_v20 }
 0xd0d   : > { %v9698_v58 = vadd.f32 %v10940_v18, %v9537_v44  ;;  %v10943_v0 = vadd.f32 %v10942_v39, %v10941_v21  ;;  %v9553_v18 = vadd.f32 %v16705_v19, %v9124_v3  ;;  %v9126_v19 = vld [vmem:[%s17599_s3 + $0x80] sm:$0xff] }
 0xd0f   : > { %v9826_v37 = vmul.f32 0.2, %v9698_v58  ;;  %v9701_v6 = vadd.f32 %v10943_v0, %v9540_v61  ;;  %vm9794_vm15 = vcmp.ge.f32.partialorder %v9698_v58, 0.0 }
 0xd11   : > { %vm9795_vm5 = vcmp.ge.f32.partialorder %v9701_v6, 0.0  ;;  %v9827_v7 = vmul.f32 0.2, %v9701_v6  ;;  %v10944_v52 = vpop.f32.mrb[216].mxu1  ;;  %v16829_v36 = vsel %vm9794_vm15, %v9698_v58, %v9826_v37  ;;  %v9556_v37 = vadd.f32 %v16707_v33, %v9125_v45 }
 0xd12   : > { %v10945_v54 = vpop.f32.mrb[217].mxu1 }
 0xd13   : > { %v16831_v35 = vsel %vm9795_vm5, %v9701_v6, %v9827_v7  ;;  %v10946_v16 = vadd.f32 %v10945_v54, %v10944_v52  ;;  %v10947_v11 = vpop.f32.mrb[218].mxu1 }
 0xd14   : > { %v10948_v10 = vpop.f32.mrb[219].mxu1  ;;  %v9887_v46 = vpack.c.bf16 %v16831_v35, %v16829_v36 }
 0xd15   : > { %v9706_v26 = vadd.f32 %v10946_v16, %v9545_v22  ;;  %v10949_v1 = vadd.f32 %v10948_v10, %v10947_v11  ;;  %v9127_v22 = vld [vmem:[%s17599_s3 + $0x88] sm:$0xff]  ;;  %v9561_v11 = vadd.f32 %v16709_v8, %v9126_v19  ;;  %v9128_v8 = vld [vmem:[%s17599_s3 + $0x90] sm:$0xff] }
 0xd17   : > { %v9828_v28 = vmul.f32 0.2, %v9706_v26  ;;  %v9709_v15 = vadd.f32 %v10949_v1, %v9548_v23  ;;  %vm9796_vm0 = vcmp.ge.f32.partialorder %v9706_v26, 0.0 }
 0xd19   : > { %vm9797_vm4 = vcmp.ge.f32.partialorder %v9709_v15, 0.0  ;;  %v9829_v40 = vmul.f32 0.2, %v9709_v15  ;;  %v10950_v53 = vpop.f32.mrb[220].mxu1  ;;  %v16843_v63 = vsel %vm9796_vm0, %v9706_v26, %v9828_v28 }
 0xd1a   : > { %v10951_v44 = vpop.f32.mrb[221].mxu1 }
 0xd1b   : > { %v16845_v21 = vsel %vm9797_vm4, %v9709_v15, %v9829_v40  ;;  %v10952_v39 = vadd.f32 %v10951_v44, %v10950_v53  ;;  %v10953_v61 = vpop.f32.mrb[222].mxu1  ;;  %v9564_v15 = vadd.f32 %v16711_v42, %v9127_v22 }
 0xd1c   : > { %v10954_v58 = vpop.f32.mrb[223].mxu1  ;;  %v9888_v0 = vpack.c.bf16 %v16845_v21, %v16843_v63  ;;  %v9898_v21 = vld [vmem:[%s17601_s27] sm:$0xff] }
 0xd1d   : > { %v9714_v6 = vadd.f32 %v10952_v39, %v9553_v18  ;;  %v10955_v48 = vadd.f32 %v10954_v58, %v10953_v61  ;;  %v9129_v39 = vld [vmem:[%s17599_s3 + $0x98] sm:$0xff]  ;;  %v9569_v58 = vadd.f32 %v16713_v14, %v9128_v8  ;;  %v9130_v14 = vld [vmem:[%s17599_s3 + $0xa0] sm:$0xff] }
 0xd1e   : > { %v9572_v19 = vadd.f32 %v16715_v38, %v9129_v39  ;;  %v9131_v38 = vld [vmem:[%s17599_s3 + $0xa8] sm:$0xff] }
 0xd1f   : > { %v9830_v7 = vmul.f32 0.2, %v9714_v6  ;;  %v9717_v52 = vadd.f32 %v10955_v48, %v9556_v37  ;;  %vm9798_vm6 = vcmp.ge.f32.partialorder %v9714_v6, 0.0 }
 0xd21   : > { %vm9799_vm9 = vcmp.ge.f32.partialorder %v9717_v52, 0.0  ;;  %v9831_v60 = vmul.f32 0.2, %v9717_v52  ;;  %v10956_v54 = vpop.f32.mrb[224].mxu1  ;;  %v16857_v33 = vsel %vm9798_vm6, %v9714_v6, %v9830_v7 }
 0xd22   : > { %v10957_v16 = vpop.f32.mrb[225].mxu1 }
 0xd23   : > { %v16859_v10 = vsel %vm9799_vm9, %v9717_v52, %v9831_v60  ;;  %v10958_v23 = vadd.f32 %v10957_v16, %v10956_v54  ;;  %v10959_v26 = vpop.f32.mrb[226].mxu1 }
 0xd24   : > { %v10960_v1 = vpop.f32.mrb[227].mxu1  ;;  %v9889_v28 = vpack.c.bf16 %v16859_v10, %v16857_v33 }
 0xd25   : > { %v9722_v3 = vadd.f32 %v10958_v23, %v9561_v11  ;;  %v10961_v40 = vadd.f32 %v10960_v1, %v10959_v26  ;;  %v9577_v1 = vadd.f32 %v16717_v59, %v9130_v14  ;;  %v9132_v59 = vld [vmem:[%s17599_s3 + $0xb0] sm:$0xff] }
 0xd27   : > { %v9832_v53 = vmul.f32 0.2, %v9722_v3  ;;  %v9725_v45 = vadd.f32 %v10961_v40, %v9564_v15  ;;  %vm9800_vm7 = vcmp.ge.f32.partialorder %v9722_v3, 0.0 }
 0xd29   : > { %vm9801_vm11 = vcmp.ge.f32.partialorder %v9725_v45, 0.0  ;;  %v9833_v44 = vmul.f32 0.2, %v9725_v45  ;;  %v10962_v18 = vpop.f32.mrb[228].mxu1  ;;  %v9864_v6 = vsel %vm9800_vm7, %v9722_v3, %v9832_v53  ;;  %v9580_v53 = vadd.f32 %v16719_v56, %v9131_v38  ;;  %v9133_v56 = vld [vmem:[%s17599_s3 + $0xb8] sm:$0xff] }
 0xd2a   : > { %v10963_v61 = vpop.f32.mrb[229].mxu1 }
 0xd2b   : > { %v10964_v42 = vadd.f32 %v10963_v61, %v10962_v18  ;;  %v10965_v37 = vpop.f32.mrb[230].mxu1  ;;  %v9865_v48 = vsel %vm9801_vm11, %v9725_v45, %v9833_v44  ;;  %vm9952_vm11 = vcmask 0  }
 0xd2c   : > { %v10966_v7 = vpop.f32.mrb[231].mxu1  ;;  %v9890_v52 = vpack.c.bf16 %v9865_v48, %v9864_v6 }
 0xd2d   : > { %v9730_v60 = vadd.f32 %v10964_v42, %v9569_v58  ;;  %v10967_v54 = vadd.f32 %v10966_v7, %v10965_v37  ;;  %v9585_v42 = vadd.f32 %v16721_v32, %v9132_v59  ;;  %v9588_v7 = vadd.f32 %v16723_v49, %v9133_v56  ;;  %v9134_v32 = vld [vmem:[%s17599_s3 + $0xc0] sm:$0xff]  ;;  %v9135_v49 = vld [vmem:[%s17599_s3 + $0xc8] sm:$0xff] }
 0xd2e   : > { %11004 = vmatprep.subr.bf16.mxu1 %v9890_v52 }
 0xd2f   : > { %v9834_v22 = vmul.f32 0.2, %v9730_v60  ;;  %v9733_v16 = vadd.f32 %v10967_v54, %v9572_v19  ;;  %11005 = vmatpush3.bf16.msra.mxu1 %v9882_v31  ;;  %vm9802_vm10 = vcmp.ge.f32.partialorder %v9730_v60, 0.0 }
 0xd31   : > { %vm9803_vm1 = vcmp.ge.f32.partialorder %v9733_v16, 0.0  ;;  %v9835_v11 = vmul.f32 0.2, %v9733_v16  ;;  %v10968_v23 = vpop.f32.mrb[232].mxu1  ;;  %v9866_v40 = vsel %vm9802_vm10, %v9730_v60, %v9834_v22 }
 0xd32   : > { %v10969_v26 = vpop.f32.mrb[233].mxu1 }
 0xd33   : > { %v10970_v15 = vadd.f32 %v10969_v26, %v10968_v23  ;;  %v10971_v3 = vpop.f32.mrb[234].mxu1  ;;  %v9867_v50 = vsel %vm9803_vm1, %v9733_v16, %v9835_v11  ;;  %v9593_v11 = vadd.f32 %v16725_v43, %v9134_v32  ;;  %v9136_v43 = vld [vmem:[%s17599_s3 + $0xd0] sm:$0xff] }
 0xd34   : > { %v10972_v17 = vpop.f32.mrb[235].mxu1  ;;  %v9891_v31 = vpack.c.bf16 %v9867_v50, %v9866_v40 }
 0xd35   : > { %v9738_v45 = vadd.f32 %v10970_v15, %v9577_v1  ;;  %v10973_v8 = vadd.f32 %v10972_v17, %v10971_v3  ;;  %v9596_v1 = vadd.f32 %v16727_v62, %v9135_v49  ;;  %v9137_v62 = vld [vmem:[%s17599_s3 + $0xd8] sm:$0xff] }
 0xd36   : > { %11006 = vmatprep.subr.bf16.mxu1 %v9891_v31  ;;  %v9604_v59 = vadd.f32 %v16731_v55, %v9137_v62  ;;  %v9139_v55 = vld [vmem:[%s17599_s3 + $0xe8] sm:$0xff] }
 0xd37   : > { %v9836_v44 = vmul.f32 0.2, %v9738_v45  ;;  %v9741_v18 = vadd.f32 %v10973_v8, %v9580_v53  ;;  %11007 = vmatpush3.bf16.msra.mxu1 %v9883_v13  ;;  %vm9804_vm12 = vcmp.ge.f32.partialorder %v9738_v45, 0.0 }
 0xd39   : > { %vm9805_vm2 = vcmp.ge.f32.partialorder %v9741_v18, 0.0  ;;  %v9837_v39 = vmul.f32 0.2, %v9741_v18  ;;  %v10974_v61 = vpop.f32.mrb[236].mxu1  ;;  %v9868_v48 = vsel %vm9804_vm12, %v9738_v45, %v9836_v44  ;;  %v9601_v45 = vadd.f32 %v16729_v25, %v9136_v43  ;;  %v9138_v25 = vld [vmem:[%s17599_s3 + $0xe0] sm:$0xff] }
 0xd3a   : > { %v10975_v58 = vpop.f32.mrb[237].mxu1  ;;  %v9899_v43 = vld [vmem:[%s17602_s6 + $0x8] sm:$0x1] }
 0xd3b   : > { %v10976_v37 = vadd.f32 %v10975_v58, %v10974_v61  ;;  %v10977_v6 = vpop.f32.mrb[238].mxu1  ;;  %v9869_v34 = vsel %vm9805_vm2, %v9741_v18, %v9837_v39 }
 0xd3c   : > { %v10978_v2 = vpop.f32.mrb[239].mxu1  ;;  %v9892_v13 = vpack.c.bf16 %v9869_v34, %v9868_v48  ;;  %v9609_v48 = vadd.f32 %v16733_v27, %v9138_v25  ;;  %v9140_v27 = vld [vmem:[%s17599_s3 + $0xf0] sm:$0xff] }
 0xd3d   : > { %v9746_v52 = vadd.f32 %v10976_v37, %v9585_v42  ;;  %v10979_v19 = vadd.f32 %v10978_v2, %v10977_v6  ;;  %v9617_v49 = vadd.f32 %v16737_v5, %v9140_v27 }
 0xd3e   : > { %11008 = vmatprep.subr.bf16.mxu1 %v9892_v13 }
 0xd3f   : > { %v9838_v60 = vmul.f32 0.2, %v9746_v52  ;;  %v9749_v54 = vadd.f32 %v10979_v19, %v9588_v7  ;;  %11009 = vmatpush3.bf16.msra.mxu1 %v9884_v29  ;;  %vm9806_vm13 = vcmp.ge.f32.partialorder %v9746_v52, 0.0  ;;  %v9612_v7 = vadd.f32 %v16735_v9, %v9139_v55  ;;  %v9141_v9 = vld [vmem:[%s17599_s3 + $0xf8] sm:$0xff] }
 0xd41   : > { %vm9807_vm14 = vcmp.ge.f32.partialorder %v9749_v54, 0.0  ;;  %v9839_v22 = vmul.f32 0.2, %v9749_v54  ;;  %v10980_v16 = vpop.f32.mrb[240].mxu1  ;;  %v9870_v26 = vsel %vm9806_vm13, %v9746_v52, %v9838_v60 }
 0xd42   : > { %v10981_v14 = vpop.f32.mrb[241].mxu1 }
 0xd43   : > { %v10982_v23 = vadd.f32 %v10981_v14, %v10980_v16  ;;  %v10983_v38 = vpop.f32.mrb[242].mxu1  ;;  %v9871_v4 = vsel %vm9807_vm14, %v9749_v54, %v9839_v22 }
 0xd44   : > { %v10984_v12 = vpop.f32.mrb[243].mxu1  ;;  %v9893_v29 = vpack.c.bf16 %v9871_v4, %v9870_v26 }
 0xd45   : > { %v9754_v15 = vadd.f32 %v10982_v23, %v9593_v11  ;;  %v10985_v3 = vadd.f32 %v10984_v12, %v10983_v38  ;;  %v9620_v38 = vadd.f32 %v16739_v30, %v9141_v9  ;;  %v12156_v30 = vld [vmem:[%s17600_s8] ss:$8 sps:$4 sm:$0x1f]  }
 0xd46   : > { %11010 = vmatprep.subr.bf16.mxu1 %v9893_v29 }
 0xd47   : > { %v9840_v40 = vmul.f32 0.2, %v9754_v15  ;;  %v9757_v50 = vadd.f32 %v10985_v3, %v9596_v1  ;;  %11011 = vmatpush3.bf16.msra.mxu1 %v9885_v51  ;;  %vm9808_vm3 = vcmp.ge.f32.partialorder %v9754_v15, 0.0 }
 0xd49   : > { %vm9809_vm15 = vcmp.ge.f32.partialorder %v9757_v50, 0.0  ;;  %v9841_v17 = vmul.f32 0.2, %v9757_v50  ;;  %v10986_v31 = vpop.f32.mrb[244].mxu1  ;;  %v9872_v18 = vsel %vm9808_vm3, %v9754_v15, %v9840_v40 }
 0xd4a   : > { %v10987_v53 = vpop.f32.mrb[245].mxu1 }
 0xd4b   : > { %v10988_v8 = vadd.f32 %v10987_v53, %v10986_v31  ;;  %v10989_v44 = vpop.f32.mrb[246].mxu1  ;;  %v9873_v41 = vsel %vm9809_vm15, %v9757_v50, %v9841_v17 }
 0xd4c   : > { %v10990_v57 = vpop.f32.mrb[247].mxu1  ;;  %v9894_v51 = vpack.c.bf16 %v9873_v41, %v9872_v18 }
 0xd4d   : > { %v9762_v39 = vadd.f32 %v10988_v8, %v9601_v45  ;;  %v10991_v61 = vadd.f32 %v10990_v57, %v10989_v44 }
 0xd4e   : > { %11012 = vmatprep.subr.bf16.mxu1 %v9894_v51 }
 0xd4f   : > { %v9842_v56 = vmul.f32 0.2, %v9762_v39  ;;  %v9765_v58 = vadd.f32 %v10991_v61, %v9604_v59  ;;  %11013 = vmatpush3.bf16.msra.mxu1 %v9886_v47  ;;  %vm9810_vm5 = vcmp.ge.f32.partialorder %v9762_v39, 0.0 }
 0xd51   : > { %vm9811_vm0 = vcmp.ge.f32.partialorder %v9765_v58, 0.0  ;;  %v9843_v42 = vmul.f32 0.2, %v9765_v58  ;;  %v10992_v37 = vpop.f32.mrb[248].mxu1  ;;  %v9874_v13 = vsel %vm9810_vm5, %v9762_v39, %v9842_v56 }
 0xd52   : > { %v10993_v6 = vpop.f32.mrb[249].mxu1 }
 0xd53   : > { %v10994_v34 = vadd.f32 %v10993_v6, %v10992_v37  ;;  %v10995_v2 = vpop.f32.mrb[250].mxu1  ;;  %v9875_v20 = vsel %vm9811_vm0, %v9765_v58, %v9843_v42 }
 0xd54   : > { %v10996_v24 = vpop.f32.mrb[251].mxu1  ;;  %v9895_v47 = vpack.c.bf16 %v9875_v20, %v9874_v13 }
 0xd55   : > { %v9770_v52 = vadd.f32 %v10994_v34, %v9609_v48  ;;  %v10997_v19 = vadd.f32 %v10996_v24, %v10995_v2 }
 0xd56   : > { %11014 = vmatprep.subr.bf16.mxu1 %v9895_v47 }
 0xd57   : > { %v9844_v60 = vmul.f32 0.2, %v9770_v52  ;;  %v9773_v54 = vadd.f32 %v10997_v19, %v9612_v7  ;;  %11015 = vmatpush3.bf16.msra.mxu1 %v9887_v46  ;;  %vm9812_vm4 = vcmp.ge.f32.partialorder %v9770_v52, 0.0 }
 0xd59   : > { %vm9813_vm6 = vcmp.ge.f32.partialorder %v9773_v54, 0.0  ;;  %v9845_v32 = vmul.f32 0.2, %v9773_v54  ;;  %v10998_v22 = vpop.f32.mrb[252].mxu1  ;;  %v9876_v23 = vsel %vm9812_vm4, %v9770_v52, %v9844_v60 }
 0xd5a   : > { %v10999_v16 = vpop.f32.mrb[253].mxu1 }
 0xd5b   : > { %v11000_v14 = vadd.f32 %v10999_v16, %v10998_v22  ;;  %v11001_v11 = vpop.f32.mrb[254].mxu1  ;;  %v9877_v36 = vsel %vm9813_vm6, %v9773_v54, %v9845_v32 }
 0xd5c   : > { %v11002_v35 = vpop.f32.mrb[255].mxu1  ;;  %v9896_v46 = vpack.c.bf16 %v9877_v36, %v9876_v23 }
 0xd5d   : > { %v9778_v26 = vadd.f32 %v11000_v14, %v9617_v49  ;;  %v11003_v4 = vadd.f32 %v11002_v35, %v11001_v11 }
 0xd5e   : > { %11016 = vmatprep.subr.bf16.mxu1 %v9896_v46 }
 0xd5f   : > { %v9846_v12 = vmul.f32 0.2, %v9778_v26  ;;  %v9781_v29 = vadd.f32 %v11003_v4, %v9620_v38  ;;  %11017 = vmatpush3.bf16.msra.mxu1 %v9888_v0  ;;  %vm9814_vm9 = vcmp.ge.f32.partialorder %v9778_v26, 0.0 }
 0xd61   : > { %vm9815_vm7 = vcmp.ge.f32.partialorder %v9781_v29, 0.0  ;;  %v9847_v5 = vmul.f32 0.2, %v9781_v29  ;;  %v9878_v1 = vsel %vm9814_vm9, %v9778_v26, %v9846_v12 }
 0xd63   : > { %v9879_v15 = vsel %vm9815_vm7, %v9781_v29, %v9847_v5 }
 0xd64   : > { %v9897_v3 = vpack.c.bf16 %v9879_v15, %v9878_v1 }
 0xd66   : > { %11018 = vmatprep.subr.bf16.mxu1 %v9897_v3 }
 0xd67   : > { %11019 = vmatpush3.bf16.msra.mxu1 %v9889_v28 }
 0xd6a   : > { %9943 = vmatmul.mubr.bf16.vlgmr.msra.gmra.mrb[0].mxu1 %v12156_v30 }
 0xe3d   : > { %v11020_v63 = vpop.f32.mrb[0].mxu1 }
 0xe3e   : > { %v11021_v0 = vpop.f32.mrb[1].mxu1 }
 0xe3f   : > { %v11022_v40 = vadd.f32 %v11021_v0, %v11020_v63  ;;  %v11023_v50 = vpop.f32.mrb[2].mxu1 }
 0xe40   : > { %v11024_v17 = vpop.f32.mrb[3].mxu1 }
 0xe41   : > { %v9945_v31 = vadd.f32 %v11022_v40, %v9898_v21  ;;  %v11025_v62 = vadd.f32 %v11024_v17, %v11023_v50 }
 0xe43   : > { %9951 = vst.msk [vmem:[%s12503_s10] sm:$0xff] %vm5741_vm8, %v9945_v31  ;;  %v9948_v33 = vadd.f32 %v11025_v62, %v9899_v43 }
 0xe45   : > { %9953 = vst.msk [vmem:[%s12503_s10 + $0x8] sm:$0x1] %vm9952_vm11, %v9948_v33 }
 0xe46 PF: > { %s25_s14 = sadd.s32 1, %s12277_s14   ;;  %s17603_s11 = sld [smem:[#allocation12_spill]] }
 0xe47   : > { %p22_p1 = scmp.ge.s32.totalorder %s25_s14, 6   ;;  %s17604_s24 = sld [smem:[#allocation10_spill]] }
 0xe48   : > { %s17605_s20 = sld [smem:[#allocation11_spill]]  ;;  %s17606_s25 = smov %s12257_s26 }
 0xe49   : > { %s17608_s27 = smov %s12269_s29  ;;  %s17609_s28 = smov %s12273_s30 }
 0xe4a   :  { %24 = sbr.rel (!%p22_p1) target bundleno = 14 (0xe), region = 172 }
 0xe4c   : > { %s17607_s26 = smov %s17603_s11 }
 0xe4d   : > { %s17610_s29 = smov %s17604_s24 }
 0xe4e   : > { %s17611_s30 = smov %s17605_s20 }
 0xe51   :  { %9975 = vsyncpa [#allocation5], 1 }
 0xe52   :  { %9977 = vsyncpa [#allocation5 + $0x1], 1 }
 0xe53   :  { %9978 = vsyncpa [#allocation7], 1 }

</bundles_post_ra>
